<compile_context>
chip_gen: v6e
topology: v6e:2x2x1
jax: 0.10.0
libtpu: 0.0.40
codegen_flags: <defaults>
</compile_context>

<pallas_src>
import functools

import jax
import jax.numpy as jnp
from jax.experimental import pallas as pl
from jax.experimental.pallas import tpu as pltpu

PRELU_ALPHA = 0.25  # nn.PReLU() default init value


# ---------------------------------------------------------------------------
# Pallas kernel: single-shot matmul + bias + activation (+ fused residual add)
# ---------------------------------------------------------------------------
@functools.lru_cache(maxsize=None)
def _make_kernel(act, alpha, has_res):
    def act_fn(z):
        if act == "relu":
            return jnp.maximum(z, 0.0)
        if act == "prelu":
            return jnp.where(z > 0, z, alpha * z)
        return z

    if has_res:
        def kernel(x_ref, w_ref, b_ref, r_ref, o_ref):
            z = jnp.dot(x_ref[...], w_ref[...],
                        preferred_element_type=jnp.float32)
            z = act_fn(z + b_ref[...])
            o_ref[...] = act_fn(z + r_ref[...]).astype(o_ref.dtype)
    else:
        def kernel(x_ref, w_ref, b_ref, o_ref):
            z = jnp.dot(x_ref[...], w_ref[...],
                        preferred_element_type=jnp.float32)
            o_ref[...] = act_fn(z + b_ref[...]).astype(o_ref.dtype)
    return kernel


def _pick_tm(mp, k, n):
    """mp is a multiple of 8.  Pick the largest tile <= 512 that divides mp
    and keeps the double-buffered working set comfortably inside VMEM.
    Footprint ~ TM*(4K bf16-in x2buf + 16N f32 out+res x2buf) bytes."""
    budget = 8 << 20
    for tm in (512, 256, 128, 64, 32, 16, 8):
        if mp % tm == 0 and tm * (4 * k + 16 * n) <= budget:
            return tm
    return 8


def fused_matmul(patches, wmat, bias, *, act="none", alpha=PRELU_ALPHA,
                 res=None):
    """patches (M,K) f32 -> bf16, wmat (K,N) bf16 (BN scale folded), bias (N,).

    Returns act(patches @ wmat + bias) in f32, or, if `res` (M,N) is given,
    act(act(patches @ wmat + bias) + res)  (bottleneck residual fusion).
    """
    M, K = patches.shape
    N = wmat.shape[1]
    Mp = -(-M // 8) * 8
    xb = patches.astype(jnp.bfloat16)
    if Mp != M:
        xb = jnp.pad(xb, ((0, Mp - M), (0, 0)))
    TM = _pick_tm(Mp, K, N)
    b2 = bias.reshape(1, N).astype(jnp.float32)

    args = [xb, wmat.astype(jnp.bfloat16), b2]
    in_specs = [
        pl.BlockSpec((TM, K), lambda i: (i, 0)),   # K = full dim, no padding
        pl.BlockSpec((K, N), lambda i: (0, 0)),    # whole weight resident
        pl.BlockSpec((1, N), lambda i: (0, 0)),
    ]
    if res is not None:
        r = res.astype(jnp.float32)
        if Mp != M:
            r = jnp.pad(r, ((0, Mp - M), (0, 0)))
        args.append(r)
        in_specs.append(pl.BlockSpec((TM, N), lambda i: (i, 0)))

    bytes_accessed = Mp * K * 2 + K * N * 2 + Mp * N * 4
    if res is not None:
        bytes_accessed += Mp * N * 4

    out = pl.pallas_call(
        _make_kernel(act, float(alpha), res is not None),
        out_shape=jax.ShapeDtypeStruct((Mp, N), jnp.float32),
        grid=(Mp // TM,),
        in_specs=in_specs,
        out_specs=pl.BlockSpec((TM, N), lambda i: (i, 0)),
        compiler_params=pltpu.CompilerParams(
            dimension_semantics=("parallel",)),
        cost_estimate=pl.CostEstimate(flops=2 * Mp * K * N, transcendentals=0,
                                      bytes_accessed=bytes_accessed),
    )(*args)
    if Mp != M:
        out = out[:M]
    return out


# ---------------------------------------------------------------------------
# Conv wrappers (im2col only for k>1; 1x1 convs are pure matmuls)
# ---------------------------------------------------------------------------
def conv2d_fused(x, wmat, bias, *, kh=1, kw=1, stride=1, pad_h=0, pad_w=0,
                 dil_h=1, dil_w=1, act="none", alpha=PRELU_ALPHA, res=None):
    n, h, w, c = x.shape
    if kh == 1 and kw == 1 and stride == 1 and pad_h == 0 and pad_w == 0:
        ho, wo = h, w
        patches = x.reshape(n * h * w, c)
    else:
        xp = jnp.pad(x, ((0, 0), (pad_h, pad_h), (pad_w, pad_w), (0, 0)))
        hp, wp = h + 2 * pad_h, w + 2 * pad_w
        ho = (hp - dil_h * (kh - 1) - 1) // stride + 1
        wo = (wp - dil_w * (kw - 1) - 1) // stride + 1
        cols = []
        for i in range(kh):
            for j in range(kw):
                ii, jj = i * dil_h, j * dil_w
                cols.append(xp[:, ii:ii + (ho - 1) * stride + 1:stride,
                               jj:jj + (wo - 1) * stride + 1:stride, :])
        patches = jnp.concatenate(cols, axis=-1).reshape(n * ho * wo,
                                                         kh * kw * c)
    res_flat = None if res is None else res.reshape(n * ho * wo, -1)
    out = fused_matmul(patches, wmat, bias, act=act, alpha=alpha, res=res_flat)
    return out.reshape(n, ho, wo, -1)


def conv_transpose_s2_fused(x, w_big, bias4, *, act="none",
                            alpha=PRELU_ALPHA):
    """ConvTranspose2d(k=3, s=2, p=1, op=1) via the 4-parity (sub-pixel)
    decomposition: one matmul with K=4*Cin, N=4*Cout, then interleave."""
    n, h, w, c = x.shape
    cout = w_big.shape[1] // 4
    xp = jnp.pad(x, ((0, 0), (0, 1), (0, 1), (0, 0)))
    t0 = x                                # x[m,   n  ]
    t1 = xp[:, :h, 1:w + 1, :]            # x[m,   n+1]
    t2 = xp[:, 1:h + 1, :w, :]            # x[m+1, n  ]
    t3 = xp[:, 1:h + 1, 1:w + 1, :]       # x[m+1, n+1]
    patches = jnp.concatenate([t0, t1, t2, t3], axis=-1).reshape(n * h * w,
                                                                 4 * c)
    out = fused_matmul(patches, w_big, bias4, act=act, alpha=alpha)
    out = out.reshape(n, h, w, 2, 2, cout)          # parity p = 2*r + s
    out = jnp.transpose(out, (0, 1, 3, 2, 4, 5)).reshape(n, 2 * h, 2 * w, cout)
    return out


# ---------------------------------------------------------------------------
# MaxPool (with PyTorch-style flat indices) and MaxUnpool — plain-JAX glue
# ---------------------------------------------------------------------------
def maxpool2d(x, kernel=3, stride=2, pad=1, return_indices=False):
    n, h, w, c = x.shape
    ho = (h + 2 * pad - kernel) // stride + 1
    wo = (w + 2 * pad - kernel) // stride + 1
    xp = jnp.pad(x, ((0, 0), (pad, pad), (pad, pad), (0, 0)),
                 constant_values=-jnp.inf)
    rows = jnp.arange(ho) * stride - pad
    colsg = jnp.arange(wo) * stride - pad
    vals, flats = [], []
    for ki in range(kernel):
        for kj in range(kernel):
            vals.append(xp[:, ki:ki + (ho - 1) * stride + 1:stride,
                           kj:kj + (wo - 1) * stride + 1:stride, :])
            flats.append((rows + ki)[:, None] * w + (colsg + kj)[None, :])
    vals = jnp.stack(vals, axis=-1)                       # (n,ho,wo,c,K*K)
    pooled = jnp.max(vals, axis=-1)
    if not return_indices:
        return pooled
    flats = jnp.stack(flats, axis=-1)                     # (ho,wo,K*K)
    am = jnp.argmax(vals, axis=-1)                        # (n,ho,wo,c)
    idx = jnp.broadcast_to(flats[None, :, :, None, :], vals.shape)
    flat_idx = jnp.take_along_axis(idx, am[..., None], axis=-1)[..., 0]
    return pooled, flat_idx.astype(jnp.int32)


def max_unpool2d(x, indices, out_h, out_w):
    n, h, w, c = x.shape
    xc = jnp.transpose(x, (0, 3, 1, 2)).reshape(n * c, h * w)
    ic = jnp.transpose(indices, (0, 3, 1, 2)).reshape(n * c, h * w)
    out = jnp.zeros((n * c, out_h * out_w), x.dtype)
    out = jax.vmap(lambda o, ix, v: o.at[ix].set(v))(out, ic, xc)
    return jnp.transpose(out.reshape(n, c, out_h, out_w), (0, 2, 3, 1))


def _prelu(z, alpha=PRELU_ALPHA):
    return jnp.where(z > 0, z, alpha * z)


# ---------------------------------------------------------------------------
# Parameter construction (synthetic, deterministic; BN folded, bf16 weights)
# ---------------------------------------------------------------------------
def _bn_fold(key, c, eps=1e-5):
    k1, k2, k3 = jax.random.split(key, 3)
    gamma = 1.0 + 0.1 * jax.random.normal(k1, (c,), jnp.float32)
    beta = 0.1 * jax.random.normal(k2, (c,), jnp.float32)
    mean = 0.1 * jax.random.normal(k3, (c,), jnp.float32)
    var = jnp.ones((c,), jnp.float32)
    scale = gamma / jnp.sqrt(var + eps)
    shift = beta - mean * scale
    return scale, shift


def _conv_bn(key, kh, kw, cin, cout, with_bn=True):
    kw_, kb = jax.random.split(key)
    std = (2.0 / (kh * kw * cin)) ** 0.5
    w = std * jax.random.normal(kw_, (kh, kw, cin, cout), jnp.float32)
    if with_bn:
        scale, shift = _bn_fold(kb, cout)
    else:
        scale = jnp.ones((cout,), jnp.float32)
        shift = jnp.zeros((cout,), jnp.float32)
    wmat = (w * scale).reshape(kh * kw * cin, cout).astype(jnp.bfloat16)
    return wmat, shift


def _build_deconv_wbig(W):
    """W (3,3,cin,cout): ConvTranspose taps (out[o] += x[i]*W[k], o=2i-1+k).
    Returns the combined 4-parity weight (4*cin, 4*cout)."""
    cin, cout = W.shape[2], W.shape[3]
    Wb = jnp.zeros((4, cin, 4, cout), jnp.float32)
    Wb = Wb.at[0, :, 0, :].set(W[1, 1])                       # (even, even)
    Wb = Wb.at[1, :, 1, :].set(W[1, 0])                       # (even, odd)
    Wb = Wb.at[0, :, 1, :].set(W[1, 2])
    Wb = Wb.at[2, :, 2, :].set(W[0, 1])                       # (odd, even)
    Wb = Wb.at[0, :, 2, :].set(W[2, 1])
    Wb = Wb.at[3, :, 3, :].set(W[0, 0])                       # (odd, odd)
    Wb = Wb.at[2, :, 3, :].set(W[0, 2])
    Wb = Wb.at[1, :, 3, :].set(W[2, 0])
    Wb = Wb.at[0, :, 3, :].set(W[2, 2])
    return Wb.reshape(4 * cin, 4 * cout)


def _deconv_bn(key, cin, cout, with_bn=True):
    kw_, kb = jax.random.split(key)
    std = (2.0 / (9 * cin)) ** 0.5
    W = std * jax.random.normal(kw_, (3, 3, cin, cout), jnp.float32)
    if with_bn:
        scale, shift = _bn_fold(kb, cout)
    else:
        scale = jnp.ones((cout,), jnp.float32)
        shift = jnp.zeros((cout,), jnp.float32)
    wbig = _build_deconv_wbig(W * scale).astype(jnp.bfloat16)
    return wbig, jnp.tile(shift, (4,)).astype(jnp.float32)


def _make_downsample_params(key, cin, cout):
    internal = cin // 4
    ks = jax.random.split(key, 3)
    d = {}
    d["w1"], d["b1"] = _conv_bn(ks[0], 2, 2, cin, internal)
    d["w2"], d["b2"] = _conv_bn(ks[1], 3, 3, internal, internal)
    d["w3"], d["b3"] = _conv_bn(ks[2], 1, 1, internal, cout)
    return d


def _make_regular_params(key, ch, asym=False):
    internal = ch // 4
    ks = jax.random.split(key, 4)
    r = {}
    r["w1"], r["b1"] = _conv_bn(ks[0], 1, 1, ch, internal)
    if asym:
        ka, kb = jax.random.split(ks[1])
        r["w2a"], r["b2a"] = _conv_bn(ka, 5, 1, internal, internal)
        r["w2b"], r["b2b"] = _conv_bn(kb, 1, 5, internal, internal)
    else:
        r["w2"], r["b2"] = _conv_bn(ks[1], 3, 3, internal, internal)
    r["w3"], r["b3"] = _conv_bn(ks[2], 1, 1, internal, ch)
    return r


def _make_upsample_params(key, cin, cout):
    internal = cin // 4
    ks = jax.random.split(key, 4)
    u = {}
    u["mw"], u["mb"] = _conv_bn(ks[0], 1, 1, cin, cout)      # main conv + BN
    u["w1"], u["b1"] = _conv_bn(ks[1], 1, 1, cin, internal)
    u["w2"], u["b2"] = _deconv_bn(ks[2], internal, internal)
    u["w3"], u["b3"] = _conv_bn(ks[3], 1, 1, internal, cout)
    return u


# (kind, dilation) pattern shared by stages 2 and 3 of ENet.
STAGE_CFG = (("regular", 1), ("dilated", 2), ("asym", 1), ("dilated", 4),
             ("regular", 1), ("dilated", 8), ("asym", 1), ("dilated", 16))


def init_enet_params(key, num_classes):
    keys = iter(jax.random.split(key, 64))
    p = {}
    # InitialBlock(3, 16, k=3, s=2, p=1): conv(3->13) || maxpool(3ch), BN(16)
    std = (2.0 / 27.0) ** 0.5
    w_init = std * jax.random.normal(next(keys), (3, 3, 3, 13), jnp.float32)
    scale16, shift16 = _bn_fold(next(keys), 16)
    p["init_wmat"] = (w_init * scale16[:13]).reshape(27, 13).astype(jnp.bfloat16)
    p["init_b"] = shift16[:13]
    p["init_ext_scale"] = scale16[13:]
    p["init_ext_shift"] = shift16[13:]

    p["down1"] = _make_downsample_params(next(keys), 16, 64)
    p["stage1"] = [_make_regular_params(next(keys), 64) for _ in range(4)]
    p["down2"] = _make_downsample_params(next(keys), 64, 128)
    p["stage2"] = [_make_regular_params(next(keys), 128, asym=(k == "asym"))
                   for k, _ in STAGE_CFG]
    p["stage3"] = [_make_regular_params(next(keys), 128, asym=(k == "asym"))
                   for k, _ in STAGE_CFG]
    p["up4"] = _make_upsample_params(next(keys), 128, 64)
    p["stage4"] = [_make_regular_params(next(keys), 64) for _ in range(2)]
    p["up5"] = _make_upsample_params(next(keys), 64, 16)
    p["stage5"] = [_make_regular_params(next(keys), 16)]

    # final ConvTranspose2d(16, num_classes, 3, 2, 1, 1, bias=False)
    Wf = ((2.0 / (9 * 16)) ** 0.5) * jax.random.normal(
        next(keys), (3, 3, 16, num_classes), jnp.float32)
    p["final_w"] = _build_deconv_wbig(Wf).astype(jnp.bfloat16)
    p["final_b"] = jnp.zeros((4 * num_classes,), jnp.float32)
    return p


# ---------------------------------------------------------------------------
# Bottleneck blocks
# ---------------------------------------------------------------------------
def _downsample(x, dp, out_c, act):
    n, h, w, c = x.shape
    pooled, idx = maxpool2d(x, 3, 2, 1, return_indices=True)
    main = jnp.pad(pooled, ((0, 0), (0, 0), (0, 0), (0, out_c - c)))
    e = conv2d_fused(x, dp["w1"], dp["b1"], kh=2, kw=2, stride=2, act=act)
    e = conv2d_fused(e, dp["w2"], dp["b2"], kh=3, kw=3, pad_h=1, pad_w=1,
                     act=act)
    out = conv2d_fused(e, dp["w3"], dp["b3"], act=act, res=main)
    return out, idx


def _regular(x, bp, act, dil=1):
    e = conv2d_fused(x, bp["w1"], bp["b1"], act=act)
    e = conv2d_fused(e, bp["w2"], bp["b2"], kh=3, kw=3, pad_h=dil, pad_w=dil,
                     dil_h=dil, dil_w=dil, act=act)
    return conv2d_fused(e, bp["w3"], bp["b3"], act=act, res=x)


def _asymmetric(x, bp, act):
    e = conv2d_fused(x, bp["w1"], bp["b1"], act=act)
    e = conv2d_fused(e, bp["w2a"], bp["b2a"], kh=5, kw=1, pad_h=2, act=act)
    e = conv2d_fused(e, bp["w2b"], bp["b2b"], kh=1, kw=5, pad_w=2, act=act)
    return conv2d_fused(e, bp["w3"], bp["b3"], act=act, res=x)


def _block(x, bp, kind, dil, act):
    if kind == "asym":
        return _asymmetric(x, bp, act)
    return _regular(x, bp, act, dil=dil)


def _upsample(x, up, idx, act):
    n, h, w, c = x.shape
    main = conv2d_fused(x, up["mw"], up["mb"], act="none")      # conv + BN
    main = max_unpool2d(main, idx, 2 * h, 2 * w)
    e = conv2d_fused(x, up["w1"], up["b1"], act=act)
    e = conv_transpose_s2_fused(e, up["w2"], up["b2"], act=act)
    return conv2d_fused(e, up["w3"], up["b3"], act=act, res=main)


# ---------------------------------------------------------------------------
# Full ENet forward (eval-mode semantics)
# ---------------------------------------------------------------------------
def enet_forward(x_nchw, params):
    p = params
    x = jnp.transpose(x_nchw, (0, 2, 3, 1)).astype(jnp.float32)   # NHWC

    # InitialBlock: conv(3->13, s2) || maxpool(3ch), concat, BN, PReLU
    main = conv2d_fused(x, p["init_wmat"], p["init_b"], kh=3, kw=3, stride=2,
                        pad_h=1, pad_w=1, act="prelu")
    ext = maxpool2d(x, 3, 2, 1)
    ext = _prelu(ext * p["init_ext_scale"] + p["init_ext_shift"])
    x = jnp.concatenate([main, ext], axis=-1)                     # 16 ch

    # Stage 1 (encoder, PReLU)
    x, idx1 = _downsample(x, p["down1"], 64, act="prelu")
    for bp in p["stage1"]:
        x = _regular(x, bp, act="prelu")

    # Stages 2 & 3 (encoder, PReLU)
    x, idx2 = _downsample(x, p["down2"], 128, act="prelu")
    for bp, (kind, dil) in zip(p["stage2"], STAGE_CFG):
        x = _block(x, bp, kind, dil, act="prelu")
    for bp, (kind, dil) in zip(p["stage3"], STAGE_CFG):
        x = _block(x, bp, kind, dil, act="prelu")

    # Stage 4 & 5 (decoder, ReLU)
    x = _upsample(x, p["up4"], idx2, act="relu")
    for bp in p["stage4"]:
        x = _regular(x, bp, act="relu")
    x = _upsample(x, p["up5"], idx1, act="relu")
    x = _regular(x, p["stage5"][0], act="relu")

    # Final ConvTranspose2d(16, num_classes, 3, 2, 1, 1, bias=False)
    x = conv_transpose_s2_fused(x, p["final_w"], p["final_b"], act="none")
    return jnp.transpose(x, (0, 3, 1, 2))                         # NCHW


if __name__ == "__main__":
    key = jax.random.PRNGKey(0)
    kx, kp = jax.random.split(key)

    NUM_CLASSES = 4
    x = jax.random.normal(kx, (2, 3, 32, 32), jnp.float32)
    params = init_enet_params(kp, NUM_CLASSES)

    fwd = jax.jit(enet_forward)
    out = jax.block_until_ready(fwd(x, params))

    assert out.shape == (2, NUM_CLASSES, 32, 32), out.shape
    assert bool(jnp.all(jnp.isfinite(out)))
    print("KERNEL_OK")
</pallas_src>

<mosaic_0001>
module attributes {stable_mosaic.version = 11 : i64} {
  func.func @kernel(%arg0: i32, %arg1: memref<512x27xbf16, #tpu.memory_space<vmem>>, %arg2: memref<27x13xbf16, #tpu.memory_space<vmem>>, %arg3: memref<1x13xf32, #tpu.memory_space<vmem>>, %arg4: memref<512x13xf32, #tpu.memory_space<vmem>>) attributes {dimension_semantics = [#tpu.dimension_semantics<parallel>], iteration_bounds = array<i64: 1>, scalar_prefetch = 0 : i64, scratch_operands = 0 : i64, tpu.core_type = #tpu.core_type<tc>, window_params = [{transform_indices = @transform_0, window_bounds = array<i64: 512, 27>}, {pipeline_mode = #tpu.pipeline_mode<synchronous>, transform_indices = @transform_1, window_bounds = array<i64: 27, 13>}, {pipeline_mode = #tpu.pipeline_mode<synchronous>, transform_indices = @transform_2, window_bounds = array<i64: 1, 13>}, {transform_indices = @transform_3, window_bounds = array<i64: 512, 13>}]} {
    %c0 = arith.constant 0 : index
    %c0_0 = arith.constant 0 : index
    %0 = vector.load %arg1[%c0, %c0_0] : memref<512x27xbf16, #tpu.memory_space<vmem>>, vector<512x27xbf16>
    %c0_1 = arith.constant 0 : index
    %c0_2 = arith.constant 0 : index
    %1 = vector.load %arg2[%c0_1, %c0_2] : memref<27x13xbf16, #tpu.memory_space<vmem>>, vector<27x13xbf16>
    %cst = arith.constant dense<0.000000e+00> : vector<512x13xf32>
    %2 = tpu.matmul %0, %1, %cst {dimension_numbers = #tpu.dot_dimension_numbers<[1], [0], [0], [1], [0, 0, 1, 1], [], []>} : vector<512x27xbf16>, vector<27x13xbf16>, vector<512x13xf32> -> vector<512x13xf32>
    %c0_3 = arith.constant 0 : index
    %c0_4 = arith.constant 0 : index
    %3 = vector.load %arg3[%c0_3, %c0_4] : memref<1x13xf32, #tpu.memory_space<vmem>>, vector<1x13xf32>
    %4 = vector.broadcast %3 : vector<1x13xf32> to vector<512x13xf32>
    %5 = arith.addf %2, %4 : vector<512x13xf32>
    %cst_5 = arith.constant 0.000000e+00 : f32
    %6 = vector.broadcast %cst_5 : f32 to vector<512x13xf32>
    %7 = arith.cmpf ogt, %5, %6 : vector<512x13xf32>
    %cst_6 = arith.constant 2.500000e-01 : f32
    %8 = vector.broadcast %cst_6 : f32 to vector<512x13xf32>
    %9 = arith.mulf %8, %5 : vector<512x13xf32>
    %10 = arith.select %7, %5, %9 : vector<512x13xi1>, vector<512x13xf32>
    %c0_7 = arith.constant 0 : index
    %c0_8 = arith.constant 0 : index
    %11 = vector.load %arg4[%c0_7, %c0_8] : memref<512x13xf32, #tpu.memory_space<vmem>>, vector<512x13xf32>
    tpu.vector_store %arg4[%c0_7, %c0_8], %10 {strides = array<i32>} : memref<512x13xf32, #tpu.memory_space<vmem>>, vector<512x13xf32>,
    return
  }
  func.func @transform_0(%arg0: i32) -> (i32, i32) {
    %c0_i32 = arith.constant 0 : i32
    %c0_i32_0 = arith.constant 0 : i32
    return %arg0, %c0_i32 : i32, i32
  }
  func.func @transform_1(%arg0: i32) -> (i32, i32) {
    %c0_i32 = arith.constant 0 : i32
    %c0_i32_0 = arith.constant 0 : i32
    %c0_i32_1 = arith.constant 0 : i32
    return %c0_i32, %c0_i32_0 : i32, i32
  }
  func.func @transform_2(%arg0: i32) -> (i32, i32) {
    %c0_i32 = arith.constant 0 : i32
    %c0_i32_0 = arith.constant 0 : i32
    %c0_i32_1 = arith.constant 0 : i32
    return %c0_i32, %c0_i32_0 : i32, i32
  }
  func.func @transform_3(%arg0: i32) -> (i32, i32) {
    %c0_i32 = arith.constant 0 : i32
    %c0_i32_0 = arith.constant 0 : i32
    return %arg0, %c0_i32 : i32, i32
  }
}

module attributes {stable_mosaic.version = 11 : i64} {
  func.func @kernel(%arg0: i32, %arg1: memref<128x64xbf16, #tpu.memory_space<vmem>>, %arg2: memref<64x4xbf16, #tpu.memory_space<vmem>>, %arg3: memref<1x4xf32, #tpu.memory_space<vmem>>, %arg4: memref<128x4xf32, #tpu.memory_space<vmem>>) attributes {dimension_semantics = [#tpu.dimension_semantics<parallel>], iteration_bounds = array<i64: 1>, scalar_prefetch = 0 : i64, scratch_operands = 0 : i64, tpu.core_type = #tpu.core_type<tc>, window_params = [{transform_indices = @transform_0, window_bounds = array<i64: 128, 64>}, {pipeline_mode = #tpu.pipeline_mode<synchronous>, transform_indices = @transform_1, window_bounds = array<i64: 64, 4>}, {pipeline_mode = #tpu.pipeline_mode<synchronous>, transform_indices = @transform_2, window_bounds = array<i64: 1, 4>}, {transform_indices = @transform_3, window_bounds = array<i64: 128, 4>}]} {
    %c0 = arith.constant 0 : index
    %c0_0 = arith.constant 0 : index
    %0 = vector.load %arg1[%c0, %c0_0] : memref<128x64xbf16, #tpu.memory_space<vmem>>, vector<128x64xbf16>
    %c0_1 = arith.constant 0 : index
    %c0_2 = arith.constant 0 : index
    %1 = vector.load %arg2[%c0_1, %c0_2] : memref<64x4xbf16, #tpu.memory_space<vmem>>, vector<64x4xbf16>
    %cst = arith.constant dense<0.000000e+00> : vector<128x4xf32>
    %2 = tpu.matmul %0, %1, %cst {dimension_numbers = #tpu.dot_dimension_numbers<[1], [0], [0], [1], [0, 0, 1, 1], [], []>} : vector<128x64xbf16>, vector<64x4xbf16>, vector<128x4xf32> -> vector<128x4xf32>
    %c0_3 = arith.constant 0 : index
    %c0_4 = arith.constant 0 : index
    %3 = vector.load %arg3[%c0_3, %c0_4] : memref<1x4xf32, #tpu.memory_space<vmem>>, vector<1x4xf32>
    %4 = vector.broadcast %3 : vector<1x4xf32> to vector<128x4xf32>
    %5 = arith.addf %2, %4 : vector<128x4xf32>
    %cst_5 = arith.constant 0.000000e+00 : f32
    %6 = vector.broadcast %cst_5 : f32 to vector<128x4xf32>
    %7 = arith.cmpf ogt, %5, %6 : vector<128x4xf32>
    %cst_6 = arith.constant 2.500000e-01 : f32
    %8 = vector.broadcast %cst_6 : f32 to vector<128x4xf32>
    %9 = arith.mulf %8, %5 : vector<128x4xf32>
    %10 = arith.select %7, %5, %9 : vector<128x4xi1>, vector<128x4xf32>
    %c0_7 = arith.constant 0 : index
    %c0_8 = arith.constant 0 : index
    %11 = vector.load %arg4[%c0_7, %c0_8] : memref<128x4xf32, #tpu.memory_space<vmem>>, vector<128x4xf32>
    tpu.vector_store %arg4[%c0_7, %c0_8], %10 {strides = array<i32>} : memref<128x4xf32, #tpu.memory_space<vmem>>, vector<128x4xf32>,
    return
  }
  func.func @transform_0(%arg0: i32) -> (i32, i32) {
    %c0_i32 = arith.constant 0 : i32
    %c0_i32_0 = arith.constant 0 : i32
    return %arg0, %c0_i32 : i32, i32
  }
  func.func @transform_1(%arg0: i32) -> (i32, i32) {
    %c0_i32 = arith.constant 0 : i32
    %c0_i32_0 = arith.constant 0 : i32
    %c0_i32_1 = arith.constant 0 : i32
    return %c0_i32, %c0_i32_0 : i32, i32
  }
  func.func @transform_2(%arg0: i32) -> (i32, i32) {
    %c0_i32 = arith.constant 0 : i32
    %c0_i32_0 = arith.constant 0 : i32
    %c0_i32_1 = arith.constant 0 : i32
    return %c0_i32, %c0_i32_0 : i32, i32
  }
  func.func @transform_3(%arg0: i32) -> (i32, i32) {
    %c0_i32 = arith.constant 0 : i32
    %c0_i32_0 = arith.constant 0 : i32
    return %arg0, %c0_i32 : i32, i32
  }
}

module attributes {stable_mosaic.version = 11 : i64} {
  func.func @kernel(%arg0: i32, %arg1: memref<128x36xbf16, #tpu.memory_space<vmem>>, %arg2: memref<36x4xbf16, #tpu.memory_space<vmem>>, %arg3: memref<1x4xf32, #tpu.memory_space<vmem>>, %arg4: memref<128x4xf32, #tpu.memory_space<vmem>>) attributes {dimension_semantics = [#tpu.dimension_semantics<parallel>], iteration_bounds = array<i64: 1>, scalar_prefetch = 0 : i64, scratch_operands = 0 : i64, tpu.core_type = #tpu.core_type<tc>, window_params = [{transform_indices = @transform_0, window_bounds = array<i64: 128, 36>}, {pipeline_mode = #tpu.pipeline_mode<synchronous>, transform_indices = @transform_1, window_bounds = array<i64: 36, 4>}, {pipeline_mode = #tpu.pipeline_mode<synchronous>, transform_indices = @transform_2, window_bounds = array<i64: 1, 4>}, {transform_indices = @transform_3, window_bounds = array<i64: 128, 4>}]} {
    %c0 = arith.constant 0 : index
    %c0_0 = arith.constant 0 : index
    %0 = vector.load %arg1[%c0, %c0_0] : memref<128x36xbf16, #tpu.memory_space<vmem>>, vector<128x36xbf16>
    %c0_1 = arith.constant 0 : index
    %c0_2 = arith.constant 0 : index
    %1 = vector.load %arg2[%c0_1, %c0_2] : memref<36x4xbf16, #tpu.memory_space<vmem>>, vector<36x4xbf16>
    %cst = arith.constant dense<0.000000e+00> : vector<128x4xf32>
    %2 = tpu.matmul %0, %1, %cst {dimension_numbers = #tpu.dot_dimension_numbers<[1], [0], [0], [1], [0, 0, 1, 1], [], []>} : vector<128x36xbf16>, vector<36x4xbf16>, vector<128x4xf32> -> vector<128x4xf32>
    %c0_3 = arith.constant 0 : index
    %c0_4 = arith.constant 0 : index
    %3 = vector.load %arg3[%c0_3, %c0_4] : memref<1x4xf32, #tpu.memory_space<vmem>>, vector<1x4xf32>
    %4 = vector.broadcast %3 : vector<1x4xf32> to vector<128x4xf32>
    %5 = arith.addf %2, %4 : vector<128x4xf32>
    %cst_5 = arith.constant 0.000000e+00 : f32
    %6 = vector.broadcast %cst_5 : f32 to vector<128x4xf32>
    %7 = arith.cmpf ogt, %5, %6 : vector<128x4xf32>
    %cst_6 = arith.constant 2.500000e-01 : f32
    %8 = vector.broadcast %cst_6 : f32 to vector<128x4xf32>
    %9 = arith.mulf %8, %5 : vector<128x4xf32>
    %10 = arith.select %7, %5, %9 : vector<128x4xi1>, vector<128x4xf32>
    %c0_7 = arith.constant 0 : index
    %c0_8 = arith.constant 0 : index
    %11 = vector.load %arg4[%c0_7, %c0_8] : memref<128x4xf32, #tpu.memory_space<vmem>>, vector<128x4xf32>
    tpu.vector_store %arg4[%c0_7, %c0_8], %10 {strides = array<i32>} : memref<128x4xf32, #tpu.memory_space<vmem>>, vector<128x4xf32>,
    return
  }
  func.func @transform_0(%arg0: i32) -> (i32, i32) {
    %c0_i32 = arith.constant 0 : i32
    %c0_i32_0 = arith.constant 0 : i32
    return %arg0, %c0_i32 : i32, i32
  }
  func.func @transform_1(%arg0: i32) -> (i32, i32) {
    %c0_i32 = arith.constant 0 : i32
    %c0_i32_0 = arith.constant 0 : i32
    %c0_i32_1 = arith.constant 0 : i32
    return %c0_i32, %c0_i32_0 : i32, i32
  }
  func.func @transform_2(%arg0: i32) -> (i32, i32) {
    %c0_i32 = arith.constant 0 : i32
    %c0_i32_0 = arith.constant 0 : i32
    %c0_i32_1 = arith.constant 0 : i32
    return %c0_i32, %c0_i32_0 : i32, i32
  }
  func.func @transform_3(%arg0: i32) -> (i32, i32) {
    %c0_i32 = arith.constant 0 : i32
    %c0_i32_0 = arith.constant 0 : i32
    return %arg0, %c0_i32 : i32, i32
  }
}

module attributes {stable_mosaic.version = 11 : i64} {
  func.func @kernel(%arg0: i32, %arg1: memref<128x4xbf16, #tpu.memory_space<vmem>>, %arg2: memref<4x64xbf16, #tpu.memory_space<vmem>>, %arg3: memref<1x64xf32, #tpu.memory_space<vmem>>, %arg4: memref<128x64xf32, #tpu.memory_space<vmem>>, %arg5: memref<128x64xf32, #tpu.memory_space<vmem>>) attributes {dimension_semantics = [#tpu.dimension_semantics<parallel>], iteration_bounds = array<i64: 1>, scalar_prefetch = 0 : i64, scratch_operands = 0 : i64, tpu.core_type = #tpu.core_type<tc>, window_params = [{transform_indices = @transform_0, window_bounds = array<i64: 128, 4>}, {pipeline_mode = #tpu.pipeline_mode<synchronous>, transform_indices = @transform_1, window_bounds = array<i64: 4, 64>}, {pipeline_mode = #tpu.pipeline_mode<synchronous>, transform_indices = @transform_2, window_bounds = array<i64: 1, 64>}, {transform_indices = @transform_3, window_bounds = array<i64: 128, 64>}, {transform_indices = @transform_4, window_bounds = array<i64: 128, 64>}]} {
    %c0 = arith.constant 0 : index
    %c0_0 = arith.constant 0 : index
    %0 = vector.load %arg1[%c0, %c0_0] : memref<128x4xbf16, #tpu.memory_space<vmem>>, vector<128x4xbf16>
    %c0_1 = arith.constant 0 : index
    %c0_2 = arith.constant 0 : index
    %1 = vector.load %arg2[%c0_1, %c0_2] : memref<4x64xbf16, #tpu.memory_space<vmem>>, vector<4x64xbf16>
    %cst = arith.constant dense<0.000000e+00> : vector<128x64xf32>
    %2 = tpu.matmul %0, %1, %cst {dimension_numbers = #tpu.dot_dimension_numbers<[1], [0], [0], [1], [0, 0, 1, 1], [], []>} : vector<128x4xbf16>, vector<4x64xbf16>, vector<128x64xf32> -> vector<128x64xf32>
    %c0_3 = arith.constant 0 : index
    %c0_4 = arith.constant 0 : index
    %3 = vector.load %arg3[%c0_3, %c0_4] : memref<1x64xf32, #tpu.memory_space<vmem>>, vector<1x64xf32>
    %4 = vector.broadcast %3 : vector<1x64xf32> to vector<128x64xf32>
    %5 = arith.addf %2, %4 : vector<128x64xf32>
    %cst_5 = arith.constant 0.000000e+00 : f32
    %6 = vector.broadcast %cst_5 : f32 to vector<128x64xf32>
    %7 = arith.cmpf ogt, %5, %6 : vector<128x64xf32>
    %cst_6 = arith.constant 2.500000e-01 : f32
    %8 = vector.broadcast %cst_6 : f32 to vector<128x64xf32>
    %9 = arith.mulf %8, %5 : vector<128x64xf32>
    %10 = arith.select %7, %5, %9 : vector<128x64xi1>, vector<128x64xf32>
    %c0_7 = arith.constant 0 : index
    %c0_8 = arith.constant 0 : index
    %11 = vector.load %arg4[%c0_7, %c0_8] : memref<128x64xf32, #tpu.memory_space<vmem>>, vector<128x64xf32>
    %12 = arith.addf %10, %11 : vector<128x64xf32>
    %cst_9 = arith.constant 0.000000e+00 : f32
    %13 = vector.broadcast %cst_9 : f32 to vector<128x64xf32>
    %14 = arith.cmpf ogt, %12, %13 : vector<128x64xf32>
    %cst_10 = arith.constant 2.500000e-01 : f32
    %15 = vector.broadcast %cst_10 : f32 to vector<128x64xf32>
    %16 = arith.mulf %15, %12 : vector<128x64xf32>
    %17 = arith.select %14, %12, %16 : vector<128x64xi1>, vector<128x64xf32>
    %c0_11 = arith.constant 0 : index
    %c0_12 = arith.constant 0 : index
    %18 = vector.load %arg5[%c0_11, %c0_12] : memref<128x64xf32, #tpu.memory_space<vmem>>, vector<128x64xf32>
    tpu.vector_store %arg5[%c0_11, %c0_12], %17 {strides = array<i32>} : memref<128x64xf32, #tpu.memory_space<vmem>>, vector<128x64xf32>,
    return
  }
  func.func @transform_0(%arg0: i32) -> (i32, i32) {
    %c0_i32 = arith.constant 0 : i32
    %c0_i32_0 = arith.constant 0 : i32
    return %arg0, %c0_i32 : i32, i32
  }
  func.func @transform_1(%arg0: i32) -> (i32, i32) {
    %c0_i32 = arith.constant 0 : i32
    %c0_i32_0 = arith.constant 0 : i32
    %c0_i32_1 = arith.constant 0 : i32
    return %c0_i32, %c0_i32_0 : i32, i32
  }
  func.func @transform_2(%arg0: i32) -> (i32, i32) {
    %c0_i32 = arith.constant 0 : i32
    %c0_i32_0 = arith.constant 0 : i32
    %c0_i32_1 = arith.constant 0 : i32
    return %c0_i32, %c0_i32_0 : i32, i32
  }
  func.func @transform_3(%arg0: i32) -> (i32, i32) {
    %c0_i32 = arith.constant 0 : i32
    %c0_i32_0 = arith.constant 0 : i32
    return %arg0, %c0_i32 : i32, i32
  }
  func.func @transform_4(%arg0: i32) -> (i32, i32) {
    %c0_i32 = arith.constant 0 : i32
    %c0_i32_0 = arith.constant 0 : i32
    return %arg0, %c0_i32 : i32, i32
  }
}

module attributes {stable_mosaic.version = 11 : i64} {
  func.func @kernel(%arg0: i32, %arg1: memref<128x64xbf16, #tpu.memory_space<vmem>>, %arg2: memref<64x16xbf16, #tpu.memory_space<vmem>>, %arg3: memref<1x16xf32, #tpu.memory_space<vmem>>, %arg4: memref<128x16xf32, #tpu.memory_space<vmem>>) attributes {dimension_semantics = [#tpu.dimension_semantics<parallel>], iteration_bounds = array<i64: 1>, scalar_prefetch = 0 : i64, scratch_operands = 0 : i64, tpu.core_type = #tpu.core_type<tc>, window_params = [{transform_indices = @transform_0, window_bounds = array<i64: 128, 64>}, {pipeline_mode = #tpu.pipeline_mode<synchronous>, transform_indices = @transform_1, window_bounds = array<i64: 64, 16>}, {pipeline_mode = #tpu.pipeline_mode<synchronous>, transform_indices = @transform_2, window_bounds = array<i64: 1, 16>}, {transform_indices = @transform_3, window_bounds = array<i64: 128, 16>}]} {
    %c0 = arith.constant 0 : index
    %c0_0 = arith.constant 0 : index
    %0 = vector.load %arg1[%c0, %c0_0] : memref<128x64xbf16, #tpu.memory_space<vmem>>, vector<128x64xbf16>
    %c0_1 = arith.constant 0 : index
    %c0_2 = arith.constant 0 : index
    %1 = vector.load %arg2[%c0_1, %c0_2] : memref<64x16xbf16, #tpu.memory_space<vmem>>, vector<64x16xbf16>
    %cst = arith.constant dense<0.000000e+00> : vector<128x16xf32>
    %2 = tpu.matmul %0, %1, %cst {dimension_numbers = #tpu.dot_dimension_numbers<[1], [0], [0], [1], [0, 0, 1, 1], [], []>} : vector<128x64xbf16>, vector<64x16xbf16>, vector<128x16xf32> -> vector<128x16xf32>
    %c0_3 = arith.constant 0 : index
    %c0_4 = arith.constant 0 : index
    %3 = vector.load %arg3[%c0_3, %c0_4] : memref<1x16xf32, #tpu.memory_space<vmem>>, vector<1x16xf32>
    %4 = vector.broadcast %3 : vector<1x16xf32> to vector<128x16xf32>
    %5 = arith.addf %2, %4 : vector<128x16xf32>
    %cst_5 = arith.constant 0.000000e+00 : f32
    %6 = vector.broadcast %cst_5 : f32 to vector<128x16xf32>
    %7 = arith.cmpf ogt, %5, %6 : vector<128x16xf32>
    %cst_6 = arith.constant 2.500000e-01 : f32
    %8 = vector.broadcast %cst_6 : f32 to vector<128x16xf32>
    %9 = arith.mulf %8, %5 : vector<128x16xf32>
    %10 = arith.select %7, %5, %9 : vector<128x16xi1>, vector<128x16xf32>
    %c0_7 = arith.constant 0 : index
    %c0_8 = arith.constant 0 : index
    %11 = vector.load %arg4[%c0_7, %c0_8] : memref<128x16xf32, #tpu.memory_space<vmem>>, vector<128x16xf32>
    tpu.vector_store %arg4[%c0_7, %c0_8], %10 {strides = array<i32>} : memref<128x16xf32, #tpu.memory_space<vmem>>, vector<128x16xf32>,
    return
  }
  func.func @transform_0(%arg0: i32) -> (i32, i32) {
    %c0_i32 = arith.constant 0 : i32
    %c0_i32_0 = arith.constant 0 : i32
    return %arg0, %c0_i32 : i32, i32
  }
  func.func @transform_1(%arg0: i32) -> (i32, i32) {
    %c0_i32 = arith.constant 0 : i32
    %c0_i32_0 = arith.constant 0 : i32
    %c0_i32_1 = arith.constant 0 : i32
    return %c0_i32, %c0_i32_0 : i32, i32
  }
  func.func @transform_2(%arg0: i32) -> (i32, i32) {
    %c0_i32 = arith.constant 0 : i32
    %c0_i32_0 = arith.constant 0 : i32
    %c0_i32_1 = arith.constant 0 : i32
    return %c0_i32, %c0_i32_0 : i32, i32
  }
  func.func @transform_3(%arg0: i32) -> (i32, i32) {
    %c0_i32 = arith.constant 0 : i32
    %c0_i32_0 = arith.constant 0 : i32
    return %arg0, %c0_i32 : i32, i32
  }
}

module attributes {stable_mosaic.version = 11 : i64} {
  func.func @kernel(%arg0: i32, %arg1: memref<128x144xbf16, #tpu.memory_space<vmem>>, %arg2: memref<144x16xbf16, #tpu.memory_space<vmem>>, %arg3: memref<1x16xf32, #tpu.memory_space<vmem>>, %arg4: memref<128x16xf32, #tpu.memory_space<vmem>>) attributes {dimension_semantics = [#tpu.dimension_semantics<parallel>], iteration_bounds = array<i64: 1>, scalar_prefetch = 0 : i64, scratch_operands = 0 : i64, tpu.core_type = #tpu.core_type<tc>, window_params = [{transform_indices = @transform_0, window_bounds = array<i64: 128, 144>}, {pipeline_mode = #tpu.pipeline_mode<synchronous>, transform_indices = @transform_1, window_bounds = array<i64: 144, 16>}, {pipeline_mode = #tpu.pipeline_mode<synchronous>, transform_indices = @transform_2, window_bounds = array<i64: 1, 16>}, {transform_indices = @transform_3, window_bounds = array<i64: 128, 16>}]} {
    %c0 = arith.constant 0 : index
    %c0_0 = arith.constant 0 : index
    %0 = vector.load %arg1[%c0, %c0_0] : memref<128x144xbf16, #tpu.memory_space<vmem>>, vector<128x144xbf16>
    %c0_1 = arith.constant 0 : index
    %c0_2 = arith.constant 0 : index
    %1 = vector.load %arg2[%c0_1, %c0_2] : memref<144x16xbf16, #tpu.memory_space<vmem>>, vector<144x16xbf16>
    %cst = arith.constant dense<0.000000e+00> : vector<128x16xf32>
    %2 = tpu.matmul %0, %1, %cst {dimension_numbers = #tpu.dot_dimension_numbers<[1], [0], [0], [1], [0, 0, 1, 1], [], []>} : vector<128x144xbf16>, vector<144x16xbf16>, vector<128x16xf32> -> vector<128x16xf32>
    %c0_3 = arith.constant 0 : index
    %c0_4 = arith.constant 0 : index
    %3 = vector.load %arg3[%c0_3, %c0_4] : memref<1x16xf32, #tpu.memory_space<vmem>>, vector<1x16xf32>
    %4 = vector.broadcast %3 : vector<1x16xf32> to vector<128x16xf32>
    %5 = arith.addf %2, %4 : vector<128x16xf32>
    %cst_5 = arith.constant 0.000000e+00 : f32
    %6 = vector.broadcast %cst_5 : f32 to vector<128x16xf32>
    %7 = arith.cmpf ogt, %5, %6 : vector<128x16xf32>
    %cst_6 = arith.constant 2.500000e-01 : f32
    %8 = vector.broadcast %cst_6 : f32 to vector<128x16xf32>
    %9 = arith.mulf %8, %5 : vector<128x16xf32>
    %10 = arith.select %7, %5, %9 : vector<128x16xi1>, vector<128x16xf32>
    %c0_7 = arith.constant 0 : index
    %c0_8 = arith.constant 0 : index
    %11 = vector.load %arg4[%c0_7, %c0_8] : memref<128x16xf32, #tpu.memory_space<vmem>>, vector<128x16xf32>
    tpu.vector_store %arg4[%c0_7, %c0_8], %10 {strides = array<i32>} : memref<128x16xf32, #tpu.memory_space<vmem>>, vector<128x16xf32>,
    return
  }
  func.func @transform_0(%arg0: i32) -> (i32, i32) {
    %c0_i32 = arith.constant 0 : i32
    %c0_i32_0 = arith.constant 0 : i32
    return %arg0, %c0_i32 : i32, i32
  }
  func.func @transform_1(%arg0: i32) -> (i32, i32) {
    %c0_i32 = arith.constant 0 : i32
    %c0_i32_0 = arith.constant 0 : i32
    %c0_i32_1 = arith.constant 0 : i32
    return %c0_i32, %c0_i32_0 : i32, i32
  }
  func.func @transform_2(%arg0: i32) -> (i32, i32) {
    %c0_i32 = arith.constant 0 : i32
    %c0_i32_0 = arith.constant 0 : i32
    %c0_i32_1 = arith.constant 0 : i32
    return %c0_i32, %c0_i32_0 : i32, i32
  }
  func.func @transform_3(%arg0: i32) -> (i32, i32) {
    %c0_i32 = arith.constant 0 : i32
    %c0_i32_0 = arith.constant 0 : i32
    return %arg0, %c0_i32 : i32, i32
  }
}

module attributes {stable_mosaic.version = 11 : i64} {
  func.func @kernel(%arg0: i32, %arg1: memref<128x16xbf16, #tpu.memory_space<vmem>>, %arg2: memref<16x64xbf16, #tpu.memory_space<vmem>>, %arg3: memref<1x64xf32, #tpu.memory_space<vmem>>, %arg4: memref<128x64xf32, #tpu.memory_space<vmem>>, %arg5: memref<128x64xf32, #tpu.memory_space<vmem>>) attributes {dimension_semantics = [#tpu.dimension_semantics<parallel>], iteration_bounds = array<i64: 1>, scalar_prefetch = 0 : i64, scratch_operands = 0 : i64, tpu.core_type = #tpu.core_type<tc>, window_params = [{transform_indices = @transform_0, window_bounds = array<i64: 128, 16>}, {pipeline_mode = #tpu.pipeline_mode<synchronous>, transform_indices = @transform_1, window_bounds = array<i64: 16, 64>}, {pipeline_mode = #tpu.pipeline_mode<synchronous>, transform_indices = @transform_2, window_bounds = array<i64: 1, 64>}, {transform_indices = @transform_3, window_bounds = array<i64: 128, 64>}, {transform_indices = @transform_4, window_bounds = array<i64: 128, 64>}]} {
    %c0 = arith.constant 0 : index
    %c0_0 = arith.constant 0 : index
    %0 = vector.load %arg1[%c0, %c0_0] : memref<128x16xbf16, #tpu.memory_space<vmem>>, vector<128x16xbf16>
    %c0_1 = arith.constant 0 : index
    %c0_2 = arith.constant 0 : index
    %1 = vector.load %arg2[%c0_1, %c0_2] : memref<16x64xbf16, #tpu.memory_space<vmem>>, vector<16x64xbf16>
    %cst = arith.constant dense<0.000000e+00> : vector<128x64xf32>
    %2 = tpu.matmul %0, %1, %cst {dimension_numbers = #tpu.dot_dimension_numbers<[1], [0], [0], [1], [0, 0, 1, 1], [], []>} : vector<128x16xbf16>, vector<16x64xbf16>, vector<128x64xf32> -> vector<128x64xf32>
    %c0_3 = arith.constant 0 : index
    %c0_4 = arith.constant 0 : index
    %3 = vector.load %arg3[%c0_3, %c0_4] : memref<1x64xf32, #tpu.memory_space<vmem>>, vector<1x64xf32>
    %4 = vector.broadcast %3 : vector<1x64xf32> to vector<128x64xf32>
    %5 = arith.addf %2, %4 : vector<128x64xf32>
    %cst_5 = arith.constant 0.000000e+00 : f32
    %6 = vector.broadcast %cst_5 : f32 to vector<128x64xf32>
    %7 = arith.cmpf ogt, %5, %6 : vector<128x64xf32>
    %cst_6 = arith.constant 2.500000e-01 : f32
    %8 = vector.broadcast %cst_6 : f32 to vector<128x64xf32>
    %9 = arith.mulf %8, %5 : vector<128x64xf32>
    %10 = arith.select %7, %5, %9 : vector<128x64xi1>, vector<128x64xf32>
    %c0_7 = arith.constant 0 : index
    %c0_8 = arith.constant 0 : index
    %11 = vector.load %arg4[%c0_7, %c0_8] : memref<128x64xf32, #tpu.memory_space<vmem>>, vector<128x64xf32>
    %12 = arith.addf %10, %11 : vector<128x64xf32>
    %cst_9 = arith.constant 0.000000e+00 : f32
    %13 = vector.broadcast %cst_9 : f32 to vector<128x64xf32>
    %14 = arith.cmpf ogt, %12, %13 : vector<128x64xf32>
    %cst_10 = arith.constant 2.500000e-01 : f32
    %15 = vector.broadcast %cst_10 : f32 to vector<128x64xf32>
    %16 = arith.mulf %15, %12 : vector<128x64xf32>
    %17 = arith.select %14, %12, %16 : vector<128x64xi1>, vector<128x64xf32>
    %c0_11 = arith.constant 0 : index
    %c0_12 = arith.constant 0 : index
    %18 = vector.load %arg5[%c0_11, %c0_12] : memref<128x64xf32, #tpu.memory_space<vmem>>, vector<128x64xf32>
    tpu.vector_store %arg5[%c0_11, %c0_12], %17 {strides = array<i32>} : memref<128x64xf32, #tpu.memory_space<vmem>>, vector<128x64xf32>,
    return
  }
  func.func @transform_0(%arg0: i32) -> (i32, i32) {
    %c0_i32 = arith.constant 0 : i32
    %c0_i32_0 = arith.constant 0 : i32
    return %arg0, %c0_i32 : i32, i32
  }
  func.func @transform_1(%arg0: i32) -> (i32, i32) {
    %c0_i32 = arith.constant 0 : i32
    %c0_i32_0 = arith.constant 0 : i32
    %c0_i32_1 = arith.constant 0 : i32
    return %c0_i32, %c0_i32_0 : i32, i32
  }
  func.func @transform_2(%arg0: i32) -> (i32, i32) {
    %c0_i32 = arith.constant 0 : i32
    %c0_i32_0 = arith.constant 0 : i32
    %c0_i32_1 = arith.constant 0 : i32
    return %c0_i32, %c0_i32_0 : i32, i32
  }
  func.func @transform_3(%arg0: i32) -> (i32, i32) {
    %c0_i32 = arith.constant 0 : i32
    %c0_i32_0 = arith.constant 0 : i32
    return %arg0, %c0_i32 : i32, i32
  }
  func.func @transform_4(%arg0: i32) -> (i32, i32) {
    %c0_i32 = arith.constant 0 : i32
    %c0_i32_0 = arith.constant 0 : i32
    return %arg0, %c0_i32 : i32, i32
  }
}

module attributes {stable_mosaic.version = 11 : i64} {
  func.func @kernel(%arg0: i32, %arg1: memref<32x256xbf16, #tpu.memory_space<vmem>>, %arg2: memref<256x16xbf16, #tpu.memory_space<vmem>>, %arg3: memref<1x16xf32, #tpu.memory_space<vmem>>, %arg4: memref<32x16xf32, #tpu.memory_space<vmem>>) attributes {dimension_semantics = [#tpu.dimension_semantics<parallel>], iteration_bounds = array<i64: 1>, scalar_prefetch = 0 : i64, scratch_operands = 0 : i64, tpu.core_type = #tpu.core_type<tc>, window_params = [{transform_indices = @transform_0, window_bounds = array<i64: 32, 256>}, {pipeline_mode = #tpu.pipeline_mode<synchronous>, transform_indices = @transform_1, window_bounds = array<i64: 256, 16>}, {pipeline_mode = #tpu.pipeline_mode<synchronous>, transform_indices = @transform_2, window_bounds = array<i64: 1, 16>}, {transform_indices = @transform_3, window_bounds = array<i64: 32, 16>}]} {
    %c0 = arith.constant 0 : index
    %c0_0 = arith.constant 0 : index
    %0 = vector.load %arg1[%c0, %c0_0] : memref<32x256xbf16, #tpu.memory_space<vmem>>, vector<32x256xbf16>
    %c0_1 = arith.constant 0 : index
    %c0_2 = arith.constant 0 : index
    %1 = vector.load %arg2[%c0_1, %c0_2] : memref<256x16xbf16, #tpu.memory_space<vmem>>, vector<256x16xbf16>
    %cst = arith.constant dense<0.000000e+00> : vector<32x16xf32>
    %2 = tpu.matmul %0, %1, %cst {dimension_numbers = #tpu.dot_dimension_numbers<[1], [0], [0], [1], [0, 0, 1, 1], [], []>} : vector<32x256xbf16>, vector<256x16xbf16>, vector<32x16xf32> -> vector<32x16xf32>
    %c0_3 = arith.constant 0 : index
    %c0_4 = arith.constant 0 : index
    %3 = vector.load %arg3[%c0_3, %c0_4] : memref<1x16xf32, #tpu.memory_space<vmem>>, vector<1x16xf32>
    %4 = vector.broadcast %3 : vector<1x16xf32> to vector<32x16xf32>
    %5 = arith.addf %2, %4 : vector<32x16xf32>
    %cst_5 = arith.constant 0.000000e+00 : f32
    %6 = vector.broadcast %cst_5 : f32 to vector<32x16xf32>
    %7 = arith.cmpf ogt, %5, %6 : vector<32x16xf32>
    %cst_6 = arith.constant 2.500000e-01 : f32
    %8 = vector.broadcast %cst_6 : f32 to vector<32x16xf32>
    %9 = arith.mulf %8, %5 : vector<32x16xf32>
    %10 = arith.select %7, %5, %9 : vector<32x16xi1>, vector<32x16xf32>
    %c0_7 = arith.constant 0 : index
    %c0_8 = arith.constant 0 : index
    %11 = vector.load %arg4[%c0_7, %c0_8] : memref<32x16xf32, #tpu.memory_space<vmem>>, vector<32x16xf32>
    tpu.vector_store %arg4[%c0_7, %c0_8], %10 {strides = array<i32>} : memref<32x16xf32, #tpu.memory_space<vmem>>, vector<32x16xf32>,
    return
  }
  func.func @transform_0(%arg0: i32) -> (i32, i32) {
    %c0_i32 = arith.constant 0 : i32
    %c0_i32_0 = arith.constant 0 : i32
    return %arg0, %c0_i32 : i32, i32
  }
  func.func @transform_1(%arg0: i32) -> (i32, i32) {
    %c0_i32 = arith.constant 0 : i32
    %c0_i32_0 = arith.constant 0 : i32
    %c0_i32_1 = arith.constant 0 : i32
    return %c0_i32, %c0_i32_0 : i32, i32
  }
  func.func @transform_2(%arg0: i32) -> (i32, i32) {
    %c0_i32 = arith.constant 0 : i32
    %c0_i32_0 = arith.constant 0 : i32
    %c0_i32_1 = arith.constant 0 : i32
    return %c0_i32, %c0_i32_0 : i32, i32
  }
  func.func @transform_3(%arg0: i32) -> (i32, i32) {
    %c0_i32 = arith.constant 0 : i32
    %c0_i32_0 = arith.constant 0 : i32
    return %arg0, %c0_i32 : i32, i32
  }
}

module attributes {stable_mosaic.version = 11 : i64} {
  func.func @kernel(%arg0: i32, %arg1: memref<32x144xbf16, #tpu.memory_space<vmem>>, %arg2: memref<144x16xbf16, #tpu.memory_space<vmem>>, %arg3: memref<1x16xf32, #tpu.memory_space<vmem>>, %arg4: memref<32x16xf32, #tpu.memory_space<vmem>>) attributes {dimension_semantics = [#tpu.dimension_semantics<parallel>], iteration_bounds = array<i64: 1>, scalar_prefetch = 0 : i64, scratch_operands = 0 : i64, tpu.core_type = #tpu.core_type<tc>, window_params = [{transform_indices = @transform_0, window_bounds = array<i64: 32, 144>}, {pipeline_mode = #tpu.pipeline_mode<synchronous>, transform_indices = @transform_1, window_bounds = array<i64: 144, 16>}, {pipeline_mode = #tpu.pipeline_mode<synchronous>, transform_indices = @transform_2, window_bounds = array<i64: 1, 16>}, {transform_indices = @transform_3, window_bounds = array<i64: 32, 16>}]} {
    %c0 = arith.constant 0 : index
    %c0_0 = arith.constant 0 : index
    %0 = vector.load %arg1[%c0, %c0_0] : memref<32x144xbf16, #tpu.memory_space<vmem>>, vector<32x144xbf16>
    %c0_1 = arith.constant 0 : index
    %c0_2 = arith.constant 0 : index
    %1 = vector.load %arg2[%c0_1, %c0_2] : memref<144x16xbf16, #tpu.memory_space<vmem>>, vector<144x16xbf16>
    %cst = arith.constant dense<0.000000e+00> : vector<32x16xf32>
    %2 = tpu.matmul %0, %1, %cst {dimension_numbers = #tpu.dot_dimension_numbers<[1], [0], [0], [1], [0, 0, 1, 1], [], []>} : vector<32x144xbf16>, vector<144x16xbf16>, vector<32x16xf32> -> vector<32x16xf32>
    %c0_3 = arith.constant 0 : index
    %c0_4 = arith.constant 0 : index
    %3 = vector.load %arg3[%c0_3, %c0_4] : memref<1x16xf32, #tpu.memory_space<vmem>>, vector<1x16xf32>
    %4 = vector.broadcast %3 : vector<1x16xf32> to vector<32x16xf32>
    %5 = arith.addf %2, %4 : vector<32x16xf32>
    %cst_5 = arith.constant 0.000000e+00 : f32
    %6 = vector.broadcast %cst_5 : f32 to vector<32x16xf32>
    %7 = arith.cmpf ogt, %5, %6 : vector<32x16xf32>
    %cst_6 = arith.constant 2.500000e-01 : f32
    %8 = vector.broadcast %cst_6 : f32 to vector<32x16xf32>
    %9 = arith.mulf %8, %5 : vector<32x16xf32>
    %10 = arith.select %7, %5, %9 : vector<32x16xi1>, vector<32x16xf32>
    %c0_7 = arith.constant 0 : index
    %c0_8 = arith.constant 0 : index
    %11 = vector.load %arg4[%c0_7, %c0_8] : memref<32x16xf32, #tpu.memory_space<vmem>>, vector<32x16xf32>
    tpu.vector_store %arg4[%c0_7, %c0_8], %10 {strides = array<i32>} : memref<32x16xf32, #tpu.memory_space<vmem>>, vector<32x16xf32>,
    return
  }
  func.func @transform_0(%arg0: i32) -> (i32, i32) {
    %c0_i32 = arith.constant 0 : i32
    %c0_i32_0 = arith.constant 0 : i32
    return %arg0, %c0_i32 : i32, i32
  }
  func.func @transform_1(%arg0: i32) -> (i32, i32) {
    %c0_i32 = arith.constant 0 : i32
    %c0_i32_0 = arith.constant 0 : i32
    %c0_i32_1 = arith.constant 0 : i32
    return %c0_i32, %c0_i32_0 : i32, i32
  }
  func.func @transform_2(%arg0: i32) -> (i32, i32) {
    %c0_i32 = arith.constant 0 : i32
    %c0_i32_0 = arith.constant 0 : i32
    %c0_i32_1 = arith.constant 0 : i32
    return %c0_i32, %c0_i32_0 : i32, i32
  }
  func.func @transform_3(%arg0: i32) -> (i32, i32) {
    %c0_i32 = arith.constant 0 : i32
    %c0_i32_0 = arith.constant 0 : i32
    return %arg0, %c0_i32 : i32, i32
  }
}

module attributes {stable_mosaic.version = 11 : i64} {
  func.func @kernel(%arg0: i32, %arg1: memref<32x16xbf16, #tpu.memory_space<vmem>>, %arg2: memref<16x128xbf16, #tpu.memory_space<vmem>>, %arg3: memref<1x128xf32, #tpu.memory_space<vmem>>, %arg4: memref<32x128xf32, #tpu.memory_space<vmem>>, %arg5: memref<32x128xf32, #tpu.memory_space<vmem>>) attributes {dimension_semantics = [#tpu.dimension_semantics<parallel>], iteration_bounds = array<i64: 1>, scalar_prefetch = 0 : i64, scratch_operands = 0 : i64, tpu.core_type = #tpu.core_type<tc>, window_params = [{transform_indices = @transform_0, window_bounds = array<i64: 32, 16>}, {pipeline_mode = #tpu.pipeline_mode<synchronous>, transform_indices = @transform_1, window_bounds = array<i64: 16, 128>}, {pipeline_mode = #tpu.pipeline_mode<synchronous>, transform_indices = @transform_2, window_bounds = array<i64: 1, 128>}, {transform_indices = @transform_3, window_bounds = array<i64: 32, 128>}, {transform_indices = @transform_4, window_bounds = array<i64: 32, 128>}]} {
    %c0 = arith.constant 0 : index
    %c0_0 = arith.constant 0 : index
    %0 = vector.load %arg1[%c0, %c0_0] : memref<32x16xbf16, #tpu.memory_space<vmem>>, vector<32x16xbf16>
    %c0_1 = arith.constant 0 : index
    %c0_2 = arith.constant 0 : index
    %1 = vector.load %arg2[%c0_1, %c0_2] : memref<16x128xbf16, #tpu.memory_space<vmem>>, vector<16x128xbf16>
    %cst = arith.constant dense<0.000000e+00> : vector<32x128xf32>
    %2 = tpu.matmul %0, %1, %cst {dimension_numbers = #tpu.dot_dimension_numbers<[1], [0], [0], [1], [0, 0, 1, 1], [], []>} : vector<32x16xbf16>, vector<16x128xbf16>, vector<32x128xf32> -> vector<32x128xf32>
    %c0_3 = arith.constant 0 : index
    %c0_4 = arith.constant 0 : index
    %3 = vector.load %arg3[%c0_3, %c0_4] : memref<1x128xf32, #tpu.memory_space<vmem>>, vector<1x128xf32>
    %4 = vector.broadcast %3 : vector<1x128xf32> to vector<32x128xf32>
    %5 = arith.addf %2, %4 : vector<32x128xf32>
    %cst_5 = arith.constant 0.000000e+00 : f32
    %6 = vector.broadcast %cst_5 : f32 to vector<32x128xf32>
    %7 = arith.cmpf ogt, %5, %6 : vector<32x128xf32>
    %cst_6 = arith.constant 2.500000e-01 : f32
    %8 = vector.broadcast %cst_6 : f32 to vector<32x128xf32>
    %9 = arith.mulf %8, %5 : vector<32x128xf32>
    %10 = arith.select %7, %5, %9 : vector<32x128xi1>, vector<32x128xf32>
    %c0_7 = arith.constant 0 : index
    %c0_8 = arith.constant 0 : index
    %11 = vector.load %arg4[%c0_7, %c0_8] : memref<32x128xf32, #tpu.memory_space<vmem>>, vector<32x128xf32>
    %12 = arith.addf %10, %11 : vector<32x128xf32>
    %cst_9 = arith.constant 0.000000e+00 : f32
    %13 = vector.broadcast %cst_9 : f32 to vector<32x128xf32>
    %14 = arith.cmpf ogt, %12, %13 : vector<32x128xf32>
    %cst_10 = arith.constant 2.500000e-01 : f32
    %15 = vector.broadcast %cst_10 : f32 to vector<32x128xf32>
    %16 = arith.mulf %15, %12 : vector<32x128xf32>
    %17 = arith.select %14, %12, %16 : vector<32x128xi1>, vector<32x128xf32>
    %c0_11 = arith.constant 0 : index
    %c0_12 = arith.constant 0 : index
    %18 = vector.load %arg5[%c0_11, %c0_12] : memref<32x128xf32, #tpu.memory_space<vmem>>, vector<32x128xf32>
    tpu.vector_store %arg5[%c0_11, %c0_12], %17 {strides = array<i32>} : memref<32x128xf32, #tpu.memory_space<vmem>>, vector<32x128xf32>,
    return
  }
  func.func @transform_0(%arg0: i32) -> (i32, i32) {
    %c0_i32 = arith.constant 0 : i32
    %c0_i32_0 = arith.constant 0 : i32
    return %arg0, %c0_i32 : i32, i32
  }
  func.func @transform_1(%arg0: i32) -> (i32, i32) {
    %c0_i32 = arith.constant 0 : i32
    %c0_i32_0 = arith.constant 0 : i32
    %c0_i32_1 = arith.constant 0 : i32
    return %c0_i32, %c0_i32_0 : i32, i32
  }
  func.func @transform_2(%arg0: i32) -> (i32, i32) {
    %c0_i32 = arith.constant 0 : i32
    %c0_i32_0 = arith.constant 0 : i32
    %c0_i32_1 = arith.constant 0 : i32
    return %c0_i32, %c0_i32_0 : i32, i32
  }
  func.func @transform_3(%arg0: i32) -> (i32, i32) {
    %c0_i32 = arith.constant 0 : i32
    %c0_i32_0 = arith.constant 0 : i32
    return %arg0, %c0_i32 : i32, i32
  }
  func.func @transform_4(%arg0: i32) -> (i32, i32) {
    %c0_i32 = arith.constant 0 : i32
    %c0_i32_0 = arith.constant 0 : i32
    return %arg0, %c0_i32 : i32, i32
  }
}

module attributes {stable_mosaic.version = 11 : i64} {
  func.func @kernel(%arg0: i32, %arg1: memref<32x128xbf16, #tpu.memory_space<vmem>>, %arg2: memref<128x32xbf16, #tpu.memory_space<vmem>>, %arg3: memref<1x32xf32, #tpu.memory_space<vmem>>, %arg4: memref<32x32xf32, #tpu.memory_space<vmem>>) attributes {dimension_semantics = [#tpu.dimension_semantics<parallel>], iteration_bounds = array<i64: 1>, scalar_prefetch = 0 : i64, scratch_operands = 0 : i64, tpu.core_type = #tpu.core_type<tc>, window_params = [{transform_indices = @transform_0, window_bounds = array<i64: 32, 128>}, {pipeline_mode = #tpu.pipeline_mode<synchronous>, transform_indices = @transform_1, window_bounds = array<i64: 128, 32>}, {pipeline_mode = #tpu.pipeline_mode<synchronous>, transform_indices = @transform_2, window_bounds = array<i64: 1, 32>}, {transform_indices = @transform_3, window_bounds = array<i64: 32, 32>}]} {
    %c0 = arith.constant 0 : index
    %c0_0 = arith.constant 0 : index
    %0 = vector.load %arg1[%c0, %c0_0] : memref<32x128xbf16, #tpu.memory_space<vmem>>, vector<32x128xbf16>
    %c0_1 = arith.constant 0 : index
    %c0_2 = arith.constant 0 : index
    %1 = vector.load %arg2[%c0_1, %c0_2] : memref<128x32xbf16, #tpu.memory_space<vmem>>, vector<128x32xbf16>
    %cst = arith.constant dense<0.000000e+00> : vector<32x32xf32>
    %2 = tpu.matmul %0, %1, %cst {dimension_numbers = #tpu.dot_dimension_numbers<[1], [0], [0], [1], [0, 0, 1, 1], [], []>} : vector<32x128xbf16>, vector<128x32xbf16>, vector<32x32xf32> -> vector<32x32xf32>
    %c0_3 = arith.constant 0 : index
    %c0_4 = arith.constant 0 : index
    %3 = vector.load %arg3[%c0_3, %c0_4] : memref<1x32xf32, #tpu.memory_space<vmem>>, vector<1x32xf32>
    %4 = vector.broadcast %3 : vector<1x32xf32> to vector<32x32xf32>
    %5 = arith.addf %2, %4 : vector<32x32xf32>
    %cst_5 = arith.constant 0.000000e+00 : f32
    %6 = vector.broadcast %cst_5 : f32 to vector<32x32xf32>
    %7 = arith.cmpf ogt, %5, %6 : vector<32x32xf32>
    %cst_6 = arith.constant 2.500000e-01 : f32
    %8 = vector.broadcast %cst_6 : f32 to vector<32x32xf32>
    %9 = arith.mulf %8, %5 : vector<32x32xf32>
    %10 = arith.select %7, %5, %9 : vector<32x32xi1>, vector<32x32xf32>
    %c0_7 = arith.constant 0 : index
    %c0_8 = arith.constant 0 : index
    %11 = vector.load %arg4[%c0_7, %c0_8] : memref<32x32xf32, #tpu.memory_space<vmem>>, vector<32x32xf32>
    tpu.vector_store %arg4[%c0_7, %c0_8], %10 {strides = array<i32>} : memref<32x32xf32, #tpu.memory_space<vmem>>, vector<32x32xf32>,
    return
  }
  func.func @transform_0(%arg0: i32) -> (i32, i32) {
    %c0_i32 = arith.constant 0 : i32
    %c0_i32_0 = arith.constant 0 : i32
    return %arg0, %c0_i32 : i32, i32
  }
  func.func @transform_1(%arg0: i32) -> (i32, i32) {
    %c0_i32 = arith.constant 0 : i32
    %c0_i32_0 = arith.constant 0 : i32
    %c0_i32_1 = arith.constant 0 : i32
    return %c0_i32, %c0_i32_0 : i32, i32
  }
  func.func @transform_2(%arg0: i32) -> (i32, i32) {
    %c0_i32 = arith.constant 0 : i32
    %c0_i32_0 = arith.constant 0 : i32
    %c0_i32_1 = arith.constant 0 : i32
    return %c0_i32, %c0_i32_0 : i32, i32
  }
  func.func @transform_3(%arg0: i32) -> (i32, i32) {
    %c0_i32 = arith.constant 0 : i32
    %c0_i32_0 = arith.constant 0 : i32
    return %arg0, %c0_i32 : i32, i32
  }
}

module attributes {stable_mosaic.version = 11 : i64} {
  func.func @kernel(%arg0: i32, %arg1: memref<32x32xbf16, #tpu.memory_space<vmem>>, %arg2: memref<32x128xbf16, #tpu.memory_space<vmem>>, %arg3: memref<1x128xf32, #tpu.memory_space<vmem>>, %arg4: memref<32x128xf32, #tpu.memory_space<vmem>>, %arg5: memref<32x128xf32, #tpu.memory_space<vmem>>) attributes {dimension_semantics = [#tpu.dimension_semantics<parallel>], iteration_bounds = array<i64: 1>, scalar_prefetch = 0 : i64, scratch_operands = 0 : i64, tpu.core_type = #tpu.core_type<tc>, window_params = [{transform_indices = @transform_0, window_bounds = array<i64: 32, 32>}, {pipeline_mode = #tpu.pipeline_mode<synchronous>, transform_indices = @transform_1, window_bounds = array<i64: 32, 128>}, {pipeline_mode = #tpu.pipeline_mode<synchronous>, transform_indices = @transform_2, window_bounds = array<i64: 1, 128>}, {transform_indices = @transform_3, window_bounds = array<i64: 32, 128>}, {transform_indices = @transform_4, window_bounds = array<i64: 32, 128>}]} {
    %c0 = arith.constant 0 : index
    %c0_0 = arith.constant 0 : index
    %0 = vector.load %arg1[%c0, %c0_0] : memref<32x32xbf16, #tpu.memory_space<vmem>>, vector<32x32xbf16>
    %c0_1 = arith.constant 0 : index
    %c0_2 = arith.constant 0 : index
    %1 = vector.load %arg2[%c0_1, %c0_2] : memref<32x128xbf16, #tpu.memory_space<vmem>>, vector<32x128xbf16>
    %cst = arith.constant dense<0.000000e+00> : vector<32x128xf32>
    %2 = tpu.matmul %0, %1, %cst {dimension_numbers = #tpu.dot_dimension_numbers<[1], [0], [0], [1], [0, 0, 1, 1], [], []>} : vector<32x32xbf16>, vector<32x128xbf16>, vector<32x128xf32> -> vector<32x128xf32>
    %c0_3 = arith.constant 0 : index
    %c0_4 = arith.constant 0 : index
    %3 = vector.load %arg3[%c0_3, %c0_4] : memref<1x128xf32, #tpu.memory_space<vmem>>, vector<1x128xf32>
    %4 = vector.broadcast %3 : vector<1x128xf32> to vector<32x128xf32>
    %5 = arith.addf %2, %4 : vector<32x128xf32>
    %cst_5 = arith.constant 0.000000e+00 : f32
    %6 = vector.broadcast %cst_5 : f32 to vector<32x128xf32>
    %7 = arith.cmpf ogt, %5, %6 : vector<32x128xf32>
    %cst_6 = arith.constant 2.500000e-01 : f32
    %8 = vector.broadcast %cst_6 : f32 to vector<32x128xf32>
    %9 = arith.mulf %8, %5 : vector<32x128xf32>
    %10 = arith.select %7, %5, %9 : vector<32x128xi1>, vector<32x128xf32>
    %c0_7 = arith.constant 0 : index
    %c0_8 = arith.constant 0 : index
    %11 = vector.load %arg4[%c0_7, %c0_8] : memref<32x128xf32, #tpu.memory_space<vmem>>, vector<32x128xf32>
    %12 = arith.addf %10, %11 : vector<32x128xf32>
    %cst_9 = arith.constant 0.000000e+00 : f32
    %13 = vector.broadcast %cst_9 : f32 to vector<32x128xf32>
    %14 = arith.cmpf ogt, %12, %13 : vector<32x128xf32>
    %cst_10 = arith.constant 2.500000e-01 : f32
    %15 = vector.broadcast %cst_10 : f32 to vector<32x128xf32>
    %16 = arith.mulf %15, %12 : vector<32x128xf32>
    %17 = arith.select %14, %12, %16 : vector<32x128xi1>, vector<32x128xf32>
    %c0_11 = arith.constant 0 : index
    %c0_12 = arith.constant 0 : index
    %18 = vector.load %arg5[%c0_11, %c0_12] : memref<32x128xf32, #tpu.memory_space<vmem>>, vector<32x128xf32>
    tpu.vector_store %arg5[%c0_11, %c0_12], %17 {strides = array<i32>} : memref<32x128xf32, #tpu.memory_space<vmem>>, vector<32x128xf32>,
    return
  }
  func.func @transform_0(%arg0: i32) -> (i32, i32) {
    %c0_i32 = arith.constant 0 : i32
    %c0_i32_0 = arith.constant 0 : i32
    return %arg0, %c0_i32 : i32, i32
  }
  func.func @transform_1(%arg0: i32) -> (i32, i32) {
    %c0_i32 = arith.constant 0 : i32
    %c0_i32_0 = arith.constant 0 : i32
    %c0_i32_1 = arith.constant 0 : i32
    return %c0_i32, %c0_i32_0 : i32, i32
  }
  func.func @transform_2(%arg0: i32) -> (i32, i32) {
    %c0_i32 = arith.constant 0 : i32
    %c0_i32_0 = arith.constant 0 : i32
    %c0_i32_1 = arith.constant 0 : i32
    return %c0_i32, %c0_i32_0 : i32, i32
  }
  func.func @transform_3(%arg0: i32) -> (i32, i32) {
    %c0_i32 = arith.constant 0 : i32
    %c0_i32_0 = arith.constant 0 : i32
    return %arg0, %c0_i32 : i32, i32
  }
  func.func @transform_4(%arg0: i32) -> (i32, i32) {
    %c0_i32 = arith.constant 0 : i32
    %c0_i32_0 = arith.constant 0 : i32
    return %arg0, %c0_i32 : i32, i32
  }
}

module attributes {stable_mosaic.version = 11 : i64} {
  func.func @kernel(%arg0: i32, %arg1: memref<32x288xbf16, #tpu.memory_space<vmem>>, %arg2: memref<288x32xbf16, #tpu.memory_space<vmem>>, %arg3: memref<1x32xf32, #tpu.memory_space<vmem>>, %arg4: memref<32x32xf32, #tpu.memory_space<vmem>>) attributes {dimension_semantics = [#tpu.dimension_semantics<parallel>], iteration_bounds = array<i64: 1>, scalar_prefetch = 0 : i64, scratch_operands = 0 : i64, tpu.core_type = #tpu.core_type<tc>, window_params = [{transform_indices = @transform_0, window_bounds = array<i64: 32, 288>}, {pipeline_mode = #tpu.pipeline_mode<synchronous>, transform_indices = @transform_1, window_bounds = array<i64: 288, 32>}, {pipeline_mode = #tpu.pipeline_mode<synchronous>, transform_indices = @transform_2, window_bounds = array<i64: 1, 32>}, {transform_indices = @transform_3, window_bounds = array<i64: 32, 32>}]} {
    %c0 = arith.constant 0 : index
    %c0_0 = arith.constant 0 : index
    %0 = vector.load %arg1[%c0, %c0_0] : memref<32x288xbf16, #tpu.memory_space<vmem>>, vector<32x288xbf16>
    %c0_1 = arith.constant 0 : index
    %c0_2 = arith.constant 0 : index
    %1 = vector.load %arg2[%c0_1, %c0_2] : memref<288x32xbf16, #tpu.memory_space<vmem>>, vector<288x32xbf16>
    %cst = arith.constant dense<0.000000e+00> : vector<32x32xf32>
    %2 = tpu.matmul %0, %1, %cst {dimension_numbers = #tpu.dot_dimension_numbers<[1], [0], [0], [1], [0, 0, 1, 1], [], []>} : vector<32x288xbf16>, vector<288x32xbf16>, vector<32x32xf32> -> vector<32x32xf32>
    %c0_3 = arith.constant 0 : index
    %c0_4 = arith.constant 0 : index
    %3 = vector.load %arg3[%c0_3, %c0_4] : memref<1x32xf32, #tpu.memory_space<vmem>>, vector<1x32xf32>
    %4 = vector.broadcast %3 : vector<1x32xf32> to vector<32x32xf32>
    %5 = arith.addf %2, %4 : vector<32x32xf32>
    %cst_5 = arith.constant 0.000000e+00 : f32
    %6 = vector.broadcast %cst_5 : f32 to vector<32x32xf32>
    %7 = arith.cmpf ogt, %5, %6 : vector<32x32xf32>
    %cst_6 = arith.constant 2.500000e-01 : f32
    %8 = vector.broadcast %cst_6 : f32 to vector<32x32xf32>
    %9 = arith.mulf %8, %5 : vector<32x32xf32>
    %10 = arith.select %7, %5, %9 : vector<32x32xi1>, vector<32x32xf32>
    %c0_7 = arith.constant 0 : index
    %c0_8 = arith.constant 0 : index
    %11 = vector.load %arg4[%c0_7, %c0_8] : memref<32x32xf32, #tpu.memory_space<vmem>>, vector<32x32xf32>
    tpu.vector_store %arg4[%c0_7, %c0_8], %10 {strides = array<i32>} : memref<32x32xf32, #tpu.memory_space<vmem>>, vector<32x32xf32>,
    return
  }
  func.func @transform_0(%arg0: i32) -> (i32, i32) {
    %c0_i32 = arith.constant 0 : i32
    %c0_i32_0 = arith.constant 0 : i32
    return %arg0, %c0_i32 : i32, i32
  }
  func.func @transform_1(%arg0: i32) -> (i32, i32) {
    %c0_i32 = arith.constant 0 : i32
    %c0_i32_0 = arith.constant 0 : i32
    %c0_i32_1 = arith.constant 0 : i32
    return %c0_i32, %c0_i32_0 : i32, i32
  }
  func.func @transform_2(%arg0: i32) -> (i32, i32) {
    %c0_i32 = arith.constant 0 : i32
    %c0_i32_0 = arith.constant 0 : i32
    %c0_i32_1 = arith.constant 0 : i32
    return %c0_i32, %c0_i32_0 : i32, i32
  }
  func.func @transform_3(%arg0: i32) -> (i32, i32) {
    %c0_i32 = arith.constant 0 : i32
    %c0_i32_0 = arith.constant 0 : i32
    return %arg0, %c0_i32 : i32, i32
  }
}

module attributes {stable_mosaic.version = 11 : i64} {
  func.func @kernel(%arg0: i32, %arg1: memref<32x160xbf16, #tpu.memory_space<vmem>>, %arg2: memref<160x32xbf16, #tpu.memory_space<vmem>>, %arg3: memref<1x32xf32, #tpu.memory_space<vmem>>, %arg4: memref<32x32xf32, #tpu.memory_space<vmem>>) attributes {dimension_semantics = [#tpu.dimension_semantics<parallel>], iteration_bounds = array<i64: 1>, scalar_prefetch = 0 : i64, scratch_operands = 0 : i64, tpu.core_type = #tpu.core_type<tc>, window_params = [{transform_indices = @transform_0, window_bounds = array<i64: 32, 160>}, {pipeline_mode = #tpu.pipeline_mode<synchronous>, transform_indices = @transform_1, window_bounds = array<i64: 160, 32>}, {pipeline_mode = #tpu.pipeline_mode<synchronous>, transform_indices = @transform_2, window_bounds = array<i64: 1, 32>}, {transform_indices = @transform_3, window_bounds = array<i64: 32, 32>}]} {
    %c0 = arith.constant 0 : index
    %c0_0 = arith.constant 0 : index
    %0 = vector.load %arg1[%c0, %c0_0] : memref<32x160xbf16, #tpu.memory_space<vmem>>, vector<32x160xbf16>
    %c0_1 = arith.constant 0 : index
    %c0_2 = arith.constant 0 : index
    %1 = vector.load %arg2[%c0_1, %c0_2] : memref<160x32xbf16, #tpu.memory_space<vmem>>, vector<160x32xbf16>
    %cst = arith.constant dense<0.000000e+00> : vector<32x32xf32>
    %2 = tpu.matmul %0, %1, %cst {dimension_numbers = #tpu.dot_dimension_numbers<[1], [0], [0], [1], [0, 0, 1, 1], [], []>} : vector<32x160xbf16>, vector<160x32xbf16>, vector<32x32xf32> -> vector<32x32xf32>
    %c0_3 = arith.constant 0 : index
    %c0_4 = arith.constant 0 : index
    %3 = vector.load %arg3[%c0_3, %c0_4] : memref<1x32xf32, #tpu.memory_space<vmem>>, vector<1x32xf32>
    %4 = vector.broadcast %3 : vector<1x32xf32> to vector<32x32xf32>
    %5 = arith.addf %2, %4 : vector<32x32xf32>
    %cst_5 = arith.constant 0.000000e+00 : f32
    %6 = vector.broadcast %cst_5 : f32 to vector<32x32xf32>
    %7 = arith.cmpf ogt, %5, %6 : vector<32x32xf32>
    %cst_6 = arith.constant 2.500000e-01 : f32
    %8 = vector.broadcast %cst_6 : f32 to vector<32x32xf32>
    %9 = arith.mulf %8, %5 : vector<32x32xf32>
    %10 = arith.select %7, %5, %9 : vector<32x32xi1>, vector<32x32xf32>
    %c0_7 = arith.constant 0 : index
    %c0_8 = arith.constant 0 : index
    %11 = vector.load %arg4[%c0_7, %c0_8] : memref<32x32xf32, #tpu.memory_space<vmem>>, vector<32x32xf32>
    tpu.vector_store %arg4[%c0_7, %c0_8], %10 {strides = array<i32>} : memref<32x32xf32, #tpu.memory_space<vmem>>, vector<32x32xf32>,
    return
  }
  func.func @transform_0(%arg0: i32) -> (i32, i32) {
    %c0_i32 = arith.constant 0 : i32
    %c0_i32_0 = arith.constant 0 : i32
    return %arg0, %c0_i32 : i32, i32
  }
  func.func @transform_1(%arg0: i32) -> (i32, i32) {
    %c0_i32 = arith.constant 0 : i32
    %c0_i32_0 = arith.constant 0 : i32
    %c0_i32_1 = arith.constant 0 : i32
    return %c0_i32, %c0_i32_0 : i32, i32
  }
  func.func @transform_2(%arg0: i32) -> (i32, i32) {
    %c0_i32 = arith.constant 0 : i32
    %c0_i32_0 = arith.constant 0 : i32
    %c0_i32_1 = arith.constant 0 : i32
    return %c0_i32, %c0_i32_0 : i32, i32
  }
  func.func @transform_3(%arg0: i32) -> (i32, i32) {
    %c0_i32 = arith.constant 0 : i32
    %c0_i32_0 = arith.constant 0 : i32
    return %arg0, %c0_i32 : i32, i32
  }
}

module attributes {stable_mosaic.version = 11 : i64} {
  func.func @kernel(%arg0: i32, %arg1: memref<32x128xbf16, #tpu.memory_space<vmem>>, %arg2: memref<128x64xbf16, #tpu.memory_space<vmem>>, %arg3: memref<1x64xf32, #tpu.memory_space<vmem>>, %arg4: memref<32x64xf32, #tpu.memory_space<vmem>>) attributes {dimension_semantics = [#tpu.dimension_semantics<parallel>], iteration_bounds = array<i64: 1>, scalar_prefetch = 0 : i64, scratch_operands = 0 : i64, tpu.core_type = #tpu.core_type<tc>, window_params = [{transform_indices = @transform_0, window_bounds = array<i64: 32, 128>}, {pipeline_mode = #tpu.pipeline_mode<synchronous>, transform_indices = @transform_1, window_bounds = array<i64: 128, 64>}, {pipeline_mode = #tpu.pipeline_mode<synchronous>, transform_indices = @transform_2, window_bounds = array<i64: 1, 64>}, {transform_indices = @transform_3, window_bounds = array<i64: 32, 64>}]} {
    %c0 = arith.constant 0 : index
    %c0_0 = arith.constant 0 : index
    %0 = vector.load %arg1[%c0, %c0_0] : memref<32x128xbf16, #tpu.memory_space<vmem>>, vector<32x128xbf16>
    %c0_1 = arith.constant 0 : index
    %c0_2 = arith.constant 0 : index
    %1 = vector.load %arg2[%c0_1, %c0_2] : memref<128x64xbf16, #tpu.memory_space<vmem>>, vector<128x64xbf16>
    %cst = arith.constant dense<0.000000e+00> : vector<32x64xf32>
    %2 = tpu.matmul %0, %1, %cst {dimension_numbers = #tpu.dot_dimension_numbers<[1], [0], [0], [1], [0, 0, 1, 1], [], []>} : vector<32x128xbf16>, vector<128x64xbf16>, vector<32x64xf32> -> vector<32x64xf32>
    %c0_3 = arith.constant 0 : index
    %c0_4 = arith.constant 0 : index
    %3 = vector.load %arg3[%c0_3, %c0_4] : memref<1x64xf32, #tpu.memory_space<vmem>>, vector<1x64xf32>
    %4 = vector.broadcast %3 : vector<1x64xf32> to vector<32x64xf32>
    %5 = arith.addf %2, %4 : vector<32x64xf32>
    %c0_5 = arith.constant 0 : index
    %c0_6 = arith.constant 0 : index
    %6 = vector.load %arg4[%c0_5, %c0_6] : memref<32x64xf32, #tpu.memory_space<vmem>>, vector<32x64xf32>
    tpu.vector_store %arg4[%c0_5, %c0_6], %5 {strides = array<i32>} : memref<32x64xf32, #tpu.memory_space<vmem>>, vector<32x64xf32>,
    return
  }
  func.func @transform_0(%arg0: i32) -> (i32, i32) {
    %c0_i32 = arith.constant 0 : i32
    %c0_i32_0 = arith.constant 0 : i32
    return %arg0, %c0_i32 : i32, i32
  }
  func.func @transform_1(%arg0: i32) -> (i32, i32) {
    %c0_i32 = arith.constant 0 : i32
    %c0_i32_0 = arith.constant 0 : i32
    %c0_i32_1 = arith.constant 0 : i32
    return %c0_i32, %c0_i32_0 : i32, i32
  }
  func.func @transform_2(%arg0: i32) -> (i32, i32) {
    %c0_i32 = arith.constant 0 : i32
    %c0_i32_0 = arith.constant 0 : i32
    %c0_i32_1 = arith.constant 0 : i32
    return %c0_i32, %c0_i32_0 : i32, i32
  }
  func.func @transform_3(%arg0: i32) -> (i32, i32) {
    %c0_i32 = arith.constant 0 : i32
    %c0_i32_0 = arith.constant 0 : i32
    return %arg0, %c0_i32 : i32, i32
  }
}

module attributes {stable_mosaic.version = 11 : i64} {
  func.func @kernel(%arg0: i32, %arg1: memref<32x128xbf16, #tpu.memory_space<vmem>>, %arg2: memref<128x32xbf16, #tpu.memory_space<vmem>>, %arg3: memref<1x32xf32, #tpu.memory_space<vmem>>, %arg4: memref<32x32xf32, #tpu.memory_space<vmem>>) attributes {dimension_semantics = [#tpu.dimension_semantics<parallel>], iteration_bounds = array<i64: 1>, scalar_prefetch = 0 : i64, scratch_operands = 0 : i64, tpu.core_type = #tpu.core_type<tc>, window_params = [{transform_indices = @transform_0, window_bounds = array<i64: 32, 128>}, {pipeline_mode = #tpu.pipeline_mode<synchronous>, transform_indices = @transform_1, window_bounds = array<i64: 128, 32>}, {pipeline_mode = #tpu.pipeline_mode<synchronous>, transform_indices = @transform_2, window_bounds = array<i64: 1, 32>}, {transform_indices = @transform_3, window_bounds = array<i64: 32, 32>}]} {
    %c0 = arith.constant 0 : index
    %c0_0 = arith.constant 0 : index
    %0 = vector.load %arg1[%c0, %c0_0] : memref<32x128xbf16, #tpu.memory_space<vmem>>, vector<32x128xbf16>
    %c0_1 = arith.constant 0 : index
    %c0_2 = arith.constant 0 : index
    %1 = vector.load %arg2[%c0_1, %c0_2] : memref<128x32xbf16, #tpu.memory_space<vmem>>, vector<128x32xbf16>
    %cst = arith.constant dense<0.000000e+00> : vector<32x32xf32>
    %2 = tpu.matmul %0, %1, %cst {dimension_numbers = #tpu.dot_dimension_numbers<[1], [0], [0], [1], [0, 0, 1, 1], [], []>} : vector<32x128xbf16>, vector<128x32xbf16>, vector<32x32xf32> -> vector<32x32xf32>
    %c0_3 = arith.constant 0 : index
    %c0_4 = arith.constant 0 : index
    %3 = vector.load %arg3[%c0_3, %c0_4] : memref<1x32xf32, #tpu.memory_space<vmem>>, vector<1x32xf32>
    %4 = vector.broadcast %3 : vector<1x32xf32> to vector<32x32xf32>
    %5 = arith.addf %2, %4 : vector<32x32xf32>
    %cst_5 = arith.constant 0.000000e+00 : f32
    %6 = vector.broadcast %cst_5 : f32 to vector<32x32xf32>
    %7 = arith.maximumf %5, %6 : vector<32x32xf32>
    %c0_6 = arith.constant 0 : index
    %c0_7 = arith.constant 0 : index
    %8 = vector.load %arg4[%c0_6, %c0_7] : memref<32x32xf32, #tpu.memory_space<vmem>>, vector<32x32xf32>
    tpu.vector_store %arg4[%c0_6, %c0_7], %7 {strides = array<i32>} : memref<32x32xf32, #tpu.memory_space<vmem>>, vector<32x32xf32>,
    return
  }
  func.func @transform_0(%arg0: i32) -> (i32, i32) {
    %c0_i32 = arith.constant 0 : i32
    %c0_i32_0 = arith.constant 0 : i32
    return %arg0, %c0_i32 : i32, i32
  }
  func.func @transform_1(%arg0: i32) -> (i32, i32) {
    %c0_i32 = arith.constant 0 : i32
    %c0_i32_0 = arith.constant 0 : i32
    %c0_i32_1 = arith.constant 0 : i32
    return %c0_i32, %c0_i32_0 : i32, i32
  }
  func.func @transform_2(%arg0: i32) -> (i32, i32) {
    %c0_i32 = arith.constant 0 : i32
    %c0_i32_0 = arith.constant 0 : i32
    %c0_i32_1 = arith.constant 0 : i32
    return %c0_i32, %c0_i32_0 : i32, i32
  }
  func.func @transform_3(%arg0: i32) -> (i32, i32) {
    %c0_i32 = arith.constant 0 : i32
    %c0_i32_0 = arith.constant 0 : i32
    return %arg0, %c0_i32 : i32, i32
  }
}

module attributes {stable_mosaic.version = 11 : i64} {
  func.func @kernel(%arg0: i32, %arg1: memref<32x128xbf16, #tpu.memory_space<vmem>>, %arg2: memref<128x128xbf16, #tpu.memory_space<vmem>>, %arg3: memref<1x128xf32, #tpu.memory_space<vmem>>, %arg4: memref<32x128xf32, #tpu.memory_space<vmem>>) attributes {dimension_semantics = [#tpu.dimension_semantics<parallel>], iteration_bounds = array<i64: 1>, scalar_prefetch = 0 : i64, scratch_operands = 0 : i64, tpu.core_type = #tpu.core_type<tc>, window_params = [{transform_indices = @transform_0, window_bounds = array<i64: 32, 128>}, {pipeline_mode = #tpu.pipeline_mode<synchronous>, transform_indices = @transform_1, window_bounds = array<i64: 128, 128>}, {pipeline_mode = #tpu.pipeline_mode<synchronous>, transform_indices = @transform_2, window_bounds = array<i64: 1, 128>}, {transform_indices = @transform_3, window_bounds = array<i64: 32, 128>}]} {
    %c0 = arith.constant 0 : index
    %c0_0 = arith.constant 0 : index
    %0 = vector.load %arg1[%c0, %c0_0] : memref<32x128xbf16, #tpu.memory_space<vmem>>, vector<32x128xbf16>
    %c0_1 = arith.constant 0 : index
    %c0_2 = arith.constant 0 : index
    %1 = vector.load %arg2[%c0_1, %c0_2] : memref<128x128xbf16, #tpu.memory_space<vmem>>, vector<128x128xbf16>
    %cst = arith.constant dense<0.000000e+00> : vector<32x128xf32>
    %2 = tpu.matmul %0, %1, %cst {dimension_numbers = #tpu.dot_dimension_numbers<[1], [0], [0], [1], [0, 0, 1, 1], [], []>} : vector<32x128xbf16>, vector<128x128xbf16>, vector<32x128xf32> -> vector<32x128xf32>
    %c0_3 = arith.constant 0 : index
    %c0_4 = arith.constant 0 : index
    %3 = vector.load %arg3[%c0_3, %c0_4] : memref<1x128xf32, #tpu.memory_space<vmem>>, vector<1x128xf32>
    %4 = vector.broadcast %3 : vector<1x128xf32> to vector<32x128xf32>
    %5 = arith.addf %2, %4 : vector<32x128xf32>
    %cst_5 = arith.constant 0.000000e+00 : f32
    %6 = vector.broadcast %cst_5 : f32 to vector<32x128xf32>
    %7 = arith.maximumf %5, %6 : vector<32x128xf32>
    %c0_6 = arith.constant 0 : index
    %c0_7 = arith.constant 0 : index
    %8 = vector.load %arg4[%c0_6, %c0_7] : memref<32x128xf32, #tpu.memory_space<vmem>>, vector<32x128xf32>
    tpu.vector_store %arg4[%c0_6, %c0_7], %7 {strides = array<i32>} : memref<32x128xf32, #tpu.memory_space<vmem>>, vector<32x128xf32>,
    return
  }
  func.func @transform_0(%arg0: i32) -> (i32, i32) {
    %c0_i32 = arith.constant 0 : i32
    %c0_i32_0 = arith.constant 0 : i32
    return %arg0, %c0_i32 : i32, i32
  }
  func.func @transform_1(%arg0: i32) -> (i32, i32) {
    %c0_i32 = arith.constant 0 : i32
    %c0_i32_0 = arith.constant 0 : i32
    %c0_i32_1 = arith.constant 0 : i32
    return %c0_i32, %c0_i32_0 : i32, i32
  }
  func.func @transform_2(%arg0: i32) -> (i32, i32) {
    %c0_i32 = arith.constant 0 : i32
    %c0_i32_0 = arith.constant 0 : i32
    %c0_i32_1 = arith.constant 0 : i32
    return %c0_i32, %c0_i32_0 : i32, i32
  }
  func.func @transform_3(%arg0: i32) -> (i32, i32) {
    %c0_i32 = arith.constant 0 : i32
    %c0_i32_0 = arith.constant 0 : i32
    return %arg0, %c0_i32 : i32, i32
  }
}

module attributes {stable_mosaic.version = 11 : i64} {
  func.func @kernel(%arg0: i32, %arg1: memref<128x32xbf16, #tpu.memory_space<vmem>>, %arg2: memref<32x64xbf16, #tpu.memory_space<vmem>>, %arg3: memref<1x64xf32, #tpu.memory_space<vmem>>, %arg4: memref<128x64xf32, #tpu.memory_space<vmem>>, %arg5: memref<128x64xf32, #tpu.memory_space<vmem>>) attributes {dimension_semantics = [#tpu.dimension_semantics<parallel>], iteration_bounds = array<i64: 1>, scalar_prefetch = 0 : i64, scratch_operands = 0 : i64, tpu.core_type = #tpu.core_type<tc>, window_params = [{transform_indices = @transform_0, window_bounds = array<i64: 128, 32>}, {pipeline_mode = #tpu.pipeline_mode<synchronous>, transform_indices = @transform_1, window_bounds = array<i64: 32, 64>}, {pipeline_mode = #tpu.pipeline_mode<synchronous>, transform_indices = @transform_2, window_bounds = array<i64: 1, 64>}, {transform_indices = @transform_3, window_bounds = array<i64: 128, 64>}, {transform_indices = @transform_4, window_bounds = array<i64: 128, 64>}]} {
    %c0 = arith.constant 0 : index
    %c0_0 = arith.constant 0 : index
    %0 = vector.load %arg1[%c0, %c0_0] : memref<128x32xbf16, #tpu.memory_space<vmem>>, vector<128x32xbf16>
    %c0_1 = arith.constant 0 : index
    %c0_2 = arith.constant 0 : index
    %1 = vector.load %arg2[%c0_1, %c0_2] : memref<32x64xbf16, #tpu.memory_space<vmem>>, vector<32x64xbf16>
    %cst = arith.constant dense<0.000000e+00> : vector<128x64xf32>
    %2 = tpu.matmul %0, %1, %cst {dimension_numbers = #tpu.dot_dimension_numbers<[1], [0], [0], [1], [0, 0, 1, 1], [], []>} : vector<128x32xbf16>, vector<32x64xbf16>, vector<128x64xf32> -> vector<128x64xf32>
    %c0_3 = arith.constant 0 : index
    %c0_4 = arith.constant 0 : index
    %3 = vector.load %arg3[%c0_3, %c0_4] : memref<1x64xf32, #tpu.memory_space<vmem>>, vector<1x64xf32>
    %4 = vector.broadcast %3 : vector<1x64xf32> to vector<128x64xf32>
    %5 = arith.addf %2, %4 : vector<128x64xf32>
    %cst_5 = arith.constant 0.000000e+00 : f32
    %6 = vector.broadcast %cst_5 : f32 to vector<128x64xf32>
    %7 = arith.maximumf %5, %6 : vector<128x64xf32>
    %c0_6 = arith.constant 0 : index
    %c0_7 = arith.constant 0 : index
    %8 = vector.load %arg4[%c0_6, %c0_7] : memref<128x64xf32, #tpu.memory_space<vmem>>, vector<128x64xf32>
    %9 = arith.addf %7, %8 : vector<128x64xf32>
    %cst_8 = arith.constant 0.000000e+00 : f32
    %10 = vector.broadcast %cst_8 : f32 to vector<128x64xf32>
    %11 = arith.maximumf %9, %10 : vector<128x64xf32>
    %c0_9 = arith.constant 0 : index
    %c0_10 = arith.constant 0 : index
    %12 = vector.load %arg5[%c0_9, %c0_10] : memref<128x64xf32, #tpu.memory_space<vmem>>, vector<128x64xf32>
    tpu.vector_store %arg5[%c0_9, %c0_10], %11 {strides = array<i32>} : memref<128x64xf32, #tpu.memory_space<vmem>>, vector<128x64xf32>,
    return
  }
  func.func @transform_0(%arg0: i32) -> (i32, i32) {
    %c0_i32 = arith.constant 0 : i32
    %c0_i32_0 = arith.constant 0 : i32
    return %arg0, %c0_i32 : i32, i32
  }
  func.func @transform_1(%arg0: i32) -> (i32, i32) {
    %c0_i32 = arith.constant 0 : i32
    %c0_i32_0 = arith.constant 0 : i32
    %c0_i32_1 = arith.constant 0 : i32
    return %c0_i32, %c0_i32_0 : i32, i32
  }
  func.func @transform_2(%arg0: i32) -> (i32, i32) {
    %c0_i32 = arith.constant 0 : i32
    %c0_i32_0 = arith.constant 0 : i32
    %c0_i32_1 = arith.constant 0 : i32
    return %c0_i32, %c0_i32_0 : i32, i32
  }
  func.func @transform_3(%arg0: i32) -> (i32, i32) {
    %c0_i32 = arith.constant 0 : i32
    %c0_i32_0 = arith.constant 0 : i32
    return %arg0, %c0_i32 : i32, i32
  }
  func.func @transform_4(%arg0: i32) -> (i32, i32) {
    %c0_i32 = arith.constant 0 : i32
    %c0_i32_0 = arith.constant 0 : i32
    return %arg0, %c0_i32 : i32, i32
  }
}

module attributes {stable_mosaic.version = 11 : i64} {
  func.func @kernel(%arg0: i32, %arg1: memref<128x64xbf16, #tpu.memory_space<vmem>>, %arg2: memref<64x16xbf16, #tpu.memory_space<vmem>>, %arg3: memref<1x16xf32, #tpu.memory_space<vmem>>, %arg4: memref<128x16xf32, #tpu.memory_space<vmem>>) attributes {dimension_semantics = [#tpu.dimension_semantics<parallel>], iteration_bounds = array<i64: 1>, scalar_prefetch = 0 : i64, scratch_operands = 0 : i64, tpu.core_type = #tpu.core_type<tc>, window_params = [{transform_indices = @transform_0, window_bounds = array<i64: 128, 64>}, {pipeline_mode = #tpu.pipeline_mode<synchronous>, transform_indices = @transform_1, window_bounds = array<i64: 64, 16>}, {pipeline_mode = #tpu.pipeline_mode<synchronous>, transform_indices = @transform_2, window_bounds = array<i64: 1, 16>}, {transform_indices = @transform_3, window_bounds = array<i64: 128, 16>}]} {
    %c0 = arith.constant 0 : index
    %c0_0 = arith.constant 0 : index
    %0 = vector.load %arg1[%c0, %c0_0] : memref<128x64xbf16, #tpu.memory_space<vmem>>, vector<128x64xbf16>
    %c0_1 = arith.constant 0 : index
    %c0_2 = arith.constant 0 : index
    %1 = vector.load %arg2[%c0_1, %c0_2] : memref<64x16xbf16, #tpu.memory_space<vmem>>, vector<64x16xbf16>
    %cst = arith.constant dense<0.000000e+00> : vector<128x16xf32>
    %2 = tpu.matmul %0, %1, %cst {dimension_numbers = #tpu.dot_dimension_numbers<[1], [0], [0], [1], [0, 0, 1, 1], [], []>} : vector<128x64xbf16>, vector<64x16xbf16>, vector<128x16xf32> -> vector<128x16xf32>
    %c0_3 = arith.constant 0 : index
    %c0_4 = arith.constant 0 : index
    %3 = vector.load %arg3[%c0_3, %c0_4] : memref<1x16xf32, #tpu.memory_space<vmem>>, vector<1x16xf32>
    %4 = vector.broadcast %3 : vector<1x16xf32> to vector<128x16xf32>
    %5 = arith.addf %2, %4 : vector<128x16xf32>
    %cst_5 = arith.constant 0.000000e+00 : f32
    %6 = vector.broadcast %cst_5 : f32 to vector<128x16xf32>
    %7 = arith.maximumf %5, %6 : vector<128x16xf32>
    %c0_6 = arith.constant 0 : index
    %c0_7 = arith.constant 0 : index
    %8 = vector.load %arg4[%c0_6, %c0_7] : memref<128x16xf32, #tpu.memory_space<vmem>>, vector<128x16xf32>
    tpu.vector_store %arg4[%c0_6, %c0_7], %7 {strides = array<i32>} : memref<128x16xf32, #tpu.memory_space<vmem>>, vector<128x16xf32>,
    return
  }
  func.func @transform_0(%arg0: i32) -> (i32, i32) {
    %c0_i32 = arith.constant 0 : i32
    %c0_i32_0 = arith.constant 0 : i32
    return %arg0, %c0_i32 : i32, i32
  }
  func.func @transform_1(%arg0: i32) -> (i32, i32) {
    %c0_i32 = arith.constant 0 : i32
    %c0_i32_0 = arith.constant 0 : i32
    %c0_i32_1 = arith.constant 0 : i32
    return %c0_i32, %c0_i32_0 : i32, i32
  }
  func.func @transform_2(%arg0: i32) -> (i32, i32) {
    %c0_i32 = arith.constant 0 : i32
    %c0_i32_0 = arith.constant 0 : i32
    %c0_i32_1 = arith.constant 0 : i32
    return %c0_i32, %c0_i32_0 : i32, i32
  }
  func.func @transform_3(%arg0: i32) -> (i32, i32) {
    %c0_i32 = arith.constant 0 : i32
    %c0_i32_0 = arith.constant 0 : i32
    return %arg0, %c0_i32 : i32, i32
  }
}

module attributes {stable_mosaic.version = 11 : i64} {
  func.func @kernel(%arg0: i32, %arg1: memref<128x144xbf16, #tpu.memory_space<vmem>>, %arg2: memref<144x16xbf16, #tpu.memory_space<vmem>>, %arg3: memref<1x16xf32, #tpu.memory_space<vmem>>, %arg4: memref<128x16xf32, #tpu.memory_space<vmem>>) attributes {dimension_semantics = [#tpu.dimension_semantics<parallel>], iteration_bounds = array<i64: 1>, scalar_prefetch = 0 : i64, scratch_operands = 0 : i64, tpu.core_type = #tpu.core_type<tc>, window_params = [{transform_indices = @transform_0, window_bounds = array<i64: 128, 144>}, {pipeline_mode = #tpu.pipeline_mode<synchronous>, transform_indices = @transform_1, window_bounds = array<i64: 144, 16>}, {pipeline_mode = #tpu.pipeline_mode<synchronous>, transform_indices = @transform_2, window_bounds = array<i64: 1, 16>}, {transform_indices = @transform_3, window_bounds = array<i64: 128, 16>}]} {
    %c0 = arith.constant 0 : index
    %c0_0 = arith.constant 0 : index
    %0 = vector.load %arg1[%c0, %c0_0] : memref<128x144xbf16, #tpu.memory_space<vmem>>, vector<128x144xbf16>
    %c0_1 = arith.constant 0 : index
    %c0_2 = arith.constant 0 : index
    %1 = vector.load %arg2[%c0_1, %c0_2] : memref<144x16xbf16, #tpu.memory_space<vmem>>, vector<144x16xbf16>
    %cst = arith.constant dense<0.000000e+00> : vector<128x16xf32>
    %2 = tpu.matmul %0, %1, %cst {dimension_numbers = #tpu.dot_dimension_numbers<[1], [0], [0], [1], [0, 0, 1, 1], [], []>} : vector<128x144xbf16>, vector<144x16xbf16>, vector<128x16xf32> -> vector<128x16xf32>
    %c0_3 = arith.constant 0 : index
    %c0_4 = arith.constant 0 : index
    %3 = vector.load %arg3[%c0_3, %c0_4] : memref<1x16xf32, #tpu.memory_space<vmem>>, vector<1x16xf32>
    %4 = vector.broadcast %3 : vector<1x16xf32> to vector<128x16xf32>
    %5 = arith.addf %2, %4 : vector<128x16xf32>
    %cst_5 = arith.constant 0.000000e+00 : f32
    %6 = vector.broadcast %cst_5 : f32 to vector<128x16xf32>
    %7 = arith.maximumf %5, %6 : vector<128x16xf32>
    %c0_6 = arith.constant 0 : index
    %c0_7 = arith.constant 0 : index
    %8 = vector.load %arg4[%c0_6, %c0_7] : memref<128x16xf32, #tpu.memory_space<vmem>>, vector<128x16xf32>
    tpu.vector_store %arg4[%c0_6, %c0_7], %7 {strides = array<i32>} : memref<128x16xf32, #tpu.memory_space<vmem>>, vector<128x16xf32>,
    return
  }
  func.func @transform_0(%arg0: i32) -> (i32, i32) {
    %c0_i32 = arith.constant 0 : i32
    %c0_i32_0 = arith.constant 0 : i32
    return %arg0, %c0_i32 : i32, i32
  }
  func.func @transform_1(%arg0: i32) -> (i32, i32) {
    %c0_i32 = arith.constant 0 : i32
    %c0_i32_0 = arith.constant 0 : i32
    %c0_i32_1 = arith.constant 0 : i32
    return %c0_i32, %c0_i32_0 : i32, i32
  }
  func.func @transform_2(%arg0: i32) -> (i32, i32) {
    %c0_i32 = arith.constant 0 : i32
    %c0_i32_0 = arith.constant 0 : i32
    %c0_i32_1 = arith.constant 0 : i32
    return %c0_i32, %c0_i32_0 : i32, i32
  }
  func.func @transform_3(%arg0: i32) -> (i32, i32) {
    %c0_i32 = arith.constant 0 : i32
    %c0_i32_0 = arith.constant 0 : i32
    return %arg0, %c0_i32 : i32, i32
  }
}

module attributes {stable_mosaic.version = 11 : i64} {
  func.func @kernel(%arg0: i32, %arg1: memref<128x16xbf16, #tpu.memory_space<vmem>>, %arg2: memref<16x64xbf16, #tpu.memory_space<vmem>>, %arg3: memref<1x64xf32, #tpu.memory_space<vmem>>, %arg4: memref<128x64xf32, #tpu.memory_space<vmem>>, %arg5: memref<128x64xf32, #tpu.memory_space<vmem>>) attributes {dimension_semantics = [#tpu.dimension_semantics<parallel>], iteration_bounds = array<i64: 1>, scalar_prefetch = 0 : i64, scratch_operands = 0 : i64, tpu.core_type = #tpu.core_type<tc>, window_params = [{transform_indices = @transform_0, window_bounds = array<i64: 128, 16>}, {pipeline_mode = #tpu.pipeline_mode<synchronous>, transform_indices = @transform_1, window_bounds = array<i64: 16, 64>}, {pipeline_mode = #tpu.pipeline_mode<synchronous>, transform_indices = @transform_2, window_bounds = array<i64: 1, 64>}, {transform_indices = @transform_3, window_bounds = array<i64: 128, 64>}, {transform_indices = @transform_4, window_bounds = array<i64: 128, 64>}]} {
    %c0 = arith.constant 0 : index
    %c0_0 = arith.constant 0 : index
    %0 = vector.load %arg1[%c0, %c0_0] : memref<128x16xbf16, #tpu.memory_space<vmem>>, vector<128x16xbf16>
    %c0_1 = arith.constant 0 : index
    %c0_2 = arith.constant 0 : index
    %1 = vector.load %arg2[%c0_1, %c0_2] : memref<16x64xbf16, #tpu.memory_space<vmem>>, vector<16x64xbf16>
    %cst = arith.constant dense<0.000000e+00> : vector<128x64xf32>
    %2 = tpu.matmul %0, %1, %cst {dimension_numbers = #tpu.dot_dimension_numbers<[1], [0], [0], [1], [0, 0, 1, 1], [], []>} : vector<128x16xbf16>, vector<16x64xbf16>, vector<128x64xf32> -> vector<128x64xf32>
    %c0_3 = arith.constant 0 : index
    %c0_4 = arith.constant 0 : index
    %3 = vector.load %arg3[%c0_3, %c0_4] : memref<1x64xf32, #tpu.memory_space<vmem>>, vector<1x64xf32>
    %4 = vector.broadcast %3 : vector<1x64xf32> to vector<128x64xf32>
    %5 = arith.addf %2, %4 : vector<128x64xf32>
    %cst_5 = arith.constant 0.000000e+00 : f32
    %6 = vector.broadcast %cst_5 : f32 to vector<128x64xf32>
    %7 = arith.maximumf %5, %6 : vector<128x64xf32>
    %c0_6 = arith.constant 0 : index
    %c0_7 = arith.constant 0 : index
    %8 = vector.load %arg4[%c0_6, %c0_7] : memref<128x64xf32, #tpu.memory_space<vmem>>, vector<128x64xf32>
    %9 = arith.addf %7, %8 : vector<128x64xf32>
    %cst_8 = arith.constant 0.000000e+00 : f32
    %10 = vector.broadcast %cst_8 : f32 to vector<128x64xf32>
    %11 = arith.maximumf %9, %10 : vector<128x64xf32>
    %c0_9 = arith.constant 0 : index
    %c0_10 = arith.constant 0 : index
    %12 = vector.load %arg5[%c0_9, %c0_10] : memref<128x64xf32, #tpu.memory_space<vmem>>, vector<128x64xf32>
    tpu.vector_store %arg5[%c0_9, %c0_10], %11 {strides = array<i32>} : memref<128x64xf32, #tpu.memory_space<vmem>>, vector<128x64xf32>,
    return
  }
  func.func @transform_0(%arg0: i32) -> (i32, i32) {
    %c0_i32 = arith.constant 0 : i32
    %c0_i32_0 = arith.constant 0 : i32
    return %arg0, %c0_i32 : i32, i32
  }
  func.func @transform_1(%arg0: i32) -> (i32, i32) {
    %c0_i32 = arith.constant 0 : i32
    %c0_i32_0 = arith.constant 0 : i32
    %c0_i32_1 = arith.constant 0 : i32
    return %c0_i32, %c0_i32_0 : i32, i32
  }
  func.func @transform_2(%arg0: i32) -> (i32, i32) {
    %c0_i32 = arith.constant 0 : i32
    %c0_i32_0 = arith.constant 0 : i32
    %c0_i32_1 = arith.constant 0 : i32
    return %c0_i32, %c0_i32_0 : i32, i32
  }
  func.func @transform_3(%arg0: i32) -> (i32, i32) {
    %c0_i32 = arith.constant 0 : i32
    %c0_i32_0 = arith.constant 0 : i32
    return %arg0, %c0_i32 : i32, i32
  }
  func.func @transform_4(%arg0: i32) -> (i32, i32) {
    %c0_i32 = arith.constant 0 : i32
    %c0_i32_0 = arith.constant 0 : i32
    return %arg0, %c0_i32 : i32, i32
  }
}

module attributes {stable_mosaic.version = 11 : i64} {
  func.func @kernel(%arg0: i32, %arg1: memref<128x64xbf16, #tpu.memory_space<vmem>>, %arg2: memref<64x16xbf16, #tpu.memory_space<vmem>>, %arg3: memref<1x16xf32, #tpu.memory_space<vmem>>, %arg4: memref<128x16xf32, #tpu.memory_space<vmem>>) attributes {dimension_semantics = [#tpu.dimension_semantics<parallel>], iteration_bounds = array<i64: 1>, scalar_prefetch = 0 : i64, scratch_operands = 0 : i64, tpu.core_type = #tpu.core_type<tc>, window_params = [{transform_indices = @transform_0, window_bounds = array<i64: 128, 64>}, {pipeline_mode = #tpu.pipeline_mode<synchronous>, transform_indices = @transform_1, window_bounds = array<i64: 64, 16>}, {pipeline_mode = #tpu.pipeline_mode<synchronous>, transform_indices = @transform_2, window_bounds = array<i64: 1, 16>}, {transform_indices = @transform_3, window_bounds = array<i64: 128, 16>}]} {
    %c0 = arith.constant 0 : index
    %c0_0 = arith.constant 0 : index
    %0 = vector.load %arg1[%c0, %c0_0] : memref<128x64xbf16, #tpu.memory_space<vmem>>, vector<128x64xbf16>
    %c0_1 = arith.constant 0 : index
    %c0_2 = arith.constant 0 : index
    %1 = vector.load %arg2[%c0_1, %c0_2] : memref<64x16xbf16, #tpu.memory_space<vmem>>, vector<64x16xbf16>
    %cst = arith.constant dense<0.000000e+00> : vector<128x16xf32>
    %2 = tpu.matmul %0, %1, %cst {dimension_numbers = #tpu.dot_dimension_numbers<[1], [0], [0], [1], [0, 0, 1, 1], [], []>} : vector<128x64xbf16>, vector<64x16xbf16>, vector<128x16xf32> -> vector<128x16xf32>
    %c0_3 = arith.constant 0 : index
    %c0_4 = arith.constant 0 : index
    %3 = vector.load %arg3[%c0_3, %c0_4] : memref<1x16xf32, #tpu.memory_space<vmem>>, vector<1x16xf32>
    %4 = vector.broadcast %3 : vector<1x16xf32> to vector<128x16xf32>
    %5 = arith.addf %2, %4 : vector<128x16xf32>
    %c0_5 = arith.constant 0 : index
    %c0_6 = arith.constant 0 : index
    %6 = vector.load %arg4[%c0_5, %c0_6] : memref<128x16xf32, #tpu.memory_space<vmem>>, vector<128x16xf32>
    tpu.vector_store %arg4[%c0_5, %c0_6], %5 {strides = array<i32>} : memref<128x16xf32, #tpu.memory_space<vmem>>, vector<128x16xf32>,
    return
  }
  func.func @transform_0(%arg0: i32) -> (i32, i32) {
    %c0_i32 = arith.constant 0 : i32
    %c0_i32_0 = arith.constant 0 : i32
    return %arg0, %c0_i32 : i32, i32
  }
  func.func @transform_1(%arg0: i32) -> (i32, i32) {
    %c0_i32 = arith.constant 0 : i32
    %c0_i32_0 = arith.constant 0 : i32
    %c0_i32_1 = arith.constant 0 : i32
    return %c0_i32, %c0_i32_0 : i32, i32
  }
  func.func @transform_2(%arg0: i32) -> (i32, i32) {
    %c0_i32 = arith.constant 0 : i32
    %c0_i32_0 = arith.constant 0 : i32
    %c0_i32_1 = arith.constant 0 : i32
    return %c0_i32, %c0_i32_0 : i32, i32
  }
  func.func @transform_3(%arg0: i32) -> (i32, i32) {
    %c0_i32 = arith.constant 0 : i32
    %c0_i32_0 = arith.constant 0 : i32
    return %arg0, %c0_i32 : i32, i32
  }
}

module attributes {stable_mosaic.version = 11 : i64} {
  func.func @kernel(%arg0: i32, %arg1: memref<128x64xbf16, #tpu.memory_space<vmem>>, %arg2: memref<64x64xbf16, #tpu.memory_space<vmem>>, %arg3: memref<1x64xf32, #tpu.memory_space<vmem>>, %arg4: memref<128x64xf32, #tpu.memory_space<vmem>>) attributes {dimension_semantics = [#tpu.dimension_semantics<parallel>], iteration_bounds = array<i64: 1>, scalar_prefetch = 0 : i64, scratch_operands = 0 : i64, tpu.core_type = #tpu.core_type<tc>, window_params = [{transform_indices = @transform_0, window_bounds = array<i64: 128, 64>}, {pipeline_mode = #tpu.pipeline_mode<synchronous>, transform_indices = @transform_1, window_bounds = array<i64: 64, 64>}, {pipeline_mode = #tpu.pipeline_mode<synchronous>, transform_indices = @transform_2, window_bounds = array<i64: 1, 64>}, {transform_indices = @transform_3, window_bounds = array<i64: 128, 64>}]} {
    %c0 = arith.constant 0 : index
    %c0_0 = arith.constant 0 : index
    %0 = vector.load %arg1[%c0, %c0_0] : memref<128x64xbf16, #tpu.memory_space<vmem>>, vector<128x64xbf16>
    %c0_1 = arith.constant 0 : index
    %c0_2 = arith.constant 0 : index
    %1 = vector.load %arg2[%c0_1, %c0_2] : memref<64x64xbf16, #tpu.memory_space<vmem>>, vector<64x64xbf16>
    %cst = arith.constant dense<0.000000e+00> : vector<128x64xf32>
    %2 = tpu.matmul %0, %1, %cst {dimension_numbers = #tpu.dot_dimension_numbers<[1], [0], [0], [1], [0, 0, 1, 1], [], []>} : vector<128x64xbf16>, vector<64x64xbf16>, vector<128x64xf32> -> vector<128x64xf32>
    %c0_3 = arith.constant 0 : index
    %c0_4 = arith.constant 0 : index
    %3 = vector.load %arg3[%c0_3, %c0_4] : memref<1x64xf32, #tpu.memory_space<vmem>>, vector<1x64xf32>
    %4 = vector.broadcast %3 : vector<1x64xf32> to vector<128x64xf32>
    %5 = arith.addf %2, %4 : vector<128x64xf32>
    %cst_5 = arith.constant 0.000000e+00 : f32
    %6 = vector.broadcast %cst_5 : f32 to vector<128x64xf32>
    %7 = arith.maximumf %5, %6 : vector<128x64xf32>
    %c0_6 = arith.constant 0 : index
    %c0_7 = arith.constant 0 : index
    %8 = vector.load %arg4[%c0_6, %c0_7] : memref<128x64xf32, #tpu.memory_space<vmem>>, vector<128x64xf32>
    tpu.vector_store %arg4[%c0_6, %c0_7], %7 {strides = array<i32>} : memref<128x64xf32, #tpu.memory_space<vmem>>, vector<128x64xf32>,
    return
  }
  func.func @transform_0(%arg0: i32) -> (i32, i32) {
    %c0_i32 = arith.constant 0 : i32
    %c0_i32_0 = arith.constant 0 : i32
    return %arg0, %c0_i32 : i32, i32
  }
  func.func @transform_1(%arg0: i32) -> (i32, i32) {
    %c0_i32 = arith.constant 0 : i32
    %c0_i32_0 = arith.constant 0 : i32
    %c0_i32_1 = arith.constant 0 : i32
    return %c0_i32, %c0_i32_0 : i32, i32
  }
  func.func @transform_2(%arg0: i32) -> (i32, i32) {
    %c0_i32 = arith.constant 0 : i32
    %c0_i32_0 = arith.constant 0 : i32
    %c0_i32_1 = arith.constant 0 : i32
    return %c0_i32, %c0_i32_0 : i32, i32
  }
  func.func @transform_3(%arg0: i32) -> (i32, i32) {
    %c0_i32 = arith.constant 0 : i32
    %c0_i32_0 = arith.constant 0 : i32
    return %arg0, %c0_i32 : i32, i32
  }
}

module attributes {stable_mosaic.version = 11 : i64} {
  func.func @kernel(%arg0: i32, %arg1: memref<512x16xbf16, #tpu.memory_space<vmem>>, %arg2: memref<16x4xbf16, #tpu.memory_space<vmem>>, %arg3: memref<1x4xf32, #tpu.memory_space<vmem>>, %arg4: memref<512x4xf32, #tpu.memory_space<vmem>>) attributes {dimension_semantics = [#tpu.dimension_semantics<parallel>], iteration_bounds = array<i64: 1>, scalar_prefetch = 0 : i64, scratch_operands = 0 : i64, tpu.core_type = #tpu.core_type<tc>, window_params = [{transform_indices = @transform_0, window_bounds = array<i64: 512, 16>}, {pipeline_mode = #tpu.pipeline_mode<synchronous>, transform_indices = @transform_1, window_bounds = array<i64: 16, 4>}, {pipeline_mode = #tpu.pipeline_mode<synchronous>, transform_indices = @transform_2, window_bounds = array<i64: 1, 4>}, {transform_indices = @transform_3, window_bounds = array<i64: 512, 4>}]} {
    %c0 = arith.constant 0 : index
    %c0_0 = arith.constant 0 : index
    %0 = vector.load %arg1[%c0, %c0_0] : memref<512x16xbf16, #tpu.memory_space<vmem>>, vector<512x16xbf16>
    %c0_1 = arith.constant 0 : index
    %c0_2 = arith.constant 0 : index
    %1 = vector.load %arg2[%c0_1, %c0_2] : memref<16x4xbf16, #tpu.memory_space<vmem>>, vector<16x4xbf16>
    %cst = arith.constant dense<0.000000e+00> : vector<512x4xf32>
    %2 = tpu.matmul %0, %1, %cst {dimension_numbers = #tpu.dot_dimension_numbers<[1], [0], [0], [1], [0, 0, 1, 1], [], []>} : vector<512x16xbf16>, vector<16x4xbf16>, vector<512x4xf32> -> vector<512x4xf32>
    %c0_3 = arith.constant 0 : index
    %c0_4 = arith.constant 0 : index
    %3 = vector.load %arg3[%c0_3, %c0_4] : memref<1x4xf32, #tpu.memory_space<vmem>>, vector<1x4xf32>
    %4 = vector.broadcast %3 : vector<1x4xf32> to vector<512x4xf32>
    %5 = arith.addf %2, %4 : vector<512x4xf32>
    %cst_5 = arith.constant 0.000000e+00 : f32
    %6 = vector.broadcast %cst_5 : f32 to vector<512x4xf32>
    %7 = arith.maximumf %5, %6 : vector<512x4xf32>
    %c0_6 = arith.constant 0 : index
    %c0_7 = arith.constant 0 : index
    %8 = vector.load %arg4[%c0_6, %c0_7] : memref<512x4xf32, #tpu.memory_space<vmem>>, vector<512x4xf32>
    tpu.vector_store %arg4[%c0_6, %c0_7], %7 {strides = array<i32>} : memref<512x4xf32, #tpu.memory_space<vmem>>, vector<512x4xf32>,
    return
  }
  func.func @transform_0(%arg0: i32) -> (i32, i32) {
    %c0_i32 = arith.constant 0 : i32
    %c0_i32_0 = arith.constant 0 : i32
    return %arg0, %c0_i32 : i32, i32
  }
  func.func @transform_1(%arg0: i32) -> (i32, i32) {
    %c0_i32 = arith.constant 0 : i32
    %c0_i32_0 = arith.constant 0 : i32
    %c0_i32_1 = arith.constant 0 : i32
    return %c0_i32, %c0_i32_0 : i32, i32
  }
  func.func @transform_2(%arg0: i32) -> (i32, i32) {
    %c0_i32 = arith.constant 0 : i32
    %c0_i32_0 = arith.constant 0 : i32
    %c0_i32_1 = arith.constant 0 : i32
    return %c0_i32, %c0_i32_0 : i32, i32
  }
  func.func @transform_3(%arg0: i32) -> (i32, i32) {
    %c0_i32 = arith.constant 0 : i32
    %c0_i32_0 = arith.constant 0 : i32
    return %arg0, %c0_i32 : i32, i32
  }
}

module attributes {stable_mosaic.version = 11 : i64} {
  func.func @kernel(%arg0: i32, %arg1: memref<512x16xbf16, #tpu.memory_space<vmem>>, %arg2: memref<16x16xbf16, #tpu.memory_space<vmem>>, %arg3: memref<1x16xf32, #tpu.memory_space<vmem>>, %arg4: memref<512x16xf32, #tpu.memory_space<vmem>>, %arg5: memref<512x16xf32, #tpu.memory_space<vmem>>) attributes {dimension_semantics = [#tpu.dimension_semantics<parallel>], iteration_bounds = array<i64: 1>, scalar_prefetch = 0 : i64, scratch_operands = 0 : i64, tpu.core_type = #tpu.core_type<tc>, window_params = [{transform_indices = @transform_0, window_bounds = array<i64: 512, 16>}, {pipeline_mode = #tpu.pipeline_mode<synchronous>, transform_indices = @transform_1, window_bounds = array<i64: 16, 16>}, {pipeline_mode = #tpu.pipeline_mode<synchronous>, transform_indices = @transform_2, window_bounds = array<i64: 1, 16>}, {transform_indices = @transform_3, window_bounds = array<i64: 512, 16>}, {transform_indices = @transform_4, window_bounds = array<i64: 512, 16>}]} {
    %c0 = arith.constant 0 : index
    %c0_0 = arith.constant 0 : index
    %0 = vector.load %arg1[%c0, %c0_0] : memref<512x16xbf16, #tpu.memory_space<vmem>>, vector<512x16xbf16>
    %c0_1 = arith.constant 0 : index
    %c0_2 = arith.constant 0 : index
    %1 = vector.load %arg2[%c0_1, %c0_2] : memref<16x16xbf16, #tpu.memory_space<vmem>>, vector<16x16xbf16>
    %cst = arith.constant dense<0.000000e+00> : vector<512x16xf32>
    %2 = tpu.matmul %0, %1, %cst {dimension_numbers = #tpu.dot_dimension_numbers<[1], [0], [0], [1], [0, 0, 1, 1], [], []>} : vector<512x16xbf16>, vector<16x16xbf16>, vector<512x16xf32> -> vector<512x16xf32>
    %c0_3 = arith.constant 0 : index
    %c0_4 = arith.constant 0 : index
    %3 = vector.load %arg3[%c0_3, %c0_4] : memref<1x16xf32, #tpu.memory_space<vmem>>, vector<1x16xf32>
    %4 = vector.broadcast %3 : vector<1x16xf32> to vector<512x16xf32>
    %5 = arith.addf %2, %4 : vector<512x16xf32>
    %cst_5 = arith.constant 0.000000e+00 : f32
    %6 = vector.broadcast %cst_5 : f32 to vector<512x16xf32>
    %7 = arith.maximumf %5, %6 : vector<512x16xf32>
    %c0_6 = arith.constant 0 : index
    %c0_7 = arith.constant 0 : index
    %8 = vector.load %arg4[%c0_6, %c0_7] : memref<512x16xf32, #tpu.memory_space<vmem>>, vector<512x16xf32>
    %9 = arith.addf %7, %8 : vector<512x16xf32>
    %cst_8 = arith.constant 0.000000e+00 : f32
    %10 = vector.broadcast %cst_8 : f32 to vector<512x16xf32>
    %11 = arith.maximumf %9, %10 : vector<512x16xf32>
    %c0_9 = arith.constant 0 : index
    %c0_10 = arith.constant 0 : index
    %12 = vector.load %arg5[%c0_9, %c0_10] : memref<512x16xf32, #tpu.memory_space<vmem>>, vector<512x16xf32>
    tpu.vector_store %arg5[%c0_9, %c0_10], %11 {strides = array<i32>} : memref<512x16xf32, #tpu.memory_space<vmem>>, vector<512x16xf32>,
    return
  }
  func.func @transform_0(%arg0: i32) -> (i32, i32) {
    %c0_i32 = arith.constant 0 : i32
    %c0_i32_0 = arith.constant 0 : i32
    return %arg0, %c0_i32 : i32, i32
  }
  func.func @transform_1(%arg0: i32) -> (i32, i32) {
    %c0_i32 = arith.constant 0 : i32
    %c0_i32_0 = arith.constant 0 : i32
    %c0_i32_1 = arith.constant 0 : i32
    return %c0_i32, %c0_i32_0 : i32, i32
  }
  func.func @transform_2(%arg0: i32) -> (i32, i32) {
    %c0_i32 = arith.constant 0 : i32
    %c0_i32_0 = arith.constant 0 : i32
    %c0_i32_1 = arith.constant 0 : i32
    return %c0_i32, %c0_i32_0 : i32, i32
  }
  func.func @transform_3(%arg0: i32) -> (i32, i32) {
    %c0_i32 = arith.constant 0 : i32
    %c0_i32_0 = arith.constant 0 : i32
    return %arg0, %c0_i32 : i32, i32
  }
  func.func @transform_4(%arg0: i32) -> (i32, i32) {
    %c0_i32 = arith.constant 0 : i32
    %c0_i32_0 = arith.constant 0 : i32
    return %arg0, %c0_i32 : i32, i32
  }
}

module attributes {stable_mosaic.version = 11 : i64} {
  func.func @kernel(%arg0: i32, %arg1: memref<512x36xbf16, #tpu.memory_space<vmem>>, %arg2: memref<36x4xbf16, #tpu.memory_space<vmem>>, %arg3: memref<1x4xf32, #tpu.memory_space<vmem>>, %arg4: memref<512x4xf32, #tpu.memory_space<vmem>>) attributes {dimension_semantics = [#tpu.dimension_semantics<parallel>], iteration_bounds = array<i64: 1>, scalar_prefetch = 0 : i64, scratch_operands = 0 : i64, tpu.core_type = #tpu.core_type<tc>, window_params = [{transform_indices = @transform_0, window_bounds = array<i64: 512, 36>}, {pipeline_mode = #tpu.pipeline_mode<synchronous>, transform_indices = @transform_1, window_bounds = array<i64: 36, 4>}, {pipeline_mode = #tpu.pipeline_mode<synchronous>, transform_indices = @transform_2, window_bounds = array<i64: 1, 4>}, {transform_indices = @transform_3, window_bounds = array<i64: 512, 4>}]} {
    %c0 = arith.constant 0 : index
    %c0_0 = arith.constant 0 : index
    %0 = vector.load %arg1[%c0, %c0_0] : memref<512x36xbf16, #tpu.memory_space<vmem>>, vector<512x36xbf16>
    %c0_1 = arith.constant 0 : index
    %c0_2 = arith.constant 0 : index
    %1 = vector.load %arg2[%c0_1, %c0_2] : memref<36x4xbf16, #tpu.memory_space<vmem>>, vector<36x4xbf16>
    %cst = arith.constant dense<0.000000e+00> : vector<512x4xf32>
    %2 = tpu.matmul %0, %1, %cst {dimension_numbers = #tpu.dot_dimension_numbers<[1], [0], [0], [1], [0, 0, 1, 1], [], []>} : vector<512x36xbf16>, vector<36x4xbf16>, vector<512x4xf32> -> vector<512x4xf32>
    %c0_3 = arith.constant 0 : index
    %c0_4 = arith.constant 0 : index
    %3 = vector.load %arg3[%c0_3, %c0_4] : memref<1x4xf32, #tpu.memory_space<vmem>>, vector<1x4xf32>
    %4 = vector.broadcast %3 : vector<1x4xf32> to vector<512x4xf32>
    %5 = arith.addf %2, %4 : vector<512x4xf32>
    %cst_5 = arith.constant 0.000000e+00 : f32
    %6 = vector.broadcast %cst_5 : f32 to vector<512x4xf32>
    %7 = arith.maximumf %5, %6 : vector<512x4xf32>
    %c0_6 = arith.constant 0 : index
    %c0_7 = arith.constant 0 : index
    %8 = vector.load %arg4[%c0_6, %c0_7] : memref<512x4xf32, #tpu.memory_space<vmem>>, vector<512x4xf32>
    tpu.vector_store %arg4[%c0_6, %c0_7], %7 {strides = array<i32>} : memref<512x4xf32, #tpu.memory_space<vmem>>, vector<512x4xf32>,
    return
  }
  func.func @transform_0(%arg0: i32) -> (i32, i32) {
    %c0_i32 = arith.constant 0 : i32
    %c0_i32_0 = arith.constant 0 : i32
    return %arg0, %c0_i32 : i32, i32
  }
  func.func @transform_1(%arg0: i32) -> (i32, i32) {
    %c0_i32 = arith.constant 0 : i32
    %c0_i32_0 = arith.constant 0 : i32
    %c0_i32_1 = arith.constant 0 : i32
    return %c0_i32, %c0_i32_0 : i32, i32
  }
  func.func @transform_2(%arg0: i32) -> (i32, i32) {
    %c0_i32 = arith.constant 0 : i32
    %c0_i32_0 = arith.constant 0 : i32
    %c0_i32_1 = arith.constant 0 : i32
    return %c0_i32, %c0_i32_0 : i32, i32
  }
  func.func @transform_3(%arg0: i32) -> (i32, i32) {
    %c0_i32 = arith.constant 0 : i32
    %c0_i32_0 = arith.constant 0 : i32
    return %arg0, %c0_i32 : i32, i32
  }
}

module attributes {stable_mosaic.version = 11 : i64} {
  func.func @kernel(%arg0: i32, %arg1: memref<512x4xbf16, #tpu.memory_space<vmem>>, %arg2: memref<4x16xbf16, #tpu.memory_space<vmem>>, %arg3: memref<1x16xf32, #tpu.memory_space<vmem>>, %arg4: memref<512x16xf32, #tpu.memory_space<vmem>>, %arg5: memref<512x16xf32, #tpu.memory_space<vmem>>) attributes {dimension_semantics = [#tpu.dimension_semantics<parallel>], iteration_bounds = array<i64: 1>, scalar_prefetch = 0 : i64, scratch_operands = 0 : i64, tpu.core_type = #tpu.core_type<tc>, window_params = [{transform_indices = @transform_0, window_bounds = array<i64: 512, 4>}, {pipeline_mode = #tpu.pipeline_mode<synchronous>, transform_indices = @transform_1, window_bounds = array<i64: 4, 16>}, {pipeline_mode = #tpu.pipeline_mode<synchronous>, transform_indices = @transform_2, window_bounds = array<i64: 1, 16>}, {transform_indices = @transform_3, window_bounds = array<i64: 512, 16>}, {transform_indices = @transform_4, window_bounds = array<i64: 512, 16>}]} {
    %c0 = arith.constant 0 : index
    %c0_0 = arith.constant 0 : index
    %0 = vector.load %arg1[%c0, %c0_0] : memref<512x4xbf16, #tpu.memory_space<vmem>>, vector<512x4xbf16>
    %c0_1 = arith.constant 0 : index
    %c0_2 = arith.constant 0 : index
    %1 = vector.load %arg2[%c0_1, %c0_2] : memref<4x16xbf16, #tpu.memory_space<vmem>>, vector<4x16xbf16>
    %cst = arith.constant dense<0.000000e+00> : vector<512x16xf32>
    %2 = tpu.matmul %0, %1, %cst {dimension_numbers = #tpu.dot_dimension_numbers<[1], [0], [0], [1], [0, 0, 1, 1], [], []>} : vector<512x4xbf16>, vector<4x16xbf16>, vector<512x16xf32> -> vector<512x16xf32>
    %c0_3 = arith.constant 0 : index
    %c0_4 = arith.constant 0 : index
    %3 = vector.load %arg3[%c0_3, %c0_4] : memref<1x16xf32, #tpu.memory_space<vmem>>, vector<1x16xf32>
    %4 = vector.broadcast %3 : vector<1x16xf32> to vector<512x16xf32>
    %5 = arith.addf %2, %4 : vector<512x16xf32>
    %cst_5 = arith.constant 0.000000e+00 : f32
    %6 = vector.broadcast %cst_5 : f32 to vector<512x16xf32>
    %7 = arith.maximumf %5, %6 : vector<512x16xf32>
    %c0_6 = arith.constant 0 : index
    %c0_7 = arith.constant 0 : index
    %8 = vector.load %arg4[%c0_6, %c0_7] : memref<512x16xf32, #tpu.memory_space<vmem>>, vector<512x16xf32>
    %9 = arith.addf %7, %8 : vector<512x16xf32>
    %cst_8 = arith.constant 0.000000e+00 : f32
    %10 = vector.broadcast %cst_8 : f32 to vector<512x16xf32>
    %11 = arith.maximumf %9, %10 : vector<512x16xf32>
    %c0_9 = arith.constant 0 : index
    %c0_10 = arith.constant 0 : index
    %12 = vector.load %arg5[%c0_9, %c0_10] : memref<512x16xf32, #tpu.memory_space<vmem>>, vector<512x16xf32>
    tpu.vector_store %arg5[%c0_9, %c0_10], %11 {strides = array<i32>} : memref<512x16xf32, #tpu.memory_space<vmem>>, vector<512x16xf32>,
    return
  }
  func.func @transform_0(%arg0: i32) -> (i32, i32) {
    %c0_i32 = arith.constant 0 : i32
    %c0_i32_0 = arith.constant 0 : i32
    return %arg0, %c0_i32 : i32, i32
  }
  func.func @transform_1(%arg0: i32) -> (i32, i32) {
    %c0_i32 = arith.constant 0 : i32
    %c0_i32_0 = arith.constant 0 : i32
    %c0_i32_1 = arith.constant 0 : i32
    return %c0_i32, %c0_i32_0 : i32, i32
  }
  func.func @transform_2(%arg0: i32) -> (i32, i32) {
    %c0_i32 = arith.constant 0 : i32
    %c0_i32_0 = arith.constant 0 : i32
    %c0_i32_1 = arith.constant 0 : i32
    return %c0_i32, %c0_i32_0 : i32, i32
  }
  func.func @transform_3(%arg0: i32) -> (i32, i32) {
    %c0_i32 = arith.constant 0 : i32
    %c0_i32_0 = arith.constant 0 : i32
    return %arg0, %c0_i32 : i32, i32
  }
  func.func @transform_4(%arg0: i32) -> (i32, i32) {
    %c0_i32 = arith.constant 0 : i32
    %c0_i32_0 = arith.constant 0 : i32
    return %arg0, %c0_i32 : i32, i32
  }
}

module attributes {stable_mosaic.version = 11 : i64} {
  func.func @kernel(%arg0: i32, %arg1: memref<512x64xbf16, #tpu.memory_space<vmem>>, %arg2: memref<64x16xbf16, #tpu.memory_space<vmem>>, %arg3: memref<1x16xf32, #tpu.memory_space<vmem>>, %arg4: memref<512x16xf32, #tpu.memory_space<vmem>>) attributes {dimension_semantics = [#tpu.dimension_semantics<parallel>], iteration_bounds = array<i64: 1>, scalar_prefetch = 0 : i64, scratch_operands = 0 : i64, tpu.core_type = #tpu.core_type<tc>, window_params = [{transform_indices = @transform_0, window_bounds = array<i64: 512, 64>}, {pipeline_mode = #tpu.pipeline_mode<synchronous>, transform_indices = @transform_1, window_bounds = array<i64: 64, 16>}, {pipeline_mode = #tpu.pipeline_mode<synchronous>, transform_indices = @transform_2, window_bounds = array<i64: 1, 16>}, {transform_indices = @transform_3, window_bounds = array<i64: 512, 16>}]} {
    %c0 = arith.constant 0 : index
    %c0_0 = arith.constant 0 : index
    %0 = vector.load %arg1[%c0, %c0_0] : memref<512x64xbf16, #tpu.memory_space<vmem>>, vector<512x64xbf16>
    %c0_1 = arith.constant 0 : index
    %c0_2 = arith.constant 0 : index
    %1 = vector.load %arg2[%c0_1, %c0_2] : memref<64x16xbf16, #tpu.memory_space<vmem>>, vector<64x16xbf16>
    %cst = arith.constant dense<0.000000e+00> : vector<512x16xf32>
    %2 = tpu.matmul %0, %1, %cst {dimension_numbers = #tpu.dot_dimension_numbers<[1], [0], [0], [1], [0, 0, 1, 1], [], []>} : vector<512x64xbf16>, vector<64x16xbf16>, vector<512x16xf32> -> vector<512x16xf32>
    %c0_3 = arith.constant 0 : index
    %c0_4 = arith.constant 0 : index
    %3 = vector.load %arg3[%c0_3, %c0_4] : memref<1x16xf32, #tpu.memory_space<vmem>>, vector<1x16xf32>
    %4 = vector.broadcast %3 : vector<1x16xf32> to vector<512x16xf32>
    %5 = arith.addf %2, %4 : vector<512x16xf32>
    %c0_5 = arith.constant 0 : index
    %c0_6 = arith.constant 0 : index
    %6 = vector.load %arg4[%c0_5, %c0_6] : memref<512x16xf32, #tpu.memory_space<vmem>>, vector<512x16xf32>
    tpu.vector_store %arg4[%c0_5, %c0_6], %5 {strides = array<i32>} : memref<512x16xf32, #tpu.memory_space<vmem>>, vector<512x16xf32>,
    return
  }
  func.func @transform_0(%arg0: i32) -> (i32, i32) {
    %c0_i32 = arith.constant 0 : i32
    %c0_i32_0 = arith.constant 0 : i32
    return %arg0, %c0_i32 : i32, i32
  }
  func.func @transform_1(%arg0: i32) -> (i32, i32) {
    %c0_i32 = arith.constant 0 : i32
    %c0_i32_0 = arith.constant 0 : i32
    %c0_i32_1 = arith.constant 0 : i32
    return %c0_i32, %c0_i32_0 : i32, i32
  }
  func.func @transform_2(%arg0: i32) -> (i32, i32) {
    %c0_i32 = arith.constant 0 : i32
    %c0_i32_0 = arith.constant 0 : i32
    %c0_i32_1 = arith.constant 0 : i32
    return %c0_i32, %c0_i32_0 : i32, i32
  }
  func.func @transform_3(%arg0: i32) -> (i32, i32) {
    %c0_i32 = arith.constant 0 : i32
    %c0_i32_0 = arith.constant 0 : i32
    return %arg0, %c0_i32 : i32, i32
  }
}

</mosaic_0001>

<bundles_post_ra>
// kernel: enet_forward.89
= control target key start
LH: loop header
LB: loop body
LE: loop exit
PB: predicated region body
PF: predicated region fallthrough
CT: control target
= control target key end

     0   :  { %vm358_vm0 = vcmask 1044480   ;;  %vm359_vm1 = vcmask 1045504   ;;  %v1123_v1 = vmov 65535   ;;  %vm261_vm2 = vcmask 220160   ;;  %s1603_s1 = inlined_call_operand.vmem [shape: bf16[27,13], index: 1, kind: input, shape index: {}]   ;;  %s1604_s0 = inlined_call_operand.vmem [shape: bf16[512,27], index: 0, kind: input, shape index: {}]   ;;  %s1605_s2 = inlined_call_operand.vmem [shape: f32[1,13], index: 2, kind: input, shape index: {}]   ;;  %s1606_s3 = inlined_call_operand.vmem [shape: f32[512,13], index: 3, kind: output, shape index: {}]  }
   0x1   :  { %v1089_v0 = vld [vmem:[%s1603_s1 + $0x8] sm:$0x3f]   ;;  %v360_v2 = vsel %vm358_vm0, 4294967295, %v1123_v1  ;;  %v1091_v4 = vld [vmem:[%s1604_s0] sm:$0xff]   ;;  %v1095_v10 = vld [vmem:[%s1604_s0 + $0x10] sm:$0xff]   ;;  %vm846_vm3 = vcmask 105472  }
   0x2   :  { %v361_v3 = vsel %vm359_vm1, %v360_v2, 0  ;;  %v1090_v6 = vld [vmem:[%s1603_s1] sm:$0xff]   ;;  %1020 = vmatprep.mubr.msk.bf16.mxu0 %vm261_vm2, %v1091_v4  ;;  %v1093_v8 = vld [vmem:[%s1604_s0 + $0x8] sm:$0xff]   ;;  %v1096_v11 = vld [vmem:[%s1604_s0 + $0x90] sm:$0xff]  }
   0x3   :  { %v363_v5 = vand.u32 %v1089_v0, %v361_v3  ;;  %v1092_v7 = vld [vmem:[%s1604_s0 + $0x80] sm:$0xff]   ;;  %v1094_v9 = vld [vmem:[%s1604_s0 + $0x88] sm:$0xff]   ;;  %v1097_v12 = vld [vmem:[%s1604_s0 + $0x18] sm:$0xff]  }
   0x4   :  { %1052 = vmatprep.mubr.msk.bf16.mxu1 %vm261_vm2, %v1092_v7  ;;  %v1098_v13 = vld [vmem:[%s1604_s0 + $0x98] sm:$0xff]   ;;  %v1099_v14 = vld [vmem:[%s1604_s0 + $0x20] sm:$0xff]   ;;  %v1101_v16 = vld [vmem:[%s1604_s0 + $0x28] sm:$0xff]  }
   0x5   :  { %1016 = vmatprep.subr.bf16.mxu0 %v363_v5  ;;  %1084 = vmatprep.subr.bf16.mxu1 %v363_v5  ;;  %v1100_v15 = vld [vmem:[%s1604_s0 + $0xa0] sm:$0xff]   ;;  %v1102_v17 = vld [vmem:[%s1604_s0 + $0xa8] sm:$0xff]   ;;  %v1103_v18 = vld [vmem:[%s1604_s0 + $0x30] sm:$0xff]  }
   0x6   :  { %1017 = vmatpush3.bf16.msra.mxu0 %v363_v5  ;;  %1086 = vmatpush3.bf16.msra.mxu1 %v363_v5  ;;  %v1104_v19 = vld [vmem:[%s1604_s0 + $0xb0] sm:$0xff]   ;;  %v1105_v20 = vld [vmem:[%s1604_s0 + $0x38] sm:$0xff]   ;;  %v1107_v22 = vld [vmem:[%s1604_s0 + $0x40] sm:$0xff]  }
   0x7   :  { %1018 = vmatprep.subr.bf16.mxu0 %v1090_v6  ;;  %1085 = vmatprep.subr.bf16.mxu1 %v1090_v6  ;;  %v1106_v21 = vld [vmem:[%s1604_s0 + $0xb8] sm:$0xff]   ;;  %v1108_v23 = vld [vmem:[%s1604_s0 + $0xc0] sm:$0xff]   ;;  %v1109_v24 = vld [vmem:[%s1604_s0 + $0x48] sm:$0xff]  }
   0x8   :  { %v1110_v25 = vld [vmem:[%s1604_s0 + $0xc8] sm:$0xff]   ;;  %v1111_v26 = vld [vmem:[%s1604_s0 + $0x50] sm:$0xff]   ;;  %v1113_v28 = vld [vmem:[%s1604_s0 + $0x58] sm:$0xff]  }
   0x9   :  { %v1112_v27 = vld [vmem:[%s1604_s0 + $0xd0] sm:$0xff]   ;;  %v1114_v29 = vld [vmem:[%s1604_s0 + $0xd8] sm:$0xff]   ;;  %v1115_v30 = vld [vmem:[%s1604_s0 + $0x60] sm:$0xff]  }
   0xa   :  { %1019 = vmatpush3.bf16.msra.mxu0 %v1090_v6  ;;  %1087 = vmatpush3.bf16.msra.mxu1 %v1090_v6  ;;  %v1116_v31 = vld [vmem:[%s1604_s0 + $0xe0] sm:$0xff]   ;;  %v1117_v32 = vld [vmem:[%s1604_s0 + $0x68] sm:$0xff]   ;;  %v1119_v34 = vld [vmem:[%s1604_s0 + $0x70] sm:$0xff]  }
   0xb   :  { %v1118_v33 = vld [vmem:[%s1604_s0 + $0xe8] sm:$0xff]   ;;  %v1120_v35 = vld [vmem:[%s1604_s0 + $0xf0] sm:$0xff]   ;;  %v1121_v36 = vld [vmem:[%s1604_s0 + $0x78] sm:$0xff]  }
   0xc   :  { %v1122_v37 = vld [vmem:[%s1604_s0 + $0xf8] sm:$0xff]   ;;  %v1281_v38 = vld [vmem:[%s1605_s2] ss:$0 sm:$0xff] }
   0xd   :  { %1021 = vmatmul.mubr.msk.bf16.vlgmr.msra.gmra.mxu0 %vm261_vm2, %v1093_v8  ;;  %1053 = vmatmul.mubr.msk.bf16.vlgmr.msra.gmra.mxu1 %vm261_vm2, %v1094_v9 }
   0xe   :  { %1024 = vmatprep.mubr.msk.bf16.mxu0 %vm261_vm2, %v1095_v10  ;;  %1056 = vmatprep.mubr.msk.bf16.mxu1 %vm261_vm2, %v1096_v11 }
  0x15   :  { %1025 = vmatmul.mubr.msk.bf16.gmra.mxu0 %vm261_vm2, %v1097_v12  ;;  %1057 = vmatmul.mubr.msk.bf16.gmra.mxu1 %vm261_vm2, %v1098_v13 }
  0x16   :  { %1028 = vmatprep.mubr.msk.bf16.mxu0 %vm261_vm2, %v1099_v14  ;;  %1060 = vmatprep.mubr.msk.bf16.mxu1 %vm261_vm2, %v1100_v15 }
  0x1d   :  { %1029 = vmatmul.mubr.msk.bf16.gmra.mxu0 %vm261_vm2, %v1101_v16  ;;  %1061 = vmatmul.mubr.msk.bf16.gmra.mxu1 %vm261_vm2, %v1102_v17 }
  0x1e   :  { %1032 = vmatprep.mubr.msk.bf16.mxu0 %vm261_vm2, %v1103_v18  ;;  %1064 = vmatprep.mubr.msk.bf16.mxu1 %vm261_vm2, %v1104_v19 }
  0x25   :  { %1033 = vmatmul.mubr.msk.bf16.gmra.mxu0 %vm261_vm2, %v1105_v20  ;;  %1065 = vmatmul.mubr.msk.bf16.gmra.mxu1 %vm261_vm2, %v1106_v21 }
  0x26   :  { %1036 = vmatprep.mubr.msk.bf16.mxu0 %vm261_vm2, %v1107_v22  ;;  %1068 = vmatprep.mubr.msk.bf16.mxu1 %vm261_vm2, %v1108_v23 }
  0x2d   :  { %1037 = vmatmul.mubr.msk.bf16.gmra.mxu0 %vm261_vm2, %v1109_v24  ;;  %1069 = vmatmul.mubr.msk.bf16.gmra.mxu1 %vm261_vm2, %v1110_v25 }
  0x2e   :  { %1040 = vmatprep.mubr.msk.bf16.mxu0 %vm261_vm2, %v1111_v26  ;;  %1072 = vmatprep.mubr.msk.bf16.mxu1 %vm261_vm2, %v1112_v27 }
  0x35   :  { %1041 = vmatmul.mubr.msk.bf16.gmra.mxu0 %vm261_vm2, %v1113_v28  ;;  %1073 = vmatmul.mubr.msk.bf16.gmra.mxu1 %vm261_vm2, %v1114_v29 }
  0x36   :  { %1044 = vmatprep.mubr.msk.bf16.mxu0 %vm261_vm2, %v1115_v30  ;;  %1076 = vmatprep.mubr.msk.bf16.mxu1 %vm261_vm2, %v1116_v31 }
  0x3d   :  { %1045 = vmatmul.mubr.msk.bf16.gmra.mxu0 %vm261_vm2, %v1117_v32  ;;  %1077 = vmatmul.mubr.msk.bf16.gmra.mxu1 %vm261_vm2, %v1118_v33 }
  0x3e   :  { %1048 = vmatprep.mubr.msk.bf16.mxu0 %vm261_vm2, %v1119_v34  ;;  %1080 = vmatprep.mubr.msk.bf16.mxu1 %vm261_vm2, %v1120_v35 }
  0x45   :  { %1049 = vmatmul.mubr.msk.bf16.gmra.mxu0 %vm261_vm2, %v1121_v36  ;;  %1081 = vmatmul.mubr.msk.bf16.gmra.mxu1 %vm261_vm2, %v1122_v37 }
  0xcd   :  { %v1022_v39 = vpop.f32.mrf.mxu0  ;;  %v1054_v40 = vpop.f32.mrf.mxu1 }
  0xce   :  { %v408_v41 = vadd.f32 %v1022_v39, %v1281_v38  ;;  %v536_v42 = vadd.f32 %v1054_v40, %v1281_v38 }
  0xcf   :  { %v399_v43 = vpop.f32.mrf.mxu0  ;;  %v527_v44 = vpop.f32.mrf.mxu1 }
  0xd0   :  { %vm656_vm4 = vcmp.gt.f32.partialorder %v408_v41, 0.0  ;;  %v720_v45 = vmul.f32 0.25, %v408_v41  ;;  %vm688_vm5 = vcmp.gt.f32.partialorder %v536_v42, 0.0  ;;  %v752_v46 = vmul.f32 0.25, %v536_v42 }
  0xd1   :  { %v400_v47 = vadd.f32 %v1281_v38, %v399_v43  ;;  %v528_v48 = vadd.f32 %v1281_v38, %v527_v44  ;;  %v1023_v49 = vpop.f32.mrf.mxu0  ;;  %v1055_v50 = vpop.f32.mrf.mxu1 }
  0xd2   :  { %v784_v51 = vsel %vm656_vm4, %v408_v41, %v720_v45  ;;  %v816_v52 = vsel %vm688_vm5, %v536_v42, %v752_v46  ;;  %v411_v53 = vadd.f32 %v1023_v49, %v1281_v38  ;;  %v539_v54 = vadd.f32 %v1055_v50, %v1281_v38 }
  0xd3   :  { %849 = vst.msk [vmem:[%s1606_s3 + $0x10] sm:$0xff] %vm846_vm3, %v784_v51  ;;  %881 = vst.msk [vmem:[%s1606_s3 + $0x110] sm:$0xff] %vm846_vm3, %v816_v52  ;;  %vm654_vm6 = vcmp.gt.f32.partialorder %v400_v47, 0.0  ;;  %v718_v55 = vmul.f32 0.25, %v400_v47  ;;  %vm686_vm7 = vcmp.gt.f32.partialorder %v528_v48, 0.0  ;;  %v750_v56 = vmul.f32 0.25, %v528_v48  ;;  %v402_v57 = vpop.f32.mrf.mxu0  ;;  %v530_v58 = vpop.f32.mrf.mxu1 }
  0xd4   :  { %vm657_vm8 = vcmp.gt.f32.partialorder %v411_v53, 0.0  ;;  %v721_v59 = vmul.f32 0.25, %v411_v53  ;;  %vm689_vm9 = vcmp.gt.f32.partialorder %v539_v54, 0.0  ;;  %v753_v60 = vmul.f32 0.25, %v539_v54 }
  0xd5   :  { %v782_v61 = vsel %vm654_vm6, %v400_v47, %v718_v55  ;;  %v814_v62 = vsel %vm686_vm7, %v528_v48, %v750_v56  ;;  %v403_v63 = vadd.f32 %v1281_v38, %v402_v57  ;;  %v531_v0 = vadd.f32 %v1281_v38, %v530_v58  ;;  %v1026_v1 = vpop.f32.mrf.mxu0  ;;  %v1058_v2 = vpop.f32.mrf.mxu1 }
  0xd6   :  { %847 = vst.msk [vmem:[%s1606_s3] sm:$0xff] %vm846_vm3, %v782_v61  ;;  %879 = vst.msk [vmem:[%s1606_s3 + $0x100] sm:$0xff] %vm846_vm3, %v814_v62  ;;  %v785_v3 = vsel %vm657_vm8, %v411_v53, %v721_v59  ;;  %v817_v4 = vsel %vm689_vm9, %v539_v54, %v753_v60  ;;  %v424_v5 = vadd.f32 %v1026_v1, %v1281_v38 }
  0xd7   :  { %v552_v6 = vadd.f32 %v1058_v2, %v1281_v38  ;;  %850 = vst.msk [vmem:[%s1606_s3 + $0x18] sm:$0xff] %vm846_vm3, %v785_v3  ;;  %882 = vst.msk [vmem:[%s1606_s3 + $0x118] sm:$0xff] %vm846_vm3, %v817_v4  ;;  %vm655_vm10 = vcmp.gt.f32.partialorder %v403_v63, 0.0  ;;  %v719_v7 = vmul.f32 0.25, %v403_v63  ;;  %vm687_vm11 = vcmp.gt.f32.partialorder %v531_v0, 0.0  ;;  %v415_v9 = vpop.f32.mrf.mxu0  ;;  %v543_v10 = vpop.f32.mrf.mxu1 }
  0xd8   :  { %v751_v8 = vmul.f32 0.25, %v531_v0  ;;  %vm660_vm12 = vcmp.gt.f32.partialorder %v424_v5, 0.0  ;;  %v724_v11 = vmul.f32 0.25, %v424_v5  ;;  %v416_v15 = vadd.f32 %v1281_v38, %v415_v9 }
  0xd9   :  { %vm692_vm13 = vcmp.gt.f32.partialorder %v552_v6, 0.0  ;;  %v756_v12 = vmul.f32 0.25, %v552_v6  ;;  %v783_v13 = vsel %vm655_vm10, %v403_v63, %v719_v7  ;;  %v544_v16 = vadd.f32 %v1281_v38, %v543_v10  ;;  %v1027_v17 = vpop.f32.mrf.mxu0  ;;  %v1059_v18 = vpop.f32.mrf.mxu1 }
  0xda   :  { %v815_v14 = vsel %vm687_vm11, %v531_v0, %v751_v8  ;;  %848 = vst.msk [vmem:[%s1606_s3 + $0x8] sm:$0xff] %vm846_vm3, %v783_v13  ;;  %v788_v19 = vsel %vm660_vm12, %v424_v5, %v724_v11  ;;  %v427_v21 = vadd.f32 %v1027_v17, %v1281_v38  ;;  %v555_v22 = vadd.f32 %v1059_v18, %v1281_v38 }
  0xdb   :  { %880 = vst.msk [vmem:[%s1606_s3 + $0x108] sm:$0xff] %vm846_vm3, %v815_v14  ;;  %v820_v20 = vsel %vm692_vm13, %v552_v6, %v756_v12  ;;  %853 = vst.msk [vmem:[%s1606_s3 + $0x30] sm:$0xff] %vm846_vm3, %v788_v19  ;;  %vm658_vm14 = vcmp.gt.f32.partialorder %v416_v15, 0.0  ;;  %v722_v23 = vmul.f32 0.25, %v416_v15  ;;  %vm690_vm15 = vcmp.gt.f32.partialorder %v544_v16, 0.0  ;;  %v418_v25 = vpop.f32.mrf.mxu0  ;;  %v546_v26 = vpop.f32.mrf.mxu1 }
  0xdc   :  { %885 = vst.msk [vmem:[%s1606_s3 + $0x130] sm:$0xff] %vm846_vm3, %v820_v20  ;;  %v754_v24 = vmul.f32 0.25, %v544_v16  ;;  %vm661_vm0 = vcmp.gt.f32.partialorder %v427_v21, 0.0  ;;  %v725_v27 = vmul.f32 0.25, %v427_v21  ;;  %vm693_vm1 = vcmp.gt.f32.partialorder %v555_v22, 0.0 }
  0xdd   :  { %v757_v28 = vmul.f32 0.25, %v555_v22  ;;  %v786_v29 = vsel %vm658_vm14, %v416_v15, %v722_v23  ;;  %v419_v31 = vadd.f32 %v1281_v38, %v418_v25  ;;  %v547_v32 = vadd.f32 %v1281_v38, %v546_v26  ;;  %v1030_v33 = vpop.f32.mrf.mxu0  ;;  %v1062_v34 = vpop.f32.mrf.mxu1 }
  0xde   :  { %v818_v30 = vsel %vm690_vm15, %v544_v16, %v754_v24  ;;  %851 = vst.msk [vmem:[%s1606_s3 + $0x20] sm:$0xff] %vm846_vm3, %v786_v29  ;;  %v789_v35 = vsel %vm661_vm0, %v427_v21, %v725_v27  ;;  %v440_v37 = vadd.f32 %v1030_v33, %v1281_v38  ;;  %v568_v39 = vadd.f32 %v1062_v34, %v1281_v38 }
  0xdf   :  { %883 = vst.msk [vmem:[%s1606_s3 + $0x120] sm:$0xff] %vm846_vm3, %v818_v30  ;;  %v821_v36 = vsel %vm693_vm1, %v555_v22, %v757_v28  ;;  %854 = vst.msk [vmem:[%s1606_s3 + $0x38] sm:$0xff] %vm846_vm3, %v789_v35  ;;  %vm659_vm2 = vcmp.gt.f32.partialorder %v419_v31, 0.0  ;;  %v723_v40 = vmul.f32 0.25, %v419_v31  ;;  %vm691_vm4 = vcmp.gt.f32.partialorder %v547_v32, 0.0  ;;  %v431_v42 = vpop.f32.mrf.mxu0  ;;  %v559_v43 = vpop.f32.mrf.mxu1 }
  0xe0   :  { %886 = vst.msk [vmem:[%s1606_s3 + $0x138] sm:$0xff] %vm846_vm3, %v821_v36  ;;  %v755_v41 = vmul.f32 0.25, %v547_v32  ;;  %vm664_vm5 = vcmp.gt.f32.partialorder %v440_v37, 0.0  ;;  %v728_v44 = vmul.f32 0.25, %v440_v37  ;;  %vm696_vm6 = vcmp.gt.f32.partialorder %v568_v39, 0.0 }
  0xe1   :  { %v760_v45 = vmul.f32 0.25, %v568_v39  ;;  %v787_v46 = vsel %vm659_vm2, %v419_v31, %v723_v40  ;;  %v432_v48 = vadd.f32 %v1281_v38, %v431_v42  ;;  %v560_v49 = vadd.f32 %v1281_v38, %v559_v43  ;;  %v1031_v50 = vpop.f32.mrf.mxu0  ;;  %v1063_v51 = vpop.f32.mrf.mxu1 }
  0xe2   :  { %v819_v47 = vsel %vm691_vm4, %v547_v32, %v755_v41  ;;  %852 = vst.msk [vmem:[%s1606_s3 + $0x28] sm:$0xff] %vm846_vm3, %v787_v46  ;;  %v792_v52 = vsel %vm664_vm5, %v440_v37, %v728_v44  ;;  %v443_v54 = vadd.f32 %v1031_v50, %v1281_v38  ;;  %v571_v55 = vadd.f32 %v1063_v51, %v1281_v38 }
  0xe3   :  { %884 = vst.msk [vmem:[%s1606_s3 + $0x128] sm:$0xff] %vm846_vm3, %v819_v47  ;;  %v824_v53 = vsel %vm696_vm6, %v568_v39, %v760_v45  ;;  %857 = vst.msk [vmem:[%s1606_s3 + $0x50] sm:$0xff] %vm846_vm3, %v792_v52  ;;  %vm662_vm7 = vcmp.gt.f32.partialorder %v432_v48, 0.0  ;;  %v726_v56 = vmul.f32 0.25, %v432_v48  ;;  %vm694_vm8 = vcmp.gt.f32.partialorder %v560_v49, 0.0  ;;  %v434_v58 = vpop.f32.mrf.mxu0  ;;  %v562_v59 = vpop.f32.mrf.mxu1 }
  0xe4   :  { %889 = vst.msk [vmem:[%s1606_s3 + $0x150] sm:$0xff] %vm846_vm3, %v824_v53  ;;  %v758_v57 = vmul.f32 0.25, %v560_v49  ;;  %vm665_vm9 = vcmp.gt.f32.partialorder %v443_v54, 0.0  ;;  %v729_v60 = vmul.f32 0.25, %v443_v54  ;;  %vm697_vm10 = vcmp.gt.f32.partialorder %v571_v55, 0.0 }
  0xe5   :  { %v761_v61 = vmul.f32 0.25, %v571_v55  ;;  %v790_v62 = vsel %vm662_vm7, %v432_v48, %v726_v56  ;;  %v435_v0 = vadd.f32 %v1281_v38, %v434_v58  ;;  %v563_v1 = vadd.f32 %v1281_v38, %v562_v59  ;;  %v1034_v2 = vpop.f32.mrf.mxu0  ;;  %v1066_v3 = vpop.f32.mrf.mxu1 }
  0xe6   :  { %v822_v63 = vsel %vm694_vm8, %v560_v49, %v758_v57  ;;  %855 = vst.msk [vmem:[%s1606_s3 + $0x40] sm:$0xff] %vm846_vm3, %v790_v62  ;;  %v793_v4 = vsel %vm665_vm9, %v443_v54, %v729_v60  ;;  %v456_v6 = vadd.f32 %v1034_v2, %v1281_v38  ;;  %v584_v7 = vadd.f32 %v1066_v3, %v1281_v38 }
  0xe7   :  { %887 = vst.msk [vmem:[%s1606_s3 + $0x140] sm:$0xff] %vm846_vm3, %v822_v63  ;;  %v825_v5 = vsel %vm697_vm10, %v571_v55, %v761_v61  ;;  %858 = vst.msk [vmem:[%s1606_s3 + $0x58] sm:$0xff] %vm846_vm3, %v793_v4  ;;  %vm663_vm11 = vcmp.gt.f32.partialorder %v435_v0, 0.0  ;;  %v727_v8 = vmul.f32 0.25, %v435_v0  ;;  %vm695_vm12 = vcmp.gt.f32.partialorder %v563_v1, 0.0  ;;  %v447_v10 = vpop.f32.mrf.mxu0  ;;  %v575_v11 = vpop.f32.mrf.mxu1 }
  0xe8   :  { %890 = vst.msk [vmem:[%s1606_s3 + $0x158] sm:$0xff] %vm846_vm3, %v825_v5  ;;  %v759_v9 = vmul.f32 0.25, %v563_v1  ;;  %vm668_vm13 = vcmp.gt.f32.partialorder %v456_v6, 0.0  ;;  %v732_v12 = vmul.f32 0.25, %v456_v6  ;;  %vm700_vm14 = vcmp.gt.f32.partialorder %v584_v7, 0.0 }
  0xe9   :  { %v764_v13 = vmul.f32 0.25, %v584_v7  ;;  %v791_v14 = vsel %vm663_vm11, %v435_v0, %v727_v8  ;;  %v448_v16 = vadd.f32 %v1281_v38, %v447_v10  ;;  %v576_v17 = vadd.f32 %v1281_v38, %v575_v11  ;;  %v1035_v18 = vpop.f32.mrf.mxu0  ;;  %v1067_v19 = vpop.f32.mrf.mxu1 }
  0xea   :  { %v823_v15 = vsel %vm695_vm12, %v563_v1, %v759_v9  ;;  %856 = vst.msk [vmem:[%s1606_s3 + $0x48] sm:$0xff] %vm846_vm3, %v791_v14  ;;  %v796_v20 = vsel %vm668_vm13, %v456_v6, %v732_v12  ;;  %v459_v22 = vadd.f32 %v1035_v18, %v1281_v38  ;;  %v587_v23 = vadd.f32 %v1067_v19, %v1281_v38 }
  0xeb   :  { %888 = vst.msk [vmem:[%s1606_s3 + $0x148] sm:$0xff] %vm846_vm3, %v823_v15  ;;  %v828_v21 = vsel %vm700_vm14, %v584_v7, %v764_v13  ;;  %861 = vst.msk [vmem:[%s1606_s3 + $0x70] sm:$0xff] %vm846_vm3, %v796_v20  ;;  %vm666_vm15 = vcmp.gt.f32.partialorder %v448_v16, 0.0  ;;  %v730_v24 = vmul.f32 0.25, %v448_v16  ;;  %vm698_vm0 = vcmp.gt.f32.partialorder %v576_v17, 0.0  ;;  %v450_v26 = vpop.f32.mrf.mxu0  ;;  %v578_v27 = vpop.f32.mrf.mxu1 }
  0xec   :  { %893 = vst.msk [vmem:[%s1606_s3 + $0x170] sm:$0xff] %vm846_vm3, %v828_v21  ;;  %v762_v25 = vmul.f32 0.25, %v576_v17  ;;  %vm669_vm1 = vcmp.gt.f32.partialorder %v459_v22, 0.0  ;;  %v733_v28 = vmul.f32 0.25, %v459_v22  ;;  %vm701_vm2 = vcmp.gt.f32.partialorder %v587_v23, 0.0 }
  0xed   :  { %v765_v29 = vmul.f32 0.25, %v587_v23  ;;  %v794_v30 = vsel %vm666_vm15, %v448_v16, %v730_v24  ;;  %v451_v32 = vadd.f32 %v1281_v38, %v450_v26  ;;  %v579_v33 = vadd.f32 %v1281_v38, %v578_v27  ;;  %v1038_v34 = vpop.f32.mrf.mxu0  ;;  %v1070_v35 = vpop.f32.mrf.mxu1 }
  0xee   :  { %v826_v31 = vsel %vm698_vm0, %v576_v17, %v762_v25  ;;  %859 = vst.msk [vmem:[%s1606_s3 + $0x60] sm:$0xff] %vm846_vm3, %v794_v30  ;;  %v797_v36 = vsel %vm669_vm1, %v459_v22, %v733_v28  ;;  %v472_v39 = vadd.f32 %v1038_v34, %v1281_v38  ;;  %v600_v40 = vadd.f32 %v1070_v35, %v1281_v38 }
  0xef   :  { %891 = vst.msk [vmem:[%s1606_s3 + $0x160] sm:$0xff] %vm846_vm3, %v826_v31  ;;  %v829_v37 = vsel %vm701_vm2, %v587_v23, %v765_v29  ;;  %862 = vst.msk [vmem:[%s1606_s3 + $0x78] sm:$0xff] %vm846_vm3, %v797_v36  ;;  %vm667_vm4 = vcmp.gt.f32.partialorder %v451_v32, 0.0  ;;  %v731_v41 = vmul.f32 0.25, %v451_v32  ;;  %vm699_vm5 = vcmp.gt.f32.partialorder %v579_v33, 0.0  ;;  %v463_v43 = vpop.f32.mrf.mxu0  ;;  %v591_v44 = vpop.f32.mrf.mxu1 }
  0xf0   :  { %894 = vst.msk [vmem:[%s1606_s3 + $0x178] sm:$0xff] %vm846_vm3, %v829_v37  ;;  %v763_v42 = vmul.f32 0.25, %v579_v33  ;;  %vm672_vm6 = vcmp.gt.f32.partialorder %v472_v39, 0.0  ;;  %v736_v45 = vmul.f32 0.25, %v472_v39  ;;  %vm704_vm7 = vcmp.gt.f32.partialorder %v600_v40, 0.0 }
  0xf1   :  { %v768_v46 = vmul.f32 0.25, %v600_v40  ;;  %v795_v47 = vsel %vm667_vm4, %v451_v32, %v731_v41  ;;  %v464_v49 = vadd.f32 %v1281_v38, %v463_v43  ;;  %v592_v50 = vadd.f32 %v1281_v38, %v591_v44  ;;  %v1039_v51 = vpop.f32.mrf.mxu0  ;;  %v1071_v52 = vpop.f32.mrf.mxu1 }
  0xf2   :  { %v827_v48 = vsel %vm699_vm5, %v579_v33, %v763_v42  ;;  %860 = vst.msk [vmem:[%s1606_s3 + $0x68] sm:$0xff] %vm846_vm3, %v795_v47  ;;  %v800_v53 = vsel %vm672_vm6, %v472_v39, %v736_v45  ;;  %v475_v55 = vadd.f32 %v1039_v51, %v1281_v38  ;;  %v603_v56 = vadd.f32 %v1071_v52, %v1281_v38 }
  0xf3   :  { %892 = vst.msk [vmem:[%s1606_s3 + $0x168] sm:$0xff] %vm846_vm3, %v827_v48  ;;  %v832_v54 = vsel %vm704_vm7, %v600_v40, %v768_v46  ;;  %865 = vst.msk [vmem:[%s1606_s3 + $0x90] sm:$0xff] %vm846_vm3, %v800_v53  ;;  %vm670_vm8 = vcmp.gt.f32.partialorder %v464_v49, 0.0  ;;  %v734_v57 = vmul.f32 0.25, %v464_v49  ;;  %vm702_vm9 = vcmp.gt.f32.partialorder %v592_v50, 0.0  ;;  %v466_v59 = vpop.f32.mrf.mxu0  ;;  %v594_v60 = vpop.f32.mrf.mxu1 }
  0xf4   :  { %897 = vst.msk [vmem:[%s1606_s3 + $0x190] sm:$0xff] %vm846_vm3, %v832_v54  ;;  %v766_v58 = vmul.f32 0.25, %v592_v50  ;;  %vm673_vm10 = vcmp.gt.f32.partialorder %v475_v55, 0.0  ;;  %v737_v61 = vmul.f32 0.25, %v475_v55  ;;  %vm705_vm11 = vcmp.gt.f32.partialorder %v603_v56, 0.0 }
  0xf5   :  { %v769_v62 = vmul.f32 0.25, %v603_v56  ;;  %v798_v63 = vsel %vm670_vm8, %v464_v49, %v734_v57  ;;  %v467_v1 = vadd.f32 %v1281_v38, %v466_v59  ;;  %v595_v2 = vadd.f32 %v1281_v38, %v594_v60  ;;  %v1042_v3 = vpop.f32.mrf.mxu0  ;;  %v1074_v4 = vpop.f32.mrf.mxu1 }
  0xf6   :  { %v830_v0 = vsel %vm702_vm9, %v592_v50, %v766_v58  ;;  %863 = vst.msk [vmem:[%s1606_s3 + $0x80] sm:$0xff] %vm846_vm3, %v798_v63  ;;  %v801_v5 = vsel %vm673_vm10, %v475_v55, %v737_v61  ;;  %v488_v7 = vadd.f32 %v1042_v3, %v1281_v38  ;;  %v616_v8 = vadd.f32 %v1074_v4, %v1281_v38 }
  0xf7   :  { %895 = vst.msk [vmem:[%s1606_s3 + $0x180] sm:$0xff] %vm846_vm3, %v830_v0  ;;  %v833_v6 = vsel %vm705_vm11, %v603_v56, %v769_v62  ;;  %866 = vst.msk [vmem:[%s1606_s3 + $0x98] sm:$0xff] %vm846_vm3, %v801_v5  ;;  %vm671_vm12 = vcmp.gt.f32.partialorder %v467_v1, 0.0  ;;  %v735_v9 = vmul.f32 0.25, %v467_v1  ;;  %vm703_vm13 = vcmp.gt.f32.partialorder %v595_v2, 0.0  ;;  %v479_v11 = vpop.f32.mrf.mxu0  ;;  %v607_v12 = vpop.f32.mrf.mxu1 }
  0xf8   :  { %898 = vst.msk [vmem:[%s1606_s3 + $0x198] sm:$0xff] %vm846_vm3, %v833_v6  ;;  %v767_v10 = vmul.f32 0.25, %v595_v2  ;;  %vm676_vm14 = vcmp.gt.f32.partialorder %v488_v7, 0.0  ;;  %v740_v13 = vmul.f32 0.25, %v488_v7  ;;  %vm708_vm15 = vcmp.gt.f32.partialorder %v616_v8, 0.0 }
  0xf9   :  { %v772_v14 = vmul.f32 0.25, %v616_v8  ;;  %v799_v15 = vsel %vm671_vm12, %v467_v1, %v735_v9  ;;  %v480_v17 = vadd.f32 %v1281_v38, %v479_v11  ;;  %v608_v18 = vadd.f32 %v1281_v38, %v607_v12  ;;  %v1043_v19 = vpop.f32.mrf.mxu0  ;;  %v1075_v20 = vpop.f32.mrf.mxu1 }
  0xfa   :  { %v831_v16 = vsel %vm703_vm13, %v595_v2, %v767_v10  ;;  %864 = vst.msk [vmem:[%s1606_s3 + $0x88] sm:$0xff] %vm846_vm3, %v799_v15  ;;  %v804_v21 = vsel %vm676_vm14, %v488_v7, %v740_v13  ;;  %v491_v23 = vadd.f32 %v1043_v19, %v1281_v38  ;;  %v619_v24 = vadd.f32 %v1075_v20, %v1281_v38 }
  0xfb   :  { %896 = vst.msk [vmem:[%s1606_s3 + $0x188] sm:$0xff] %vm846_vm3, %v831_v16  ;;  %v836_v22 = vsel %vm708_vm15, %v616_v8, %v772_v14  ;;  %869 = vst.msk [vmem:[%s1606_s3 + $0xb0] sm:$0xff] %vm846_vm3, %v804_v21  ;;  %vm674_vm0 = vcmp.gt.f32.partialorder %v480_v17, 0.0  ;;  %v738_v25 = vmul.f32 0.25, %v480_v17  ;;  %vm706_vm1 = vcmp.gt.f32.partialorder %v608_v18, 0.0  ;;  %v482_v27 = vpop.f32.mrf.mxu0  ;;  %v610_v28 = vpop.f32.mrf.mxu1 }
  0xfc   :  { %901 = vst.msk [vmem:[%s1606_s3 + $0x1b0] sm:$0xff] %vm846_vm3, %v836_v22  ;;  %v770_v26 = vmul.f32 0.25, %v608_v18  ;;  %vm677_vm2 = vcmp.gt.f32.partialorder %v491_v23, 0.0  ;;  %v741_v29 = vmul.f32 0.25, %v491_v23  ;;  %vm709_vm4 = vcmp.gt.f32.partialorder %v619_v24, 0.0 }
  0xfd   :  { %v773_v30 = vmul.f32 0.25, %v619_v24  ;;  %v802_v31 = vsel %vm674_vm0, %v480_v17, %v738_v25  ;;  %v483_v33 = vadd.f32 %v1281_v38, %v482_v27  ;;  %v611_v34 = vadd.f32 %v1281_v38, %v610_v28  ;;  %v1046_v35 = vpop.f32.mrf.mxu0  ;;  %v1078_v36 = vpop.f32.mrf.mxu1 }
  0xfe   :  { %v834_v32 = vsel %vm706_vm1, %v608_v18, %v770_v26  ;;  %867 = vst.msk [vmem:[%s1606_s3 + $0xa0] sm:$0xff] %vm846_vm3, %v802_v31  ;;  %v805_v37 = vsel %vm677_vm2, %v491_v23, %v741_v29  ;;  %v504_v40 = vadd.f32 %v1046_v35, %v1281_v38  ;;  %v632_v41 = vadd.f32 %v1078_v36, %v1281_v38 }
  0xff   :  { %899 = vst.msk [vmem:[%s1606_s3 + $0x1a0] sm:$0xff] %vm846_vm3, %v834_v32  ;;  %v837_v39 = vsel %vm709_vm4, %v619_v24, %v773_v30  ;;  %870 = vst.msk [vmem:[%s1606_s3 + $0xb8] sm:$0xff] %vm846_vm3, %v805_v37  ;;  %vm675_vm5 = vcmp.gt.f32.partialorder %v483_v33, 0.0  ;;  %v739_v42 = vmul.f32 0.25, %v483_v33  ;;  %vm707_vm6 = vcmp.gt.f32.partialorder %v611_v34, 0.0  ;;  %v495_v44 = vpop.f32.mrf.mxu0  ;;  %v623_v45 = vpop.f32.mrf.mxu1 }
 0x100   :  { %902 = vst.msk [vmem:[%s1606_s3 + $0x1b8] sm:$0xff] %vm846_vm3, %v837_v39  ;;  %v771_v43 = vmul.f32 0.25, %v611_v34  ;;  %vm680_vm7 = vcmp.gt.f32.partialorder %v504_v40, 0.0  ;;  %v744_v46 = vmul.f32 0.25, %v504_v40  ;;  %vm712_vm8 = vcmp.gt.f32.partialorder %v632_v41, 0.0 }
 0x101   :  { %v776_v47 = vmul.f32 0.25, %v632_v41  ;;  %v803_v48 = vsel %vm675_vm5, %v483_v33, %v739_v42  ;;  %v496_v50 = vadd.f32 %v1281_v38, %v495_v44  ;;  %v624_v51 = vadd.f32 %v1281_v38, %v623_v45  ;;  %v1047_v52 = vpop.f32.mrf.mxu0  ;;  %v1079_v53 = vpop.f32.mrf.mxu1 }
 0x102   :  { %v835_v49 = vsel %vm707_vm6, %v611_v34, %v771_v43  ;;  %868 = vst.msk [vmem:[%s1606_s3 + $0xa8] sm:$0xff] %vm846_vm3, %v803_v48  ;;  %v808_v54 = vsel %vm680_vm7, %v504_v40, %v744_v46  ;;  %v507_v56 = vadd.f32 %v1047_v52, %v1281_v38  ;;  %v635_v57 = vadd.f32 %v1079_v53, %v1281_v38 }
 0x103   :  { %900 = vst.msk [vmem:[%s1606_s3 + $0x1a8] sm:$0xff] %vm846_vm3, %v835_v49  ;;  %v840_v55 = vsel %vm712_vm8, %v632_v41, %v776_v47  ;;  %873 = vst.msk [vmem:[%s1606_s3 + $0xd0] sm:$0xff] %vm846_vm3, %v808_v54  ;;  %vm678_vm9 = vcmp.gt.f32.partialorder %v496_v50, 0.0  ;;  %v742_v58 = vmul.f32 0.25, %v496_v50  ;;  %vm710_vm10 = vcmp.gt.f32.partialorder %v624_v51, 0.0  ;;  %v498_v60 = vpop.f32.mrf.mxu0  ;;  %v626_v61 = vpop.f32.mrf.mxu1 }
 0x104   :  { %905 = vst.msk [vmem:[%s1606_s3 + $0x1d0] sm:$0xff] %vm846_vm3, %v840_v55  ;;  %v774_v59 = vmul.f32 0.25, %v624_v51  ;;  %vm681_vm11 = vcmp.gt.f32.partialorder %v507_v56, 0.0  ;;  %v745_v62 = vmul.f32 0.25, %v507_v56  ;;  %vm713_vm12 = vcmp.gt.f32.partialorder %v635_v57, 0.0 }
 0x105   :  { %v777_v63 = vmul.f32 0.25, %v635_v57  ;;  %v806_v0 = vsel %vm678_vm9, %v496_v50, %v742_v58  ;;  %v499_v2 = vadd.f32 %v1281_v38, %v498_v60  ;;  %v627_v3 = vadd.f32 %v1281_v38, %v626_v61  ;;  %v1050_v4 = vpop.f32.mrf.mxu0  ;;  %v1082_v5 = vpop.f32.mrf.mxu1 }
 0x106   :  { %v838_v1 = vsel %vm710_vm10, %v624_v51, %v774_v59  ;;  %871 = vst.msk [vmem:[%s1606_s3 + $0xc0] sm:$0xff] %vm846_vm3, %v806_v0  ;;  %v809_v6 = vsel %vm681_vm11, %v507_v56, %v745_v62  ;;  %v520_v8 = vadd.f32 %v1050_v4, %v1281_v38  ;;  %v648_v9 = vadd.f32 %v1082_v5, %v1281_v38 }
 0x107   :  { %903 = vst.msk [vmem:[%s1606_s3 + $0x1c0] sm:$0xff] %vm846_vm3, %v838_v1  ;;  %v841_v7 = vsel %vm713_vm12, %v635_v57, %v777_v63  ;;  %874 = vst.msk [vmem:[%s1606_s3 + $0xd8] sm:$0xff] %vm846_vm3, %v809_v6  ;;  %vm679_vm13 = vcmp.gt.f32.partialorder %v499_v2, 0.0  ;;  %v743_v10 = vmul.f32 0.25, %v499_v2  ;;  %vm711_vm14 = vcmp.gt.f32.partialorder %v627_v3, 0.0  ;;  %v511_v12 = vpop.f32.mrf.mxu0  ;;  %v639_v13 = vpop.f32.mrf.mxu1 }
 0x108   :  { %906 = vst.msk [vmem:[%s1606_s3 + $0x1d8] sm:$0xff] %vm846_vm3, %v841_v7  ;;  %v775_v11 = vmul.f32 0.25, %v627_v3  ;;  %vm684_vm15 = vcmp.gt.f32.partialorder %v520_v8, 0.0  ;;  %v748_v14 = vmul.f32 0.25, %v520_v8  ;;  %vm716_vm0 = vcmp.gt.f32.partialorder %v648_v9, 0.0 }
 0x109   :  { %v780_v15 = vmul.f32 0.25, %v648_v9  ;;  %v807_v16 = vsel %vm679_vm13, %v499_v2, %v743_v10  ;;  %v512_v18 = vadd.f32 %v1281_v38, %v511_v12  ;;  %v640_v19 = vadd.f32 %v1281_v38, %v639_v13  ;;  %v1051_v20 = vpop.f32.mrf.mxu0  ;;  %v1083_v21 = vpop.f32.mrf.mxu1 }
 0x10a   :  { %v839_v17 = vsel %vm711_vm14, %v627_v3, %v775_v11  ;;  %872 = vst.msk [vmem:[%s1606_s3 + $0xc8] sm:$0xff] %vm846_vm3, %v807_v16  ;;  %v812_v22 = vsel %vm684_vm15, %v520_v8, %v748_v14  ;;  %v523_v24 = vadd.f32 %v1051_v20, %v1281_v38  ;;  %v651_v25 = vadd.f32 %v1083_v21, %v1281_v38 }
 0x10b   :  { %904 = vst.msk [vmem:[%s1606_s3 + $0x1c8] sm:$0xff] %vm846_vm3, %v839_v17  ;;  %v844_v23 = vsel %vm716_vm0, %v648_v9, %v780_v15  ;;  %877 = vst.msk [vmem:[%s1606_s3 + $0xf0] sm:$0xff] %vm846_vm3, %v812_v22  ;;  %vm682_vm1 = vcmp.gt.f32.partialorder %v512_v18, 0.0  ;;  %v746_v26 = vmul.f32 0.25, %v512_v18  ;;  %vm714_vm2 = vcmp.gt.f32.partialorder %v640_v19, 0.0  ;;  %v514_v28 = vpop.f32.mrf.mxu0  ;;  %v642_v29 = vpop.f32.mrf.mxu1 }
 0x10c   :  { %909 = vst.msk [vmem:[%s1606_s3 + $0x1f0] sm:$0xff] %vm846_vm3, %v844_v23  ;;  %v778_v27 = vmul.f32 0.25, %v640_v19  ;;  %vm685_vm4 = vcmp.gt.f32.partialorder %v523_v24, 0.0  ;;  %v749_v30 = vmul.f32 0.25, %v523_v24  ;;  %vm717_vm5 = vcmp.gt.f32.partialorder %v651_v25, 0.0 }
 0x10d   :  { %v781_v31 = vmul.f32 0.25, %v651_v25  ;;  %v810_v32 = vsel %vm682_vm1, %v512_v18, %v746_v26  ;;  %v515_v34 = vadd.f32 %v1281_v38, %v514_v28  ;;  %v643_v35 = vadd.f32 %v1281_v38, %v642_v29 }
 0x10e   :  { %v842_v33 = vsel %vm714_vm2, %v640_v19, %v778_v27  ;;  %875 = vst.msk [vmem:[%s1606_s3 + $0xe0] sm:$0xff] %vm846_vm3, %v810_v32  ;;  %v813_v36 = vsel %vm685_vm4, %v523_v24, %v749_v30 }
 0x10f   :  { %907 = vst.msk [vmem:[%s1606_s3 + $0x1e0] sm:$0xff] %vm846_vm3, %v842_v33  ;;  %v845_v37 = vsel %vm717_vm5, %v651_v25, %v781_v31  ;;  %878 = vst.msk [vmem:[%s1606_s3 + $0xf8] sm:$0xff] %vm846_vm3, %v813_v36  ;;  %vm683_vm6 = vcmp.gt.f32.partialorder %v515_v34, 0.0  ;;  %v747_v38 = vmul.f32 0.25, %v515_v34  ;;  %vm715_vm7 = vcmp.gt.f32.partialorder %v643_v35, 0.0 }
 0x110   :  { %910 = vst.msk [vmem:[%s1606_s3 + $0x1f8] sm:$0xff] %vm846_vm3, %v845_v37  ;;  %v779_v39 = vmul.f32 0.25, %v643_v35 }
 0x111   :  { %v811_v40 = vsel %vm683_vm6, %v515_v34, %v747_v38 }
 0x112   :  { %v843_v41 = vsel %vm715_vm7, %v643_v35, %v779_v39  ;;  %876 = vst.msk [vmem:[%s1606_s3 + $0xe8] sm:$0xff] %vm846_vm3, %v811_v40 }
 0x113   :  { %908 = vst.msk [vmem:[%s1606_s3 + $0x1e8] sm:$0xff] %vm846_vm3, %v843_v41 }

// kernel: enet_forward.90
= control target key start
LH: loop header
LB: loop body
LE: loop exit
PB: predicated region body
PF: predicated region fallthrough
CT: control target
= control target key end

     0   :  { %vm110_vm0 = vcmask 523264   ;;  %vm280_vm1 = vcmask 31744   ;;  %s527_s1 = inlined_call_operand.vmem [shape: bf16[64,4], index: 1, kind: input, shape index: {}]   ;;  %s528_s0 = inlined_call_operand.vmem [shape: bf16[128,64], index: 0, kind: input, shape index: {}]   ;;  %s529_s2 = inlined_call_operand.vmem [shape: f32[1,4], index: 2, kind: input, shape index: {}]   ;;  %s530_s3 = inlined_call_operand.vmem [shape: f32[128,4], index: 3, kind: output, shape index: {}]  }
   0x1   :  { %v366_v0 = vld [vmem:[%s527_s1 + $0x18] sm:$0xff]   ;;  %v367_v1 = vld [vmem:[%s527_s1 + $0x10] sm:$0xff]   ;;  %v368_v2 = vld [vmem:[%s527_s1 + $0x8] sm:$0xff]  }
   0x2   :  { %334 = vmatprep.subr.bf16.mxu0 %v366_v0  ;;  %358 = vmatprep.subr.bf16.mxu1 %v366_v0  ;;  %v370_v3 = vld [vmem:[%s528_s0] sm:$0xff]   ;;  %v372_v6 = vld [vmem:[%s528_s0 + $0x8] sm:$0xff]   ;;  %v374_v8 = vld [vmem:[%s528_s0 + $0x10] sm:$0xff]  }
   0x3   :  { %335 = vmatpush3.bf16.msra.mxu0 %v366_v0  ;;  %362 = vmatpush3.bf16.msra.mxu1 %v366_v0  ;;  %v371_v4 = vld [vmem:[%s528_s0 + $0x20] sm:$0xff]   ;;  %v373_v7 = vld [vmem:[%s528_s0 + $0x28] sm:$0xff]   ;;  %v375_v9 = vld [vmem:[%s528_s0 + $0x30] sm:$0xff]  }
   0x4   :  { %336 = vmatprep.subr.bf16.mxu0 %v367_v1  ;;  %359 = vmatprep.subr.bf16.mxu1 %v367_v1  ;;  %v369_v5 = vld [vmem:[%s527_s1] sm:$0xff]   ;;  %v376_v10 = vld [vmem:[%s528_s0 + $0x18] sm:$0xff]  }
   0x5   :  { %342 = vmatprep.mubr.msk.bf16.mxu0 %vm110_vm0, %v370_v3  ;;  %350 = vmatprep.mubr.msk.bf16.mxu1 %vm110_vm0, %v371_v4  ;;  %v377_v11 = vld [vmem:[%s528_s0 + $0x38] sm:$0xff]   ;;  %v445_v12 = vld [vmem:[%s529_s2] ss:$0 sm:$0xff] }
   0x7   :  { %337 = vmatpush3.bf16.msra.mxu0 %v367_v1  ;;  %363 = vmatpush3.bf16.msra.mxu1 %v367_v1 }
   0x8   :  { %338 = vmatprep.subr.bf16.mxu0 %v368_v2  ;;  %360 = vmatprep.subr.bf16.mxu1 %v368_v2 }
   0xb   :  { %339 = vmatpush3.bf16.msra.mxu0 %v368_v2  ;;  %364 = vmatpush3.bf16.msra.mxu1 %v368_v2 }
   0xc   :  { %340 = vmatprep.subr.bf16.mxu0 %v369_v5  ;;  %361 = vmatprep.subr.bf16.mxu1 %v369_v5 }
   0xf   :  { %341 = vmatpush3.bf16.msra.mxu0 %v369_v5  ;;  %365 = vmatpush3.bf16.msra.mxu1 %v369_v5 }
  0x12   :  { %343 = vmatmul.mubr.msk.bf16.vlgmr.msra.gmra.mxu0 %vm110_vm0, %v372_v6  ;;  %351 = vmatmul.mubr.msk.bf16.vlgmr.msra.gmra.mxu1 %vm110_vm0, %v373_v7 }
  0x13   :  { %346 = vmatprep.mubr.msk.bf16.mxu0 %vm110_vm0, %v374_v8  ;;  %354 = vmatprep.mubr.msk.bf16.mxu1 %vm110_vm0, %v375_v9 }
  0x1a   :  { %347 = vmatmul.mubr.msk.bf16.gmra.mxu0 %vm110_vm0, %v376_v10  ;;  %355 = vmatmul.mubr.msk.bf16.gmra.mxu1 %vm110_vm0, %v377_v11 }
  0xd2   :  { %v344_v13 = vpop.f32.mrf.mxu0  ;;  %v352_v14 = vpop.f32.mrf.mxu1 }
  0xd3   :  { %v178_v15 = vadd.f32 %v344_v13, %v445_v12  ;;  %v210_v16 = vadd.f32 %v352_v14, %v445_v12 }
  0xd4   :  { %v169_v17 = vpop.f32.mrf.mxu0  ;;  %v201_v18 = vpop.f32.mrf.mxu1 }
  0xd5   :  { %vm234_vm2 = vcmp.gt.f32.partialorder %v178_v15, 0.0  ;;  %v250_v19 = vmul.f32 0.25, %v178_v15  ;;  %vm242_vm3 = vcmp.gt.f32.partialorder %v210_v16, 0.0  ;;  %v258_v20 = vmul.f32 0.25, %v210_v16 }
  0xd6   :  { %v170_v21 = vadd.f32 %v445_v12, %v169_v17  ;;  %v202_v22 = vadd.f32 %v445_v12, %v201_v18  ;;  %v345_v23 = vpop.f32.mrf.mxu0  ;;  %v353_v24 = vpop.f32.mrf.mxu1 }
  0xd7   :  { %v266_v25 = vsel %vm234_vm2, %v178_v15, %v250_v19  ;;  %v274_v26 = vsel %vm242_vm3, %v210_v16, %v258_v20  ;;  %v181_v27 = vadd.f32 %v345_v23, %v445_v12  ;;  %v213_v28 = vadd.f32 %v353_v24, %v445_v12 }
  0xd8   :  { %283 = vst.msk [vmem:[%s530_s3 + $0x10] sm:$0xff] %vm280_vm1, %v266_v25  ;;  %291 = vst.msk [vmem:[%s530_s3 + $0x50] sm:$0xff] %vm280_vm1, %v274_v26  ;;  %vm232_vm4 = vcmp.gt.f32.partialorder %v170_v21, 0.0  ;;  %v248_v29 = vmul.f32 0.25, %v170_v21  ;;  %vm240_vm5 = vcmp.gt.f32.partialorder %v202_v22, 0.0  ;;  %v256_v30 = vmul.f32 0.25, %v202_v22  ;;  %v172_v31 = vpop.f32.mrf.mxu0  ;;  %v204_v32 = vpop.f32.mrf.mxu1 }
  0xd9   :  { %vm235_vm6 = vcmp.gt.f32.partialorder %v181_v27, 0.0  ;;  %v251_v33 = vmul.f32 0.25, %v181_v27  ;;  %vm243_vm7 = vcmp.gt.f32.partialorder %v213_v28, 0.0  ;;  %v259_v34 = vmul.f32 0.25, %v213_v28 }
  0xda   :  { %v264_v35 = vsel %vm232_vm4, %v170_v21, %v248_v29  ;;  %v272_v36 = vsel %vm240_vm5, %v202_v22, %v256_v30  ;;  %v173_v37 = vadd.f32 %v445_v12, %v172_v31  ;;  %v205_v38 = vadd.f32 %v445_v12, %v204_v32  ;;  %v348_v39 = vpop.f32.mrf.mxu0  ;;  %v356_v40 = vpop.f32.mrf.mxu1 }
  0xdb   :  { %281 = vst.msk [vmem:[%s530_s3] sm:$0xff] %vm280_vm1, %v264_v35  ;;  %289 = vst.msk [vmem:[%s530_s3 + $0x40] sm:$0xff] %vm280_vm1, %v272_v36  ;;  %v267_v41 = vsel %vm235_vm6, %v181_v27, %v251_v33  ;;  %v275_v42 = vsel %vm243_vm7, %v213_v28, %v259_v34  ;;  %v194_v43 = vadd.f32 %v348_v39, %v445_v12 }
  0xdc   :  { %v226_v44 = vadd.f32 %v356_v40, %v445_v12  ;;  %284 = vst.msk [vmem:[%s530_s3 + $0x18] sm:$0xff] %vm280_vm1, %v267_v41  ;;  %292 = vst.msk [vmem:[%s530_s3 + $0x58] sm:$0xff] %vm280_vm1, %v275_v42  ;;  %vm233_vm8 = vcmp.gt.f32.partialorder %v173_v37, 0.0  ;;  %v249_v45 = vmul.f32 0.25, %v173_v37  ;;  %vm241_vm9 = vcmp.gt.f32.partialorder %v205_v38, 0.0  ;;  %v185_v47 = vpop.f32.mrf.mxu0  ;;  %v217_v48 = vpop.f32.mrf.mxu1 }
  0xdd   :  { %v257_v46 = vmul.f32 0.25, %v205_v38  ;;  %vm238_vm10 = vcmp.gt.f32.partialorder %v194_v43, 0.0  ;;  %v254_v49 = vmul.f32 0.25, %v194_v43  ;;  %v186_v53 = vadd.f32 %v445_v12, %v185_v47 }
  0xde   :  { %vm246_vm11 = vcmp.gt.f32.partialorder %v226_v44, 0.0  ;;  %v262_v50 = vmul.f32 0.25, %v226_v44  ;;  %v265_v51 = vsel %vm233_vm8, %v173_v37, %v249_v45  ;;  %v218_v54 = vadd.f32 %v445_v12, %v217_v48  ;;  %v349_v55 = vpop.f32.mrf.mxu0  ;;  %v357_v56 = vpop.f32.mrf.mxu1 }
  0xdf   :  { %v273_v52 = vsel %vm241_vm9, %v205_v38, %v257_v46  ;;  %282 = vst.msk [vmem:[%s530_s3 + $0x8] sm:$0xff] %vm280_vm1, %v265_v51  ;;  %v270_v57 = vsel %vm238_vm10, %v194_v43, %v254_v49  ;;  %v197_v59 = vadd.f32 %v349_v55, %v445_v12  ;;  %v229_v60 = vadd.f32 %v357_v56, %v445_v12 }
  0xe0   :  { %290 = vst.msk [vmem:[%s530_s3 + $0x48] sm:$0xff] %vm280_vm1, %v273_v52  ;;  %v278_v58 = vsel %vm246_vm11, %v226_v44, %v262_v50  ;;  %287 = vst.msk [vmem:[%s530_s3 + $0x30] sm:$0xff] %vm280_vm1, %v270_v57  ;;  %vm236_vm12 = vcmp.gt.f32.partialorder %v186_v53, 0.0  ;;  %v252_v61 = vmul.f32 0.25, %v186_v53  ;;  %vm244_vm13 = vcmp.gt.f32.partialorder %v218_v54, 0.0  ;;  %v188_v63 = vpop.f32.mrf.mxu0  ;;  %v220_v0 = vpop.f32.mrf.mxu1 }
  0xe1   :  { %295 = vst.msk [vmem:[%s530_s3 + $0x70] sm:$0xff] %vm280_vm1, %v278_v58  ;;  %v260_v62 = vmul.f32 0.25, %v218_v54  ;;  %vm239_vm14 = vcmp.gt.f32.partialorder %v197_v59, 0.0  ;;  %v255_v1 = vmul.f32 0.25, %v197_v59  ;;  %vm247_vm15 = vcmp.gt.f32.partialorder %v229_v60, 0.0 }
  0xe2   :  { %v263_v2 = vmul.f32 0.25, %v229_v60  ;;  %v268_v3 = vsel %vm236_vm12, %v186_v53, %v252_v61  ;;  %v189_v5 = vadd.f32 %v445_v12, %v188_v63  ;;  %v221_v6 = vadd.f32 %v445_v12, %v220_v0 }
  0xe3   :  { %v276_v4 = vsel %vm244_vm13, %v218_v54, %v260_v62  ;;  %285 = vst.msk [vmem:[%s530_s3 + $0x20] sm:$0xff] %vm280_vm1, %v268_v3  ;;  %v271_v7 = vsel %vm239_vm14, %v197_v59, %v255_v1 }
  0xe4   :  { %293 = vst.msk [vmem:[%s530_s3 + $0x60] sm:$0xff] %vm280_vm1, %v276_v4  ;;  %v279_v8 = vsel %vm247_vm15, %v229_v60, %v263_v2  ;;  %288 = vst.msk [vmem:[%s530_s3 + $0x38] sm:$0xff] %vm280_vm1, %v271_v7  ;;  %vm237_vm0 = vcmp.gt.f32.partialorder %v189_v5, 0.0  ;;  %v253_v9 = vmul.f32 0.25, %v189_v5  ;;  %vm245_vm2 = vcmp.gt.f32.partialorder %v221_v6, 0.0 }
  0xe5   :  { %296 = vst.msk [vmem:[%s530_s3 + $0x78] sm:$0xff] %vm280_vm1, %v279_v8  ;;  %v261_v10 = vmul.f32 0.25, %v221_v6 }
  0xe6   :  { %v269_v11 = vsel %vm237_vm0, %v189_v5, %v253_v9 }
  0xe7   :  { %v277_v12 = vsel %vm245_vm2, %v221_v6, %v261_v10  ;;  %286 = vst.msk [vmem:[%s530_s3 + $0x28] sm:$0xff] %vm280_vm1, %v269_v11 }
  0xe8   :  { %294 = vst.msk [vmem:[%s530_s3 + $0x68] sm:$0xff] %vm280_vm1, %v277_v12 }

// kernel: enet_forward.91
= control target key start
LH: loop header
LB: loop body
LE: loop exit
PB: predicated region body
PF: predicated region fallthrough
CT: control target
= control target key end

     0   :  { %vm123_vm0 = vcmask 1041408   ;;  %vm98_vm1 = vcmask 293888   ;;  %vm272_vm2 = vcmask 31744   ;;  %s511_s1 = inlined_call_operand.vmem [shape: bf16[36,4], index: 1, kind: input, shape index: {}]   ;;  %s512_s0 = inlined_call_operand.vmem [shape: bf16[128,36], index: 0, kind: input, shape index: {}]   ;;  %s513_s2 = inlined_call_operand.vmem [shape: f32[1,4], index: 2, kind: input, shape index: {}]   ;;  %s514_s3 = inlined_call_operand.vmem [shape: f32[128,4], index: 3, kind: output, shape index: {}]  }
   0x1   :  { %v354_v0 = vld [vmem:[%s511_s1 + $0x10] ss:$0 sps:$4 sm:$0x33]   ;;  %v355_v1 = vld [vmem:[%s511_s1 + $0x8] sm:$0xff]   ;;  %v356_v3 = vld [vmem:[%s511_s1] sm:$0xff]  }
   0x2   :  { %352 = vmatprep.subr.msk.bf16.mxu0 %vm123_vm0, %v354_v0  ;;  %353 = vmatprep.subr.msk.bf16.mxu1 %vm123_vm0, %v354_v0  ;;  %v125_v2 = vsel %vm123_vm0, %v354_v0, 0  ;;  %v357_v4 = vld [vmem:[%s512_s0] sm:$0xff]   ;;  %v359_v6 = vld [vmem:[%s512_s0 + $0x8] sm:$0xff]   ;;  %v361_v8 = vld [vmem:[%s512_s0 + $0x10] sm:$0xff]  }
   0x3   :  { %325 = vmatpush3.bf16.msra.mxu0 %v125_v2  ;;  %349 = vmatpush3.bf16.msra.mxu1 %v125_v2  ;;  %v358_v5 = vld [vmem:[%s512_s0 + $0x20] sm:$0xff]   ;;  %v360_v7 = vld [vmem:[%s512_s0 + $0x28] sm:$0xff]   ;;  %v362_v9 = vld [vmem:[%s512_s0 + $0x30] sm:$0xff]  }
   0x4   :  { %326 = vmatprep.subr.bf16.mxu0 %v355_v1  ;;  %347 = vmatprep.subr.bf16.mxu1 %v355_v1  ;;  %v363_v10 = vld [vmem:[%s512_s0 + $0x18] sm:$0xff]   ;;  %v429_v12 = vld [vmem:[%s513_s2] ss:$0 sm:$0xff] }
   0x5   :  { %330 = vmatprep.mubr.msk.bf16.mxu0 %vm98_vm1, %v357_v4  ;;  %338 = vmatprep.mubr.msk.bf16.mxu1 %vm98_vm1, %v358_v5  ;;  %v364_v11 = vld [vmem:[%s512_s0 + $0x38] sm:$0xff]  }
   0x7   :  { %327 = vmatpush3.bf16.msra.mxu0 %v355_v1  ;;  %350 = vmatpush3.bf16.msra.mxu1 %v355_v1 }
   0x8   :  { %328 = vmatprep.subr.bf16.mxu0 %v356_v3  ;;  %348 = vmatprep.subr.bf16.mxu1 %v356_v3 }
   0xb   :  { %329 = vmatpush3.bf16.msra.mxu0 %v356_v3  ;;  %351 = vmatpush3.bf16.msra.mxu1 %v356_v3 }
   0xe   :  { %331 = vmatmul.mubr.msk.bf16.vlgmr.msra.gmra.mxu0 %vm98_vm1, %v359_v6  ;;  %339 = vmatmul.mubr.msk.bf16.vlgmr.msra.gmra.mxu1 %vm98_vm1, %v360_v7 }
   0xf   :  { %334 = vmatprep.mubr.msk.bf16.mxu0 %vm98_vm1, %v361_v8  ;;  %342 = vmatprep.mubr.msk.bf16.mxu1 %vm98_vm1, %v362_v9 }
  0x16   :  { %335 = vmatmul.mubr.msk.bf16.gmra.mxu0 %vm98_vm1, %v363_v10  ;;  %343 = vmatmul.mubr.msk.bf16.gmra.mxu1 %vm98_vm1, %v364_v11 }
  0xce   :  { %v332_v13 = vpop.f32.mrf.mxu0  ;;  %v340_v14 = vpop.f32.mrf.mxu1 }
  0xcf   :  { %v170_v15 = vadd.f32 %v332_v13, %v429_v12  ;;  %v202_v16 = vadd.f32 %v340_v14, %v429_v12 }
  0xd0   :  { %v161_v17 = vpop.f32.mrf.mxu0  ;;  %v193_v18 = vpop.f32.mrf.mxu1 }
  0xd1   :  { %vm226_vm3 = vcmp.gt.f32.partialorder %v170_v15, 0.0  ;;  %v242_v19 = vmul.f32 0.25, %v170_v15  ;;  %vm234_vm4 = vcmp.gt.f32.partialorder %v202_v16, 0.0  ;;  %v250_v20 = vmul.f32 0.25, %v202_v16 }
  0xd2   :  { %v162_v21 = vadd.f32 %v429_v12, %v161_v17  ;;  %v194_v22 = vadd.f32 %v429_v12, %v193_v18  ;;  %v333_v23 = vpop.f32.mrf.mxu0  ;;  %v341_v24 = vpop.f32.mrf.mxu1 }
  0xd3   :  { %v258_v25 = vsel %vm226_vm3, %v170_v15, %v242_v19  ;;  %v266_v26 = vsel %vm234_vm4, %v202_v16, %v250_v20  ;;  %v173_v27 = vadd.f32 %v333_v23, %v429_v12  ;;  %v205_v28 = vadd.f32 %v341_v24, %v429_v12 }
  0xd4   :  { %275 = vst.msk [vmem:[%s514_s3 + $0x10] sm:$0xff] %vm272_vm2, %v258_v25  ;;  %283 = vst.msk [vmem:[%s514_s3 + $0x50] sm:$0xff] %vm272_vm2, %v266_v26  ;;  %vm224_vm5 = vcmp.gt.f32.partialorder %v162_v21, 0.0  ;;  %v240_v29 = vmul.f32 0.25, %v162_v21  ;;  %vm232_vm6 = vcmp.gt.f32.partialorder %v194_v22, 0.0  ;;  %v248_v30 = vmul.f32 0.25, %v194_v22  ;;  %v164_v31 = vpop.f32.mrf.mxu0  ;;  %v196_v32 = vpop.f32.mrf.mxu1 }
  0xd5   :  { %vm227_vm7 = vcmp.gt.f32.partialorder %v173_v27, 0.0  ;;  %v243_v33 = vmul.f32 0.25, %v173_v27  ;;  %vm235_vm8 = vcmp.gt.f32.partialorder %v205_v28, 0.0  ;;  %v251_v34 = vmul.f32 0.25, %v205_v28 }
  0xd6   :  { %v256_v35 = vsel %vm224_vm5, %v162_v21, %v240_v29  ;;  %v264_v36 = vsel %vm232_vm6, %v194_v22, %v248_v30  ;;  %v165_v37 = vadd.f32 %v429_v12, %v164_v31  ;;  %v197_v38 = vadd.f32 %v429_v12, %v196_v32  ;;  %v336_v39 = vpop.f32.mrf.mxu0  ;;  %v344_v40 = vpop.f32.mrf.mxu1 }
  0xd7   :  { %273 = vst.msk [vmem:[%s514_s3] sm:$0xff] %vm272_vm2, %v256_v35  ;;  %281 = vst.msk [vmem:[%s514_s3 + $0x40] sm:$0xff] %vm272_vm2, %v264_v36  ;;  %v259_v41 = vsel %vm227_vm7, %v173_v27, %v243_v33  ;;  %v267_v42 = vsel %vm235_vm8, %v205_v28, %v251_v34  ;;  %v186_v43 = vadd.f32 %v336_v39, %v429_v12 }
  0xd8   :  { %v218_v44 = vadd.f32 %v344_v40, %v429_v12  ;;  %276 = vst.msk [vmem:[%s514_s3 + $0x18] sm:$0xff] %vm272_vm2, %v259_v41  ;;  %284 = vst.msk [vmem:[%s514_s3 + $0x58] sm:$0xff] %vm272_vm2, %v267_v42  ;;  %vm225_vm9 = vcmp.gt.f32.partialorder %v165_v37, 0.0  ;;  %v241_v45 = vmul.f32 0.25, %v165_v37  ;;  %vm233_vm10 = vcmp.gt.f32.partialorder %v197_v38, 0.0  ;;  %v177_v47 = vpop.f32.mrf.mxu0  ;;  %v209_v48 = vpop.f32.mrf.mxu1 }
  0xd9   :  { %v249_v46 = vmul.f32 0.25, %v197_v38  ;;  %vm230_vm11 = vcmp.gt.f32.partialorder %v186_v43, 0.0  ;;  %v246_v49 = vmul.f32 0.25, %v186_v43  ;;  %v178_v53 = vadd.f32 %v429_v12, %v177_v47 }
  0xda   :  { %vm238_vm12 = vcmp.gt.f32.partialorder %v218_v44, 0.0  ;;  %v254_v50 = vmul.f32 0.25, %v218_v44  ;;  %v257_v51 = vsel %vm225_vm9, %v165_v37, %v241_v45  ;;  %v210_v54 = vadd.f32 %v429_v12, %v209_v48  ;;  %v337_v55 = vpop.f32.mrf.mxu0  ;;  %v345_v56 = vpop.f32.mrf.mxu1 }
  0xdb   :  { %v265_v52 = vsel %vm233_vm10, %v197_v38, %v249_v46  ;;  %274 = vst.msk [vmem:[%s514_s3 + $0x8] sm:$0xff] %vm272_vm2, %v257_v51  ;;  %v262_v57 = vsel %vm230_vm11, %v186_v43, %v246_v49  ;;  %v189_v59 = vadd.f32 %v337_v55, %v429_v12  ;;  %v221_v60 = vadd.f32 %v345_v56, %v429_v12 }
  0xdc   :  { %282 = vst.msk [vmem:[%s514_s3 + $0x48] sm:$0xff] %vm272_vm2, %v265_v52  ;;  %v270_v58 = vsel %vm238_vm12, %v218_v44, %v254_v50  ;;  %279 = vst.msk [vmem:[%s514_s3 + $0x30] sm:$0xff] %vm272_vm2, %v262_v57  ;;  %vm228_vm13 = vcmp.gt.f32.partialorder %v178_v53, 0.0  ;;  %v244_v61 = vmul.f32 0.25, %v178_v53  ;;  %vm236_vm14 = vcmp.gt.f32.partialorder %v210_v54, 0.0  ;;  %v180_v63 = vpop.f32.mrf.mxu0  ;;  %v212_v0 = vpop.f32.mrf.mxu1 }
  0xdd   :  { %287 = vst.msk [vmem:[%s514_s3 + $0x70] sm:$0xff] %vm272_vm2, %v270_v58  ;;  %v252_v62 = vmul.f32 0.25, %v210_v54  ;;  %vm231_vm15 = vcmp.gt.f32.partialorder %v189_v59, 0.0  ;;  %v247_v1 = vmul.f32 0.25, %v189_v59  ;;  %vm239_vm0 = vcmp.gt.f32.partialorder %v221_v60, 0.0 }
  0xde   :  { %v255_v2 = vmul.f32 0.25, %v221_v60  ;;  %v260_v3 = vsel %vm228_vm13, %v178_v53, %v244_v61  ;;  %v181_v5 = vadd.f32 %v429_v12, %v180_v63  ;;  %v213_v6 = vadd.f32 %v429_v12, %v212_v0 }
  0xdf   :  { %v268_v4 = vsel %vm236_vm14, %v210_v54, %v252_v62  ;;  %277 = vst.msk [vmem:[%s514_s3 + $0x20] sm:$0xff] %vm272_vm2, %v260_v3  ;;  %v263_v7 = vsel %vm231_vm15, %v189_v59, %v247_v1 }
  0xe0   :  { %285 = vst.msk [vmem:[%s514_s3 + $0x60] sm:$0xff] %vm272_vm2, %v268_v4  ;;  %v271_v8 = vsel %vm239_vm0, %v221_v60, %v255_v2  ;;  %280 = vst.msk [vmem:[%s514_s3 + $0x38] sm:$0xff] %vm272_vm2, %v263_v7  ;;  %vm229_vm1 = vcmp.gt.f32.partialorder %v181_v5, 0.0  ;;  %v245_v9 = vmul.f32 0.25, %v181_v5  ;;  %vm237_vm3 = vcmp.gt.f32.partialorder %v213_v6, 0.0 }
  0xe1   :  { %288 = vst.msk [vmem:[%s514_s3 + $0x78] sm:$0xff] %vm272_vm2, %v271_v8  ;;  %v253_v10 = vmul.f32 0.25, %v213_v6 }
  0xe2   :  { %v261_v11 = vsel %vm229_vm1, %v181_v5, %v245_v9 }
  0xe3   :  { %v269_v12 = vsel %vm237_vm3, %v213_v6, %v253_v10  ;;  %278 = vst.msk [vmem:[%s514_s3 + $0x28] sm:$0xff] %vm272_vm2, %v261_v11 }
  0xe4   :  { %286 = vst.msk [vmem:[%s514_s3 + $0x68] sm:$0xff] %vm272_vm2, %v269_v12 }

// kernel: enet_forward.92
= control target key start
LH: loop header
LB: loop body
LE: loop exit
PB: predicated region body
PF: predicated region fallthrough
CT: control target
= control target key end

     0   :  { %vm107_vm0 = vcmask 1041408   ;;  %vm82_vm1 = vcmask 31744   ;;  %vm336_vm3 = vcmask 523264   ;;  %s606_s1 = inlined_call_operand.vmem [shape: bf16[4,64], index: 1, kind: input, shape index: {}]   ;;  %s607_s0 = inlined_call_operand.vmem [shape: bf16[128,4], index: 0, kind: input, shape index: {}]   ;;  %s608_s2 = inlined_call_operand.vmem [shape: f32[1,64], index: 2, kind: input, shape index: {}]   ;;  %s609_s3 = inlined_call_operand.vmem [shape: f32[128,64], index: 3, kind: input, shape index: {}]   ;;  %s610_s4 = inlined_call_operand.vmem [shape: f32[128,64], index: 4, kind: output, shape index: {}]  }
   0x1   :  { %v34_v0 = vld [vmem:[%s606_s1] sm:$0x3]  ;;  %v407_v4 = vld [vmem:[%s607_s0 + $0x8] sm:$0xff]   ;;  %v409_v6 = vld [vmem:[%s607_s0 + $0x10] sm:$0xff]  }
   0x2   :  { %403 = vmatprep.subr.msk.bf16.mxu0 %vm107_vm0, %v34_v0  ;;  %404 = vmatprep.subr.msk.bf16.mxu1 %vm107_vm0, %v34_v0  ;;  %v109_v1 = vsel %vm107_vm0, %v34_v0, 0  ;;  %v405_v2 = vld [vmem:[%s607_s0] sm:$0xff]   ;;  %v408_v5 = vld [vmem:[%s607_s0 + $0x28] sm:$0xff]   ;;  %v410_v7 = vld [vmem:[%s607_s0 + $0x30] sm:$0xff]  }
   0x3   :  { %384 = vmatpush3.bf16.msra.mxu0 %v109_v1  ;;  %402 = vmatpush3.bf16.msra.mxu1 %v109_v1  ;;  %v406_v3 = vld [vmem:[%s607_s0 + $0x20] sm:$0xff]   ;;  %v411_v8 = vld [vmem:[%s607_s0 + $0x18] sm:$0xff]   ;;  %v258_v17 = vld [vmem:[%s609_s3 + $0x10] sm:$0xff] }
   0x4   :  { %385 = vmatprep.mubr.msk.bf16.mxu0 %vm82_vm1, %v405_v2  ;;  %393 = vmatprep.mubr.msk.bf16.mxu1 %vm82_vm1, %v406_v3  ;;  %v412_v9 = vld [vmem:[%s607_s0 + $0x38] sm:$0xff]   ;;  %v476_v10 = vld [vmem:[%s608_s2] ss:$0 sm:$0xff]  ;;  %v266_v21 = vld [vmem:[%s609_s3 + $0x50] sm:$0xff] }
   0x5   :  { %v256_v26 = vld [vmem:[%s609_s3] sm:$0xff]  ;;  %v259_v37 = vld [vmem:[%s609_s3 + $0x18] sm:$0xff]  ;;  %v257_v62 = vld [vmem:[%s609_s3 + $0x8] sm:$0xff] }
   0x6   :  { %386 = vmatmul.mubr.msk.bf16.vlgmr.msra.gmra.mxu0 %vm82_vm1, %v407_v4  ;;  %394 = vmatmul.mubr.msk.bf16.vlgmr.msra.gmra.mxu1 %vm82_vm1, %v408_v5  ;;  %v264_v32 = vld [vmem:[%s609_s3 + $0x40] sm:$0xff]  ;;  %v267_v58 = vld [vmem:[%s609_s3 + $0x58] sm:$0xff]  ;;  %v265_v3 = vld [vmem:[%s609_s3 + $0x48] sm:$0xff] }
   0x7   :  { %389 = vmatprep.mubr.msk.bf16.mxu0 %vm82_vm1, %v409_v6  ;;  %397 = vmatprep.mubr.msk.bf16.mxu1 %vm82_vm1, %v410_v7 }
   0xe   :  { %390 = vmatmul.mubr.msk.bf16.gmra.mxu0 %vm82_vm1, %v411_v8  ;;  %398 = vmatmul.mubr.msk.bf16.gmra.mxu1 %vm82_vm1, %v412_v9  ;;  %v262_v8 = vld [vmem:[%s609_s3 + $0x30] sm:$0xff] }
  0xc6   :  { %v387_v11 = vpop.f32.mrf.mxu0  ;;  %v395_v13 = vpop.f32.mrf.mxu1 }
  0xc7   :  { %v154_v12 = vadd.f32 %v387_v11, %v476_v10  ;;  %v186_v14 = vadd.f32 %v395_v13, %v476_v10  ;;  %v270_v13 = vld [vmem:[%s609_s3 + $0x70] sm:$0xff] }
  0xc8   :  { %v145_v15 = vpop.f32.mrf.mxu0  ;;  %v177_v19 = vpop.f32.mrf.mxu1 }
  0xc9   :  { %vm210_vm2 = vcmp.gt.f32.partialorder %v154_v12, 0.0  ;;  %v226_v16 = vmul.f32 0.25, %v154_v12  ;;  %v146_v18 = vadd.f32 %v476_v10, %v145_v15  ;;  %vm218_vm4 = vcmp.gt.f32.partialorder %v186_v14, 0.0 }
  0xca   :  { %v234_v20 = vmul.f32 0.25, %v186_v14  ;;  %v178_v22 = vadd.f32 %v476_v10, %v177_v19  ;;  %v388_v23 = vpop.f32.mrf.mxu0  ;;  %v396_v28 = vpop.f32.mrf.mxu1 }
  0xcb   :  { %v242_v24 = vsel %vm210_vm2, %v154_v12, %v226_v16  ;;  %vm208_vm5 = vcmp.gt.f32.partialorder %v146_v18, 0.0  ;;  %v224_v25 = vmul.f32 0.25, %v146_v18  ;;  %v157_v27 = vadd.f32 %v388_v23, %v476_v10 }
  0xcc   :  { %v274_v29 = vadd.f32 %v258_v17, %v242_v24  ;;  %v250_v30 = vsel %vm218_vm4, %v186_v14, %v234_v20  ;;  %vm216_vm6 = vcmp.gt.f32.partialorder %v178_v22, 0.0  ;;  %v232_v31 = vmul.f32 0.25, %v178_v22  ;;  %v148_v33 = vpop.f32.mrf.mxu0  ;;  %v180_v41 = vpop.f32.mrf.mxu1 }
  0xcd   :  { %v282_v34 = vadd.f32 %v266_v21, %v250_v30  ;;  %v240_v35 = vsel %vm208_vm5, %v146_v18, %v224_v25  ;;  %vm211_vm7 = vcmp.gt.f32.partialorder %v157_v27, 0.0  ;;  %v227_v36 = vmul.f32 0.25, %v157_v27 }
  0xce   :  { %vm290_vm8 = vcmp.gt.f32.partialorder %v274_v29, 0.0  ;;  %v306_v38 = vmul.f32 0.25, %v274_v29  ;;  %v272_v39 = vadd.f32 %v256_v26, %v240_v35  ;;  %v248_v40 = vsel %vm216_vm6, %v178_v22, %v232_v31  ;;  %v391_v48 = vpop.f32.mrf.mxu0  ;;  %v399_v55 = vpop.f32.mrf.mxu1  ;;  %v260_v35 = vld [vmem:[%s609_s3 + $0x20] sm:$0xff] }
  0xcf   :  { %vm298_vm9 = vcmp.gt.f32.partialorder %v282_v34, 0.0  ;;  %v314_v42 = vmul.f32 0.25, %v282_v34  ;;  %v280_v43 = vadd.f32 %v264_v32, %v248_v40  ;;  %v243_v44 = vsel %vm211_vm7, %v157_v27, %v227_v36 }
  0xd0   :  { %v322_v45 = vsel %vm290_vm8, %v274_v29, %v306_v38  ;;  %vm288_vm10 = vcmp.gt.f32.partialorder %v272_v39, 0.0  ;;  %v304_v46 = vmul.f32 0.25, %v272_v39  ;;  %v275_v47 = vadd.f32 %v259_v37, %v243_v44  ;;  %v161_v0 = vpop.f32.mrf.mxu0  ;;  %v193_v14 = vpop.f32.mrf.mxu1 }
  0xd1   :  { %339 = vst.msk [vmem:[%s610_s4 + $0x10] sm:$0xff] %vm336_vm3, %v322_v45  ;;  %v330_v49 = vsel %vm298_vm9, %v282_v34, %v314_v42  ;;  %vm296_vm11 = vcmp.gt.f32.partialorder %v280_v43, 0.0  ;;  %v312_v50 = vmul.f32 0.25, %v280_v43  ;;  %v189_v51 = vadd.f32 %v396_v28, %v476_v10 }
  0xd2   :  { %347 = vst.msk [vmem:[%s610_s4 + $0x50] sm:$0xff] %vm336_vm3, %v330_v49  ;;  %v320_v52 = vsel %vm288_vm10, %v272_v39, %v304_v46  ;;  %vm291_vm12 = vcmp.gt.f32.partialorder %v275_v47, 0.0  ;;  %v307_v53 = vmul.f32 0.25, %v275_v47  ;;  %v149_v54 = vadd.f32 %v476_v10, %v148_v33  ;;  %v392_v18 = vpop.f32.mrf.mxu0  ;;  %v400_v28 = vpop.f32.mrf.mxu1  ;;  %v268_v39 = vld [vmem:[%s609_s3 + $0x60] sm:$0xff] }
  0xd3   :  { %337 = vst.msk [vmem:[%s610_s4] sm:$0xff] %vm336_vm3, %v320_v52  ;;  %v328_v56 = vsel %vm296_vm11, %v280_v43, %v312_v50  ;;  %vm219_vm13 = vcmp.gt.f32.partialorder %v189_v51, 0.0  ;;  %v235_v57 = vmul.f32 0.25, %v189_v51  ;;  %v181_v59 = vadd.f32 %v476_v10, %v180_v41  ;;  %v263_v43 = vld [vmem:[%s609_s3 + $0x38] sm:$0xff]  ;;  %v261_v52 = vld [vmem:[%s609_s3 + $0x28] sm:$0xff] }
  0xd4   :  { %345 = vst.msk [vmem:[%s610_s4 + $0x40] sm:$0xff] %vm336_vm3, %v328_v56  ;;  %v323_v60 = vsel %vm291_vm12, %v275_v47, %v307_v53  ;;  %vm209_vm14 = vcmp.gt.f32.partialorder %v149_v54, 0.0  ;;  %v225_v61 = vmul.f32 0.25, %v149_v54  ;;  %v170_v63 = vadd.f32 %v391_v48, %v476_v10  ;;  %v164_v32 = vpop.f32.mrf.mxu0  ;;  %v271_v48 = vld [vmem:[%s609_s3 + $0x78] sm:$0xff]  ;;  %v196_v56 = vpop.f32.mrf.mxu1 }
  0xd5   :  { %340 = vst.msk [vmem:[%s610_s4 + $0x18] sm:$0xff] %vm336_vm3, %v323_v60  ;;  %v251_v1 = vsel %vm219_vm13, %v189_v51, %v235_v57  ;;  %vm217_vm15 = vcmp.gt.f32.partialorder %v181_v59, 0.0  ;;  %v233_v2 = vmul.f32 0.25, %v181_v59  ;;  %v202_v4 = vadd.f32 %v399_v55, %v476_v10 }
  0xd6   :  { %v283_v5 = vadd.f32 %v267_v58, %v251_v1  ;;  %v241_v6 = vsel %vm209_vm14, %v149_v54, %v225_v61  ;;  %vm214_vm0 = vcmp.gt.f32.partialorder %v170_v63, 0.0  ;;  %v230_v7 = vmul.f32 0.25, %v170_v63 }
  0xd7   :  { %v273_v9 = vadd.f32 %v257_v62, %v241_v6  ;;  %v249_v11 = vsel %vm217_vm15, %v181_v59, %v233_v2  ;;  %vm222_vm1 = vcmp.gt.f32.partialorder %v202_v4, 0.0  ;;  %v238_v12 = vmul.f32 0.25, %v202_v4 }
  0xd8   :  { %vm299_vm2 = vcmp.gt.f32.partialorder %v283_v5, 0.0  ;;  %v315_v15 = vmul.f32 0.25, %v283_v5  ;;  %v281_v16 = vadd.f32 %v265_v3, %v249_v11  ;;  %v246_v17 = vsel %vm214_vm0, %v170_v63, %v230_v7 }
  0xd9   :  { %vm289_vm4 = vcmp.gt.f32.partialorder %v273_v9, 0.0  ;;  %v305_v19 = vmul.f32 0.25, %v273_v9  ;;  %v278_v20 = vadd.f32 %v262_v8, %v246_v17  ;;  %v254_v21 = vsel %vm222_vm1, %v202_v4, %v238_v12 }
  0xda   :  { %v331_v22 = vsel %vm299_vm2, %v283_v5, %v315_v15  ;;  %vm297_vm5 = vcmp.gt.f32.partialorder %v281_v16, 0.0  ;;  %v313_v23 = vmul.f32 0.25, %v281_v16  ;;  %v286_v24 = vadd.f32 %v270_v13, %v254_v21 }
  0xdb   :  { %348 = vst.msk [vmem:[%s610_s4 + $0x58] sm:$0xff] %vm336_vm3, %v331_v22  ;;  %v321_v25 = vsel %vm289_vm4, %v273_v9, %v305_v19  ;;  %vm294_vm6 = vcmp.gt.f32.partialorder %v278_v20, 0.0  ;;  %v310_v26 = vmul.f32 0.25, %v278_v20  ;;  %v162_v27 = vadd.f32 %v476_v10, %v161_v0 }
  0xdc   :  { %338 = vst.msk [vmem:[%s610_s4 + $0x8] sm:$0xff] %vm336_vm3, %v321_v25  ;;  %v329_v29 = vsel %vm297_vm5, %v281_v16, %v313_v23  ;;  %vm302_vm7 = vcmp.gt.f32.partialorder %v286_v24, 0.0  ;;  %v318_v30 = vmul.f32 0.25, %v286_v24  ;;  %v194_v31 = vadd.f32 %v476_v10, %v193_v14 }
  0xdd   :  { %346 = vst.msk [vmem:[%s610_s4 + $0x48] sm:$0xff] %vm336_vm3, %v329_v29  ;;  %v326_v33 = vsel %vm294_vm6, %v278_v20, %v310_v26  ;;  %vm212_vm8 = vcmp.gt.f32.partialorder %v162_v27, 0.0  ;;  %v228_v34 = vmul.f32 0.25, %v162_v27  ;;  %v173_v36 = vadd.f32 %v392_v18, %v476_v10 }
  0xde   :  { %343 = vst.msk [vmem:[%s610_s4 + $0x30] sm:$0xff] %vm336_vm3, %v326_v33  ;;  %v334_v37 = vsel %vm302_vm7, %v286_v24, %v318_v30  ;;  %vm220_vm9 = vcmp.gt.f32.partialorder %v194_v31, 0.0  ;;  %v236_v38 = vmul.f32 0.25, %v194_v31  ;;  %v205_v40 = vadd.f32 %v400_v28, %v476_v10 }
  0xdf   :  { %351 = vst.msk [vmem:[%s610_s4 + $0x70] sm:$0xff] %vm336_vm3, %v334_v37  ;;  %v244_v41 = vsel %vm212_vm8, %v162_v27, %v228_v34  ;;  %vm215_vm10 = vcmp.gt.f32.partialorder %v173_v36, 0.0  ;;  %v231_v42 = vmul.f32 0.25, %v173_v36  ;;  %v165_v44 = vadd.f32 %v476_v10, %v164_v32 }
  0xe0   :  { %v276_v45 = vadd.f32 %v260_v35, %v244_v41  ;;  %v252_v46 = vsel %vm220_vm9, %v194_v31, %v236_v38  ;;  %vm223_vm11 = vcmp.gt.f32.partialorder %v205_v40, 0.0  ;;  %v239_v47 = vmul.f32 0.25, %v205_v40 }
  0xe1   :  { %v284_v49 = vadd.f32 %v268_v39, %v252_v46  ;;  %v247_v50 = vsel %vm215_vm10, %v173_v36, %v231_v42  ;;  %vm213_vm12 = vcmp.gt.f32.partialorder %v165_v44, 0.0  ;;  %v229_v51 = vmul.f32 0.25, %v165_v44 }
  0xe2   :  { %vm292_vm13 = vcmp.gt.f32.partialorder %v276_v45, 0.0  ;;  %v308_v53 = vmul.f32 0.25, %v276_v45  ;;  %v279_v54 = vadd.f32 %v263_v43, %v247_v50  ;;  %v255_v55 = vsel %vm223_vm11, %v205_v40, %v239_v47 }
  0xe3   :  { %vm300_vm14 = vcmp.gt.f32.partialorder %v284_v49, 0.0  ;;  %v316_v57 = vmul.f32 0.25, %v284_v49  ;;  %v287_v58 = vadd.f32 %v271_v48, %v255_v55  ;;  %v245_v59 = vsel %vm213_vm12, %v165_v44, %v229_v51 }
  0xe4   :  { %v324_v60 = vsel %vm292_vm13, %v276_v45, %v308_v53  ;;  %vm295_vm15 = vcmp.gt.f32.partialorder %v279_v54, 0.0  ;;  %v311_v61 = vmul.f32 0.25, %v279_v54  ;;  %v277_v62 = vadd.f32 %v261_v52, %v245_v59 }
  0xe5   :  { %341 = vst.msk [vmem:[%s610_s4 + $0x20] sm:$0xff] %vm336_vm3, %v324_v60  ;;  %v332_v63 = vsel %vm300_vm14, %v284_v49, %v316_v57  ;;  %vm303_vm0 = vcmp.gt.f32.partialorder %v287_v58, 0.0  ;;  %v319_v0 = vmul.f32 0.25, %v287_v58  ;;  %v197_v1 = vadd.f32 %v476_v10, %v196_v56  ;;  %v269_v10 = vld [vmem:[%s609_s3 + $0x68] sm:$0xff] }
  0xe6   :  { %349 = vst.msk [vmem:[%s610_s4 + $0x60] sm:$0xff] %vm336_vm3, %v332_v63  ;;  %v327_v2 = vsel %vm295_vm15, %v279_v54, %v311_v61  ;;  %vm293_vm1 = vcmp.gt.f32.partialorder %v277_v62, 0.0  ;;  %v309_v3 = vmul.f32 0.25, %v277_v62 }
  0xe7   :  { %344 = vst.msk [vmem:[%s610_s4 + $0x38] sm:$0xff] %vm336_vm3, %v327_v2  ;;  %v335_v4 = vsel %vm303_vm0, %v287_v58, %v319_v0  ;;  %vm221_vm2 = vcmp.gt.f32.partialorder %v197_v1, 0.0  ;;  %v237_v5 = vmul.f32 0.25, %v197_v1 }
  0xe8   :  { %352 = vst.msk [vmem:[%s610_s4 + $0x78] sm:$0xff] %vm336_vm3, %v335_v4  ;;  %v325_v6 = vsel %vm293_vm1, %v277_v62, %v309_v3 }
  0xe9   :  { %342 = vst.msk [vmem:[%s610_s4 + $0x28] sm:$0xff] %vm336_vm3, %v325_v6  ;;  %v253_v7 = vsel %vm221_vm2, %v197_v1, %v237_v5 }
  0xea   :  { %v285_v8 = vadd.f32 %v269_v10, %v253_v7 }
  0xec   :  { %vm301_vm4 = vcmp.gt.f32.partialorder %v285_v8, 0.0  ;;  %v317_v9 = vmul.f32 0.25, %v285_v8 }
  0xee   :  { %v333_v11 = vsel %vm301_vm4, %v285_v8, %v317_v9 }
  0xef   :  { %350 = vst.msk [vmem:[%s610_s4 + $0x68] sm:$0xff] %vm336_vm3, %v333_v11 }

// kernel: enet_forward.93
= control target key start
LH: loop header
LB: loop body
LE: loop exit
PB: predicated region body
PF: predicated region fallthrough
CT: control target
= control target key end

     0   :  { %vm110_vm0 = vcmask 523264   ;;  %vm280_vm1 = vcmask 130048   ;;  %s527_s1 = inlined_call_operand.vmem [shape: bf16[64,16], index: 1, kind: input, shape index: {}]   ;;  %s528_s0 = inlined_call_operand.vmem [shape: bf16[128,64], index: 0, kind: input, shape index: {}]   ;;  %s529_s2 = inlined_call_operand.vmem [shape: f32[1,16], index: 2, kind: input, shape index: {}]   ;;  %s530_s3 = inlined_call_operand.vmem [shape: f32[128,16], index: 3, kind: output, shape index: {}]  }
   0x1   :  { %v366_v0 = vld [vmem:[%s527_s1 + $0x18] sm:$0xff]   ;;  %v367_v1 = vld [vmem:[%s527_s1 + $0x10] sm:$0xff]   ;;  %v368_v2 = vld [vmem:[%s527_s1 + $0x8] sm:$0xff]  }
   0x2   :  { %334 = vmatprep.subr.bf16.mxu0 %v366_v0  ;;  %358 = vmatprep.subr.bf16.mxu1 %v366_v0  ;;  %v370_v3 = vld [vmem:[%s528_s0] sm:$0xff]   ;;  %v372_v6 = vld [vmem:[%s528_s0 + $0x8] sm:$0xff]   ;;  %v374_v8 = vld [vmem:[%s528_s0 + $0x10] sm:$0xff]  }
   0x3   :  { %335 = vmatpush3.bf16.msra.mxu0 %v366_v0  ;;  %362 = vmatpush3.bf16.msra.mxu1 %v366_v0  ;;  %v371_v4 = vld [vmem:[%s528_s0 + $0x20] sm:$0xff]   ;;  %v373_v7 = vld [vmem:[%s528_s0 + $0x28] sm:$0xff]   ;;  %v375_v9 = vld [vmem:[%s528_s0 + $0x30] sm:$0xff]  }
   0x4   :  { %336 = vmatprep.subr.bf16.mxu0 %v367_v1  ;;  %359 = vmatprep.subr.bf16.mxu1 %v367_v1  ;;  %v369_v5 = vld [vmem:[%s527_s1] sm:$0xff]   ;;  %v376_v10 = vld [vmem:[%s528_s0 + $0x18] sm:$0xff]  }
   0x5   :  { %342 = vmatprep.mubr.msk.bf16.mxu0 %vm110_vm0, %v370_v3  ;;  %350 = vmatprep.mubr.msk.bf16.mxu1 %vm110_vm0, %v371_v4  ;;  %v377_v11 = vld [vmem:[%s528_s0 + $0x38] sm:$0xff]   ;;  %v445_v12 = vld [vmem:[%s529_s2] ss:$0 sm:$0xff] }
   0x7   :  { %337 = vmatpush3.bf16.msra.mxu0 %v367_v1  ;;  %363 = vmatpush3.bf16.msra.mxu1 %v367_v1 }
   0x8   :  { %338 = vmatprep.subr.bf16.mxu0 %v368_v2  ;;  %360 = vmatprep.subr.bf16.mxu1 %v368_v2 }
   0xb   :  { %339 = vmatpush3.bf16.msra.mxu0 %v368_v2  ;;  %364 = vmatpush3.bf16.msra.mxu1 %v368_v2 }
   0xc   :  { %340 = vmatprep.subr.bf16.mxu0 %v369_v5  ;;  %361 = vmatprep.subr.bf16.mxu1 %v369_v5 }
   0xf   :  { %341 = vmatpush3.bf16.msra.mxu0 %v369_v5  ;;  %365 = vmatpush3.bf16.msra.mxu1 %v369_v5 }
  0x12   :  { %343 = vmatmul.mubr.msk.bf16.vlgmr.msra.gmra.mxu0 %vm110_vm0, %v372_v6  ;;  %351 = vmatmul.mubr.msk.bf16.vlgmr.msra.gmra.mxu1 %vm110_vm0, %v373_v7 }
  0x13   :  { %346 = vmatprep.mubr.msk.bf16.mxu0 %vm110_vm0, %v374_v8  ;;  %354 = vmatprep.mubr.msk.bf16.mxu1 %vm110_vm0, %v375_v9 }
  0x1a   :  { %347 = vmatmul.mubr.msk.bf16.gmra.mxu0 %vm110_vm0, %v376_v10  ;;  %355 = vmatmul.mubr.msk.bf16.gmra.mxu1 %vm110_vm0, %v377_v11 }
  0xd2   :  { %v344_v13 = vpop.f32.mrf.mxu0  ;;  %v352_v14 = vpop.f32.mrf.mxu1 }
  0xd3   :  { %v178_v15 = vadd.f32 %v344_v13, %v445_v12  ;;  %v210_v16 = vadd.f32 %v352_v14, %v445_v12 }
  0xd4   :  { %v169_v17 = vpop.f32.mrf.mxu0  ;;  %v201_v18 = vpop.f32.mrf.mxu1 }
  0xd5   :  { %vm234_vm2 = vcmp.gt.f32.partialorder %v178_v15, 0.0  ;;  %v250_v19 = vmul.f32 0.25, %v178_v15  ;;  %vm242_vm3 = vcmp.gt.f32.partialorder %v210_v16, 0.0  ;;  %v258_v20 = vmul.f32 0.25, %v210_v16 }
  0xd6   :  { %v170_v21 = vadd.f32 %v445_v12, %v169_v17  ;;  %v202_v22 = vadd.f32 %v445_v12, %v201_v18  ;;  %v345_v23 = vpop.f32.mrf.mxu0  ;;  %v353_v24 = vpop.f32.mrf.mxu1 }
  0xd7   :  { %v266_v25 = vsel %vm234_vm2, %v178_v15, %v250_v19  ;;  %v274_v26 = vsel %vm242_vm3, %v210_v16, %v258_v20  ;;  %v181_v27 = vadd.f32 %v345_v23, %v445_v12  ;;  %v213_v28 = vadd.f32 %v353_v24, %v445_v12 }
  0xd8   :  { %283 = vst.msk [vmem:[%s530_s3 + $0x10] sm:$0xff] %vm280_vm1, %v266_v25  ;;  %291 = vst.msk [vmem:[%s530_s3 + $0x50] sm:$0xff] %vm280_vm1, %v274_v26  ;;  %vm232_vm4 = vcmp.gt.f32.partialorder %v170_v21, 0.0  ;;  %v248_v29 = vmul.f32 0.25, %v170_v21  ;;  %vm240_vm5 = vcmp.gt.f32.partialorder %v202_v22, 0.0  ;;  %v256_v30 = vmul.f32 0.25, %v202_v22  ;;  %v172_v31 = vpop.f32.mrf.mxu0  ;;  %v204_v32 = vpop.f32.mrf.mxu1 }
  0xd9   :  { %vm235_vm6 = vcmp.gt.f32.partialorder %v181_v27, 0.0  ;;  %v251_v33 = vmul.f32 0.25, %v181_v27  ;;  %vm243_vm7 = vcmp.gt.f32.partialorder %v213_v28, 0.0  ;;  %v259_v34 = vmul.f32 0.25, %v213_v28 }
  0xda   :  { %v264_v35 = vsel %vm232_vm4, %v170_v21, %v248_v29  ;;  %v272_v36 = vsel %vm240_vm5, %v202_v22, %v256_v30  ;;  %v173_v37 = vadd.f32 %v445_v12, %v172_v31  ;;  %v205_v38 = vadd.f32 %v445_v12, %v204_v32  ;;  %v348_v39 = vpop.f32.mrf.mxu0  ;;  %v356_v40 = vpop.f32.mrf.mxu1 }
  0xdb   :  { %281 = vst.msk [vmem:[%s530_s3] sm:$0xff] %vm280_vm1, %v264_v35  ;;  %289 = vst.msk [vmem:[%s530_s3 + $0x40] sm:$0xff] %vm280_vm1, %v272_v36  ;;  %v267_v41 = vsel %vm235_vm6, %v181_v27, %v251_v33  ;;  %v275_v42 = vsel %vm243_vm7, %v213_v28, %v259_v34  ;;  %v194_v43 = vadd.f32 %v348_v39, %v445_v12 }
  0xdc   :  { %v226_v44 = vadd.f32 %v356_v40, %v445_v12  ;;  %284 = vst.msk [vmem:[%s530_s3 + $0x18] sm:$0xff] %vm280_vm1, %v267_v41  ;;  %292 = vst.msk [vmem:[%s530_s3 + $0x58] sm:$0xff] %vm280_vm1, %v275_v42  ;;  %vm233_vm8 = vcmp.gt.f32.partialorder %v173_v37, 0.0  ;;  %v249_v45 = vmul.f32 0.25, %v173_v37  ;;  %vm241_vm9 = vcmp.gt.f32.partialorder %v205_v38, 0.0  ;;  %v185_v47 = vpop.f32.mrf.mxu0  ;;  %v217_v48 = vpop.f32.mrf.mxu1 }
  0xdd   :  { %v257_v46 = vmul.f32 0.25, %v205_v38  ;;  %vm238_vm10 = vcmp.gt.f32.partialorder %v194_v43, 0.0  ;;  %v254_v49 = vmul.f32 0.25, %v194_v43  ;;  %v186_v53 = vadd.f32 %v445_v12, %v185_v47 }
  0xde   :  { %vm246_vm11 = vcmp.gt.f32.partialorder %v226_v44, 0.0  ;;  %v262_v50 = vmul.f32 0.25, %v226_v44  ;;  %v265_v51 = vsel %vm233_vm8, %v173_v37, %v249_v45  ;;  %v218_v54 = vadd.f32 %v445_v12, %v217_v48  ;;  %v349_v55 = vpop.f32.mrf.mxu0  ;;  %v357_v56 = vpop.f32.mrf.mxu1 }
  0xdf   :  { %v273_v52 = vsel %vm241_vm9, %v205_v38, %v257_v46  ;;  %282 = vst.msk [vmem:[%s530_s3 + $0x8] sm:$0xff] %vm280_vm1, %v265_v51  ;;  %v270_v57 = vsel %vm238_vm10, %v194_v43, %v254_v49  ;;  %v197_v59 = vadd.f32 %v349_v55, %v445_v12  ;;  %v229_v60 = vadd.f32 %v357_v56, %v445_v12 }
  0xe0   :  { %290 = vst.msk [vmem:[%s530_s3 + $0x48] sm:$0xff] %vm280_vm1, %v273_v52  ;;  %v278_v58 = vsel %vm246_vm11, %v226_v44, %v262_v50  ;;  %287 = vst.msk [vmem:[%s530_s3 + $0x30] sm:$0xff] %vm280_vm1, %v270_v57  ;;  %vm236_vm12 = vcmp.gt.f32.partialorder %v186_v53, 0.0  ;;  %v252_v61 = vmul.f32 0.25, %v186_v53  ;;  %vm244_vm13 = vcmp.gt.f32.partialorder %v218_v54, 0.0  ;;  %v188_v63 = vpop.f32.mrf.mxu0  ;;  %v220_v0 = vpop.f32.mrf.mxu1 }
  0xe1   :  { %295 = vst.msk [vmem:[%s530_s3 + $0x70] sm:$0xff] %vm280_vm1, %v278_v58  ;;  %v260_v62 = vmul.f32 0.25, %v218_v54  ;;  %vm239_vm14 = vcmp.gt.f32.partialorder %v197_v59, 0.0  ;;  %v255_v1 = vmul.f32 0.25, %v197_v59  ;;  %vm247_vm15 = vcmp.gt.f32.partialorder %v229_v60, 0.0 }
  0xe2   :  { %v263_v2 = vmul.f32 0.25, %v229_v60  ;;  %v268_v3 = vsel %vm236_vm12, %v186_v53, %v252_v61  ;;  %v189_v5 = vadd.f32 %v445_v12, %v188_v63  ;;  %v221_v6 = vadd.f32 %v445_v12, %v220_v0 }
  0xe3   :  { %v276_v4 = vsel %vm244_vm13, %v218_v54, %v260_v62  ;;  %285 = vst.msk [vmem:[%s530_s3 + $0x20] sm:$0xff] %vm280_vm1, %v268_v3  ;;  %v271_v7 = vsel %vm239_vm14, %v197_v59, %v255_v1 }
  0xe4   :  { %293 = vst.msk [vmem:[%s530_s3 + $0x60] sm:$0xff] %vm280_vm1, %v276_v4  ;;  %v279_v8 = vsel %vm247_vm15, %v229_v60, %v263_v2  ;;  %288 = vst.msk [vmem:[%s530_s3 + $0x38] sm:$0xff] %vm280_vm1, %v271_v7  ;;  %vm237_vm0 = vcmp.gt.f32.partialorder %v189_v5, 0.0  ;;  %v253_v9 = vmul.f32 0.25, %v189_v5  ;;  %vm245_vm2 = vcmp.gt.f32.partialorder %v221_v6, 0.0 }
  0xe5   :  { %296 = vst.msk [vmem:[%s530_s3 + $0x78] sm:$0xff] %vm280_vm1, %v279_v8  ;;  %v261_v10 = vmul.f32 0.25, %v221_v6 }
  0xe6   :  { %v269_v11 = vsel %vm237_vm0, %v189_v5, %v253_v9 }
  0xe7   :  { %v277_v12 = vsel %vm245_vm2, %v221_v6, %v261_v10  ;;  %286 = vst.msk [vmem:[%s530_s3 + $0x28] sm:$0xff] %vm280_vm1, %v269_v11 }
  0xe8   :  { %294 = vst.msk [vmem:[%s530_s3 + $0x68] sm:$0xff] %vm280_vm1, %v277_v12 }

// kernel: enet_forward.94
= control target key start
LH: loop header
LB: loop body
LE: loop exit
PB: predicated region body
PF: predicated region fallthrough
CT: control target
= control target key end

     0   :  { %v458_v0 = vmov 0   ;;  %vm182_vm0 = vcmask 130048   ;;  %s647_s1 = inlined_call_operand.vmem [shape: bf16[144,16], index: 1, kind: input, shape index: {}]   ;;  %s648_s0 = inlined_call_operand.vmem [shape: bf16[128,144], index: 0, kind: input, shape index: {}]   ;;  %s649_s2 = inlined_call_operand.vmem [shape: f32[1,16], index: 2, kind: input, shape index: {}]   ;;  %s650_s3 = inlined_call_operand.vmem [shape: f32[128,16], index: 3, kind: output, shape index: {}]  }
   0x1   :  { %207 = vmatprep.subr.bf16.mxu0 %v458_v0  ;;  %406 = vmatprep.subr.bf16.mxu1 %v458_v0  ;;  %v425_v1 = vld [vmem:[%s647_s1 + $0x38] sm:$0xff]   ;;  %v426_v2 = vld [vmem:[%s647_s1 + $0x30] sm:$0xff]   ;;  %v427_v3 = vld [vmem:[%s647_s1 + $0x28] sm:$0xff]  }
   0x2   :  { %208 = vmatpush1.bf16.msra.mxu0 %v425_v1  ;;  %415 = vmatpush1.bf16.msra.mxu1 %v425_v1  ;;  %v428_v4 = vld [vmem:[%s647_s1 + $0x20] sm:$0xff]   ;;  %v429_v7 = vld [vmem:[%s647_s1 + $0x18] sm:$0xff]   ;;  %v430_v8 = vld [vmem:[%s647_s1 + $0x10] sm:$0xff]  }
   0x3   :  { %209 = vmatprep.subr.bf16.mxu0 %v458_v0  ;;  %407 = vmatprep.subr.bf16.mxu1 %v458_v0  ;;  %v436_v5 = vld [vmem:[%s648_s0 + $0x4] ss:$8 sps:$4 sm:$0xff]   ;;  %v434_v12 = vld [vmem:[%s648_s0] ss:$8 sps:$4 sm:$0xff]   ;;  %v440_v14 = vld [vmem:[%s648_s0 + $0x14] ss:$8 sps:$4 sm:$0xff]  }
   0x4   :  { %v439_v6 = vld [vmem:[%s648_s0 + $0x44] ss:$8 sps:$4 sm:$0xff]   ;;  %398 = vmatprep.mubr.msk.bf16.mxu0 %vm182_vm0, %v436_v5  ;;  %v437_v13 = vld [vmem:[%s648_s0 + $0x40] ss:$8 sps:$4 sm:$0xff]   ;;  %v442_v15 = vld [vmem:[%s648_s0 + $0x54] ss:$8 sps:$4 sm:$0xff]  }
   0x5   :  { %402 = vmatprep.mubr.msk.bf16.mxu1 %vm182_vm0, %v439_v6  ;;  %v431_v9 = vld [vmem:[%s647_s1 + $0x8] sm:$0xff]   ;;  %v432_v10 = vld [vmem:[%s647_s1] sm:$0xff]   ;;  %v444_v16 = vld [vmem:[%s648_s0 + $0x10] ss:$8 sps:$4 sm:$0xff]  }
   0x6   :  { %210 = vmatpush1.bf16.msra.mxu0 %v426_v2  ;;  %416 = vmatpush1.bf16.msra.mxu1 %v426_v2  ;;  %v433_v11 = vld [vmem:[%s647_s1 + $0x40] sm:$0xff]   ;;  %v445_v17 = vld [vmem:[%s648_s0 + $0x50] ss:$8 sps:$4 sm:$0xff]   ;;  %v452_v22 = vld [vmem:[%s648_s0 + $0x34] ss:$8 sps:$4 sm:$0xff]  }
   0x7   :  { %211 = vmatprep.subr.bf16.mxu0 %v458_v0  ;;  %408 = vmatprep.subr.bf16.mxu1 %v458_v0  ;;  %v446_v18 = vld [vmem:[%s648_s0 + $0x24] ss:$8 sps:$4 sm:$0xff]   ;;  %v450_v20 = vld [vmem:[%s648_s0 + $0x20] ss:$8 sps:$4 sm:$0xff]   ;;  %v454_v23 = vld [vmem:[%s648_s0 + $0x74] ss:$8 sps:$4 sm:$0xff]  }
   0x8   :  { %v448_v19 = vld [vmem:[%s648_s0 + $0x64] ss:$8 sps:$4 sm:$0xff]   ;;  %v451_v21 = vld [vmem:[%s648_s0 + $0x60] ss:$8 sps:$4 sm:$0xff]   ;;  %v456_v24 = vld [vmem:[%s648_s0 + $0x30] ss:$8 sps:$4 sm:$0xff]  }
   0x9   :  { %v457_v25 = vld [vmem:[%s648_s0 + $0x70] ss:$8 sps:$4 sm:$0xff]   ;;  %v565_v26 = vld [vmem:[%s649_s2] ss:$0 sm:$0xff] }
   0xa   :  { %212 = vmatpush1.bf16.msra.mxu0 %v427_v3  ;;  %417 = vmatpush1.bf16.msra.mxu1 %v427_v3 }
   0xb   :  { %213 = vmatprep.subr.bf16.mxu0 %v458_v0  ;;  %409 = vmatprep.subr.bf16.mxu1 %v458_v0 }
   0xe   :  { %214 = vmatpush1.bf16.msra.mxu0 %v428_v4  ;;  %418 = vmatpush1.bf16.msra.mxu1 %v428_v4 }
   0xf   :  { %215 = vmatprep.subr.bf16.mxu0 %v458_v0  ;;  %410 = vmatprep.subr.bf16.mxu1 %v458_v0 }
  0x12   :  { %216 = vmatpush1.bf16.msra.mxu0 %v429_v7  ;;  %419 = vmatpush1.bf16.msra.mxu1 %v429_v7 }
  0x13   :  { %217 = vmatprep.subr.bf16.mxu0 %v458_v0  ;;  %411 = vmatprep.subr.bf16.mxu1 %v458_v0 }
  0x16   :  { %218 = vmatpush1.bf16.msra.mxu0 %v430_v8  ;;  %420 = vmatpush1.bf16.msra.mxu1 %v430_v8 }
  0x17   :  { %219 = vmatprep.subr.bf16.mxu0 %v458_v0  ;;  %412 = vmatprep.subr.bf16.mxu1 %v458_v0 }
  0x1a   :  { %220 = vmatpush1.bf16.msra.mxu0 %v431_v9  ;;  %421 = vmatpush1.bf16.msra.mxu1 %v431_v9 }
  0x1b   :  { %221 = vmatprep.subr.bf16.mxu0 %v458_v0  ;;  %413 = vmatprep.subr.bf16.mxu1 %v458_v0 }
  0x1e   :  { %222 = vmatpush1.bf16.msra.mxu0 %v432_v10  ;;  %422 = vmatpush1.bf16.msra.mxu1 %v432_v10 }
  0x1f   :  { %237 = vmatprep.subr.bf16.mxu0 %v458_v0  ;;  %414 = vmatprep.subr.bf16.mxu1 %v458_v0 }
  0x22   :  { %238 = vmatpush2.bf16.msra.mxu0 %v433_v11  ;;  %423 = vmatpush2.bf16.msra.mxu1 %v433_v11 }
  0x25   :  { %240 = vmatmul.mubr.bf16.vlgmr.msra.gmra.mxu0 %v434_v12  ;;  %272 = vmatmul.mubr.bf16.vlgmr.msra.gmra.mxu1 %v437_v13 }
  0x26   :  { %399 = vmatprep.mubr.msk.bf16.mxu0 %vm182_vm0, %v440_v14  ;;  %403 = vmatprep.mubr.msk.bf16.mxu1 %vm182_vm0, %v442_v15 }
  0x2d   :  { %248 = vmatmul.mubr.bf16.gmra.mxu0 %v444_v16  ;;  %280 = vmatmul.mubr.bf16.gmra.mxu1 %v445_v17 }
  0x2e   :  { %400 = vmatprep.mubr.msk.bf16.mxu0 %vm182_vm0, %v446_v18  ;;  %404 = vmatprep.mubr.msk.bf16.mxu1 %vm182_vm0, %v448_v19 }
  0x35   :  { %256 = vmatmul.mubr.bf16.gmra.mxu0 %v450_v20  ;;  %288 = vmatmul.mubr.bf16.gmra.mxu1 %v451_v21 }
  0x36   :  { %401 = vmatprep.mubr.msk.bf16.mxu0 %vm182_vm0, %v452_v22  ;;  %405 = vmatprep.mubr.msk.bf16.mxu1 %vm182_vm0, %v454_v23 }
  0x3d   :  { %264 = vmatmul.mubr.bf16.gmra.mxu0 %v456_v24  ;;  %296 = vmatmul.mubr.bf16.gmra.mxu1 %v457_v25 }
  0xe5   :  { %v241_v27 = vpop.f32.mrf.mxu0  ;;  %v273_v28 = vpop.f32.mrf.mxu1 }
  0xe6   :  { %v242_v29 = vadd.f32 %v565_v26, %v241_v27  ;;  %v274_v30 = vadd.f32 %v565_v26, %v273_v28 }
  0xe7   :  { %v243_v31 = vpop.f32.mrf.mxu0  ;;  %v275_v32 = vpop.f32.mrf.mxu1 }
  0xe8   :  { %vm304_vm1 = vcmp.gt.f32.partialorder %v242_v29, 0.0  ;;  %v320_v33 = vmul.f32 0.25, %v242_v29  ;;  %vm312_vm2 = vcmp.gt.f32.partialorder %v274_v30, 0.0  ;;  %v328_v34 = vmul.f32 0.25, %v274_v30 }
  0xe9   :  { %v244_v35 = vpop.f32.mrf.mxu0  ;;  %v276_v36 = vpop.f32.mrf.mxu1 }
  0xea   :  { %v336_v37 = vsel %vm304_vm1, %v242_v29, %v320_v33  ;;  %v344_v38 = vsel %vm312_vm2, %v274_v30, %v328_v34  ;;  %v245_v39 = vadd.f32 %v565_v26, %v244_v35  ;;  %v277_v40 = vadd.f32 %v565_v26, %v276_v36 }
  0xeb   :  { %352 = vst.msk [vmem:[%s650_s3] sm:$0xff] %vm182_vm0, %v336_v37  ;;  %360 = vst.msk [vmem:[%s650_s3 + $0x40] sm:$0xff] %vm182_vm0, %v344_v38  ;;  %v246_v41 = vpop.f32.mrf.mxu0  ;;  %v278_v42 = vpop.f32.mrf.mxu1 }
  0xec   :  { %vm305_vm3 = vcmp.gt.f32.partialorder %v245_v39, 0.0  ;;  %v321_v43 = vmul.f32 0.25, %v245_v39  ;;  %vm313_vm4 = vcmp.gt.f32.partialorder %v277_v40, 0.0  ;;  %v329_v44 = vmul.f32 0.25, %v277_v40 }
  0xed   :  { %v249_v45 = vpop.f32.mrf.mxu0  ;;  %v281_v46 = vpop.f32.mrf.mxu1 }
  0xee   :  { %v337_v47 = vsel %vm305_vm3, %v245_v39, %v321_v43  ;;  %v345_v48 = vsel %vm313_vm4, %v277_v40, %v329_v44  ;;  %v250_v49 = vadd.f32 %v565_v26, %v249_v45  ;;  %v282_v50 = vadd.f32 %v565_v26, %v281_v46 }
  0xef   :  { %353 = vst.msk [vmem:[%s650_s3 + $0x8] sm:$0xff] %vm182_vm0, %v337_v47  ;;  %361 = vst.msk [vmem:[%s650_s3 + $0x48] sm:$0xff] %vm182_vm0, %v345_v48  ;;  %v251_v51 = vpop.f32.mrf.mxu0  ;;  %v283_v52 = vpop.f32.mrf.mxu1 }
  0xf0   :  { %vm306_vm5 = vcmp.gt.f32.partialorder %v250_v49, 0.0  ;;  %v322_v53 = vmul.f32 0.25, %v250_v49  ;;  %vm314_vm6 = vcmp.gt.f32.partialorder %v282_v50, 0.0  ;;  %v330_v54 = vmul.f32 0.25, %v282_v50 }
  0xf1   :  { %v252_v55 = vpop.f32.mrf.mxu0  ;;  %v284_v56 = vpop.f32.mrf.mxu1 }
  0xf2   :  { %v338_v57 = vsel %vm306_vm5, %v250_v49, %v322_v53  ;;  %v346_v58 = vsel %vm314_vm6, %v282_v50, %v330_v54  ;;  %v253_v59 = vadd.f32 %v565_v26, %v252_v55  ;;  %v285_v60 = vadd.f32 %v565_v26, %v284_v56 }
  0xf3   :  { %354 = vst.msk [vmem:[%s650_s3 + $0x10] sm:$0xff] %vm182_vm0, %v338_v57  ;;  %362 = vst.msk [vmem:[%s650_s3 + $0x50] sm:$0xff] %vm182_vm0, %v346_v58  ;;  %v254_v61 = vpop.f32.mrf.mxu0  ;;  %v286_v62 = vpop.f32.mrf.mxu1 }
  0xf4   :  { %vm307_vm7 = vcmp.gt.f32.partialorder %v253_v59, 0.0  ;;  %v323_v63 = vmul.f32 0.25, %v253_v59  ;;  %vm315_vm8 = vcmp.gt.f32.partialorder %v285_v60, 0.0  ;;  %v331_v0 = vmul.f32 0.25, %v285_v60 }
  0xf5   :  { %v257_v1 = vpop.f32.mrf.mxu0  ;;  %v289_v2 = vpop.f32.mrf.mxu1 }
  0xf6   :  { %v339_v3 = vsel %vm307_vm7, %v253_v59, %v323_v63  ;;  %v347_v4 = vsel %vm315_vm8, %v285_v60, %v331_v0  ;;  %v258_v5 = vadd.f32 %v565_v26, %v257_v1  ;;  %v290_v6 = vadd.f32 %v565_v26, %v289_v2 }
  0xf7   :  { %355 = vst.msk [vmem:[%s650_s3 + $0x18] sm:$0xff] %vm182_vm0, %v339_v3  ;;  %363 = vst.msk [vmem:[%s650_s3 + $0x58] sm:$0xff] %vm182_vm0, %v347_v4  ;;  %v259_v7 = vpop.f32.mrf.mxu0  ;;  %v291_v8 = vpop.f32.mrf.mxu1 }
  0xf8   :  { %vm308_vm9 = vcmp.gt.f32.partialorder %v258_v5, 0.0  ;;  %v324_v9 = vmul.f32 0.25, %v258_v5  ;;  %vm316_vm10 = vcmp.gt.f32.partialorder %v290_v6, 0.0  ;;  %v332_v10 = vmul.f32 0.25, %v290_v6 }
  0xf9   :  { %v260_v11 = vpop.f32.mrf.mxu0  ;;  %v292_v12 = vpop.f32.mrf.mxu1 }
  0xfa   :  { %v340_v13 = vsel %vm308_vm9, %v258_v5, %v324_v9  ;;  %v348_v14 = vsel %vm316_vm10, %v290_v6, %v332_v10  ;;  %v261_v15 = vadd.f32 %v565_v26, %v260_v11  ;;  %v293_v16 = vadd.f32 %v565_v26, %v292_v12 }
  0xfb   :  { %356 = vst.msk [vmem:[%s650_s3 + $0x20] sm:$0xff] %vm182_vm0, %v340_v13  ;;  %364 = vst.msk [vmem:[%s650_s3 + $0x60] sm:$0xff] %vm182_vm0, %v348_v14  ;;  %v262_v17 = vpop.f32.mrf.mxu0  ;;  %v294_v18 = vpop.f32.mrf.mxu1 }
  0xfc   :  { %vm309_vm11 = vcmp.gt.f32.partialorder %v261_v15, 0.0  ;;  %v325_v19 = vmul.f32 0.25, %v261_v15  ;;  %vm317_vm12 = vcmp.gt.f32.partialorder %v293_v16, 0.0  ;;  %v333_v20 = vmul.f32 0.25, %v293_v16 }
  0xfd   :  { %v265_v21 = vpop.f32.mrf.mxu0  ;;  %v297_v22 = vpop.f32.mrf.mxu1 }
  0xfe   :  { %v341_v23 = vsel %vm309_vm11, %v261_v15, %v325_v19  ;;  %v349_v24 = vsel %vm317_vm12, %v293_v16, %v333_v20  ;;  %v266_v25 = vadd.f32 %v565_v26, %v265_v21  ;;  %v298_v27 = vadd.f32 %v565_v26, %v297_v22 }
  0xff   :  { %357 = vst.msk [vmem:[%s650_s3 + $0x28] sm:$0xff] %vm182_vm0, %v341_v23  ;;  %365 = vst.msk [vmem:[%s650_s3 + $0x68] sm:$0xff] %vm182_vm0, %v349_v24  ;;  %v267_v28 = vpop.f32.mrf.mxu0  ;;  %v299_v29 = vpop.f32.mrf.mxu1 }
 0x100   :  { %vm310_vm13 = vcmp.gt.f32.partialorder %v266_v25, 0.0  ;;  %v326_v30 = vmul.f32 0.25, %v266_v25  ;;  %vm318_vm14 = vcmp.gt.f32.partialorder %v298_v27, 0.0  ;;  %v334_v31 = vmul.f32 0.25, %v298_v27 }
 0x101   :  { %v268_v32 = vpop.f32.mrf.mxu0  ;;  %v300_v33 = vpop.f32.mrf.mxu1 }
 0x102   :  { %v342_v34 = vsel %vm310_vm13, %v266_v25, %v326_v30  ;;  %v350_v35 = vsel %vm318_vm14, %v298_v27, %v334_v31  ;;  %v269_v36 = vadd.f32 %v565_v26, %v268_v32  ;;  %v301_v37 = vadd.f32 %v565_v26, %v300_v33 }
 0x103   :  { %358 = vst.msk [vmem:[%s650_s3 + $0x30] sm:$0xff] %vm182_vm0, %v342_v34  ;;  %366 = vst.msk [vmem:[%s650_s3 + $0x70] sm:$0xff] %vm182_vm0, %v350_v35  ;;  %v270_v38 = vpop.f32.mrf.mxu0  ;;  %v302_v39 = vpop.f32.mrf.mxu1 }
 0x104   :  { %vm311_vm15 = vcmp.gt.f32.partialorder %v269_v36, 0.0  ;;  %v327_v40 = vmul.f32 0.25, %v269_v36  ;;  %vm319_vm1 = vcmp.gt.f32.partialorder %v301_v37, 0.0  ;;  %v335_v41 = vmul.f32 0.25, %v301_v37 }
 0x106   :  { %v343_v42 = vsel %vm311_vm15, %v269_v36, %v327_v40  ;;  %v351_v43 = vsel %vm319_vm1, %v301_v37, %v335_v41 }
 0x107   :  { %359 = vst.msk [vmem:[%s650_s3 + $0x38] sm:$0xff] %vm182_vm0, %v343_v42  ;;  %367 = vst.msk [vmem:[%s650_s3 + $0x78] sm:$0xff] %vm182_vm0, %v351_v43 }

// kernel: enet_forward.95
= control target key start
LH: loop header
LB: loop body
LE: loop exit
PB: predicated region body
PF: predicated region fallthrough
CT: control target
= control target key end

     0   :  { %vm89_vm0 = vcmask 130048   ;;  %vm339_vm3 = vcmask 523264   ;;  %s612_s1 = inlined_call_operand.vmem [shape: bf16[16,64], index: 1, kind: input, shape index: {}]   ;;  %s613_s0 = inlined_call_operand.vmem [shape: bf16[128,16], index: 0, kind: input, shape index: {}]   ;;  %s614_s2 = inlined_call_operand.vmem [shape: f32[1,64], index: 2, kind: input, shape index: {}]   ;;  %s615_s3 = inlined_call_operand.vmem [shape: f32[128,64], index: 3, kind: input, shape index: {}]   ;;  %s616_s4 = inlined_call_operand.vmem [shape: f32[128,64], index: 4, kind: output, shape index: {}]  }
   0x1   :  { %v407_v0 = vld [vmem:[%s612_s1] sm:$0xff]   ;;  %v410_v3 = vld [vmem:[%s613_s0 + $0x8] sm:$0xff]   ;;  %v412_v5 = vld [vmem:[%s613_s0 + $0x10] sm:$0xff]  }
   0x2   :  { %v408_v1 = vld [vmem:[%s613_s0] sm:$0xff]   ;;  %387 = vmatprep.subr.bf16.mxu0 %v407_v0  ;;  %405 = vmatprep.subr.bf16.mxu1 %v407_v0  ;;  %v411_v4 = vld [vmem:[%s613_s0 + $0x28] sm:$0xff]   ;;  %v413_v6 = vld [vmem:[%s613_s0 + $0x30] sm:$0xff]  }
   0x3   :  { %v409_v2 = vld [vmem:[%s613_s0 + $0x20] sm:$0xff]   ;;  %388 = vmatpush3.bf16.msra.mxu0 %v407_v0  ;;  %406 = vmatpush3.bf16.msra.mxu1 %v407_v0  ;;  %v414_v7 = vld [vmem:[%s613_s0 + $0x18] sm:$0xff]   ;;  %v261_v17 = vld [vmem:[%s615_s3 + $0x10] sm:$0xff] }
   0x4   :  { %389 = vmatprep.mubr.msk.bf16.mxu0 %vm89_vm0, %v408_v1  ;;  %397 = vmatprep.mubr.msk.bf16.mxu1 %vm89_vm0, %v409_v2  ;;  %v415_v8 = vld [vmem:[%s613_s0 + $0x38] sm:$0xff]   ;;  %v479_v9 = vld [vmem:[%s614_s2] ss:$0 sm:$0xff]  ;;  %v269_v19 = vld [vmem:[%s615_s3 + $0x50] sm:$0xff] }
   0x5   :  { %v259_v31 = vld [vmem:[%s615_s3] sm:$0xff]  ;;  %v262_v38 = vld [vmem:[%s615_s3 + $0x18] sm:$0xff]  ;;  %v260_v62 = vld [vmem:[%s615_s3 + $0x8] sm:$0xff] }
   0x6   :  { %390 = vmatmul.mubr.msk.bf16.vlgmr.msra.gmra.mxu0 %vm89_vm0, %v410_v3  ;;  %398 = vmatmul.mubr.msk.bf16.vlgmr.msra.gmra.mxu1 %vm89_vm0, %v411_v4  ;;  %v267_v33 = vld [vmem:[%s615_s3 + $0x40] sm:$0xff]  ;;  %v270_v49 = vld [vmem:[%s615_s3 + $0x58] sm:$0xff]  ;;  %v268_v1 = vld [vmem:[%s615_s3 + $0x48] sm:$0xff] }
   0x7   :  { %393 = vmatprep.mubr.msk.bf16.mxu0 %vm89_vm0, %v412_v5  ;;  %401 = vmatprep.mubr.msk.bf16.mxu1 %vm89_vm0, %v413_v6 }
   0xe   :  { %394 = vmatmul.mubr.msk.bf16.gmra.mxu0 %vm89_vm0, %v414_v7  ;;  %402 = vmatmul.mubr.msk.bf16.gmra.mxu1 %vm89_vm0, %v415_v8 }
  0xc6   :  { %v391_v10 = vpop.f32.mrf.mxu0  ;;  %v399_v11 = vpop.f32.mrf.mxu1 }
  0xc7   :  { %v157_v12 = vadd.f32 %v391_v10, %v479_v9  ;;  %v189_v13 = vadd.f32 %v399_v11, %v479_v9  ;;  %v265_v11 = vld [vmem:[%s615_s3 + $0x30] sm:$0xff] }
  0xc8   :  { %v148_v14 = vpop.f32.mrf.mxu0  ;;  %v180_v15 = vpop.f32.mrf.mxu1 }
  0xc9   :  { %vm213_vm1 = vcmp.gt.f32.partialorder %v157_v12, 0.0  ;;  %v229_v16 = vmul.f32 0.25, %v157_v12  ;;  %vm221_vm2 = vcmp.gt.f32.partialorder %v189_v13, 0.0  ;;  %v237_v18 = vmul.f32 0.25, %v189_v13 }
  0xca   :  { %v149_v20 = vadd.f32 %v479_v9, %v148_v14  ;;  %v181_v21 = vadd.f32 %v479_v9, %v180_v15  ;;  %v392_v22 = vpop.f32.mrf.mxu0  ;;  %v400_v23 = vpop.f32.mrf.mxu1  ;;  %v273_v15 = vld [vmem:[%s615_s3 + $0x70] sm:$0xff] }
  0xcb   :  { %v245_v24 = vsel %vm213_vm1, %v157_v12, %v229_v16  ;;  %v253_v25 = vsel %vm221_vm2, %v189_v13, %v237_v18  ;;  %v160_v26 = vadd.f32 %v392_v22, %v479_v9  ;;  %v192_v27 = vadd.f32 %v400_v23, %v479_v9 }
  0xcc   :  { %v277_v28 = vadd.f32 %v261_v17, %v245_v24  ;;  %v285_v29 = vadd.f32 %v269_v19, %v253_v25  ;;  %vm211_vm4 = vcmp.gt.f32.partialorder %v149_v20, 0.0  ;;  %v227_v30 = vmul.f32 0.25, %v149_v20  ;;  %v151_v35 = vpop.f32.mrf.mxu0  ;;  %v183_v39 = vpop.f32.mrf.mxu1 }
  0xcd   :  { %vm219_vm5 = vcmp.gt.f32.partialorder %v181_v21, 0.0  ;;  %v235_v32 = vmul.f32 0.25, %v181_v21  ;;  %vm214_vm6 = vcmp.gt.f32.partialorder %v160_v26, 0.0  ;;  %v230_v34 = vmul.f32 0.25, %v160_v26 }
  0xce   :  { %vm293_vm7 = vcmp.gt.f32.partialorder %v277_v28, 0.0  ;;  %v309_v36 = vmul.f32 0.25, %v277_v28  ;;  %vm301_vm8 = vcmp.gt.f32.partialorder %v285_v29, 0.0  ;;  %v317_v37 = vmul.f32 0.25, %v285_v29  ;;  %v395_v52 = vpop.f32.mrf.mxu0  ;;  %v403_v57 = vpop.f32.mrf.mxu1 }
  0xcf   :  { %v243_v40 = vsel %vm211_vm4, %v149_v20, %v227_v30  ;;  %v251_v41 = vsel %vm219_vm5, %v181_v21, %v235_v32  ;;  %v246_v42 = vsel %vm214_vm6, %v160_v26, %v230_v34  ;;  %vm222_vm9 = vcmp.gt.f32.partialorder %v192_v27, 0.0 }
  0xd0   :  { %v325_v43 = vsel %vm293_vm7, %v277_v28, %v309_v36  ;;  %v333_v44 = vsel %vm301_vm8, %v285_v29, %v317_v37  ;;  %v275_v45 = vadd.f32 %v259_v31, %v243_v40  ;;  %v283_v46 = vadd.f32 %v267_v33, %v251_v41  ;;  %v164_v3 = vpop.f32.mrf.mxu0  ;;  %v196_v16 = vpop.f32.mrf.mxu1 }
  0xd1   :  { %342 = vst.msk [vmem:[%s616_s4 + $0x10] sm:$0xff] %vm339_vm3, %v325_v43  ;;  %350 = vst.msk [vmem:[%s616_s4 + $0x50] sm:$0xff] %vm339_vm3, %v333_v44  ;;  %v278_v47 = vadd.f32 %v262_v38, %v246_v42  ;;  %v238_v48 = vmul.f32 0.25, %v192_v27  ;;  %v152_v50 = vadd.f32 %v479_v9, %v151_v35  ;;  %v184_v51 = vadd.f32 %v479_v9, %v183_v39  ;;  %v271_v39 = vld [vmem:[%s615_s3 + $0x60] sm:$0xff]  ;;  %v266_v42 = vld [vmem:[%s615_s3 + $0x38] sm:$0xff] }
  0xd2   :  { %vm291_vm10 = vcmp.gt.f32.partialorder %v275_v45, 0.0  ;;  %v307_v53 = vmul.f32 0.25, %v275_v45  ;;  %vm299_vm11 = vcmp.gt.f32.partialorder %v283_v46, 0.0  ;;  %v315_v54 = vmul.f32 0.25, %v283_v46  ;;  %v396_v20 = vpop.f32.mrf.mxu0  ;;  %v404_v31 = vpop.f32.mrf.mxu1 }
  0xd3   :  { %vm294_vm12 = vcmp.gt.f32.partialorder %v278_v47, 0.0  ;;  %v310_v55 = vmul.f32 0.25, %v278_v47  ;;  %v254_v56 = vsel %vm222_vm9, %v192_v27, %v238_v48  ;;  %vm212_vm13 = vcmp.gt.f32.partialorder %v152_v50, 0.0  ;;  %v263_v27 = vld [vmem:[%s615_s3 + $0x20] sm:$0xff] }
  0xd4   :  { %v323_v58 = vsel %vm291_vm10, %v275_v45, %v307_v53  ;;  %v331_v59 = vsel %vm299_vm11, %v283_v46, %v315_v54  ;;  %v286_v60 = vadd.f32 %v270_v49, %v254_v56  ;;  %v228_v61 = vmul.f32 0.25, %v152_v50  ;;  %v167_v35 = vpop.f32.mrf.mxu0 }
  0xd5   :  { %340 = vst.msk [vmem:[%s616_s4] sm:$0xff] %vm339_vm3, %v323_v58  ;;  %348 = vst.msk [vmem:[%s616_s4 + $0x40] sm:$0xff] %vm339_vm3, %v331_v59  ;;  %v326_v63 = vsel %vm294_vm12, %v278_v47, %v310_v55  ;;  %vm220_vm14 = vcmp.gt.f32.partialorder %v184_v51, 0.0  ;;  %v236_v0 = vmul.f32 0.25, %v184_v51  ;;  %v173_v2 = vadd.f32 %v395_v52, %v479_v9  ;;  %v199_v47 = vpop.f32.mrf.mxu1  ;;  %v264_v55 = vld [vmem:[%s615_s3 + $0x28] sm:$0xff] }
  0xd6   :  { %343 = vst.msk [vmem:[%s616_s4 + $0x18] sm:$0xff] %vm339_vm3, %v326_v63  ;;  %vm302_vm15 = vcmp.gt.f32.partialorder %v286_v60, 0.0  ;;  %v318_v4 = vmul.f32 0.25, %v286_v60  ;;  %v244_v5 = vsel %vm212_vm13, %v152_v50, %v228_v61  ;;  %v205_v6 = vadd.f32 %v403_v57, %v479_v9 }
  0xd7   :  { %v276_v7 = vadd.f32 %v260_v62, %v244_v5  ;;  %v252_v8 = vsel %vm220_vm14, %v184_v51, %v236_v0  ;;  %vm217_vm0 = vcmp.gt.f32.partialorder %v173_v2, 0.0  ;;  %v233_v10 = vmul.f32 0.25, %v173_v2  ;;  %v274_v51 = vld [vmem:[%s615_s3 + $0x78] sm:$0xff] }
  0xd8   :  { %v334_v12 = vsel %vm302_vm15, %v286_v60, %v318_v4  ;;  %v284_v13 = vadd.f32 %v268_v1, %v252_v8  ;;  %vm225_vm1 = vcmp.gt.f32.partialorder %v205_v6, 0.0  ;;  %v241_v14 = vmul.f32 0.25, %v205_v6  ;;  %v272_v1 = vld [vmem:[%s615_s3 + $0x68] sm:$0xff] }
  0xd9   :  { %351 = vst.msk [vmem:[%s616_s4 + $0x58] sm:$0xff] %vm339_vm3, %v334_v12  ;;  %vm292_vm2 = vcmp.gt.f32.partialorder %v276_v7, 0.0  ;;  %v308_v17 = vmul.f32 0.25, %v276_v7  ;;  %v249_v18 = vsel %vm217_vm0, %v173_v2, %v233_v10  ;;  %v165_v19 = vadd.f32 %v479_v9, %v164_v3 }
  0xda   :  { %vm300_vm4 = vcmp.gt.f32.partialorder %v284_v13, 0.0  ;;  %v316_v21 = vmul.f32 0.25, %v284_v13  ;;  %v281_v22 = vadd.f32 %v265_v11, %v249_v18  ;;  %v257_v23 = vsel %vm225_vm1, %v205_v6, %v241_v14 }
  0xdb   :  { %v324_v24 = vsel %vm292_vm2, %v276_v7, %v308_v17  ;;  %v289_v25 = vadd.f32 %v273_v15, %v257_v23  ;;  %vm215_vm5 = vcmp.gt.f32.partialorder %v165_v19, 0.0  ;;  %v231_v26 = vmul.f32 0.25, %v165_v19 }
  0xdc   :  { %341 = vst.msk [vmem:[%s616_s4 + $0x8] sm:$0xff] %vm339_vm3, %v324_v24  ;;  %v332_v28 = vsel %vm300_vm4, %v284_v13, %v316_v21  ;;  %vm297_vm6 = vcmp.gt.f32.partialorder %v281_v22, 0.0  ;;  %v313_v29 = vmul.f32 0.25, %v281_v22  ;;  %v197_v30 = vadd.f32 %v479_v9, %v196_v16 }
  0xdd   :  { %349 = vst.msk [vmem:[%s616_s4 + $0x48] sm:$0xff] %vm339_vm3, %v332_v28  ;;  %vm305_vm7 = vcmp.gt.f32.partialorder %v289_v25, 0.0  ;;  %v321_v32 = vmul.f32 0.25, %v289_v25  ;;  %v247_v33 = vsel %vm215_vm5, %v165_v19, %v231_v26  ;;  %v176_v34 = vadd.f32 %v396_v20, %v479_v9 }
  0xde   :  { %v329_v36 = vsel %vm297_vm6, %v281_v22, %v313_v29  ;;  %v279_v37 = vadd.f32 %v263_v27, %v247_v33  ;;  %vm223_vm8 = vcmp.gt.f32.partialorder %v197_v30, 0.0  ;;  %v239_v38 = vmul.f32 0.25, %v197_v30 }
  0xdf   :  { %346 = vst.msk [vmem:[%s616_s4 + $0x30] sm:$0xff] %vm339_vm3, %v329_v36  ;;  %v337_v40 = vsel %vm305_vm7, %v289_v25, %v321_v32  ;;  %vm218_vm9 = vcmp.gt.f32.partialorder %v176_v34, 0.0  ;;  %v234_v41 = vmul.f32 0.25, %v176_v34  ;;  %v208_v43 = vadd.f32 %v404_v31, %v479_v9 }
  0xe0   :  { %354 = vst.msk [vmem:[%s616_s4 + $0x70] sm:$0xff] %vm339_vm3, %v337_v40  ;;  %vm295_vm10 = vcmp.gt.f32.partialorder %v279_v37, 0.0  ;;  %v311_v44 = vmul.f32 0.25, %v279_v37  ;;  %v255_v45 = vsel %vm223_vm8, %v197_v30, %v239_v38  ;;  %v168_v46 = vadd.f32 %v479_v9, %v167_v35 }
  0xe1   :  { %v287_v48 = vadd.f32 %v271_v39, %v255_v45  ;;  %v250_v49 = vsel %vm218_vm9, %v176_v34, %v234_v41  ;;  %vm226_vm11 = vcmp.gt.f32.partialorder %v208_v43, 0.0  ;;  %v242_v50 = vmul.f32 0.25, %v208_v43 }
  0xe2   :  { %v327_v52 = vsel %vm295_vm10, %v279_v37, %v311_v44  ;;  %v282_v53 = vadd.f32 %v266_v42, %v250_v49  ;;  %vm216_vm12 = vcmp.gt.f32.partialorder %v168_v46, 0.0  ;;  %v232_v54 = vmul.f32 0.25, %v168_v46 }
  0xe3   :  { %344 = vst.msk [vmem:[%s616_s4 + $0x20] sm:$0xff] %vm339_vm3, %v327_v52  ;;  %vm303_vm13 = vcmp.gt.f32.partialorder %v287_v48, 0.0  ;;  %v319_v56 = vmul.f32 0.25, %v287_v48  ;;  %v258_v57 = vsel %vm226_vm11, %v208_v43, %v242_v50  ;;  %v200_v58 = vadd.f32 %v479_v9, %v199_v47 }
  0xe4   :  { %vm298_vm14 = vcmp.gt.f32.partialorder %v282_v53, 0.0  ;;  %v314_v59 = vmul.f32 0.25, %v282_v53  ;;  %v290_v60 = vadd.f32 %v274_v51, %v258_v57  ;;  %v248_v61 = vsel %vm216_vm12, %v168_v46, %v232_v54 }
  0xe5   :  { %v335_v62 = vsel %vm303_vm13, %v287_v48, %v319_v56  ;;  %v280_v63 = vadd.f32 %v264_v55, %v248_v61  ;;  %vm224_vm15 = vcmp.gt.f32.partialorder %v200_v58, 0.0  ;;  %v240_v0 = vmul.f32 0.25, %v200_v58 }
  0xe6   :  { %352 = vst.msk [vmem:[%s616_s4 + $0x60] sm:$0xff] %vm339_vm3, %v335_v62  ;;  %v330_v2 = vsel %vm298_vm14, %v282_v53, %v314_v59  ;;  %vm306_vm0 = vcmp.gt.f32.partialorder %v290_v60, 0.0  ;;  %v322_v9 = vmul.f32 0.25, %v290_v60 }
  0xe7   :  { %347 = vst.msk [vmem:[%s616_s4 + $0x38] sm:$0xff] %vm339_vm3, %v330_v2  ;;  %vm296_vm1 = vcmp.gt.f32.partialorder %v280_v63, 0.0  ;;  %v312_v3 = vmul.f32 0.25, %v280_v63  ;;  %v256_v4 = vsel %vm224_vm15, %v200_v58, %v240_v0 }
  0xe8   :  { %v338_v5 = vsel %vm306_vm0, %v290_v60, %v322_v9  ;;  %v288_v6 = vadd.f32 %v272_v1, %v256_v4 }
  0xe9   :  { %355 = vst.msk [vmem:[%s616_s4 + $0x78] sm:$0xff] %vm339_vm3, %v338_v5  ;;  %v328_v7 = vsel %vm296_vm1, %v280_v63, %v312_v3 }
  0xea   :  { %345 = vst.msk [vmem:[%s616_s4 + $0x28] sm:$0xff] %vm339_vm3, %v328_v7  ;;  %vm304_vm2 = vcmp.gt.f32.partialorder %v288_v6, 0.0  ;;  %v320_v8 = vmul.f32 0.25, %v288_v6 }
  0xec   :  { %v336_v10 = vsel %vm304_vm2, %v288_v6, %v320_v8 }
  0xed   :  { %353 = vst.msk [vmem:[%s616_s4 + $0x68] sm:$0xff] %vm339_vm3, %v336_v10 }

// kernel: enet_forward.105
= control target key start
LH: loop header
LB: loop body
LE: loop exit
PB: predicated region body
PF: predicated region fallthrough
CT: control target
= control target key end

     0   :  { %vm235_vm0 = vcmask 130048   ;;  %s430_s1 = inlined_call_operand.vmem [shape: bf16[256,16], index: 1, kind: input, shape index: {}]   ;;  %s431_s0 = inlined_call_operand.vmem [shape: bf16[32,256], index: 0, kind: input, shape index: {}]   ;;  %s432_s2 = inlined_call_operand.vmem [shape: f32[1,16], index: 2, kind: input, shape index: {}]   ;;  %s433_s3 = inlined_call_operand.vmem [shape: f32[32,16], index: 3, kind: output, shape index: {}]  }
   0x1   :  { %v309_v0 = vld [vmem:[%s430_s1 + $0x78] sm:$0xff]   ;;  %v311_v2 = vld [vmem:[%s430_s1 + $0x70] sm:$0xff]   ;;  %v313_v4 = vld [vmem:[%s430_s1 + $0x68] sm:$0xff]  }
   0x2   :  { %v310_v1 = vld [vmem:[%s430_s1 + $0x38] sm:$0xff]   ;;  %265 = vmatprep.subr.bf16.mxu0 %v309_v0  ;;  %293 = vmatprep.subr.bf16.mxu1 %v309_v0  ;;  %v312_v3 = vld [vmem:[%s430_s1 + $0x30] sm:$0xff]   ;;  %v314_v5 = vld [vmem:[%s430_s1 + $0x28] sm:$0xff]  }
   0x3   :  { %266 = vmatpush3.bf16.msra.mxu0 %v310_v1  ;;  %301 = vmatpush3.bf16.msra.mxu1 %v310_v1  ;;  %v315_v6 = vld [vmem:[%s430_s1 + $0x60] sm:$0xff]   ;;  %v317_v8 = vld [vmem:[%s430_s1 + $0x58] sm:$0xff]   ;;  %v319_v10 = vld [vmem:[%s430_s1 + $0x50] sm:$0xff]  }
   0x4   :  { %267 = vmatprep.subr.bf16.mxu0 %v311_v2  ;;  %294 = vmatprep.subr.bf16.mxu1 %v311_v2  ;;  %v316_v7 = vld [vmem:[%s430_s1 + $0x20] sm:$0xff]   ;;  %v318_v9 = vld [vmem:[%s430_s1 + $0x18] sm:$0xff]   ;;  %v320_v13 = vld [vmem:[%s430_s1 + $0x10] sm:$0xff]  }
   0x5   :  { %v327_v11 = vld [vmem:[%s431_s0 + $0x4] ss:$8 sps:$4 sm:$0xff]   ;;  %v330_v12 = vld [vmem:[%s431_s0 + $0x14] ss:$8 sps:$4 sm:$0xff]   ;;  %v325_v18 = vld [vmem:[%s431_s0] ss:$8 sps:$4 sm:$0xff]  }
   0x6   :  { %v321_v14 = vld [vmem:[%s430_s1 + $0x48] sm:$0xff]   ;;  %206 = vmatprep.mubr.bf16.mxu0 %v327_v11  ;;  %214 = vmatprep.mubr.bf16.mxu1 %v330_v12  ;;  %v323_v16 = vld [vmem:[%s430_s1 + $0x40] sm:$0xff]   ;;  %v328_v19 = vld [vmem:[%s431_s0 + $0x10] ss:$8 sps:$4 sm:$0xff]  }
   0x7   :  { %268 = vmatpush3.bf16.msra.mxu0 %v312_v3  ;;  %302 = vmatpush3.bf16.msra.mxu1 %v312_v3  ;;  %v322_v15 = vld [vmem:[%s430_s1 + $0x8] sm:$0xff]   ;;  %v324_v17 = vld [vmem:[%s430_s1] sm:$0xff]  }
   0x8   :  { %269 = vmatprep.subr.bf16.mxu0 %v313_v4  ;;  %295 = vmatprep.subr.bf16.mxu1 %v313_v4  ;;  %v244_v22 = vld [vmem:[%s432_s2] ss:$0 sm:$0xff] }
   0xb   :  { %270 = vmatpush3.bf16.msra.mxu0 %v314_v5  ;;  %303 = vmatpush3.bf16.msra.mxu1 %v314_v5 }
   0xc   :  { %271 = vmatprep.subr.bf16.mxu0 %v315_v6  ;;  %296 = vmatprep.subr.bf16.mxu1 %v315_v6 }
   0xf   :  { %272 = vmatpush3.bf16.msra.mxu0 %v316_v7  ;;  %304 = vmatpush3.bf16.msra.mxu1 %v316_v7 }
  0x10   :  { %273 = vmatprep.subr.bf16.mxu0 %v317_v8  ;;  %297 = vmatprep.subr.bf16.mxu1 %v317_v8 }
  0x13   :  { %274 = vmatpush3.bf16.msra.mxu0 %v318_v9  ;;  %305 = vmatpush3.bf16.msra.mxu1 %v318_v9 }
  0x14   :  { %275 = vmatprep.subr.bf16.mxu0 %v319_v10  ;;  %298 = vmatprep.subr.bf16.mxu1 %v319_v10 }
  0x17   :  { %276 = vmatpush3.bf16.msra.mxu0 %v320_v13  ;;  %306 = vmatpush3.bf16.msra.mxu1 %v320_v13 }
  0x18   :  { %277 = vmatprep.subr.bf16.mxu0 %v321_v14  ;;  %299 = vmatprep.subr.bf16.mxu1 %v321_v14 }
  0x1b   :  { %278 = vmatpush3.bf16.msra.mxu0 %v322_v15  ;;  %307 = vmatpush3.bf16.msra.mxu1 %v322_v15 }
  0x1c   :  { %279 = vmatprep.subr.bf16.mxu0 %v323_v16  ;;  %300 = vmatprep.subr.bf16.mxu1 %v323_v16 }
  0x1f   :  { %280 = vmatpush3.bf16.msra.mxu0 %v324_v17  ;;  %308 = vmatpush3.bf16.msra.mxu1 %v324_v17 }
  0x22   :  { %207 = vmatmul.mubr.bf16.vlgmr.msra.gmra.mxu0 %v325_v18  ;;  %215 = vmatmul.mubr.bf16.vlgmr.msra.gmra.mxu1 %v328_v19 }
  0xe2   :  { %v281_v20 = vpop.f32.mrf.mxu0  ;;  %v287_v21 = vpop.f32.mrf.mxu1 }
  0xe4   :  { %v282_v23 = vpop.f32.mrf.mxu0  ;;  %v288_v24 = vpop.f32.mrf.mxu1 }
  0xe5   :  { %v283_v25 = vadd.f32 %v282_v23, %v281_v20  ;;  %v289_v26 = vadd.f32 %v288_v24, %v287_v21 }
  0xe6   :  { %v284_v27 = vpop.f32.mrf.mxu0  ;;  %v290_v28 = vpop.f32.mrf.mxu1 }
  0xe7   :  { %v209_v29 = vadd.f32 %v283_v25, %v244_v22  ;;  %v217_v30 = vadd.f32 %v289_v26, %v244_v22 }
  0xe8   :  { %v285_v31 = vpop.f32.mrf.mxu0  ;;  %v291_v32 = vpop.f32.mrf.mxu1 }
  0xe9   :  { %vm223_vm1 = vcmp.gt.f32.partialorder %v209_v29, 0.0  ;;  %v227_v33 = vmul.f32 0.25, %v209_v29  ;;  %vm225_vm2 = vcmp.gt.f32.partialorder %v217_v30, 0.0  ;;  %v229_v34 = vmul.f32 0.25, %v217_v30 }
  0xea   :  { %v286_v35 = vadd.f32 %v285_v31, %v284_v27  ;;  %v292_v36 = vadd.f32 %v291_v32, %v290_v28 }
  0xeb   :  { %v231_v37 = vsel %vm223_vm1, %v209_v29, %v227_v33  ;;  %v233_v38 = vsel %vm225_vm2, %v217_v30, %v229_v34 }
  0xec   :  { %236 = vst.msk [vmem:[%s433_s3] sm:$0xff] %vm235_vm0, %v231_v37  ;;  %238 = vst.msk [vmem:[%s433_s3 + $0x10] sm:$0xff] %vm235_vm0, %v233_v38  ;;  %v212_v39 = vadd.f32 %v286_v35, %v244_v22  ;;  %v220_v40 = vadd.f32 %v292_v36, %v244_v22 }
  0xee   :  { %vm224_vm3 = vcmp.gt.f32.partialorder %v212_v39, 0.0  ;;  %v228_v41 = vmul.f32 0.25, %v212_v39  ;;  %vm226_vm4 = vcmp.gt.f32.partialorder %v220_v40, 0.0  ;;  %v230_v42 = vmul.f32 0.25, %v220_v40 }
  0xf0   :  { %v232_v43 = vsel %vm224_vm3, %v212_v39, %v228_v41  ;;  %v234_v44 = vsel %vm226_vm4, %v220_v40, %v230_v42 }
  0xf1   :  { %237 = vst.msk [vmem:[%s433_s3 + $0x8] sm:$0xff] %vm235_vm0, %v232_v43  ;;  %239 = vst.msk [vmem:[%s433_s3 + $0x18] sm:$0xff] %vm235_vm0, %v234_v44 }

// kernel: enet_forward.106
= control target key start
LH: loop header
LB: loop body
LE: loop exit
PB: predicated region body
PF: predicated region fallthrough
CT: control target
= control target key end

     0   :  { %v242_v0 = vmov 0   ;;  %vm116_vm0 = vcmask 130048   ;;  %s323_s1 = inlined_call_operand.vmem [shape: bf16[144,16], index: 1, kind: input, shape index: {}]   ;;  %s324_s0 = inlined_call_operand.vmem [shape: bf16[32,144], index: 0, kind: input, shape index: {}]   ;;  %s325_s2 = inlined_call_operand.vmem [shape: f32[1,16], index: 2, kind: input, shape index: {}]   ;;  %s326_s3 = inlined_call_operand.vmem [shape: f32[32,16], index: 3, kind: output, shape index: {}]  }
   0x1   :  { %123 = vmatprep.subr.bf16.mxu0 %v242_v0  ;;  %208 = vmatprep.subr.bf16.mxu1 %v242_v0  ;;  %v227_v1 = vld [vmem:[%s323_s1 + $0x38] sm:$0xff]   ;;  %v228_v2 = vld [vmem:[%s323_s1 + $0x30] sm:$0xff]   ;;  %v229_v3 = vld [vmem:[%s323_s1 + $0x28] sm:$0xff]  }
   0x2   :  { %124 = vmatpush1.bf16.msra.mxu0 %v227_v1  ;;  %217 = vmatpush1.bf16.msra.mxu1 %v227_v1  ;;  %v230_v4 = vld [vmem:[%s323_s1 + $0x20] sm:$0xff]   ;;  %v241_v6 = vld [vmem:[%s324_s0 + $0x14] ss:$8 sps:$4 sm:$0xff]   ;;  %v233_v9 = vld [vmem:[%s323_s1 + $0x8] sm:$0xff]  }
   0x3   :  { %125 = vmatprep.subr.bf16.mxu0 %v242_v0  ;;  %209 = vmatprep.subr.bf16.mxu1 %v242_v0  ;;  %v238_v5 = vld [vmem:[%s324_s0 + $0x4] ss:$8 sps:$4 sm:$0xff]   ;;  %v231_v7 = vld [vmem:[%s323_s1 + $0x18] sm:$0xff]   ;;  %v232_v8 = vld [vmem:[%s323_s1 + $0x10] sm:$0xff]  }
   0x4   :  { %206 = vmatprep.mubr.msk.bf16.mxu0 %vm116_vm0, %v238_v5  ;;  %207 = vmatprep.mubr.msk.bf16.mxu1 %vm116_vm0, %v241_v6  ;;  %v234_v10 = vld [vmem:[%s323_s1] sm:$0xff]   ;;  %v239_v13 = vld [vmem:[%s324_s0 + $0x10] ss:$8 sps:$4 sm:$0xff]  }
   0x5   :  { %v235_v11 = vld [vmem:[%s323_s1 + $0x40] sm:$0xff]  }
   0x6   :  { %126 = vmatpush1.bf16.msra.mxu0 %v228_v2  ;;  %218 = vmatpush1.bf16.msra.mxu1 %v228_v2  ;;  %v236_v12 = vld [vmem:[%s324_s0] ss:$8 sps:$4 sm:$0xff]  }
   0x7   :  { %127 = vmatprep.subr.bf16.mxu0 %v242_v0  ;;  %210 = vmatprep.subr.bf16.mxu1 %v242_v0  ;;  %v192_v14 = vld [vmem:[%s325_s2] ss:$0 sm:$0xff] }
   0xa   :  { %128 = vmatpush1.bf16.msra.mxu0 %v229_v3  ;;  %219 = vmatpush1.bf16.msra.mxu1 %v229_v3 }
   0xb   :  { %129 = vmatprep.subr.bf16.mxu0 %v242_v0  ;;  %211 = vmatprep.subr.bf16.mxu1 %v242_v0 }
   0xe   :  { %130 = vmatpush1.bf16.msra.mxu0 %v230_v4  ;;  %220 = vmatpush1.bf16.msra.mxu1 %v230_v4 }
   0xf   :  { %131 = vmatprep.subr.bf16.mxu0 %v242_v0  ;;  %212 = vmatprep.subr.bf16.mxu1 %v242_v0 }
  0x12   :  { %132 = vmatpush1.bf16.msra.mxu0 %v231_v7  ;;  %221 = vmatpush1.bf16.msra.mxu1 %v231_v7 }
  0x13   :  { %133 = vmatprep.subr.bf16.mxu0 %v242_v0  ;;  %213 = vmatprep.subr.bf16.mxu1 %v242_v0 }
  0x16   :  { %134 = vmatpush1.bf16.msra.mxu0 %v232_v8  ;;  %222 = vmatpush1.bf16.msra.mxu1 %v232_v8 }
  0x17   :  { %135 = vmatprep.subr.bf16.mxu0 %v242_v0  ;;  %214 = vmatprep.subr.bf16.mxu1 %v242_v0 }
  0x1a   :  { %136 = vmatpush1.bf16.msra.mxu0 %v233_v9  ;;  %223 = vmatpush1.bf16.msra.mxu1 %v233_v9 }
  0x1b   :  { %137 = vmatprep.subr.bf16.mxu0 %v242_v0  ;;  %215 = vmatprep.subr.bf16.mxu1 %v242_v0 }
  0x1e   :  { %138 = vmatpush1.bf16.msra.mxu0 %v234_v10  ;;  %224 = vmatpush1.bf16.msra.mxu1 %v234_v10 }
  0x1f   :  { %153 = vmatprep.subr.bf16.mxu0 %v242_v0  ;;  %216 = vmatprep.subr.bf16.mxu1 %v242_v0 }
  0x22   :  { %154 = vmatpush2.bf16.msra.mxu0 %v235_v11  ;;  %225 = vmatpush2.bf16.msra.mxu1 %v235_v11 }
  0x25   :  { %156 = vmatmul.mubr.bf16.vlgmr.msra.gmra.mxu0 %v236_v12  ;;  %164 = vmatmul.mubr.bf16.vlgmr.msra.gmra.mxu1 %v239_v13 }
  0xe5   :  { %v157_v15 = vpop.f32.mrf.mxu0  ;;  %v165_v16 = vpop.f32.mrf.mxu1 }
  0xe6   :  { %v158_v17 = vadd.f32 %v192_v14, %v157_v15  ;;  %v166_v18 = vadd.f32 %v192_v14, %v165_v16 }
  0xe7   :  { %v159_v19 = vpop.f32.mrf.mxu0  ;;  %v167_v20 = vpop.f32.mrf.mxu1 }
  0xe8   :  { %vm172_vm1 = vcmp.gt.f32.partialorder %v158_v17, 0.0  ;;  %v176_v21 = vmul.f32 0.25, %v158_v17  ;;  %vm174_vm2 = vcmp.gt.f32.partialorder %v166_v18, 0.0  ;;  %v178_v22 = vmul.f32 0.25, %v166_v18 }
  0xe9   :  { %v160_v23 = vpop.f32.mrf.mxu0  ;;  %v168_v24 = vpop.f32.mrf.mxu1 }
  0xea   :  { %v180_v25 = vsel %vm172_vm1, %v158_v17, %v176_v21  ;;  %v182_v26 = vsel %vm174_vm2, %v166_v18, %v178_v22  ;;  %v161_v27 = vadd.f32 %v192_v14, %v160_v23  ;;  %v169_v28 = vadd.f32 %v192_v14, %v168_v24 }
  0xeb   :  { %184 = vst.msk [vmem:[%s326_s3] sm:$0xff] %vm116_vm0, %v180_v25  ;;  %186 = vst.msk [vmem:[%s326_s3 + $0x10] sm:$0xff] %vm116_vm0, %v182_v26  ;;  %v162_v29 = vpop.f32.mrf.mxu0  ;;  %v170_v30 = vpop.f32.mrf.mxu1 }
  0xec   :  { %vm173_vm3 = vcmp.gt.f32.partialorder %v161_v27, 0.0  ;;  %v177_v31 = vmul.f32 0.25, %v161_v27  ;;  %vm175_vm4 = vcmp.gt.f32.partialorder %v169_v28, 0.0  ;;  %v179_v32 = vmul.f32 0.25, %v169_v28 }
  0xee   :  { %v181_v33 = vsel %vm173_vm3, %v161_v27, %v177_v31  ;;  %v183_v34 = vsel %vm175_vm4, %v169_v28, %v179_v32 }
  0xef   :  { %185 = vst.msk [vmem:[%s326_s3 + $0x8] sm:$0xff] %vm116_vm0, %v181_v33  ;;  %187 = vst.msk [vmem:[%s326_s3 + $0x18] sm:$0xff] %vm116_vm0, %v183_v34 }

// kernel: enet_forward.107
= control target key start
LH: loop header
LB: loop body
LE: loop exit
PB: predicated region body
PF: predicated region fallthrough
CT: control target
= control target key end

     0   :  { %vm47_vm0 = vcmask 130048   ;;  %s222_s1 = inlined_call_operand.vmem [shape: bf16[16,128], index: 1, kind: input, shape index: {}]   ;;  %s223_s0 = inlined_call_operand.vmem [shape: bf16[32,16], index: 0, kind: input, shape index: {}]   ;;  %s224_s2 = inlined_call_operand.vmem [shape: f32[1,128], index: 2, kind: input, shape index: {}]   ;;  %s225_s3 = inlined_call_operand.vmem [shape: f32[32,128], index: 3, kind: input, shape index: {}]   ;;  %s226_s4 = inlined_call_operand.vmem [shape: f32[32,128], index: 4, kind: output, shape index: {}]  }
   0x1   :  { %v158_v0 = vld [vmem:[%s222_s1] sm:$0xff]   ;;  %v160_v2 = vld [vmem:[%s223_s0 + $0x8] sm:$0xff]   ;;  %v117_v8 = vld [vmem:[%s225_s3 + $0x10] sm:$0xff] }
   0x2   :  { %v159_v1 = vld [vmem:[%s223_s0] sm:$0xff]   ;;  %152 = vmatprep.subr.bf16.mxu0 %v158_v0  ;;  %v118_v19 = vld [vmem:[%s225_s3 + $0x18] sm:$0xff]  ;;  %v116_v25 = vld [vmem:[%s225_s3 + $0x8] sm:$0xff] }
   0x3   :  { %153 = vmatpush3.bf16.msra.mxu0 %v158_v0  ;;  %154 = vmatprep.mubr.msk.bf16.mxu0 %vm47_vm0, %v159_v1  ;;  %v143_v3 = vld [vmem:[%s224_s2] ss:$0 sm:$0xff] }
   0x4   :  { %v115_v13 = vld [vmem:[%s225_s3] sm:$0xff] }
   0x6   :  { %155 = vmatmul.mubr.msk.bf16.vlgmr.msra.gmra.mxu0 %vm47_vm0, %v160_v2 }
  0xc6   :  { %v156_v4 = vpop.f32.mrf.mxu0 }
  0xc7   :  { %v97_v5 = vadd.f32 %v156_v4, %v143_v3 }
  0xc8   :  { %v88_v6 = vpop.f32.mrf.mxu0 }
  0xc9   :  { %vm105_vm1 = vcmp.gt.f32.partialorder %v97_v5, 0.0  ;;  %v109_v7 = vmul.f32 0.25, %v97_v5  ;;  %v89_v9 = vadd.f32 %v143_v3, %v88_v6 }
  0xca   :  { %v157_v10 = vpop.f32.mrf.mxu0 }
  0xcb   :  { %v113_v11 = vsel %vm105_vm1, %v97_v5, %v109_v7  ;;  %vm103_vm2 = vcmp.gt.f32.partialorder %v89_v9, 0.0  ;;  %v107_v12 = vmul.f32 0.25, %v89_v9  ;;  %v100_v14 = vadd.f32 %v157_v10, %v143_v3 }
  0xcc   :  { %v121_v15 = vadd.f32 %v117_v8, %v113_v11  ;;  %v91_v16 = vpop.f32.mrf.mxu0 }
  0xcd   :  { %v111_v17 = vsel %vm103_vm2, %v89_v9, %v107_v12  ;;  %vm106_vm3 = vcmp.gt.f32.partialorder %v100_v14, 0.0  ;;  %v110_v18 = vmul.f32 0.25, %v100_v14  ;;  %v92_v20 = vadd.f32 %v143_v3, %v91_v16 }
  0xce   :  { %vm125_vm4 = vcmp.gt.f32.partialorder %v121_v15, 0.0  ;;  %v129_v21 = vmul.f32 0.25, %v121_v15  ;;  %v119_v22 = vadd.f32 %v115_v13, %v111_v17 }
  0xcf   :  { %v114_v23 = vsel %vm106_vm3, %v100_v14, %v110_v18  ;;  %vm104_vm5 = vcmp.gt.f32.partialorder %v92_v20, 0.0  ;;  %v108_v24 = vmul.f32 0.25, %v92_v20 }
  0xd0   :  { %v133_v26 = vsel %vm125_vm4, %v121_v15, %v129_v21  ;;  %vm123_vm6 = vcmp.gt.f32.partialorder %v119_v22, 0.0  ;;  %v127_v27 = vmul.f32 0.25, %v119_v22  ;;  %v122_v28 = vadd.f32 %v118_v19, %v114_v23 }
  0xd1   :  { %137 = vst [vmem:[%s226_s4 + $0x10] sm:$0xff] %v133_v26  ;;  %v112_v29 = vsel %vm104_vm5, %v92_v20, %v108_v24 }
  0xd2   :  { %v131_v30 = vsel %vm123_vm6, %v119_v22, %v127_v27  ;;  %vm126_vm7 = vcmp.gt.f32.partialorder %v122_v28, 0.0  ;;  %v130_v31 = vmul.f32 0.25, %v122_v28  ;;  %v120_v32 = vadd.f32 %v116_v25, %v112_v29 }
  0xd3   :  { %135 = vst [vmem:[%s226_s4] sm:$0xff] %v131_v30 }
  0xd4   :  { %v134_v33 = vsel %vm126_vm7, %v122_v28, %v130_v31  ;;  %vm124_vm8 = vcmp.gt.f32.partialorder %v120_v32, 0.0  ;;  %v128_v34 = vmul.f32 0.25, %v120_v32 }
  0xd5   :  { %138 = vst [vmem:[%s226_s4 + $0x18] sm:$0xff] %v134_v33 }
  0xd6   :  { %v132_v35 = vsel %vm124_vm8, %v120_v32, %v128_v34 }
  0xd7   :  { %136 = vst [vmem:[%s226_s4 + $0x8] sm:$0xff] %v132_v35 }

// kernel: enet_forward.108
= control target key start
LH: loop header
LB: loop body
LE: loop exit
PB: predicated region body
PF: predicated region fallthrough
CT: control target
= control target key end

     0   :  { %vm163_vm1 = vcmask 261120   ;;  %s292_s1 = inlined_call_operand.vmem [shape: bf16[128,32], index: 1, kind: input, shape index: {}]   ;;  %s293_s0 = inlined_call_operand.vmem [shape: bf16[32,128], index: 0, kind: input, shape index: {}]   ;;  %s294_s2 = inlined_call_operand.vmem [shape: f32[1,32], index: 2, kind: input, shape index: {}]   ;;  %s295_s3 = inlined_call_operand.vmem [shape: f32[32,32], index: 3, kind: output, shape index: {}]  }
   0x1   :  { %v213_v0 = vld [vmem:[%s292_s1 + $0x38] sm:$0xff]   ;;  %v214_v1 = vld [vmem:[%s292_s1 + $0x30] sm:$0xff]   ;;  %v215_v2 = vld [vmem:[%s292_s1 + $0x28] sm:$0xff]  }
   0x2   :  { %193 = vmatprep.subr.bf16.mxu0 %v213_v0  ;;  %v216_v3 = vld [vmem:[%s292_s1 + $0x20] sm:$0xff]   ;;  %v217_v5 = vld [vmem:[%s292_s1 + $0x18] sm:$0xff]   ;;  %v218_v6 = vld [vmem:[%s292_s1 + $0x10] sm:$0xff]  }
   0x3   :  { %194 = vmatpush3.bf16.msra.mxu0 %v213_v0  ;;  %v221_v4 = vld [vmem:[%s293_s0] sm:$0xff]   ;;  %v219_v7 = vld [vmem:[%s292_s1 + $0x8] sm:$0xff]  }
   0x4   :  { %195 = vmatprep.subr.bf16.mxu0 %v214_v1  ;;  %209 = vmatprep.mubr.bf16.mxu0 %v221_v4  ;;  %v220_v8 = vld [vmem:[%s292_s1] sm:$0xff]   ;;  %v222_v9 = vld [vmem:[%s293_s0 + $0x8] sm:$0xff]  }
   0x5   :  { %v172_v10 = vld [vmem:[%s294_s2] ss:$0 sm:$0xff] }
   0x7   :  { %196 = vmatpush3.bf16.msra.mxu0 %v214_v1 }
   0x8   :  { %197 = vmatprep.subr.bf16.mxu0 %v215_v2 }
   0xb   :  { %198 = vmatpush3.bf16.msra.mxu0 %v215_v2 }
   0xc   :  { %199 = vmatprep.subr.bf16.mxu0 %v216_v3 }
   0xf   :  { %200 = vmatpush3.bf16.msra.mxu0 %v216_v3 }
  0x10   :  { %201 = vmatprep.subr.bf16.mxu0 %v217_v5 }
  0x13   :  { %202 = vmatpush3.bf16.msra.mxu0 %v217_v5 }
  0x14   :  { %203 = vmatprep.subr.bf16.mxu0 %v218_v6 }
  0x17   :  { %204 = vmatpush3.bf16.msra.mxu0 %v218_v6 }
  0x18   :  { %205 = vmatprep.subr.bf16.mxu0 %v219_v7 }
  0x1b   :  { %206 = vmatpush3.bf16.msra.mxu0 %v219_v7 }
  0x1c   :  { %207 = vmatprep.subr.bf16.mxu0 %v220_v8 }
  0x1f   :  { %208 = vmatpush3.bf16.msra.mxu0 %v220_v8 }
  0x22   :  { %210 = vmatmul.mubr.bf16.vlgmr.msra.gmra.mxu0 %v222_v9 }
  0xe2   :  { %v211_v11 = vpop.f32.mrf.mxu0 }
  0xe3   :  { %v145_v12 = vadd.f32 %v211_v11, %v172_v10 }
  0xe4   :  { %v136_v13 = vpop.f32.mrf.mxu0 }
  0xe5   :  { %vm153_vm0 = vcmp.gt.f32.partialorder %v145_v12, 0.0  ;;  %v157_v14 = vmul.f32 0.25, %v145_v12  ;;  %v137_v15 = vadd.f32 %v172_v10, %v136_v13 }
  0xe6   :  { %v212_v16 = vpop.f32.mrf.mxu0 }
  0xe7   :  { %v161_v17 = vsel %vm153_vm0, %v145_v12, %v157_v14  ;;  %vm151_vm2 = vcmp.gt.f32.partialorder %v137_v15, 0.0  ;;  %v155_v18 = vmul.f32 0.25, %v137_v15  ;;  %v148_v19 = vadd.f32 %v212_v16, %v172_v10 }
  0xe8   :  { %166 = vst.msk [vmem:[%s295_s3 + $0x10] sm:$0xff] %vm163_vm1, %v161_v17  ;;  %v139_v20 = vpop.f32.mrf.mxu0 }
  0xe9   :  { %v159_v21 = vsel %vm151_vm2, %v137_v15, %v155_v18  ;;  %vm154_vm3 = vcmp.gt.f32.partialorder %v148_v19, 0.0  ;;  %v158_v22 = vmul.f32 0.25, %v148_v19  ;;  %v140_v23 = vadd.f32 %v172_v10, %v139_v20 }
  0xea   :  { %164 = vst.msk [vmem:[%s295_s3] sm:$0xff] %vm163_vm1, %v159_v21 }
  0xeb   :  { %v162_v24 = vsel %vm154_vm3, %v148_v19, %v158_v22  ;;  %vm152_vm4 = vcmp.gt.f32.partialorder %v140_v23, 0.0  ;;  %v156_v25 = vmul.f32 0.25, %v140_v23 }
  0xec   :  { %167 = vst.msk [vmem:[%s295_s3 + $0x18] sm:$0xff] %vm163_vm1, %v162_v24 }
  0xed   :  { %v160_v26 = vsel %vm152_vm4, %v140_v23, %v156_v25 }
  0xee   :  { %165 = vst.msk [vmem:[%s295_s3 + $0x8] sm:$0xff] %vm163_vm1, %v160_v26 }

// kernel: enet_forward.110
= control target key start
LH: loop header
LB: loop body
LE: loop exit
PB: predicated region body
PF: predicated region fallthrough
CT: control target
= control target key end

     0   :  { %vm55_vm0 = vcmask 261120   ;;  %s238_s1 = inlined_call_operand.vmem [shape: bf16[32,128], index: 1, kind: input, shape index: {}]   ;;  %s239_s0 = inlined_call_operand.vmem [shape: bf16[32,32], index: 0, kind: input, shape index: {}]   ;;  %s240_s2 = inlined_call_operand.vmem [shape: f32[1,128], index: 2, kind: input, shape index: {}]   ;;  %s241_s3 = inlined_call_operand.vmem [shape: f32[32,128], index: 3, kind: input, shape index: {}]   ;;  %s242_s4 = inlined_call_operand.vmem [shape: f32[32,128], index: 4, kind: output, shape index: {}]  }
   0x1   :  { %v170_v0 = vld [vmem:[%s238_s1 + $0x8] sm:$0xff]   ;;  %v171_v1 = vld [vmem:[%s238_s1] sm:$0xff]   ;;  %v125_v9 = vld [vmem:[%s241_s3 + $0x10] sm:$0xff] }
   0x2   :  { %162 = vmatprep.subr.bf16.mxu0 %v170_v0  ;;  %v172_v2 = vld [vmem:[%s239_s0] sm:$0xff]   ;;  %v173_v3 = vld [vmem:[%s239_s0 + $0x8] sm:$0xff]   ;;  %v126_v20 = vld [vmem:[%s241_s3 + $0x18] sm:$0xff] }
   0x3   :  { %163 = vmatpush3.bf16.msra.mxu0 %v170_v0  ;;  %166 = vmatprep.mubr.msk.bf16.mxu0 %vm55_vm0, %v172_v2  ;;  %v151_v4 = vld [vmem:[%s240_s2] ss:$0 sm:$0xff]  ;;  %v124_v26 = vld [vmem:[%s241_s3 + $0x8] sm:$0xff] }
   0x4   :  { %164 = vmatprep.subr.bf16.mxu0 %v171_v1  ;;  %v123_v14 = vld [vmem:[%s241_s3] sm:$0xff] }
   0x7   :  { %165 = vmatpush3.bf16.msra.mxu0 %v171_v1 }
   0xa   :  { %167 = vmatmul.mubr.msk.bf16.vlgmr.msra.gmra.mxu0 %vm55_vm0, %v173_v3 }
  0xca   :  { %v168_v5 = vpop.f32.mrf.mxu0 }
  0xcb   :  { %v105_v6 = vadd.f32 %v168_v5, %v151_v4 }
  0xcc   :  { %v96_v7 = vpop.f32.mrf.mxu0 }
  0xcd   :  { %vm113_vm1 = vcmp.gt.f32.partialorder %v105_v6, 0.0  ;;  %v117_v8 = vmul.f32 0.25, %v105_v6  ;;  %v97_v10 = vadd.f32 %v151_v4, %v96_v7 }
  0xce   :  { %v169_v11 = vpop.f32.mrf.mxu0 }
  0xcf   :  { %v121_v12 = vsel %vm113_vm1, %v105_v6, %v117_v8  ;;  %vm111_vm2 = vcmp.gt.f32.partialorder %v97_v10, 0.0  ;;  %v115_v13 = vmul.f32 0.25, %v97_v10  ;;  %v108_v15 = vadd.f32 %v169_v11, %v151_v4 }
  0xd0   :  { %v129_v16 = vadd.f32 %v125_v9, %v121_v12  ;;  %v99_v17 = vpop.f32.mrf.mxu0 }
  0xd1   :  { %v119_v18 = vsel %vm111_vm2, %v97_v10, %v115_v13  ;;  %vm114_vm3 = vcmp.gt.f32.partialorder %v108_v15, 0.0  ;;  %v118_v19 = vmul.f32 0.25, %v108_v15  ;;  %v100_v21 = vadd.f32 %v151_v4, %v99_v17 }
  0xd2   :  { %vm133_vm4 = vcmp.gt.f32.partialorder %v129_v16, 0.0  ;;  %v137_v22 = vmul.f32 0.25, %v129_v16  ;;  %v127_v23 = vadd.f32 %v123_v14, %v119_v18 }
  0xd3   :  { %v122_v24 = vsel %vm114_vm3, %v108_v15, %v118_v19  ;;  %vm112_vm5 = vcmp.gt.f32.partialorder %v100_v21, 0.0  ;;  %v116_v25 = vmul.f32 0.25, %v100_v21 }
  0xd4   :  { %v141_v27 = vsel %vm133_vm4, %v129_v16, %v137_v22  ;;  %vm131_vm6 = vcmp.gt.f32.partialorder %v127_v23, 0.0  ;;  %v135_v28 = vmul.f32 0.25, %v127_v23  ;;  %v130_v29 = vadd.f32 %v126_v20, %v122_v24 }
  0xd5   :  { %145 = vst [vmem:[%s242_s4 + $0x10] sm:$0xff] %v141_v27  ;;  %v120_v30 = vsel %vm112_vm5, %v100_v21, %v116_v25 }
  0xd6   :  { %v139_v31 = vsel %vm131_vm6, %v127_v23, %v135_v28  ;;  %vm134_vm7 = vcmp.gt.f32.partialorder %v130_v29, 0.0  ;;  %v138_v32 = vmul.f32 0.25, %v130_v29  ;;  %v128_v33 = vadd.f32 %v124_v26, %v120_v30 }
  0xd7   :  { %143 = vst [vmem:[%s242_s4] sm:$0xff] %v139_v31 }
  0xd8   :  { %v142_v34 = vsel %vm134_vm7, %v130_v29, %v138_v32  ;;  %vm132_vm8 = vcmp.gt.f32.partialorder %v128_v33, 0.0  ;;  %v136_v35 = vmul.f32 0.25, %v128_v33 }
  0xd9   :  { %146 = vst [vmem:[%s242_s4 + $0x18] sm:$0xff] %v142_v34 }
  0xda   :  { %v140_v36 = vsel %vm132_vm8, %v128_v33, %v136_v35 }
  0xdb   :  { %144 = vst [vmem:[%s242_s4 + $0x8] sm:$0xff] %v140_v36 }

// kernel: enet_forward.109
= control target key start
LH: loop header
LB: loop body
LE: loop exit
PB: predicated region body
PF: predicated region fallthrough
CT: control target
= control target key end

     0   :  { %vm204_vm0 = vcmask 261120   ;;  %s535_s1 = inlined_call_operand.vmem [shape: bf16[288,32], index: 1, kind: input, shape index: {}]   ;;  %s536_s0 = inlined_call_operand.vmem [shape: bf16[32,288], index: 0, kind: input, shape index: {}]   ;;  %s537_s2 = inlined_call_operand.vmem [shape: f32[1,32], index: 2, kind: input, shape index: {}]   ;;  %s538_s3 = inlined_call_operand.vmem [shape: f32[32,32], index: 3, kind: output, shape index: {}]  }
   0x1   :  { %v396_v0 = vld [vmem:[%s535_s1 + $0x78] sm:$0xff]   ;;  %v398_v2 = vld [vmem:[%s535_s1 + $0x70] sm:$0xff]   ;;  %v400_v4 = vld [vmem:[%s535_s1 + $0x68] sm:$0xff]  }
   0x2   :  { %v397_v1 = vld [vmem:[%s535_s1 + $0x38] sm:$0xff]   ;;  %356 = vmatprep.subr.bf16.mxu0 %v396_v0  ;;  %v399_v3 = vld [vmem:[%s535_s1 + $0x30] sm:$0xff]   ;;  %v401_v5 = vld [vmem:[%s535_s1 + $0x28] sm:$0xff]  }
   0x3   :  { %357 = vmatpush3.bf16.msra.mxu0 %v397_v1  ;;  %v402_v6 = vld [vmem:[%s535_s1 + $0x60] sm:$0xff]   ;;  %v404_v8 = vld [vmem:[%s535_s1 + $0x58] sm:$0xff]   ;;  %v411_v10 = vld [vmem:[%s535_s1 + $0x88] sm:$0xff]  }
   0x4   :  { %358 = vmatprep.subr.bf16.mxu0 %v398_v2  ;;  %v403_v7 = vld [vmem:[%s535_s1 + $0x20] sm:$0xff]   ;;  %v405_v9 = vld [vmem:[%s535_s1 + $0x18] sm:$0xff]   ;;  %v406_v11 = vld [vmem:[%s535_s1 + $0x50] sm:$0xff]   ;;  %388 = vmatprep.subr.bf16.mxu1 %v411_v10 }
   0x5   :  { %v407_v12 = vld [vmem:[%s535_s1 + $0x10] sm:$0xff]   ;;  %v408_v13 = vld [vmem:[%s535_s1 + $0x48] sm:$0xff]   ;;  %389 = vmatpush3.bf16.msra.mxu1 %v411_v10  ;;  %v416_v15 = vld [vmem:[%s535_s1 + $0x80] sm:$0xff]  }
   0x6   :  { %v415_v14 = vld [vmem:[%s536_s0 + $0x4] ss:$12 sps:$4 sm:$0xff]   ;;  %v417_v16 = vld [vmem:[%s536_s0 + $0x8] ss:$12 sps:$4 sm:$0xff]   ;;  %390 = vmatprep.subr.bf16.mxu1 %v416_v15  ;;  %v418_v17 = vld [vmem:[%s536_s0 + $0x20] ss:$12 sps:$4 sm:$0xff]  }
   0x7   :  { %359 = vmatpush3.bf16.msra.mxu0 %v399_v3  ;;  %243 = vmatprep.mubr.bf16.mxu0 %v415_v14  ;;  %v409_v18 = vld [vmem:[%s535_s1 + $0x8] sm:$0xff]   ;;  %v410_v19 = vld [vmem:[%s535_s1 + $0x40] sm:$0xff]  }
   0x8   :  { %360 = vmatprep.subr.bf16.mxu0 %v400_v4  ;;  %392 = vmatprep.mubr.msk.bf16.mxu1 %vm204_vm0, %v417_v16  ;;  %v412_v20 = vld [vmem:[%s535_s1] sm:$0xff]   ;;  %v419_v22 = vld [vmem:[%s536_s0 + $0x1c] ss:$12 sps:$4 sm:$0xff]  }
   0x9   :  { %391 = vmatpush3.bf16.msra.mxu1 %v416_v15  ;;  %v413_v21 = vld [vmem:[%s536_s0] ss:$12 sps:$4 sm:$0xff]   ;;  %v421_v23 = vld [vmem:[%s536_s0 + $0x18] ss:$12 sps:$4 sm:$0xff]  }
   0xa   :  { %v329_v28 = vld [vmem:[%s537_s2] ss:$0 sm:$0xff] }
   0xb   :  { %361 = vmatpush3.bf16.msra.mxu0 %v401_v5 }
   0xc   :  { %362 = vmatprep.subr.bf16.mxu0 %v402_v6  ;;  %393 = vmatmul.mubr.msk.bf16.vlgmr.msra.gmra.mxu1 %vm204_vm0, %v418_v17 }
   0xf   :  { %363 = vmatpush3.bf16.msra.mxu0 %v403_v7 }
  0x10   :  { %364 = vmatprep.subr.bf16.mxu0 %v404_v8 }
  0x13   :  { %365 = vmatpush3.bf16.msra.mxu0 %v405_v9 }
  0x14   :  { %366 = vmatprep.subr.bf16.mxu0 %v406_v11 }
  0x17   :  { %367 = vmatpush3.bf16.msra.mxu0 %v407_v12 }
  0x18   :  { %368 = vmatprep.subr.bf16.mxu0 %v408_v13 }
  0x1b   :  { %369 = vmatpush3.bf16.msra.mxu0 %v409_v18 }
  0x1c   :  { %370 = vmatprep.subr.bf16.mxu0 %v410_v19 }
  0x1f   :  { %371 = vmatpush3.bf16.msra.mxu0 %v412_v20 }
  0x22   :  { %244 = vmatmul.mubr.bf16.vlgmr.msra.gmra.mxu0 %v413_v21 }
  0x23   :  { %251 = vmatprep.mubr.bf16.mxu0 %v419_v22 }
  0x2a   :  { %252 = vmatmul.mubr.bf16.gmra.mxu0 %v421_v23 }
  0xcc   :  { %v394_v24 = vpop.f32.mrf.mxu1 }
  0xce   :  { %v294_v26 = vpop.f32.mrf.mxu1 }
  0xd0   :  { %v395_v31 = vpop.f32.mrf.mxu1 }
  0xd2   :  { %v297_v37 = vpop.f32.mrf.mxu1 }
  0xe2   :  { %v372_v25 = vpop.f32.mrf.mxu0 }
  0xe4   :  { %v373_v27 = vpop.f32.mrf.mxu0 }
  0xe5   :  { %v374_v29 = vadd.f32 %v373_v27, %v372_v25 }
  0xe6   :  { %v375_v30 = vpop.f32.mrf.mxu0 }
  0xe7   :  { %v246_v32 = vadd.f32 %v374_v29, %v329_v28 }
  0xe8   :  { %v376_v33 = vpop.f32.mrf.mxu0 }
  0xe9   :  { %v377_v34 = vadd.f32 %v376_v33, %v375_v30  ;;  %v295_v35 = vadd.f32 %v294_v26, %v246_v32 }
  0xea   :  { %v378_v36 = vpop.f32.mrf.mxu0 }
  0xeb   :  { %vm309_vm1 = vcmp.gt.f32.partialorder %v295_v35, 0.0  ;;  %v313_v38 = vmul.f32 0.25, %v295_v35  ;;  %v249_v39 = vadd.f32 %v377_v34, %v329_v28 }
  0xec   :  { %v379_v40 = vpop.f32.mrf.mxu0 }
  0xed   :  { %v317_v41 = vsel %vm309_vm1, %v295_v35, %v313_v38  ;;  %v380_v42 = vadd.f32 %v379_v40, %v378_v36  ;;  %v298_v43 = vadd.f32 %v297_v37, %v249_v39 }
  0xee   :  { %321 = vst.msk [vmem:[%s538_s3] sm:$0xff] %vm204_vm0, %v317_v41  ;;  %v381_v44 = vpop.f32.mrf.mxu0 }
  0xef   :  { %v254_v45 = vadd.f32 %v380_v42, %v329_v28  ;;  %vm310_vm2 = vcmp.gt.f32.partialorder %v298_v43, 0.0  ;;  %v314_v46 = vmul.f32 0.25, %v298_v43 }
  0xf0   :  { %v382_v47 = vpop.f32.mrf.mxu0 }
  0xf1   :  { %v303_v48 = vadd.f32 %v394_v24, %v254_v45  ;;  %v318_v49 = vsel %vm310_vm2, %v298_v43, %v314_v46  ;;  %v383_v50 = vadd.f32 %v382_v47, %v381_v44 }
  0xf2   :  { %322 = vst.msk [vmem:[%s538_s3 + $0x8] sm:$0xff] %vm204_vm0, %v318_v49 }
  0xf3   :  { %vm311_vm3 = vcmp.gt.f32.partialorder %v303_v48, 0.0  ;;  %v315_v51 = vmul.f32 0.25, %v303_v48  ;;  %v257_v52 = vadd.f32 %v383_v50, %v329_v28 }
  0xf5   :  { %v319_v53 = vsel %vm311_vm3, %v303_v48, %v315_v51  ;;  %v306_v54 = vadd.f32 %v395_v31, %v257_v52 }
  0xf6   :  { %323 = vst.msk [vmem:[%s538_s3 + $0x10] sm:$0xff] %vm204_vm0, %v319_v53 }
  0xf7   :  { %vm312_vm4 = vcmp.gt.f32.partialorder %v306_v54, 0.0  ;;  %v316_v55 = vmul.f32 0.25, %v306_v54 }
  0xf9   :  { %v320_v56 = vsel %vm312_vm4, %v306_v54, %v316_v55 }
  0xfa   :  { %324 = vst.msk [vmem:[%s538_s3 + $0x18] sm:$0xff] %vm204_vm0, %v320_v56 }

// kernel: enet_forward.115
= control target key start
LH: loop header
LB: loop body
LE: loop exit
PB: predicated region body
PF: predicated region fallthrough
CT: control target
= control target key end

     0   :  { %v254_v0 = vmov 0   ;;  %vm124_vm0 = vcmask 261120   ;;  %s338_s1 = inlined_call_operand.vmem [shape: bf16[160,32], index: 1, kind: input, shape index: {}]   ;;  %s339_s0 = inlined_call_operand.vmem [shape: bf16[32,160], index: 0, kind: input, shape index: {}]   ;;  %s340_s2 = inlined_call_operand.vmem [shape: f32[1,32], index: 2, kind: input, shape index: {}]   ;;  %s341_s3 = inlined_call_operand.vmem [shape: f32[32,32], index: 3, kind: output, shape index: {}]  }
   0x1   :  { %131 = vmatprep.subr.bf16.mxu0 %v254_v0  ;;  %217 = vmatprep.subr.bf16.mxu1 %v254_v0  ;;  %v238_v1 = vld [vmem:[%s338_s1 + $0x38] sm:$0xff]   ;;  %v239_v2 = vld [vmem:[%s338_s1 + $0x30] sm:$0xff]   ;;  %v240_v3 = vld [vmem:[%s338_s1 + $0x28] sm:$0xff]  }
   0x2   :  { %132 = vmatpush1.bf16.msra.mxu0 %v238_v1  ;;  %227 = vmatpush1.bf16.msra.mxu1 %v238_v1  ;;  %v241_v4 = vld [vmem:[%s338_s1 + $0x20] sm:$0xff]   ;;  %v253_v6 = vld [vmem:[%s339_s0 + $0x14] ss:$8 sps:$4 sm:$0xff]   ;;  %v244_v9 = vld [vmem:[%s338_s1 + $0x8] sm:$0xff]  }
   0x3   :  { %133 = vmatprep.subr.bf16.mxu0 %v254_v0  ;;  %218 = vmatprep.subr.bf16.mxu1 %v254_v0  ;;  %v250_v5 = vld [vmem:[%s339_s0 + $0x4] ss:$8 sps:$4 sm:$0xff]   ;;  %v242_v7 = vld [vmem:[%s338_s1 + $0x18] sm:$0xff]   ;;  %v243_v8 = vld [vmem:[%s338_s1 + $0x10] sm:$0xff]  }
   0x4   :  { %215 = vmatprep.mubr.msk.bf16.mxu0 %vm124_vm0, %v250_v5  ;;  %216 = vmatprep.mubr.msk.bf16.mxu1 %vm124_vm0, %v253_v6  ;;  %v245_v10 = vld [vmem:[%s338_s1] sm:$0xff]   ;;  %v246_v11 = vld [vmem:[%s338_s1 + $0x48] sm:$0xff]   ;;  %v251_v14 = vld [vmem:[%s339_s0 + $0x10] ss:$8 sps:$4 sm:$0xff]  }
   0x5   :  { %v247_v12 = vld [vmem:[%s338_s1 + $0x40] sm:$0xff]  }
   0x6   :  { %134 = vmatpush1.bf16.msra.mxu0 %v239_v2  ;;  %228 = vmatpush1.bf16.msra.mxu1 %v239_v2  ;;  %v248_v13 = vld [vmem:[%s339_s0] ss:$8 sps:$4 sm:$0xff]  }
   0x7   :  { %135 = vmatprep.subr.bf16.mxu0 %v254_v0  ;;  %219 = vmatprep.subr.bf16.mxu1 %v254_v0  ;;  %v200_v15 = vld [vmem:[%s340_s2] ss:$0 sm:$0xff] }
   0xa   :  { %136 = vmatpush1.bf16.msra.mxu0 %v240_v3  ;;  %229 = vmatpush1.bf16.msra.mxu1 %v240_v3 }
   0xb   :  { %137 = vmatprep.subr.bf16.mxu0 %v254_v0  ;;  %220 = vmatprep.subr.bf16.mxu1 %v254_v0 }
   0xe   :  { %138 = vmatpush1.bf16.msra.mxu0 %v241_v4  ;;  %230 = vmatpush1.bf16.msra.mxu1 %v241_v4 }
   0xf   :  { %139 = vmatprep.subr.bf16.mxu0 %v254_v0  ;;  %221 = vmatprep.subr.bf16.mxu1 %v254_v0 }
  0x12   :  { %140 = vmatpush1.bf16.msra.mxu0 %v242_v7  ;;  %231 = vmatpush1.bf16.msra.mxu1 %v242_v7 }
  0x13   :  { %141 = vmatprep.subr.bf16.mxu0 %v254_v0  ;;  %222 = vmatprep.subr.bf16.mxu1 %v254_v0 }
  0x16   :  { %142 = vmatpush1.bf16.msra.mxu0 %v243_v8  ;;  %232 = vmatpush1.bf16.msra.mxu1 %v243_v8 }
  0x17   :  { %143 = vmatprep.subr.bf16.mxu0 %v254_v0  ;;  %223 = vmatprep.subr.bf16.mxu1 %v254_v0 }
  0x1a   :  { %144 = vmatpush1.bf16.msra.mxu0 %v244_v9  ;;  %233 = vmatpush1.bf16.msra.mxu1 %v244_v9 }
  0x1b   :  { %145 = vmatprep.subr.bf16.mxu0 %v254_v0  ;;  %224 = vmatprep.subr.bf16.mxu1 %v254_v0 }
  0x1e   :  { %146 = vmatpush1.bf16.msra.mxu0 %v245_v10  ;;  %234 = vmatpush1.bf16.msra.mxu1 %v245_v10 }
  0x1f   :  { %159 = vmatprep.subr.bf16.mxu0 %v254_v0  ;;  %225 = vmatprep.subr.bf16.mxu1 %v254_v0 }
  0x22   :  { %160 = vmatpush2.bf16.msra.mxu0 %v246_v11  ;;  %235 = vmatpush2.bf16.msra.mxu1 %v246_v11 }
  0x23   :  { %161 = vmatprep.subr.bf16.mxu0 %v254_v0  ;;  %226 = vmatprep.subr.bf16.mxu1 %v254_v0 }
  0x26   :  { %162 = vmatpush2.bf16.msra.mxu0 %v247_v12  ;;  %236 = vmatpush2.bf16.msra.mxu1 %v247_v12 }
  0x29   :  { %164 = vmatmul.mubr.bf16.vlgmr.msra.gmra.mxu0 %v248_v13  ;;  %172 = vmatmul.mubr.bf16.vlgmr.msra.gmra.mxu1 %v251_v14 }
  0xe9   :  { %v165_v16 = vpop.f32.mrf.mxu0  ;;  %v173_v17 = vpop.f32.mrf.mxu1 }
  0xea   :  { %v166_v18 = vadd.f32 %v200_v15, %v165_v16  ;;  %v174_v19 = vadd.f32 %v200_v15, %v173_v17 }
  0xeb   :  { %v167_v20 = vpop.f32.mrf.mxu0  ;;  %v175_v21 = vpop.f32.mrf.mxu1 }
  0xec   :  { %vm180_vm1 = vcmp.gt.f32.partialorder %v166_v18, 0.0  ;;  %v184_v22 = vmul.f32 0.25, %v166_v18  ;;  %vm182_vm2 = vcmp.gt.f32.partialorder %v174_v19, 0.0  ;;  %v186_v23 = vmul.f32 0.25, %v174_v19 }
  0xed   :  { %v168_v24 = vpop.f32.mrf.mxu0  ;;  %v176_v25 = vpop.f32.mrf.mxu1 }
  0xee   :  { %v188_v26 = vsel %vm180_vm1, %v166_v18, %v184_v22  ;;  %v190_v27 = vsel %vm182_vm2, %v174_v19, %v186_v23  ;;  %v169_v28 = vadd.f32 %v200_v15, %v168_v24  ;;  %v177_v29 = vadd.f32 %v200_v15, %v176_v25 }
  0xef   :  { %192 = vst.msk [vmem:[%s341_s3] sm:$0xff] %vm124_vm0, %v188_v26  ;;  %194 = vst.msk [vmem:[%s341_s3 + $0x10] sm:$0xff] %vm124_vm0, %v190_v27  ;;  %v170_v30 = vpop.f32.mrf.mxu0  ;;  %v178_v31 = vpop.f32.mrf.mxu1 }
  0xf0   :  { %vm181_vm3 = vcmp.gt.f32.partialorder %v169_v28, 0.0  ;;  %v185_v32 = vmul.f32 0.25, %v169_v28  ;;  %vm183_vm4 = vcmp.gt.f32.partialorder %v177_v29, 0.0  ;;  %v187_v33 = vmul.f32 0.25, %v177_v29 }
  0xf2   :  { %v189_v34 = vsel %vm181_vm3, %v169_v28, %v185_v32  ;;  %v191_v35 = vsel %vm183_vm4, %v177_v29, %v187_v33 }
  0xf3   :  { %193 = vst.msk [vmem:[%s341_s3 + $0x8] sm:$0xff] %vm124_vm0, %v189_v34  ;;  %195 = vst.msk [vmem:[%s341_s3 + $0x18] sm:$0xff] %vm124_vm0, %v191_v35 }

// kernel: enet_forward.160
= control target key start
LH: loop header
LB: loop body
LE: loop exit
PB: predicated region body
PF: predicated region fallthrough
CT: control target
= control target key end

     0   :  { %vm151_vm0 = vcmask 523264   ;;  %s276_s1 = inlined_call_operand.vmem [shape: bf16[128,64], index: 1, kind: input, shape index: {}]   ;;  %s277_s0 = inlined_call_operand.vmem [shape: bf16[32,128], index: 0, kind: input, shape index: {}]   ;;  %s278_s2 = inlined_call_operand.vmem [shape: f32[1,64], index: 2, kind: input, shape index: {}]   ;;  %s279_s3 = inlined_call_operand.vmem [shape: f32[32,64], index: 3, kind: output, shape index: {}]  }
   0x1   :  { %v201_v0 = vld [vmem:[%s276_s1 + $0x38] sm:$0xff]   ;;  %v202_v1 = vld [vmem:[%s276_s1 + $0x30] sm:$0xff]   ;;  %v203_v2 = vld [vmem:[%s276_s1 + $0x28] sm:$0xff]  }
   0x2   :  { %181 = vmatprep.subr.bf16.mxu0 %v201_v0  ;;  %v204_v3 = vld [vmem:[%s276_s1 + $0x20] sm:$0xff]   ;;  %v205_v5 = vld [vmem:[%s276_s1 + $0x18] sm:$0xff]   ;;  %v206_v6 = vld [vmem:[%s276_s1 + $0x10] sm:$0xff]  }
   0x3   :  { %182 = vmatpush3.bf16.msra.mxu0 %v201_v0  ;;  %v209_v4 = vld [vmem:[%s277_s0] sm:$0xff]   ;;  %v207_v7 = vld [vmem:[%s276_s1 + $0x8] sm:$0xff]  }
   0x4   :  { %183 = vmatprep.subr.bf16.mxu0 %v202_v1  ;;  %197 = vmatprep.mubr.bf16.mxu0 %v209_v4  ;;  %v208_v8 = vld [vmem:[%s276_s1] sm:$0xff]   ;;  %v210_v9 = vld [vmem:[%s277_s0 + $0x8] sm:$0xff]  }
   0x5   :  { %v160_v10 = vld [vmem:[%s278_s2] ss:$0 sm:$0xff] }
   0x7   :  { %184 = vmatpush3.bf16.msra.mxu0 %v202_v1 }
   0x8   :  { %185 = vmatprep.subr.bf16.mxu0 %v203_v2 }
   0xb   :  { %186 = vmatpush3.bf16.msra.mxu0 %v203_v2 }
   0xc   :  { %187 = vmatprep.subr.bf16.mxu0 %v204_v3 }
   0xf   :  { %188 = vmatpush3.bf16.msra.mxu0 %v204_v3 }
  0x10   :  { %189 = vmatprep.subr.bf16.mxu0 %v205_v5 }
  0x13   :  { %190 = vmatpush3.bf16.msra.mxu0 %v205_v5 }
  0x14   :  { %191 = vmatprep.subr.bf16.mxu0 %v206_v6 }
  0x17   :  { %192 = vmatpush3.bf16.msra.mxu0 %v206_v6 }
  0x18   :  { %193 = vmatprep.subr.bf16.mxu0 %v207_v7 }
  0x1b   :  { %194 = vmatpush3.bf16.msra.mxu0 %v207_v7 }
  0x1c   :  { %195 = vmatprep.subr.bf16.mxu0 %v208_v8 }
  0x1f   :  { %196 = vmatpush3.bf16.msra.mxu0 %v208_v8 }
  0x22   :  { %198 = vmatmul.mubr.bf16.vlgmr.msra.gmra.mxu0 %v210_v9 }
  0xe2   :  { %v199_v11 = vpop.f32.mrf.mxu0 }
  0xe3   :  { %v145_v12 = vadd.f32 %v199_v11, %v160_v10 }
  0xe4   :  { %v136_v13 = vpop.f32.mrf.mxu0 }
  0xe5   :  { %154 = vst.msk [vmem:[%s279_s3 + $0x10] sm:$0xff] %vm151_vm0, %v145_v12  ;;  %v137_v14 = vadd.f32 %v160_v10, %v136_v13 }
  0xe6   :  { %v200_v15 = vpop.f32.mrf.mxu0 }
  0xe7   :  { %152 = vst.msk [vmem:[%s279_s3] sm:$0xff] %vm151_vm0, %v137_v14  ;;  %v148_v16 = vadd.f32 %v200_v15, %v160_v10 }
  0xe8   :  { %v139_v17 = vpop.f32.mrf.mxu0 }
  0xe9   :  { %155 = vst.msk [vmem:[%s279_s3 + $0x18] sm:$0xff] %vm151_vm0, %v148_v16  ;;  %v140_v18 = vadd.f32 %v160_v10, %v139_v17 }
  0xeb   :  { %153 = vst.msk [vmem:[%s279_s3 + $0x8] sm:$0xff] %vm151_vm0, %v140_v18 }

// kernel: enet_forward.161
= control target key start
LH: loop header
LB: loop body
LE: loop exit
PB: predicated region body
PF: predicated region fallthrough
CT: control target
= control target key end

     0   :  { %vm155_vm0 = vcmask 261120   ;;  %s280_s1 = inlined_call_operand.vmem [shape: bf16[128,32], index: 1, kind: input, shape index: {}]   ;;  %s281_s0 = inlined_call_operand.vmem [shape: bf16[32,128], index: 0, kind: input, shape index: {}]   ;;  %s282_s2 = inlined_call_operand.vmem [shape: f32[1,32], index: 2, kind: input, shape index: {}]   ;;  %s283_s3 = inlined_call_operand.vmem [shape: f32[32,32], index: 3, kind: output, shape index: {}]  }
   0x1   :  { %v205_v0 = vld [vmem:[%s280_s1 + $0x38] sm:$0xff]   ;;  %v206_v1 = vld [vmem:[%s280_s1 + $0x30] sm:$0xff]   ;;  %v207_v2 = vld [vmem:[%s280_s1 + $0x28] sm:$0xff]  }
   0x2   :  { %185 = vmatprep.subr.bf16.mxu0 %v205_v0  ;;  %v208_v3 = vld [vmem:[%s280_s1 + $0x20] sm:$0xff]   ;;  %v209_v5 = vld [vmem:[%s280_s1 + $0x18] sm:$0xff]   ;;  %v210_v6 = vld [vmem:[%s280_s1 + $0x10] sm:$0xff]  }
   0x3   :  { %186 = vmatpush3.bf16.msra.mxu0 %v205_v0  ;;  %v213_v4 = vld [vmem:[%s281_s0] sm:$0xff]   ;;  %v211_v7 = vld [vmem:[%s280_s1 + $0x8] sm:$0xff]  }
   0x4   :  { %187 = vmatprep.subr.bf16.mxu0 %v206_v1  ;;  %201 = vmatprep.mubr.bf16.mxu0 %v213_v4  ;;  %v212_v8 = vld [vmem:[%s280_s1] sm:$0xff]   ;;  %v214_v9 = vld [vmem:[%s281_s0 + $0x8] sm:$0xff]  }
   0x5   :  { %v164_v10 = vld [vmem:[%s282_s2] ss:$0 sm:$0xff] }
   0x7   :  { %188 = vmatpush3.bf16.msra.mxu0 %v206_v1 }
   0x8   :  { %189 = vmatprep.subr.bf16.mxu0 %v207_v2 }
   0xb   :  { %190 = vmatpush3.bf16.msra.mxu0 %v207_v2 }
   0xc   :  { %191 = vmatprep.subr.bf16.mxu0 %v208_v3 }
   0xf   :  { %192 = vmatpush3.bf16.msra.mxu0 %v208_v3 }
  0x10   :  { %193 = vmatprep.subr.bf16.mxu0 %v209_v5 }
  0x13   :  { %194 = vmatpush3.bf16.msra.mxu0 %v209_v5 }
  0x14   :  { %195 = vmatprep.subr.bf16.mxu0 %v210_v6 }
  0x17   :  { %196 = vmatpush3.bf16.msra.mxu0 %v210_v6 }
  0x18   :  { %197 = vmatprep.subr.bf16.mxu0 %v211_v7 }
  0x1b   :  { %198 = vmatpush3.bf16.msra.mxu0 %v211_v7 }
  0x1c   :  { %199 = vmatprep.subr.bf16.mxu0 %v212_v8 }
  0x1f   :  { %200 = vmatpush3.bf16.msra.mxu0 %v212_v8 }
  0x22   :  { %202 = vmatmul.mubr.bf16.vlgmr.msra.gmra.mxu0 %v214_v9 }
  0xe2   :  { %v203_v11 = vpop.f32.mrf.mxu0 }
  0xe3   :  { %v145_v12 = vadd.f32 %v203_v11, %v164_v10 }
  0xe4   :  { %v136_v13 = vpop.f32.mrf.mxu0 }
  0xe5   :  { %v153_v14 = vmax.f32 %v145_v12, 0.0  ;;  %v137_v15 = vadd.f32 %v164_v10, %v136_v13 }
  0xe6   :  { %v204_v16 = vpop.f32.mrf.mxu0 }
  0xe7   :  { %158 = vst.msk [vmem:[%s283_s3 + $0x10] sm:$0xff] %vm155_vm0, %v153_v14  ;;  %v151_v17 = vmax.f32 %v137_v15, 0.0  ;;  %v148_v18 = vadd.f32 %v204_v16, %v164_v10 }
  0xe8   :  { %v139_v19 = vpop.f32.mrf.mxu0 }
  0xe9   :  { %156 = vst.msk [vmem:[%s283_s3] sm:$0xff] %vm155_vm0, %v151_v17  ;;  %v154_v20 = vmax.f32 %v148_v18, 0.0  ;;  %v140_v21 = vadd.f32 %v164_v10, %v139_v19 }
  0xeb   :  { %159 = vst.msk [vmem:[%s283_s3 + $0x18] sm:$0xff] %vm155_vm0, %v154_v20  ;;  %v152_v22 = vmax.f32 %v140_v21, 0.0 }
  0xed   :  { %157 = vst.msk [vmem:[%s283_s3 + $0x8] sm:$0xff] %vm155_vm0, %v152_v22 }

// kernel: enet_forward.162
= control target key start
LH: loop header
LB: loop body
LE: loop exit
PB: predicated region body
PF: predicated region fallthrough
CT: control target
= control target key end

     0   :  { %s279_s1 = inlined_call_operand.vmem [shape: bf16[128,128], index: 1, kind: input, shape index: {}]   ;;  %s280_s0 = inlined_call_operand.vmem [shape: bf16[32,128], index: 0, kind: input, shape index: {}]   ;;  %s281_s2 = inlined_call_operand.vmem [shape: f32[1,128], index: 2, kind: input, shape index: {}]   ;;  %s282_s3 = inlined_call_operand.vmem [shape: f32[32,128], index: 3, kind: output, shape index: {}]  }
   0x1   :  { %v204_v0 = vld [vmem:[%s279_s1 + $0x38] sm:$0xff]   ;;  %v205_v1 = vld [vmem:[%s279_s1 + $0x30] sm:$0xff]   ;;  %v206_v2 = vld [vmem:[%s279_s1 + $0x28] sm:$0xff]  }
   0x2   :  { %184 = vmatprep.subr.bf16.mxu0 %v204_v0  ;;  %v207_v3 = vld [vmem:[%s279_s1 + $0x20] sm:$0xff]   ;;  %v208_v5 = vld [vmem:[%s279_s1 + $0x18] sm:$0xff]   ;;  %v209_v6 = vld [vmem:[%s279_s1 + $0x10] sm:$0xff]  }
   0x3   :  { %185 = vmatpush3.bf16.msra.mxu0 %v204_v0  ;;  %v212_v4 = vld [vmem:[%s280_s0] sm:$0xff]   ;;  %v210_v7 = vld [vmem:[%s279_s1 + $0x8] sm:$0xff]  }
   0x4   :  { %186 = vmatprep.subr.bf16.mxu0 %v205_v1  ;;  %200 = vmatprep.mubr.bf16.mxu0 %v212_v4  ;;  %v211_v8 = vld [vmem:[%s279_s1] sm:$0xff]   ;;  %v213_v9 = vld [vmem:[%s280_s0 + $0x8] sm:$0xff]  }
   0x5   :  { %v163_v10 = vld [vmem:[%s281_s2] ss:$0 sm:$0xff] }
   0x7   :  { %187 = vmatpush3.bf16.msra.mxu0 %v205_v1 }
   0x8   :  { %188 = vmatprep.subr.bf16.mxu0 %v206_v2 }
   0xb   :  { %189 = vmatpush3.bf16.msra.mxu0 %v206_v2 }
   0xc   :  { %190 = vmatprep.subr.bf16.mxu0 %v207_v3 }
   0xf   :  { %191 = vmatpush3.bf16.msra.mxu0 %v207_v3 }
  0x10   :  { %192 = vmatprep.subr.bf16.mxu0 %v208_v5 }
  0x13   :  { %193 = vmatpush3.bf16.msra.mxu0 %v208_v5 }
  0x14   :  { %194 = vmatprep.subr.bf16.mxu0 %v209_v6 }
  0x17   :  { %195 = vmatpush3.bf16.msra.mxu0 %v209_v6 }
  0x18   :  { %196 = vmatprep.subr.bf16.mxu0 %v210_v7 }
  0x1b   :  { %197 = vmatpush3.bf16.msra.mxu0 %v210_v7 }
  0x1c   :  { %198 = vmatprep.subr.bf16.mxu0 %v211_v8 }
  0x1f   :  { %199 = vmatpush3.bf16.msra.mxu0 %v211_v8 }
  0x22   :  { %201 = vmatmul.mubr.bf16.vlgmr.msra.gmra.mxu0 %v213_v9 }
  0xe2   :  { %v202_v11 = vpop.f32.mrf.mxu0 }
  0xe3   :  { %v145_v12 = vadd.f32 %v202_v11, %v163_v10 }
  0xe4   :  { %v136_v13 = vpop.f32.mrf.mxu0 }
  0xe5   :  { %v153_v14 = vmax.f32 %v145_v12, 0.0  ;;  %v137_v15 = vadd.f32 %v163_v10, %v136_v13 }
  0xe6   :  { %v203_v16 = vpop.f32.mrf.mxu0 }
  0xe7   :  { %157 = vst [vmem:[%s282_s3 + $0x10] sm:$0xff] %v153_v14  ;;  %v151_v17 = vmax.f32 %v137_v15, 0.0  ;;  %v148_v18 = vadd.f32 %v203_v16, %v163_v10 }
  0xe8   :  { %v139_v19 = vpop.f32.mrf.mxu0 }
  0xe9   :  { %155 = vst [vmem:[%s282_s3] sm:$0xff] %v151_v17  ;;  %v154_v20 = vmax.f32 %v148_v18, 0.0  ;;  %v140_v21 = vadd.f32 %v163_v10, %v139_v19 }
  0xeb   :  { %158 = vst [vmem:[%s282_s3 + $0x18] sm:$0xff] %v154_v20  ;;  %v152_v22 = vmax.f32 %v140_v21, 0.0 }
  0xed   :  { %156 = vst [vmem:[%s282_s3 + $0x8] sm:$0xff] %v152_v22 }

// kernel: enet_forward.165
= control target key start
LH: loop header
LB: loop body
LE: loop exit
PB: predicated region body
PF: predicated region fallthrough
CT: control target
= control target key end

     0   :  { %v426_v0 = vmov 0   ;;  %vm182_vm0 = vcmask 130048   ;;  %s615_s1 = inlined_call_operand.vmem [shape: bf16[144,16], index: 1, kind: input, shape index: {}]   ;;  %s616_s0 = inlined_call_operand.vmem [shape: bf16[128,144], index: 0, kind: input, shape index: {}]   ;;  %s617_s2 = inlined_call_operand.vmem [shape: f32[1,16], index: 2, kind: input, shape index: {}]   ;;  %s618_s3 = inlined_call_operand.vmem [shape: f32[128,16], index: 3, kind: output, shape index: {}]  }
   0x1   :  { %207 = vmatprep.subr.bf16.mxu0 %v426_v0  ;;  %374 = vmatprep.subr.bf16.mxu1 %v426_v0  ;;  %v393_v1 = vld [vmem:[%s615_s1 + $0x38] sm:$0xff]   ;;  %v394_v2 = vld [vmem:[%s615_s1 + $0x30] sm:$0xff]   ;;  %v395_v3 = vld [vmem:[%s615_s1 + $0x28] sm:$0xff]  }
   0x2   :  { %208 = vmatpush1.bf16.msra.mxu0 %v393_v1  ;;  %383 = vmatpush1.bf16.msra.mxu1 %v393_v1  ;;  %v396_v4 = vld [vmem:[%s615_s1 + $0x20] sm:$0xff]   ;;  %v397_v7 = vld [vmem:[%s615_s1 + $0x18] sm:$0xff]   ;;  %v398_v8 = vld [vmem:[%s615_s1 + $0x10] sm:$0xff]  }
   0x3   :  { %209 = vmatprep.subr.bf16.mxu0 %v426_v0  ;;  %375 = vmatprep.subr.bf16.mxu1 %v426_v0  ;;  %v404_v5 = vld [vmem:[%s616_s0 + $0x4] ss:$8 sps:$4 sm:$0xff]   ;;  %v402_v12 = vld [vmem:[%s616_s0] ss:$8 sps:$4 sm:$0xff]   ;;  %v408_v14 = vld [vmem:[%s616_s0 + $0x14] ss:$8 sps:$4 sm:$0xff]  }
   0x4   :  { %v407_v6 = vld [vmem:[%s616_s0 + $0x44] ss:$8 sps:$4 sm:$0xff]   ;;  %366 = vmatprep.mubr.msk.bf16.mxu0 %vm182_vm0, %v404_v5  ;;  %v405_v13 = vld [vmem:[%s616_s0 + $0x40] ss:$8 sps:$4 sm:$0xff]   ;;  %v410_v15 = vld [vmem:[%s616_s0 + $0x54] ss:$8 sps:$4 sm:$0xff]  }
   0x5   :  { %370 = vmatprep.mubr.msk.bf16.mxu1 %vm182_vm0, %v407_v6  ;;  %v399_v9 = vld [vmem:[%s615_s1 + $0x8] sm:$0xff]   ;;  %v400_v10 = vld [vmem:[%s615_s1] sm:$0xff]   ;;  %v412_v16 = vld [vmem:[%s616_s0 + $0x10] ss:$8 sps:$4 sm:$0xff]  }
   0x6   :  { %210 = vmatpush1.bf16.msra.mxu0 %v394_v2  ;;  %384 = vmatpush1.bf16.msra.mxu1 %v394_v2  ;;  %v401_v11 = vld [vmem:[%s615_s1 + $0x40] sm:$0xff]   ;;  %v413_v17 = vld [vmem:[%s616_s0 + $0x50] ss:$8 sps:$4 sm:$0xff]   ;;  %v420_v22 = vld [vmem:[%s616_s0 + $0x34] ss:$8 sps:$4 sm:$0xff]  }
   0x7   :  { %211 = vmatprep.subr.bf16.mxu0 %v426_v0  ;;  %376 = vmatprep.subr.bf16.mxu1 %v426_v0  ;;  %v414_v18 = vld [vmem:[%s616_s0 + $0x24] ss:$8 sps:$4 sm:$0xff]   ;;  %v418_v20 = vld [vmem:[%s616_s0 + $0x20] ss:$8 sps:$4 sm:$0xff]   ;;  %v422_v23 = vld [vmem:[%s616_s0 + $0x74] ss:$8 sps:$4 sm:$0xff]  }
   0x8   :  { %v416_v19 = vld [vmem:[%s616_s0 + $0x64] ss:$8 sps:$4 sm:$0xff]   ;;  %v419_v21 = vld [vmem:[%s616_s0 + $0x60] ss:$8 sps:$4 sm:$0xff]   ;;  %v424_v24 = vld [vmem:[%s616_s0 + $0x30] ss:$8 sps:$4 sm:$0xff]  }
   0x9   :  { %v425_v25 = vld [vmem:[%s616_s0 + $0x70] ss:$8 sps:$4 sm:$0xff]   ;;  %v533_v26 = vld [vmem:[%s617_s2] ss:$0 sm:$0xff] }
   0xa   :  { %212 = vmatpush1.bf16.msra.mxu0 %v395_v3  ;;  %385 = vmatpush1.bf16.msra.mxu1 %v395_v3 }
   0xb   :  { %213 = vmatprep.subr.bf16.mxu0 %v426_v0  ;;  %377 = vmatprep.subr.bf16.mxu1 %v426_v0 }
   0xe   :  { %214 = vmatpush1.bf16.msra.mxu0 %v396_v4  ;;  %386 = vmatpush1.bf16.msra.mxu1 %v396_v4 }
   0xf   :  { %215 = vmatprep.subr.bf16.mxu0 %v426_v0  ;;  %378 = vmatprep.subr.bf16.mxu1 %v426_v0 }
  0x12   :  { %216 = vmatpush1.bf16.msra.mxu0 %v397_v7  ;;  %387 = vmatpush1.bf16.msra.mxu1 %v397_v7 }
  0x13   :  { %217 = vmatprep.subr.bf16.mxu0 %v426_v0  ;;  %379 = vmatprep.subr.bf16.mxu1 %v426_v0 }
  0x16   :  { %218 = vmatpush1.bf16.msra.mxu0 %v398_v8  ;;  %388 = vmatpush1.bf16.msra.mxu1 %v398_v8 }
  0x17   :  { %219 = vmatprep.subr.bf16.mxu0 %v426_v0  ;;  %380 = vmatprep.subr.bf16.mxu1 %v426_v0 }
  0x1a   :  { %220 = vmatpush1.bf16.msra.mxu0 %v399_v9  ;;  %389 = vmatpush1.bf16.msra.mxu1 %v399_v9 }
  0x1b   :  { %221 = vmatprep.subr.bf16.mxu0 %v426_v0  ;;  %381 = vmatprep.subr.bf16.mxu1 %v426_v0 }
  0x1e   :  { %222 = vmatpush1.bf16.msra.mxu0 %v400_v10  ;;  %390 = vmatpush1.bf16.msra.mxu1 %v400_v10 }
  0x1f   :  { %237 = vmatprep.subr.bf16.mxu0 %v426_v0  ;;  %382 = vmatprep.subr.bf16.mxu1 %v426_v0 }
  0x22   :  { %238 = vmatpush2.bf16.msra.mxu0 %v401_v11  ;;  %391 = vmatpush2.bf16.msra.mxu1 %v401_v11 }
  0x25   :  { %240 = vmatmul.mubr.bf16.vlgmr.msra.gmra.mxu0 %v402_v12  ;;  %272 = vmatmul.mubr.bf16.vlgmr.msra.gmra.mxu1 %v405_v13 }
  0x26   :  { %367 = vmatprep.mubr.msk.bf16.mxu0 %vm182_vm0, %v408_v14  ;;  %371 = vmatprep.mubr.msk.bf16.mxu1 %vm182_vm0, %v410_v15 }
  0x2d   :  { %248 = vmatmul.mubr.bf16.gmra.mxu0 %v412_v16  ;;  %280 = vmatmul.mubr.bf16.gmra.mxu1 %v413_v17 }
  0x2e   :  { %368 = vmatprep.mubr.msk.bf16.mxu0 %vm182_vm0, %v414_v18  ;;  %372 = vmatprep.mubr.msk.bf16.mxu1 %vm182_vm0, %v416_v19 }
  0x35   :  { %256 = vmatmul.mubr.bf16.gmra.mxu0 %v418_v20  ;;  %288 = vmatmul.mubr.bf16.gmra.mxu1 %v419_v21 }
  0x36   :  { %369 = vmatprep.mubr.msk.bf16.mxu0 %vm182_vm0, %v420_v22  ;;  %373 = vmatprep.mubr.msk.bf16.mxu1 %vm182_vm0, %v422_v23 }
  0x3d   :  { %264 = vmatmul.mubr.bf16.gmra.mxu0 %v424_v24  ;;  %296 = vmatmul.mubr.bf16.gmra.mxu1 %v425_v25 }
  0xe5   :  { %v241_v27 = vpop.f32.mrf.mxu0  ;;  %v273_v28 = vpop.f32.mrf.mxu1 }
  0xe6   :  { %v242_v29 = vadd.f32 %v533_v26, %v241_v27  ;;  %v274_v30 = vadd.f32 %v533_v26, %v273_v28 }
  0xe7   :  { %v243_v31 = vpop.f32.mrf.mxu0  ;;  %v275_v32 = vpop.f32.mrf.mxu1 }
  0xe8   :  { %v304_v33 = vmax.f32 %v242_v29, 0.0  ;;  %v312_v34 = vmax.f32 %v274_v30, 0.0 }
  0xe9   :  { %v244_v35 = vpop.f32.mrf.mxu0  ;;  %v276_v36 = vpop.f32.mrf.mxu1 }
  0xea   :  { %320 = vst.msk [vmem:[%s618_s3] sm:$0xff] %vm182_vm0, %v304_v33  ;;  %328 = vst.msk [vmem:[%s618_s3 + $0x40] sm:$0xff] %vm182_vm0, %v312_v34  ;;  %v245_v37 = vadd.f32 %v533_v26, %v244_v35  ;;  %v277_v38 = vadd.f32 %v533_v26, %v276_v36 }
  0xeb   :  { %v246_v39 = vpop.f32.mrf.mxu0  ;;  %v278_v40 = vpop.f32.mrf.mxu1 }
  0xec   :  { %v305_v41 = vmax.f32 %v245_v37, 0.0  ;;  %v313_v42 = vmax.f32 %v277_v38, 0.0 }
  0xed   :  { %v249_v43 = vpop.f32.mrf.mxu0  ;;  %v281_v44 = vpop.f32.mrf.mxu1 }
  0xee   :  { %321 = vst.msk [vmem:[%s618_s3 + $0x8] sm:$0xff] %vm182_vm0, %v305_v41  ;;  %329 = vst.msk [vmem:[%s618_s3 + $0x48] sm:$0xff] %vm182_vm0, %v313_v42  ;;  %v250_v45 = vadd.f32 %v533_v26, %v249_v43  ;;  %v282_v46 = vadd.f32 %v533_v26, %v281_v44 }
  0xef   :  { %v251_v47 = vpop.f32.mrf.mxu0  ;;  %v283_v48 = vpop.f32.mrf.mxu1 }
  0xf0   :  { %v306_v49 = vmax.f32 %v250_v45, 0.0  ;;  %v314_v50 = vmax.f32 %v282_v46, 0.0 }
  0xf1   :  { %v252_v51 = vpop.f32.mrf.mxu0  ;;  %v284_v52 = vpop.f32.mrf.mxu1 }
  0xf2   :  { %322 = vst.msk [vmem:[%s618_s3 + $0x10] sm:$0xff] %vm182_vm0, %v306_v49  ;;  %330 = vst.msk [vmem:[%s618_s3 + $0x50] sm:$0xff] %vm182_vm0, %v314_v50  ;;  %v253_v53 = vadd.f32 %v533_v26, %v252_v51  ;;  %v285_v54 = vadd.f32 %v533_v26, %v284_v52 }
  0xf3   :  { %v254_v55 = vpop.f32.mrf.mxu0  ;;  %v286_v56 = vpop.f32.mrf.mxu1 }
  0xf4   :  { %v307_v57 = vmax.f32 %v253_v53, 0.0  ;;  %v315_v58 = vmax.f32 %v285_v54, 0.0 }
  0xf5   :  { %v257_v59 = vpop.f32.mrf.mxu0  ;;  %v289_v60 = vpop.f32.mrf.mxu1 }
  0xf6   :  { %323 = vst.msk [vmem:[%s618_s3 + $0x18] sm:$0xff] %vm182_vm0, %v307_v57  ;;  %331 = vst.msk [vmem:[%s618_s3 + $0x58] sm:$0xff] %vm182_vm0, %v315_v58  ;;  %v258_v61 = vadd.f32 %v533_v26, %v257_v59  ;;  %v290_v62 = vadd.f32 %v533_v26, %v289_v60 }
  0xf7   :  { %v259_v63 = vpop.f32.mrf.mxu0  ;;  %v291_v0 = vpop.f32.mrf.mxu1 }
  0xf8   :  { %v308_v1 = vmax.f32 %v258_v61, 0.0  ;;  %v316_v2 = vmax.f32 %v290_v62, 0.0 }
  0xf9   :  { %v260_v3 = vpop.f32.mrf.mxu0  ;;  %v292_v4 = vpop.f32.mrf.mxu1 }
  0xfa   :  { %324 = vst.msk [vmem:[%s618_s3 + $0x20] sm:$0xff] %vm182_vm0, %v308_v1  ;;  %332 = vst.msk [vmem:[%s618_s3 + $0x60] sm:$0xff] %vm182_vm0, %v316_v2  ;;  %v261_v5 = vadd.f32 %v533_v26, %v260_v3  ;;  %v293_v6 = vadd.f32 %v533_v26, %v292_v4 }
  0xfb   :  { %v262_v7 = vpop.f32.mrf.mxu0  ;;  %v294_v8 = vpop.f32.mrf.mxu1 }
  0xfc   :  { %v309_v9 = vmax.f32 %v261_v5, 0.0  ;;  %v317_v10 = vmax.f32 %v293_v6, 0.0 }
  0xfd   :  { %v265_v11 = vpop.f32.mrf.mxu0  ;;  %v297_v12 = vpop.f32.mrf.mxu1 }
  0xfe   :  { %325 = vst.msk [vmem:[%s618_s3 + $0x28] sm:$0xff] %vm182_vm0, %v309_v9  ;;  %333 = vst.msk [vmem:[%s618_s3 + $0x68] sm:$0xff] %vm182_vm0, %v317_v10  ;;  %v266_v13 = vadd.f32 %v533_v26, %v265_v11  ;;  %v298_v14 = vadd.f32 %v533_v26, %v297_v12 }
  0xff   :  { %v267_v15 = vpop.f32.mrf.mxu0  ;;  %v299_v16 = vpop.f32.mrf.mxu1 }
 0x100   :  { %v310_v17 = vmax.f32 %v266_v13, 0.0  ;;  %v318_v18 = vmax.f32 %v298_v14, 0.0 }
 0x101   :  { %v268_v19 = vpop.f32.mrf.mxu0  ;;  %v300_v20 = vpop.f32.mrf.mxu1 }
 0x102   :  { %326 = vst.msk [vmem:[%s618_s3 + $0x30] sm:$0xff] %vm182_vm0, %v310_v17  ;;  %334 = vst.msk [vmem:[%s618_s3 + $0x70] sm:$0xff] %vm182_vm0, %v318_v18  ;;  %v269_v21 = vadd.f32 %v533_v26, %v268_v19  ;;  %v301_v22 = vadd.f32 %v533_v26, %v300_v20 }
 0x103   :  { %v270_v23 = vpop.f32.mrf.mxu0  ;;  %v302_v24 = vpop.f32.mrf.mxu1 }
 0x104   :  { %v311_v25 = vmax.f32 %v269_v21, 0.0  ;;  %v319_v27 = vmax.f32 %v301_v22, 0.0 }
 0x106   :  { %327 = vst.msk [vmem:[%s618_s3 + $0x38] sm:$0xff] %vm182_vm0, %v311_v25  ;;  %335 = vst.msk [vmem:[%s618_s3 + $0x78] sm:$0xff] %vm182_vm0, %v319_v27 }

// kernel: enet_forward.164
= control target key start
LH: loop header
LB: loop body
LE: loop exit
PB: predicated region body
PF: predicated region fallthrough
CT: control target
= control target key end

     0   :  { %vm110_vm0 = vcmask 523264   ;;  %vm248_vm1 = vcmask 130048   ;;  %s477_s1 = inlined_call_operand.vmem [shape: bf16[64,16], index: 1, kind: input, shape index: {}]   ;;  %s478_s0 = inlined_call_operand.vmem [shape: bf16[128,64], index: 0, kind: input, shape index: {}]   ;;  %s479_s2 = inlined_call_operand.vmem [shape: f32[1,16], index: 2, kind: input, shape index: {}]   ;;  %s480_s3 = inlined_call_operand.vmem [shape: f32[128,16], index: 3, kind: output, shape index: {}]  }
   0x1   :  { %v334_v0 = vld [vmem:[%s477_s1 + $0x18] sm:$0xff]   ;;  %v335_v1 = vld [vmem:[%s477_s1 + $0x10] sm:$0xff]   ;;  %v336_v2 = vld [vmem:[%s477_s1 + $0x8] sm:$0xff]  }
   0x2   :  { %302 = vmatprep.subr.bf16.mxu0 %v334_v0  ;;  %326 = vmatprep.subr.bf16.mxu1 %v334_v0  ;;  %v338_v3 = vld [vmem:[%s478_s0] sm:$0xff]   ;;  %v340_v6 = vld [vmem:[%s478_s0 + $0x8] sm:$0xff]   ;;  %v342_v8 = vld [vmem:[%s478_s0 + $0x10] sm:$0xff]  }
   0x3   :  { %303 = vmatpush3.bf16.msra.mxu0 %v334_v0  ;;  %330 = vmatpush3.bf16.msra.mxu1 %v334_v0  ;;  %v339_v4 = vld [vmem:[%s478_s0 + $0x20] sm:$0xff]   ;;  %v341_v7 = vld [vmem:[%s478_s0 + $0x28] sm:$0xff]   ;;  %v343_v9 = vld [vmem:[%s478_s0 + $0x30] sm:$0xff]  }
   0x4   :  { %304 = vmatprep.subr.bf16.mxu0 %v335_v1  ;;  %327 = vmatprep.subr.bf16.mxu1 %v335_v1  ;;  %v337_v5 = vld [vmem:[%s477_s1] sm:$0xff]   ;;  %v344_v10 = vld [vmem:[%s478_s0 + $0x18] sm:$0xff]  }
   0x5   :  { %310 = vmatprep.mubr.msk.bf16.mxu0 %vm110_vm0, %v338_v3  ;;  %318 = vmatprep.mubr.msk.bf16.mxu1 %vm110_vm0, %v339_v4  ;;  %v345_v11 = vld [vmem:[%s478_s0 + $0x38] sm:$0xff]   ;;  %v269_v12 = vld [vmem:[%s479_s2] ss:$0 sm:$0xff] }
   0x7   :  { %305 = vmatpush3.bf16.msra.mxu0 %v335_v1  ;;  %331 = vmatpush3.bf16.msra.mxu1 %v335_v1 }
   0x8   :  { %306 = vmatprep.subr.bf16.mxu0 %v336_v2  ;;  %328 = vmatprep.subr.bf16.mxu1 %v336_v2 }
   0xb   :  { %307 = vmatpush3.bf16.msra.mxu0 %v336_v2  ;;  %332 = vmatpush3.bf16.msra.mxu1 %v336_v2 }
   0xc   :  { %308 = vmatprep.subr.bf16.mxu0 %v337_v5  ;;  %329 = vmatprep.subr.bf16.mxu1 %v337_v5 }
   0xf   :  { %309 = vmatpush3.bf16.msra.mxu0 %v337_v5  ;;  %333 = vmatpush3.bf16.msra.mxu1 %v337_v5 }
  0x12   :  { %311 = vmatmul.mubr.msk.bf16.vlgmr.msra.gmra.mxu0 %vm110_vm0, %v340_v6  ;;  %319 = vmatmul.mubr.msk.bf16.vlgmr.msra.gmra.mxu1 %vm110_vm0, %v341_v7 }
  0x13   :  { %314 = vmatprep.mubr.msk.bf16.mxu0 %vm110_vm0, %v342_v8  ;;  %322 = vmatprep.mubr.msk.bf16.mxu1 %vm110_vm0, %v343_v9 }
  0x1a   :  { %315 = vmatmul.mubr.msk.bf16.gmra.mxu0 %vm110_vm0, %v344_v10  ;;  %323 = vmatmul.mubr.msk.bf16.gmra.mxu1 %vm110_vm0, %v345_v11 }
  0xd2   :  { %v312_v13 = vpop.f32.mrf.mxu0  ;;  %v320_v14 = vpop.f32.mrf.mxu1 }
  0xd3   :  { %v178_v15 = vadd.f32 %v312_v13, %v269_v12  ;;  %v210_v16 = vadd.f32 %v320_v14, %v269_v12 }
  0xd4   :  { %v169_v17 = vpop.f32.mrf.mxu0  ;;  %v201_v18 = vpop.f32.mrf.mxu1 }
  0xd5   :  { %v234_v19 = vmax.f32 %v178_v15, 0.0  ;;  %v242_v20 = vmax.f32 %v210_v16, 0.0  ;;  %v170_v21 = vadd.f32 %v269_v12, %v169_v17  ;;  %v202_v22 = vadd.f32 %v269_v12, %v201_v18 }
  0xd6   :  { %v313_v23 = vpop.f32.mrf.mxu0  ;;  %v321_v24 = vpop.f32.mrf.mxu1 }
  0xd7   :  { %251 = vst.msk [vmem:[%s480_s3 + $0x10] sm:$0xff] %vm248_vm1, %v234_v19  ;;  %259 = vst.msk [vmem:[%s480_s3 + $0x50] sm:$0xff] %vm248_vm1, %v242_v20  ;;  %v232_v25 = vmax.f32 %v170_v21, 0.0  ;;  %v240_v26 = vmax.f32 %v202_v22, 0.0  ;;  %v181_v27 = vadd.f32 %v313_v23, %v269_v12  ;;  %v213_v28 = vadd.f32 %v321_v24, %v269_v12 }
  0xd8   :  { %v172_v29 = vpop.f32.mrf.mxu0  ;;  %v204_v30 = vpop.f32.mrf.mxu1 }
  0xd9   :  { %249 = vst.msk [vmem:[%s480_s3] sm:$0xff] %vm248_vm1, %v232_v25  ;;  %257 = vst.msk [vmem:[%s480_s3 + $0x40] sm:$0xff] %vm248_vm1, %v240_v26  ;;  %v235_v31 = vmax.f32 %v181_v27, 0.0  ;;  %v243_v32 = vmax.f32 %v213_v28, 0.0  ;;  %v173_v33 = vadd.f32 %v269_v12, %v172_v29  ;;  %v205_v34 = vadd.f32 %v269_v12, %v204_v30 }
  0xda   :  { %v316_v35 = vpop.f32.mrf.mxu0  ;;  %v324_v36 = vpop.f32.mrf.mxu1 }
  0xdb   :  { %252 = vst.msk [vmem:[%s480_s3 + $0x18] sm:$0xff] %vm248_vm1, %v235_v31  ;;  %260 = vst.msk [vmem:[%s480_s3 + $0x58] sm:$0xff] %vm248_vm1, %v243_v32  ;;  %v233_v37 = vmax.f32 %v173_v33, 0.0  ;;  %v241_v38 = vmax.f32 %v205_v34, 0.0  ;;  %v194_v39 = vadd.f32 %v316_v35, %v269_v12  ;;  %v226_v40 = vadd.f32 %v324_v36, %v269_v12 }
  0xdc   :  { %v185_v41 = vpop.f32.mrf.mxu0  ;;  %v217_v42 = vpop.f32.mrf.mxu1 }
  0xdd   :  { %250 = vst.msk [vmem:[%s480_s3 + $0x8] sm:$0xff] %vm248_vm1, %v233_v37  ;;  %258 = vst.msk [vmem:[%s480_s3 + $0x48] sm:$0xff] %vm248_vm1, %v241_v38  ;;  %v238_v43 = vmax.f32 %v194_v39, 0.0  ;;  %v246_v44 = vmax.f32 %v226_v40, 0.0  ;;  %v186_v45 = vadd.f32 %v269_v12, %v185_v41  ;;  %v218_v46 = vadd.f32 %v269_v12, %v217_v42 }
  0xde   :  { %v317_v47 = vpop.f32.mrf.mxu0  ;;  %v325_v48 = vpop.f32.mrf.mxu1 }
  0xdf   :  { %255 = vst.msk [vmem:[%s480_s3 + $0x30] sm:$0xff] %vm248_vm1, %v238_v43  ;;  %263 = vst.msk [vmem:[%s480_s3 + $0x70] sm:$0xff] %vm248_vm1, %v246_v44  ;;  %v236_v49 = vmax.f32 %v186_v45, 0.0  ;;  %v244_v50 = vmax.f32 %v218_v46, 0.0  ;;  %v197_v51 = vadd.f32 %v317_v47, %v269_v12  ;;  %v229_v52 = vadd.f32 %v325_v48, %v269_v12 }
  0xe0   :  { %v188_v53 = vpop.f32.mrf.mxu0  ;;  %v220_v54 = vpop.f32.mrf.mxu1 }
  0xe1   :  { %253 = vst.msk [vmem:[%s480_s3 + $0x20] sm:$0xff] %vm248_vm1, %v236_v49  ;;  %261 = vst.msk [vmem:[%s480_s3 + $0x60] sm:$0xff] %vm248_vm1, %v244_v50  ;;  %v239_v55 = vmax.f32 %v197_v51, 0.0  ;;  %v247_v56 = vmax.f32 %v229_v52, 0.0  ;;  %v189_v57 = vadd.f32 %v269_v12, %v188_v53  ;;  %v221_v58 = vadd.f32 %v269_v12, %v220_v54 }
  0xe3   :  { %256 = vst.msk [vmem:[%s480_s3 + $0x38] sm:$0xff] %vm248_vm1, %v239_v55  ;;  %264 = vst.msk [vmem:[%s480_s3 + $0x78] sm:$0xff] %vm248_vm1, %v247_v56  ;;  %v237_v59 = vmax.f32 %v189_v57, 0.0  ;;  %v245_v60 = vmax.f32 %v221_v58, 0.0 }
  0xe5   :  { %254 = vst.msk [vmem:[%s480_s3 + $0x28] sm:$0xff] %vm248_vm1, %v237_v59  ;;  %262 = vst.msk [vmem:[%s480_s3 + $0x68] sm:$0xff] %vm248_vm1, %v245_v60 }

// kernel: enet_forward.163
= control target key start
LH: loop header
LB: loop body
LE: loop exit
PB: predicated region body
PF: predicated region fallthrough
CT: control target
= control target key end

     0   :  { %vm97_vm0 = vcmask 261120   ;;  %vm283_vm1 = vcmask 523264   ;;  %s563_s1 = inlined_call_operand.vmem [shape: bf16[32,64], index: 1, kind: input, shape index: {}]   ;;  %s564_s0 = inlined_call_operand.vmem [shape: bf16[128,32], index: 0, kind: input, shape index: {}]   ;;  %s565_s2 = inlined_call_operand.vmem [shape: f32[1,64], index: 2, kind: input, shape index: {}]   ;;  %s566_s3 = inlined_call_operand.vmem [shape: f32[128,64], index: 3, kind: input, shape index: {}]   ;;  %s567_s4 = inlined_call_operand.vmem [shape: f32[128,64], index: 4, kind: output, shape index: {}]  }
   0x1   :  { %v357_v0 = vld [vmem:[%s563_s1 + $0x8] sm:$0xff]   ;;  %v358_v1 = vld [vmem:[%s563_s1] sm:$0xff]   ;;  %v363_v6 = vld [vmem:[%s564_s0 + $0x10] sm:$0xff]  }
   0x2   :  { %333 = vmatprep.subr.bf16.mxu0 %v357_v0  ;;  %353 = vmatprep.subr.bf16.mxu1 %v357_v0  ;;  %v359_v2 = vld [vmem:[%s564_s0] sm:$0xff]   ;;  %v361_v4 = vld [vmem:[%s564_s0 + $0x8] sm:$0xff]   ;;  %v364_v7 = vld [vmem:[%s564_s0 + $0x30] sm:$0xff]  }
   0x3   :  { %334 = vmatpush3.bf16.msra.mxu0 %v357_v0  ;;  %355 = vmatpush3.bf16.msra.mxu1 %v357_v0  ;;  %v360_v3 = vld [vmem:[%s564_s0 + $0x20] sm:$0xff]   ;;  %v362_v5 = vld [vmem:[%s564_s0 + $0x28] sm:$0xff]   ;;  %v365_v8 = vld [vmem:[%s564_s0 + $0x18] sm:$0xff]  }
   0x4   :  { %335 = vmatprep.subr.bf16.mxu0 %v358_v1  ;;  %354 = vmatprep.subr.bf16.mxu1 %v358_v1  ;;  %v366_v9 = vld [vmem:[%s564_s0 + $0x38] sm:$0xff]   ;;  %v433_v10 = vld [vmem:[%s565_s2] ss:$0 sm:$0xff]  ;;  %v237_v15 = vld [vmem:[%s566_s3 + $0x10] sm:$0xff] }
   0x5   :  { %337 = vmatprep.mubr.msk.bf16.mxu0 %vm97_vm0, %v359_v2  ;;  %345 = vmatprep.mubr.msk.bf16.mxu1 %vm97_vm0, %v360_v3  ;;  %v245_v16 = vld [vmem:[%s566_s3 + $0x50] sm:$0xff]  ;;  %v235_v23 = vld [vmem:[%s566_s3] sm:$0xff]  ;;  %v238_v39 = vld [vmem:[%s566_s3 + $0x18] sm:$0xff] }
   0x6   :  { %v243_v24 = vld [vmem:[%s566_s3 + $0x40] sm:$0xff]  ;;  %v246_v40 = vld [vmem:[%s566_s3 + $0x58] sm:$0xff]  ;;  %v236_v49 = vld [vmem:[%s566_s3 + $0x8] sm:$0xff] }
   0x7   :  { %336 = vmatpush3.bf16.msra.mxu0 %v358_v1  ;;  %356 = vmatpush3.bf16.msra.mxu1 %v358_v1  ;;  %v244_v50 = vld [vmem:[%s566_s3 + $0x48] sm:$0xff]  ;;  %v241_v57 = vld [vmem:[%s566_s3 + $0x30] sm:$0xff] }
   0x8   :  { %v249_v58 = vld [vmem:[%s566_s3 + $0x70] sm:$0xff] }
   0xa   :  { %338 = vmatmul.mubr.msk.bf16.vlgmr.msra.gmra.mxu0 %vm97_vm0, %v361_v4  ;;  %346 = vmatmul.mubr.msk.bf16.vlgmr.msra.gmra.mxu1 %vm97_vm0, %v362_v5  ;;  %v239_v5 = vld [vmem:[%s566_s3 + $0x20] sm:$0xff] }
   0xb   :  { %341 = vmatprep.mubr.msk.bf16.mxu0 %vm97_vm0, %v363_v6  ;;  %349 = vmatprep.mubr.msk.bf16.mxu1 %vm97_vm0, %v364_v7  ;;  %v247_v6 = vld [vmem:[%s566_s3 + $0x60] sm:$0xff] }
  0x12   :  { %342 = vmatmul.mubr.msk.bf16.gmra.mxu0 %vm97_vm0, %v365_v8  ;;  %350 = vmatmul.mubr.msk.bf16.gmra.mxu1 %vm97_vm0, %v366_v9 }
  0xca   :  { %v339_v11 = vpop.f32.mrf.mxu0  ;;  %v347_v12 = vpop.f32.mrf.mxu1 }
  0xcb   :  { %v165_v13 = vadd.f32 %v339_v11, %v433_v10  ;;  %v197_v14 = vadd.f32 %v347_v12, %v433_v10 }
  0xcc   :  { %v156_v17 = vpop.f32.mrf.mxu0  ;;  %v188_v18 = vpop.f32.mrf.mxu1 }
  0xcd   :  { %v221_v19 = vmax.f32 %v165_v13, 0.0  ;;  %v229_v20 = vmax.f32 %v197_v14, 0.0  ;;  %v157_v21 = vadd.f32 %v433_v10, %v156_v17  ;;  %v189_v22 = vadd.f32 %v433_v10, %v188_v18 }
  0xce   :  { %v340_v25 = vpop.f32.mrf.mxu0  ;;  %v348_v26 = vpop.f32.mrf.mxu1 }
  0xcf   :  { %v253_v27 = vadd.f32 %v237_v15, %v221_v19  ;;  %v261_v28 = vadd.f32 %v245_v16, %v229_v20  ;;  %v219_v29 = vmax.f32 %v157_v21, 0.0  ;;  %v227_v30 = vmax.f32 %v189_v22, 0.0 }
  0xd0   :  { %v168_v31 = vadd.f32 %v340_v25, %v433_v10  ;;  %v200_v32 = vadd.f32 %v348_v26, %v433_v10  ;;  %v159_v33 = vpop.f32.mrf.mxu0  ;;  %v191_v34 = vpop.f32.mrf.mxu1  ;;  %v250_v25 = vld [vmem:[%s566_s3 + $0x78] sm:$0xff] }
  0xd1   :  { %v269_v35 = vmax.f32 %v253_v27, 0.0  ;;  %v277_v36 = vmax.f32 %v261_v28, 0.0  ;;  %v251_v37 = vadd.f32 %v235_v23, %v219_v29  ;;  %v259_v38 = vadd.f32 %v243_v24, %v227_v30  ;;  %v242_v24 = vld [vmem:[%s566_s3 + $0x38] sm:$0xff] }
  0xd2   :  { %v222_v41 = vmax.f32 %v168_v31, 0.0  ;;  %v230_v42 = vmax.f32 %v200_v32, 0.0  ;;  %v160_v43 = vadd.f32 %v433_v10, %v159_v33  ;;  %v192_v44 = vadd.f32 %v433_v10, %v191_v34  ;;  %v343_v45 = vpop.f32.mrf.mxu0  ;;  %v351_v46 = vpop.f32.mrf.mxu1  ;;  %v240_v32 = vld [vmem:[%s566_s3 + $0x28] sm:$0xff] }
  0xd3   :  { %286 = vst.msk [vmem:[%s567_s4 + $0x10] sm:$0xff] %vm283_vm1, %v269_v35  ;;  %294 = vst.msk [vmem:[%s567_s4 + $0x50] sm:$0xff] %vm283_vm1, %v277_v36  ;;  %v267_v47 = vmax.f32 %v251_v37, 0.0  ;;  %v275_v48 = vmax.f32 %v259_v38, 0.0  ;;  %v181_v51 = vadd.f32 %v343_v45, %v433_v10  ;;  %v213_v52 = vadd.f32 %v351_v46, %v433_v10 }
  0xd4   :  { %v254_v53 = vadd.f32 %v238_v39, %v222_v41  ;;  %v262_v54 = vadd.f32 %v246_v40, %v230_v42  ;;  %v220_v55 = vmax.f32 %v160_v43, 0.0  ;;  %v228_v56 = vmax.f32 %v192_v44, 0.0  ;;  %v172_v59 = vpop.f32.mrf.mxu0  ;;  %v204_v60 = vpop.f32.mrf.mxu1 }
  0xd5   :  { %284 = vst.msk [vmem:[%s567_s4] sm:$0xff] %vm283_vm1, %v267_v47  ;;  %292 = vst.msk [vmem:[%s567_s4 + $0x40] sm:$0xff] %vm283_vm1, %v275_v48  ;;  %v225_v61 = vmax.f32 %v181_v51, 0.0  ;;  %v233_v62 = vmax.f32 %v213_v52, 0.0  ;;  %v173_v63 = vadd.f32 %v433_v10, %v172_v59  ;;  %v205_v0 = vadd.f32 %v433_v10, %v204_v60 }
  0xd6   :  { %v270_v1 = vmax.f32 %v254_v53, 0.0  ;;  %v278_v2 = vmax.f32 %v262_v54, 0.0  ;;  %v252_v3 = vadd.f32 %v236_v49, %v220_v55  ;;  %v260_v4 = vadd.f32 %v244_v50, %v228_v56  ;;  %v344_v7 = vpop.f32.mrf.mxu0  ;;  %v352_v8 = vpop.f32.mrf.mxu1 }
  0xd7   :  { %v257_v9 = vadd.f32 %v241_v57, %v225_v61  ;;  %v265_v11 = vadd.f32 %v249_v58, %v233_v62  ;;  %v223_v12 = vmax.f32 %v173_v63, 0.0  ;;  %v231_v13 = vmax.f32 %v205_v0, 0.0 }
  0xd8   :  { %287 = vst.msk [vmem:[%s567_s4 + $0x18] sm:$0xff] %vm283_vm1, %v270_v1  ;;  %295 = vst.msk [vmem:[%s567_s4 + $0x58] sm:$0xff] %vm283_vm1, %v278_v2  ;;  %v268_v14 = vmax.f32 %v252_v3, 0.0  ;;  %v276_v15 = vmax.f32 %v260_v4, 0.0  ;;  %v184_v16 = vadd.f32 %v344_v7, %v433_v10  ;;  %v216_v17 = vadd.f32 %v352_v8, %v433_v10  ;;  %v175_v18 = vpop.f32.mrf.mxu0  ;;  %v207_v19 = vpop.f32.mrf.mxu1 }
  0xd9   :  { %v273_v20 = vmax.f32 %v257_v9, 0.0  ;;  %v281_v21 = vmax.f32 %v265_v11, 0.0  ;;  %v255_v22 = vadd.f32 %v239_v5, %v223_v12  ;;  %v263_v23 = vadd.f32 %v247_v6, %v231_v13 }
  0xda   :  { %285 = vst.msk [vmem:[%s567_s4 + $0x8] sm:$0xff] %vm283_vm1, %v268_v14  ;;  %293 = vst.msk [vmem:[%s567_s4 + $0x48] sm:$0xff] %vm283_vm1, %v276_v15  ;;  %v226_v26 = vmax.f32 %v184_v16, 0.0  ;;  %v234_v27 = vmax.f32 %v216_v17, 0.0  ;;  %v176_v28 = vadd.f32 %v433_v10, %v175_v18  ;;  %v208_v29 = vadd.f32 %v433_v10, %v207_v19  ;;  %v248_v10 = vld [vmem:[%s566_s3 + $0x68] sm:$0xff] }
  0xdb   :  { %290 = vst.msk [vmem:[%s567_s4 + $0x30] sm:$0xff] %vm283_vm1, %v273_v20  ;;  %298 = vst.msk [vmem:[%s567_s4 + $0x70] sm:$0xff] %vm283_vm1, %v281_v21  ;;  %v271_v30 = vmax.f32 %v255_v22, 0.0  ;;  %v279_v31 = vmax.f32 %v263_v23, 0.0 }
  0xdc   :  { %v258_v33 = vadd.f32 %v242_v24, %v226_v26  ;;  %v266_v34 = vadd.f32 %v250_v25, %v234_v27  ;;  %v224_v35 = vmax.f32 %v176_v28, 0.0  ;;  %v232_v36 = vmax.f32 %v208_v29, 0.0 }
  0xdd   :  { %288 = vst.msk [vmem:[%s567_s4 + $0x20] sm:$0xff] %vm283_vm1, %v271_v30  ;;  %296 = vst.msk [vmem:[%s567_s4 + $0x60] sm:$0xff] %vm283_vm1, %v279_v31 }
  0xde   :  { %v274_v37 = vmax.f32 %v258_v33, 0.0  ;;  %v282_v38 = vmax.f32 %v266_v34, 0.0  ;;  %v256_v39 = vadd.f32 %v240_v32, %v224_v35  ;;  %v264_v40 = vadd.f32 %v248_v10, %v232_v36 }
  0xe0   :  { %291 = vst.msk [vmem:[%s567_s4 + $0x38] sm:$0xff] %vm283_vm1, %v274_v37  ;;  %299 = vst.msk [vmem:[%s567_s4 + $0x78] sm:$0xff] %vm283_vm1, %v282_v38  ;;  %v272_v41 = vmax.f32 %v256_v39, 0.0  ;;  %v280_v42 = vmax.f32 %v264_v40, 0.0 }
  0xe2   :  { %289 = vst.msk [vmem:[%s567_s4 + $0x28] sm:$0xff] %vm283_vm1, %v272_v41  ;;  %297 = vst.msk [vmem:[%s567_s4 + $0x68] sm:$0xff] %vm283_vm1, %v280_v42 }

// kernel: enet_forward.166
= control target key start
LH: loop header
LB: loop body
LE: loop exit
PB: predicated region body
PF: predicated region fallthrough
CT: control target
= control target key end

     0   :  { %vm89_vm0 = vcmask 130048   ;;  %vm275_vm1 = vcmask 523264   ;;  %s545_s1 = inlined_call_operand.vmem [shape: bf16[16,64], index: 1, kind: input, shape index: {}]   ;;  %s546_s0 = inlined_call_operand.vmem [shape: bf16[128,16], index: 0, kind: input, shape index: {}]   ;;  %s547_s2 = inlined_call_operand.vmem [shape: f32[1,64], index: 2, kind: input, shape index: {}]   ;;  %s548_s3 = inlined_call_operand.vmem [shape: f32[128,64], index: 3, kind: input, shape index: {}]   ;;  %s549_s4 = inlined_call_operand.vmem [shape: f32[128,64], index: 4, kind: output, shape index: {}]  }
   0x1   :  { %v343_v0 = vld [vmem:[%s545_s1] sm:$0xff]   ;;  %v346_v3 = vld [vmem:[%s546_s0 + $0x8] sm:$0xff]   ;;  %v348_v5 = vld [vmem:[%s546_s0 + $0x10] sm:$0xff]  }
   0x2   :  { %v344_v1 = vld [vmem:[%s546_s0] sm:$0xff]   ;;  %323 = vmatprep.subr.bf16.mxu0 %v343_v0  ;;  %341 = vmatprep.subr.bf16.mxu1 %v343_v0  ;;  %v347_v4 = vld [vmem:[%s546_s0 + $0x28] sm:$0xff]   ;;  %v349_v6 = vld [vmem:[%s546_s0 + $0x30] sm:$0xff]  }
   0x3   :  { %v345_v2 = vld [vmem:[%s546_s0 + $0x20] sm:$0xff]   ;;  %324 = vmatpush3.bf16.msra.mxu0 %v343_v0  ;;  %342 = vmatpush3.bf16.msra.mxu1 %v343_v0  ;;  %v350_v7 = vld [vmem:[%s546_s0 + $0x18] sm:$0xff]   ;;  %v229_v14 = vld [vmem:[%s548_s3 + $0x10] sm:$0xff] }
   0x4   :  { %325 = vmatprep.mubr.msk.bf16.mxu0 %vm89_vm0, %v344_v1  ;;  %333 = vmatprep.mubr.msk.bf16.mxu1 %vm89_vm0, %v345_v2  ;;  %v351_v8 = vld [vmem:[%s546_s0 + $0x38] sm:$0xff]   ;;  %v415_v9 = vld [vmem:[%s547_s2] ss:$0 sm:$0xff]  ;;  %v237_v15 = vld [vmem:[%s548_s3 + $0x50] sm:$0xff] }
   0x5   :  { %v227_v22 = vld [vmem:[%s548_s3] sm:$0xff]  ;;  %v230_v38 = vld [vmem:[%s548_s3 + $0x18] sm:$0xff]  ;;  %v228_v48 = vld [vmem:[%s548_s3 + $0x8] sm:$0xff] }
   0x6   :  { %326 = vmatmul.mubr.msk.bf16.vlgmr.msra.gmra.mxu0 %vm89_vm0, %v346_v3  ;;  %334 = vmatmul.mubr.msk.bf16.vlgmr.msra.gmra.mxu1 %vm89_vm0, %v347_v4  ;;  %v235_v23 = vld [vmem:[%s548_s3 + $0x40] sm:$0xff]  ;;  %v238_v39 = vld [vmem:[%s548_s3 + $0x58] sm:$0xff]  ;;  %v236_v49 = vld [vmem:[%s548_s3 + $0x48] sm:$0xff] }
   0x7   :  { %329 = vmatprep.mubr.msk.bf16.mxu0 %vm89_vm0, %v348_v5  ;;  %337 = vmatprep.mubr.msk.bf16.mxu1 %vm89_vm0, %v349_v6  ;;  %v233_v56 = vld [vmem:[%s548_s3 + $0x30] sm:$0xff]  ;;  %v231_v4 = vld [vmem:[%s548_s3 + $0x20] sm:$0xff] }
   0x8   :  { %v241_v57 = vld [vmem:[%s548_s3 + $0x70] sm:$0xff]  ;;  %v239_v5 = vld [vmem:[%s548_s3 + $0x60] sm:$0xff] }
   0xe   :  { %330 = vmatmul.mubr.msk.bf16.gmra.mxu0 %vm89_vm0, %v350_v7  ;;  %338 = vmatmul.mubr.msk.bf16.gmra.mxu1 %vm89_vm0, %v351_v8 }
  0xc6   :  { %v327_v10 = vpop.f32.mrf.mxu0  ;;  %v335_v11 = vpop.f32.mrf.mxu1 }
  0xc7   :  { %v157_v12 = vadd.f32 %v327_v10, %v415_v9  ;;  %v189_v13 = vadd.f32 %v335_v11, %v415_v9 }
  0xc8   :  { %v148_v16 = vpop.f32.mrf.mxu0  ;;  %v180_v17 = vpop.f32.mrf.mxu1 }
  0xc9   :  { %v213_v18 = vmax.f32 %v157_v12, 0.0  ;;  %v221_v19 = vmax.f32 %v189_v13, 0.0  ;;  %v149_v20 = vadd.f32 %v415_v9, %v148_v16  ;;  %v181_v21 = vadd.f32 %v415_v9, %v180_v17 }
  0xca   :  { %v328_v24 = vpop.f32.mrf.mxu0  ;;  %v336_v25 = vpop.f32.mrf.mxu1 }
  0xcb   :  { %v245_v26 = vadd.f32 %v229_v14, %v213_v18  ;;  %v253_v27 = vadd.f32 %v237_v15, %v221_v19  ;;  %v211_v28 = vmax.f32 %v149_v20, 0.0  ;;  %v219_v29 = vmax.f32 %v181_v21, 0.0 }
  0xcc   :  { %v160_v30 = vadd.f32 %v328_v24, %v415_v9  ;;  %v192_v31 = vadd.f32 %v336_v25, %v415_v9  ;;  %v151_v32 = vpop.f32.mrf.mxu0  ;;  %v183_v33 = vpop.f32.mrf.mxu1  ;;  %v242_v24 = vld [vmem:[%s548_s3 + $0x78] sm:$0xff] }
  0xcd   :  { %v261_v34 = vmax.f32 %v245_v26, 0.0  ;;  %v269_v35 = vmax.f32 %v253_v27, 0.0  ;;  %v243_v36 = vadd.f32 %v227_v22, %v211_v28  ;;  %v251_v37 = vadd.f32 %v235_v23, %v219_v29  ;;  %v234_v23 = vld [vmem:[%s548_s3 + $0x38] sm:$0xff] }
  0xce   :  { %v214_v40 = vmax.f32 %v160_v30, 0.0  ;;  %v222_v41 = vmax.f32 %v192_v31, 0.0  ;;  %v152_v42 = vadd.f32 %v415_v9, %v151_v32  ;;  %v184_v43 = vadd.f32 %v415_v9, %v183_v33  ;;  %v331_v44 = vpop.f32.mrf.mxu0  ;;  %v339_v45 = vpop.f32.mrf.mxu1  ;;  %v232_v31 = vld [vmem:[%s548_s3 + $0x28] sm:$0xff] }
  0xcf   :  { %278 = vst.msk [vmem:[%s549_s4 + $0x10] sm:$0xff] %vm275_vm1, %v261_v34  ;;  %286 = vst.msk [vmem:[%s549_s4 + $0x50] sm:$0xff] %vm275_vm1, %v269_v35  ;;  %v259_v46 = vmax.f32 %v243_v36, 0.0  ;;  %v267_v47 = vmax.f32 %v251_v37, 0.0  ;;  %v173_v50 = vadd.f32 %v331_v44, %v415_v9  ;;  %v205_v51 = vadd.f32 %v339_v45, %v415_v9 }
  0xd0   :  { %v246_v52 = vadd.f32 %v230_v38, %v214_v40  ;;  %v254_v53 = vadd.f32 %v238_v39, %v222_v41  ;;  %v212_v54 = vmax.f32 %v152_v42, 0.0  ;;  %v220_v55 = vmax.f32 %v184_v43, 0.0  ;;  %v164_v58 = vpop.f32.mrf.mxu0  ;;  %v196_v59 = vpop.f32.mrf.mxu1 }
  0xd1   :  { %276 = vst.msk [vmem:[%s549_s4] sm:$0xff] %vm275_vm1, %v259_v46  ;;  %284 = vst.msk [vmem:[%s549_s4 + $0x40] sm:$0xff] %vm275_vm1, %v267_v47  ;;  %v217_v60 = vmax.f32 %v173_v50, 0.0  ;;  %v225_v61 = vmax.f32 %v205_v51, 0.0  ;;  %v165_v62 = vadd.f32 %v415_v9, %v164_v58  ;;  %v197_v63 = vadd.f32 %v415_v9, %v196_v59 }
  0xd2   :  { %v262_v0 = vmax.f32 %v246_v52, 0.0  ;;  %v270_v1 = vmax.f32 %v254_v53, 0.0  ;;  %v244_v2 = vadd.f32 %v228_v48, %v212_v54  ;;  %v252_v3 = vadd.f32 %v236_v49, %v220_v55  ;;  %v332_v6 = vpop.f32.mrf.mxu0  ;;  %v340_v7 = vpop.f32.mrf.mxu1 }
  0xd3   :  { %v249_v8 = vadd.f32 %v233_v56, %v217_v60  ;;  %v257_v10 = vadd.f32 %v241_v57, %v225_v61  ;;  %v215_v11 = vmax.f32 %v165_v62, 0.0  ;;  %v223_v12 = vmax.f32 %v197_v63, 0.0 }
  0xd4   :  { %279 = vst.msk [vmem:[%s549_s4 + $0x18] sm:$0xff] %vm275_vm1, %v262_v0  ;;  %287 = vst.msk [vmem:[%s549_s4 + $0x58] sm:$0xff] %vm275_vm1, %v270_v1  ;;  %v260_v13 = vmax.f32 %v244_v2, 0.0  ;;  %v268_v14 = vmax.f32 %v252_v3, 0.0  ;;  %v176_v15 = vadd.f32 %v332_v6, %v415_v9  ;;  %v208_v16 = vadd.f32 %v340_v7, %v415_v9  ;;  %v167_v17 = vpop.f32.mrf.mxu0  ;;  %v199_v18 = vpop.f32.mrf.mxu1 }
  0xd5   :  { %v265_v19 = vmax.f32 %v249_v8, 0.0  ;;  %v273_v20 = vmax.f32 %v257_v10, 0.0  ;;  %v247_v21 = vadd.f32 %v231_v4, %v215_v11  ;;  %v255_v22 = vadd.f32 %v239_v5, %v223_v12 }
  0xd6   :  { %277 = vst.msk [vmem:[%s549_s4 + $0x8] sm:$0xff] %vm275_vm1, %v260_v13  ;;  %285 = vst.msk [vmem:[%s549_s4 + $0x48] sm:$0xff] %vm275_vm1, %v268_v14  ;;  %v218_v25 = vmax.f32 %v176_v15, 0.0  ;;  %v226_v26 = vmax.f32 %v208_v16, 0.0  ;;  %v168_v27 = vadd.f32 %v415_v9, %v167_v17  ;;  %v200_v28 = vadd.f32 %v415_v9, %v199_v18  ;;  %v240_v9 = vld [vmem:[%s548_s3 + $0x68] sm:$0xff] }
  0xd7   :  { %282 = vst.msk [vmem:[%s549_s4 + $0x30] sm:$0xff] %vm275_vm1, %v265_v19  ;;  %290 = vst.msk [vmem:[%s549_s4 + $0x70] sm:$0xff] %vm275_vm1, %v273_v20  ;;  %v263_v29 = vmax.f32 %v247_v21, 0.0  ;;  %v271_v30 = vmax.f32 %v255_v22, 0.0 }
  0xd8   :  { %v250_v32 = vadd.f32 %v234_v23, %v218_v25  ;;  %v258_v33 = vadd.f32 %v242_v24, %v226_v26  ;;  %v216_v34 = vmax.f32 %v168_v27, 0.0  ;;  %v224_v35 = vmax.f32 %v200_v28, 0.0 }
  0xd9   :  { %280 = vst.msk [vmem:[%s549_s4 + $0x20] sm:$0xff] %vm275_vm1, %v263_v29  ;;  %288 = vst.msk [vmem:[%s549_s4 + $0x60] sm:$0xff] %vm275_vm1, %v271_v30 }
  0xda   :  { %v266_v36 = vmax.f32 %v250_v32, 0.0  ;;  %v274_v37 = vmax.f32 %v258_v33, 0.0  ;;  %v248_v38 = vadd.f32 %v232_v31, %v216_v34  ;;  %v256_v39 = vadd.f32 %v240_v9, %v224_v35 }
  0xdc   :  { %283 = vst.msk [vmem:[%s549_s4 + $0x38] sm:$0xff] %vm275_vm1, %v266_v36  ;;  %291 = vst.msk [vmem:[%s549_s4 + $0x78] sm:$0xff] %vm275_vm1, %v274_v37  ;;  %v264_v40 = vmax.f32 %v248_v38, 0.0  ;;  %v272_v41 = vmax.f32 %v256_v39, 0.0 }
  0xde   :  { %281 = vst.msk [vmem:[%s549_s4 + $0x28] sm:$0xff] %vm275_vm1, %v264_v40  ;;  %289 = vst.msk [vmem:[%s549_s4 + $0x68] sm:$0xff] %vm275_vm1, %v272_v41 }

// kernel: enet_forward.170
= control target key start
LH: loop header
LB: loop body
LE: loop exit
PB: predicated region body
PF: predicated region fallthrough
CT: control target
= control target key end

     0   :  { %vm110_vm0 = vcmask 523264   ;;  %vm232_vm1 = vcmask 130048   ;;  %s461_s1 = inlined_call_operand.vmem [shape: bf16[64,16], index: 1, kind: input, shape index: {}]   ;;  %s462_s0 = inlined_call_operand.vmem [shape: bf16[128,64], index: 0, kind: input, shape index: {}]   ;;  %s463_s2 = inlined_call_operand.vmem [shape: f32[1,16], index: 2, kind: input, shape index: {}]   ;;  %s464_s3 = inlined_call_operand.vmem [shape: f32[128,16], index: 3, kind: output, shape index: {}]  }
   0x1   :  { %v318_v0 = vld [vmem:[%s461_s1 + $0x18] sm:$0xff]   ;;  %v319_v1 = vld [vmem:[%s461_s1 + $0x10] sm:$0xff]   ;;  %v320_v2 = vld [vmem:[%s461_s1 + $0x8] sm:$0xff]  }
   0x2   :  { %286 = vmatprep.subr.bf16.mxu0 %v318_v0  ;;  %310 = vmatprep.subr.bf16.mxu1 %v318_v0  ;;  %v322_v3 = vld [vmem:[%s462_s0] sm:$0xff]   ;;  %v324_v6 = vld [vmem:[%s462_s0 + $0x8] sm:$0xff]   ;;  %v326_v8 = vld [vmem:[%s462_s0 + $0x10] sm:$0xff]  }
   0x3   :  { %287 = vmatpush3.bf16.msra.mxu0 %v318_v0  ;;  %314 = vmatpush3.bf16.msra.mxu1 %v318_v0  ;;  %v323_v4 = vld [vmem:[%s462_s0 + $0x20] sm:$0xff]   ;;  %v325_v7 = vld [vmem:[%s462_s0 + $0x28] sm:$0xff]   ;;  %v327_v9 = vld [vmem:[%s462_s0 + $0x30] sm:$0xff]  }
   0x4   :  { %288 = vmatprep.subr.bf16.mxu0 %v319_v1  ;;  %311 = vmatprep.subr.bf16.mxu1 %v319_v1  ;;  %v321_v5 = vld [vmem:[%s461_s1] sm:$0xff]   ;;  %v328_v10 = vld [vmem:[%s462_s0 + $0x18] sm:$0xff]  }
   0x5   :  { %294 = vmatprep.mubr.msk.bf16.mxu0 %vm110_vm0, %v322_v3  ;;  %302 = vmatprep.mubr.msk.bf16.mxu1 %vm110_vm0, %v323_v4  ;;  %v329_v11 = vld [vmem:[%s462_s0 + $0x38] sm:$0xff]   ;;  %v253_v12 = vld [vmem:[%s463_s2] ss:$0 sm:$0xff] }
   0x7   :  { %289 = vmatpush3.bf16.msra.mxu0 %v319_v1  ;;  %315 = vmatpush3.bf16.msra.mxu1 %v319_v1 }
   0x8   :  { %290 = vmatprep.subr.bf16.mxu0 %v320_v2  ;;  %312 = vmatprep.subr.bf16.mxu1 %v320_v2 }
   0xb   :  { %291 = vmatpush3.bf16.msra.mxu0 %v320_v2  ;;  %316 = vmatpush3.bf16.msra.mxu1 %v320_v2 }
   0xc   :  { %292 = vmatprep.subr.bf16.mxu0 %v321_v5  ;;  %313 = vmatprep.subr.bf16.mxu1 %v321_v5 }
   0xf   :  { %293 = vmatpush3.bf16.msra.mxu0 %v321_v5  ;;  %317 = vmatpush3.bf16.msra.mxu1 %v321_v5 }
  0x12   :  { %295 = vmatmul.mubr.msk.bf16.vlgmr.msra.gmra.mxu0 %vm110_vm0, %v324_v6  ;;  %303 = vmatmul.mubr.msk.bf16.vlgmr.msra.gmra.mxu1 %vm110_vm0, %v325_v7 }
  0x13   :  { %298 = vmatprep.mubr.msk.bf16.mxu0 %vm110_vm0, %v326_v8  ;;  %306 = vmatprep.mubr.msk.bf16.mxu1 %vm110_vm0, %v327_v9 }
  0x1a   :  { %299 = vmatmul.mubr.msk.bf16.gmra.mxu0 %vm110_vm0, %v328_v10  ;;  %307 = vmatmul.mubr.msk.bf16.gmra.mxu1 %vm110_vm0, %v329_v11 }
  0xd2   :  { %v296_v13 = vpop.f32.mrf.mxu0  ;;  %v304_v14 = vpop.f32.mrf.mxu1 }
  0xd3   :  { %v178_v15 = vadd.f32 %v296_v13, %v253_v12  ;;  %v210_v16 = vadd.f32 %v304_v14, %v253_v12 }
  0xd4   :  { %v169_v17 = vpop.f32.mrf.mxu0  ;;  %v201_v18 = vpop.f32.mrf.mxu1 }
  0xd5   :  { %235 = vst.msk [vmem:[%s464_s3 + $0x10] sm:$0xff] %vm232_vm1, %v178_v15  ;;  %243 = vst.msk [vmem:[%s464_s3 + $0x50] sm:$0xff] %vm232_vm1, %v210_v16  ;;  %v170_v19 = vadd.f32 %v253_v12, %v169_v17  ;;  %v202_v20 = vadd.f32 %v253_v12, %v201_v18 }
  0xd6   :  { %v297_v21 = vpop.f32.mrf.mxu0  ;;  %v305_v22 = vpop.f32.mrf.mxu1 }
  0xd7   :  { %233 = vst.msk [vmem:[%s464_s3] sm:$0xff] %vm232_vm1, %v170_v19  ;;  %241 = vst.msk [vmem:[%s464_s3 + $0x40] sm:$0xff] %vm232_vm1, %v202_v20  ;;  %v181_v23 = vadd.f32 %v297_v21, %v253_v12  ;;  %v213_v24 = vadd.f32 %v305_v22, %v253_v12 }
  0xd8   :  { %v172_v25 = vpop.f32.mrf.mxu0  ;;  %v204_v26 = vpop.f32.mrf.mxu1 }
  0xd9   :  { %236 = vst.msk [vmem:[%s464_s3 + $0x18] sm:$0xff] %vm232_vm1, %v181_v23  ;;  %244 = vst.msk [vmem:[%s464_s3 + $0x58] sm:$0xff] %vm232_vm1, %v213_v24  ;;  %v173_v27 = vadd.f32 %v253_v12, %v172_v25  ;;  %v205_v28 = vadd.f32 %v253_v12, %v204_v26 }
  0xda   :  { %v300_v29 = vpop.f32.mrf.mxu0  ;;  %v308_v30 = vpop.f32.mrf.mxu1 }
  0xdb   :  { %234 = vst.msk [vmem:[%s464_s3 + $0x8] sm:$0xff] %vm232_vm1, %v173_v27  ;;  %242 = vst.msk [vmem:[%s464_s3 + $0x48] sm:$0xff] %vm232_vm1, %v205_v28  ;;  %v194_v31 = vadd.f32 %v300_v29, %v253_v12  ;;  %v226_v32 = vadd.f32 %v308_v30, %v253_v12 }
  0xdc   :  { %v185_v33 = vpop.f32.mrf.mxu0  ;;  %v217_v34 = vpop.f32.mrf.mxu1 }
  0xdd   :  { %239 = vst.msk [vmem:[%s464_s3 + $0x30] sm:$0xff] %vm232_vm1, %v194_v31  ;;  %247 = vst.msk [vmem:[%s464_s3 + $0x70] sm:$0xff] %vm232_vm1, %v226_v32  ;;  %v186_v35 = vadd.f32 %v253_v12, %v185_v33  ;;  %v218_v36 = vadd.f32 %v253_v12, %v217_v34 }
  0xde   :  { %v301_v37 = vpop.f32.mrf.mxu0  ;;  %v309_v38 = vpop.f32.mrf.mxu1 }
  0xdf   :  { %237 = vst.msk [vmem:[%s464_s3 + $0x20] sm:$0xff] %vm232_vm1, %v186_v35  ;;  %245 = vst.msk [vmem:[%s464_s3 + $0x60] sm:$0xff] %vm232_vm1, %v218_v36  ;;  %v197_v39 = vadd.f32 %v301_v37, %v253_v12  ;;  %v229_v40 = vadd.f32 %v309_v38, %v253_v12 }
  0xe0   :  { %v188_v41 = vpop.f32.mrf.mxu0  ;;  %v220_v42 = vpop.f32.mrf.mxu1 }
  0xe1   :  { %240 = vst.msk [vmem:[%s464_s3 + $0x38] sm:$0xff] %vm232_vm1, %v197_v39  ;;  %248 = vst.msk [vmem:[%s464_s3 + $0x78] sm:$0xff] %vm232_vm1, %v229_v40  ;;  %v189_v43 = vadd.f32 %v253_v12, %v188_v41  ;;  %v221_v44 = vadd.f32 %v253_v12, %v220_v42 }
  0xe3   :  { %238 = vst.msk [vmem:[%s464_s3 + $0x28] sm:$0xff] %vm232_vm1, %v189_v43  ;;  %246 = vst.msk [vmem:[%s464_s3 + $0x68] sm:$0xff] %vm232_vm1, %v221_v44 }

// kernel: enet_forward.172
= control target key start
LH: loop header
LB: loop body
LE: loop exit
PB: predicated region body
PF: predicated region fallthrough
CT: control target
= control target key end

     0   :  { %vm110_vm0 = vcmask 523264   ;;  %s476_s1 = inlined_call_operand.vmem [shape: bf16[64,64], index: 1, kind: input, shape index: {}]   ;;  %s477_s0 = inlined_call_operand.vmem [shape: bf16[128,64], index: 0, kind: input, shape index: {}]   ;;  %s478_s2 = inlined_call_operand.vmem [shape: f32[1,64], index: 2, kind: input, shape index: {}]   ;;  %s479_s3 = inlined_call_operand.vmem [shape: f32[128,64], index: 3, kind: output, shape index: {}]  }
   0x1   :  { %v333_v0 = vld [vmem:[%s476_s1 + $0x18] sm:$0xff]   ;;  %v334_v1 = vld [vmem:[%s476_s1 + $0x10] sm:$0xff]   ;;  %v335_v2 = vld [vmem:[%s476_s1 + $0x8] sm:$0xff]  }
   0x2   :  { %301 = vmatprep.subr.bf16.mxu0 %v333_v0  ;;  %325 = vmatprep.subr.bf16.mxu1 %v333_v0  ;;  %v337_v3 = vld [vmem:[%s477_s0] sm:$0xff]   ;;  %v339_v6 = vld [vmem:[%s477_s0 + $0x8] sm:$0xff]   ;;  %v341_v8 = vld [vmem:[%s477_s0 + $0x10] sm:$0xff]  }
   0x3   :  { %302 = vmatpush3.bf16.msra.mxu0 %v333_v0  ;;  %329 = vmatpush3.bf16.msra.mxu1 %v333_v0  ;;  %v338_v4 = vld [vmem:[%s477_s0 + $0x20] sm:$0xff]   ;;  %v340_v7 = vld [vmem:[%s477_s0 + $0x28] sm:$0xff]   ;;  %v342_v9 = vld [vmem:[%s477_s0 + $0x30] sm:$0xff]  }
   0x4   :  { %303 = vmatprep.subr.bf16.mxu0 %v334_v1  ;;  %326 = vmatprep.subr.bf16.mxu1 %v334_v1  ;;  %v336_v5 = vld [vmem:[%s476_s1] sm:$0xff]   ;;  %v343_v10 = vld [vmem:[%s477_s0 + $0x18] sm:$0xff]  }
   0x5   :  { %309 = vmatprep.mubr.msk.bf16.mxu0 %vm110_vm0, %v337_v3  ;;  %317 = vmatprep.mubr.msk.bf16.mxu1 %vm110_vm0, %v338_v4  ;;  %v344_v11 = vld [vmem:[%s477_s0 + $0x38] sm:$0xff]   ;;  %v268_v12 = vld [vmem:[%s478_s2] ss:$0 sm:$0xff] }
   0x7   :  { %304 = vmatpush3.bf16.msra.mxu0 %v334_v1  ;;  %330 = vmatpush3.bf16.msra.mxu1 %v334_v1 }
   0x8   :  { %305 = vmatprep.subr.bf16.mxu0 %v335_v2  ;;  %327 = vmatprep.subr.bf16.mxu1 %v335_v2 }
   0xb   :  { %306 = vmatpush3.bf16.msra.mxu0 %v335_v2  ;;  %331 = vmatpush3.bf16.msra.mxu1 %v335_v2 }
   0xc   :  { %307 = vmatprep.subr.bf16.mxu0 %v336_v5  ;;  %328 = vmatprep.subr.bf16.mxu1 %v336_v5 }
   0xf   :  { %308 = vmatpush3.bf16.msra.mxu0 %v336_v5  ;;  %332 = vmatpush3.bf16.msra.mxu1 %v336_v5 }
  0x12   :  { %310 = vmatmul.mubr.msk.bf16.vlgmr.msra.gmra.mxu0 %vm110_vm0, %v339_v6  ;;  %318 = vmatmul.mubr.msk.bf16.vlgmr.msra.gmra.mxu1 %vm110_vm0, %v340_v7 }
  0x13   :  { %313 = vmatprep.mubr.msk.bf16.mxu0 %vm110_vm0, %v341_v8  ;;  %321 = vmatprep.mubr.msk.bf16.mxu1 %vm110_vm0, %v342_v9 }
  0x1a   :  { %314 = vmatmul.mubr.msk.bf16.gmra.mxu0 %vm110_vm0, %v343_v10  ;;  %322 = vmatmul.mubr.msk.bf16.gmra.mxu1 %vm110_vm0, %v344_v11 }
  0xd2   :  { %v311_v13 = vpop.f32.mrf.mxu0  ;;  %v319_v14 = vpop.f32.mrf.mxu1 }
  0xd3   :  { %v178_v15 = vadd.f32 %v311_v13, %v268_v12  ;;  %v210_v16 = vadd.f32 %v319_v14, %v268_v12 }
  0xd4   :  { %v169_v17 = vpop.f32.mrf.mxu0  ;;  %v201_v18 = vpop.f32.mrf.mxu1 }
  0xd5   :  { %v234_v19 = vmax.f32 %v178_v15, 0.0  ;;  %v242_v20 = vmax.f32 %v210_v16, 0.0  ;;  %v170_v21 = vadd.f32 %v268_v12, %v169_v17  ;;  %v202_v22 = vadd.f32 %v268_v12, %v201_v18 }
  0xd6   :  { %v312_v23 = vpop.f32.mrf.mxu0  ;;  %v320_v24 = vpop.f32.mrf.mxu1 }
  0xd7   :  { %250 = vst.msk [vmem:[%s479_s3 + $0x10] sm:$0xff] %vm110_vm0, %v234_v19  ;;  %258 = vst.msk [vmem:[%s479_s3 + $0x50] sm:$0xff] %vm110_vm0, %v242_v20  ;;  %v232_v25 = vmax.f32 %v170_v21, 0.0  ;;  %v240_v26 = vmax.f32 %v202_v22, 0.0  ;;  %v181_v27 = vadd.f32 %v312_v23, %v268_v12  ;;  %v213_v28 = vadd.f32 %v320_v24, %v268_v12 }
  0xd8   :  { %v172_v29 = vpop.f32.mrf.mxu0  ;;  %v204_v30 = vpop.f32.mrf.mxu1 }
  0xd9   :  { %248 = vst.msk [vmem:[%s479_s3] sm:$0xff] %vm110_vm0, %v232_v25  ;;  %256 = vst.msk [vmem:[%s479_s3 + $0x40] sm:$0xff] %vm110_vm0, %v240_v26  ;;  %v235_v31 = vmax.f32 %v181_v27, 0.0  ;;  %v243_v32 = vmax.f32 %v213_v28, 0.0  ;;  %v173_v33 = vadd.f32 %v268_v12, %v172_v29  ;;  %v205_v34 = vadd.f32 %v268_v12, %v204_v30 }
  0xda   :  { %v315_v35 = vpop.f32.mrf.mxu0  ;;  %v323_v36 = vpop.f32.mrf.mxu1 }
  0xdb   :  { %251 = vst.msk [vmem:[%s479_s3 + $0x18] sm:$0xff] %vm110_vm0, %v235_v31  ;;  %259 = vst.msk [vmem:[%s479_s3 + $0x58] sm:$0xff] %vm110_vm0, %v243_v32  ;;  %v233_v37 = vmax.f32 %v173_v33, 0.0  ;;  %v241_v38 = vmax.f32 %v205_v34, 0.0  ;;  %v194_v39 = vadd.f32 %v315_v35, %v268_v12  ;;  %v226_v40 = vadd.f32 %v323_v36, %v268_v12 }
  0xdc   :  { %v185_v41 = vpop.f32.mrf.mxu0  ;;  %v217_v42 = vpop.f32.mrf.mxu1 }
  0xdd   :  { %249 = vst.msk [vmem:[%s479_s3 + $0x8] sm:$0xff] %vm110_vm0, %v233_v37  ;;  %257 = vst.msk [vmem:[%s479_s3 + $0x48] sm:$0xff] %vm110_vm0, %v241_v38  ;;  %v238_v43 = vmax.f32 %v194_v39, 0.0  ;;  %v246_v44 = vmax.f32 %v226_v40, 0.0  ;;  %v186_v45 = vadd.f32 %v268_v12, %v185_v41  ;;  %v218_v46 = vadd.f32 %v268_v12, %v217_v42 }
  0xde   :  { %v316_v47 = vpop.f32.mrf.mxu0  ;;  %v324_v48 = vpop.f32.mrf.mxu1 }
  0xdf   :  { %254 = vst.msk [vmem:[%s479_s3 + $0x30] sm:$0xff] %vm110_vm0, %v238_v43  ;;  %262 = vst.msk [vmem:[%s479_s3 + $0x70] sm:$0xff] %vm110_vm0, %v246_v44  ;;  %v236_v49 = vmax.f32 %v186_v45, 0.0  ;;  %v244_v50 = vmax.f32 %v218_v46, 0.0  ;;  %v197_v51 = vadd.f32 %v316_v47, %v268_v12  ;;  %v229_v52 = vadd.f32 %v324_v48, %v268_v12 }
  0xe0   :  { %v188_v53 = vpop.f32.mrf.mxu0  ;;  %v220_v54 = vpop.f32.mrf.mxu1 }
  0xe1   :  { %252 = vst.msk [vmem:[%s479_s3 + $0x20] sm:$0xff] %vm110_vm0, %v236_v49  ;;  %260 = vst.msk [vmem:[%s479_s3 + $0x60] sm:$0xff] %vm110_vm0, %v244_v50  ;;  %v239_v55 = vmax.f32 %v197_v51, 0.0  ;;  %v247_v56 = vmax.f32 %v229_v52, 0.0  ;;  %v189_v57 = vadd.f32 %v268_v12, %v188_v53  ;;  %v221_v58 = vadd.f32 %v268_v12, %v220_v54 }
  0xe3   :  { %255 = vst.msk [vmem:[%s479_s3 + $0x38] sm:$0xff] %vm110_vm0, %v239_v55  ;;  %263 = vst.msk [vmem:[%s479_s3 + $0x78] sm:$0xff] %vm110_vm0, %v247_v56  ;;  %v237_v59 = vmax.f32 %v189_v57, 0.0  ;;  %v245_v60 = vmax.f32 %v221_v58, 0.0 }
  0xe5   :  { %253 = vst.msk [vmem:[%s479_s3 + $0x28] sm:$0xff] %vm110_vm0, %v237_v59  ;;  %261 = vst.msk [vmem:[%s479_s3 + $0x68] sm:$0xff] %vm110_vm0, %v245_v60 }

// kernel: enet_forward.174
= control target key start
LH: loop header
LB: loop body
LE: loop exit
PB: predicated region body
PF: predicated region fallthrough
CT: control target
= control target key end

     0   :  { %vm254_vm0 = vcmask 130048   ;;  %vm704_vm1 = vcmask 31744   ;;  %s1449_s1 = inlined_call_operand.vmem [shape: bf16[16,4], index: 1, kind: input, shape index: {}]   ;;  %s1450_s0 = inlined_call_operand.vmem [shape: bf16[512,16], index: 0, kind: input, shape index: {}]   ;;  %s1451_s2 = inlined_call_operand.vmem [shape: f32[1,4], index: 2, kind: input, shape index: {}]   ;;  %s1452_s3 = inlined_call_operand.vmem [shape: f32[512,4], index: 3, kind: output, shape index: {}]  }
   0x1   :  { %v940_v0 = vld [vmem:[%s1449_s1] sm:$0xff]   ;;  %v943_v3 = vld [vmem:[%s1450_s0 + $0x8] sm:$0xff]   ;;  %v945_v5 = vld [vmem:[%s1450_s0 + $0x10] sm:$0xff]  }
   0x2   :  { %v941_v1 = vld [vmem:[%s1450_s0] sm:$0xff]   ;;  %872 = vmatprep.subr.bf16.mxu0 %v940_v0  ;;  %938 = vmatprep.subr.bf16.mxu1 %v940_v0  ;;  %v944_v4 = vld [vmem:[%s1450_s0 + $0x88] sm:$0xff]   ;;  %v946_v6 = vld [vmem:[%s1450_s0 + $0x90] sm:$0xff]  }
   0x3   :  { %v942_v2 = vld [vmem:[%s1450_s0 + $0x80] sm:$0xff]   ;;  %873 = vmatpush3.bf16.msra.mxu0 %v940_v0  ;;  %939 = vmatpush3.bf16.msra.mxu1 %v940_v0  ;;  %v947_v7 = vld [vmem:[%s1450_s0 + $0x18] sm:$0xff]   ;;  %v951_v11 = vld [vmem:[%s1450_s0 + $0x28] sm:$0xff]  }
   0x4   :  { %874 = vmatprep.mubr.msk.bf16.mxu0 %vm254_vm0, %v941_v1  ;;  %906 = vmatprep.mubr.msk.bf16.mxu1 %vm254_vm0, %v942_v2  ;;  %v948_v8 = vld [vmem:[%s1450_s0 + $0x98] sm:$0xff]   ;;  %v949_v9 = vld [vmem:[%s1450_s0 + $0x20] sm:$0xff]   ;;  %v952_v12 = vld [vmem:[%s1450_s0 + $0xa8] sm:$0xff]  }
   0x5   :  { %v950_v10 = vld [vmem:[%s1450_s0 + $0xa0] sm:$0xff]   ;;  %v953_v13 = vld [vmem:[%s1450_s0 + $0x30] sm:$0xff]   ;;  %v955_v15 = vld [vmem:[%s1450_s0 + $0x38] sm:$0xff]  }
   0x6   :  { %875 = vmatmul.mubr.msk.bf16.vlgmr.msra.gmra.mxu0 %vm254_vm0, %v943_v3  ;;  %907 = vmatmul.mubr.msk.bf16.vlgmr.msra.gmra.mxu1 %vm254_vm0, %v944_v4  ;;  %v954_v14 = vld [vmem:[%s1450_s0 + $0xb0] sm:$0xff]   ;;  %v956_v16 = vld [vmem:[%s1450_s0 + $0xb8] sm:$0xff]   ;;  %v957_v17 = vld [vmem:[%s1450_s0 + $0x40] sm:$0xff]  }
   0x7   :  { %878 = vmatprep.mubr.msk.bf16.mxu0 %vm254_vm0, %v945_v5  ;;  %910 = vmatprep.mubr.msk.bf16.mxu1 %vm254_vm0, %v946_v6  ;;  %v958_v18 = vld [vmem:[%s1450_s0 + $0xc0] sm:$0xff]   ;;  %v959_v19 = vld [vmem:[%s1450_s0 + $0x48] sm:$0xff]   ;;  %v961_v21 = vld [vmem:[%s1450_s0 + $0x50] sm:$0xff]  }
   0x8   :  { %v960_v20 = vld [vmem:[%s1450_s0 + $0xc8] sm:$0xff]   ;;  %v962_v22 = vld [vmem:[%s1450_s0 + $0xd0] sm:$0xff]   ;;  %v963_v23 = vld [vmem:[%s1450_s0 + $0x58] sm:$0xff]  }
   0x9   :  { %v964_v24 = vld [vmem:[%s1450_s0 + $0xd8] sm:$0xff]   ;;  %v965_v25 = vld [vmem:[%s1450_s0 + $0x60] sm:$0xff]   ;;  %v967_v27 = vld [vmem:[%s1450_s0 + $0x68] sm:$0xff]  }
   0xa   :  { %v966_v26 = vld [vmem:[%s1450_s0 + $0xe0] sm:$0xff]   ;;  %v968_v28 = vld [vmem:[%s1450_s0 + $0xe8] sm:$0xff]   ;;  %v969_v29 = vld [vmem:[%s1450_s0 + $0x70] sm:$0xff]  }
   0xb   :  { %v970_v30 = vld [vmem:[%s1450_s0 + $0xf0] sm:$0xff]   ;;  %v971_v31 = vld [vmem:[%s1450_s0 + $0x78] sm:$0xff]   ;;  %v1127_v33 = vld [vmem:[%s1451_s2] ss:$0 sm:$0xff] }
   0xc   :  { %v972_v32 = vld [vmem:[%s1450_s0 + $0xf8] sm:$0xff]  }
   0xe   :  { %879 = vmatmul.mubr.msk.bf16.gmra.mxu0 %vm254_vm0, %v947_v7  ;;  %911 = vmatmul.mubr.msk.bf16.gmra.mxu1 %vm254_vm0, %v948_v8 }
   0xf   :  { %882 = vmatprep.mubr.msk.bf16.mxu0 %vm254_vm0, %v949_v9  ;;  %914 = vmatprep.mubr.msk.bf16.mxu1 %vm254_vm0, %v950_v10 }
  0x16   :  { %883 = vmatmul.mubr.msk.bf16.gmra.mxu0 %vm254_vm0, %v951_v11  ;;  %915 = vmatmul.mubr.msk.bf16.gmra.mxu1 %vm254_vm0, %v952_v12 }
  0x17   :  { %886 = vmatprep.mubr.msk.bf16.mxu0 %vm254_vm0, %v953_v13  ;;  %918 = vmatprep.mubr.msk.bf16.mxu1 %vm254_vm0, %v954_v14 }
  0x1e   :  { %887 = vmatmul.mubr.msk.bf16.gmra.mxu0 %vm254_vm0, %v955_v15  ;;  %919 = vmatmul.mubr.msk.bf16.gmra.mxu1 %vm254_vm0, %v956_v16 }
  0x1f   :  { %890 = vmatprep.mubr.msk.bf16.mxu0 %vm254_vm0, %v957_v17  ;;  %922 = vmatprep.mubr.msk.bf16.mxu1 %vm254_vm0, %v958_v18 }
  0x26   :  { %891 = vmatmul.mubr.msk.bf16.gmra.mxu0 %vm254_vm0, %v959_v19  ;;  %923 = vmatmul.mubr.msk.bf16.gmra.mxu1 %vm254_vm0, %v960_v20 }
  0x27   :  { %894 = vmatprep.mubr.msk.bf16.mxu0 %vm254_vm0, %v961_v21  ;;  %926 = vmatprep.mubr.msk.bf16.mxu1 %vm254_vm0, %v962_v22 }
  0x2e   :  { %895 = vmatmul.mubr.msk.bf16.gmra.mxu0 %vm254_vm0, %v963_v23  ;;  %927 = vmatmul.mubr.msk.bf16.gmra.mxu1 %vm254_vm0, %v964_v24 }
  0x2f   :  { %898 = vmatprep.mubr.msk.bf16.mxu0 %vm254_vm0, %v965_v25  ;;  %930 = vmatprep.mubr.msk.bf16.mxu1 %vm254_vm0, %v966_v26 }
  0x36   :  { %899 = vmatmul.mubr.msk.bf16.gmra.mxu0 %vm254_vm0, %v967_v27  ;;  %931 = vmatmul.mubr.msk.bf16.gmra.mxu1 %vm254_vm0, %v968_v28 }
  0x37   :  { %902 = vmatprep.mubr.msk.bf16.mxu0 %vm254_vm0, %v969_v29  ;;  %934 = vmatprep.mubr.msk.bf16.mxu1 %vm254_vm0, %v970_v30 }
  0x3e   :  { %903 = vmatmul.mubr.msk.bf16.gmra.mxu0 %vm254_vm0, %v971_v31  ;;  %935 = vmatmul.mubr.msk.bf16.gmra.mxu1 %vm254_vm0, %v972_v32 }
  0xc6   :  { %v876_v34 = vpop.f32.mrf.mxu0  ;;  %v908_v35 = vpop.f32.mrf.mxu1 }
  0xc7   :  { %v394_v36 = vadd.f32 %v876_v34, %v1127_v33  ;;  %v522_v37 = vadd.f32 %v908_v35, %v1127_v33 }
  0xc8   :  { %v385_v38 = vpop.f32.mrf.mxu0  ;;  %v513_v39 = vpop.f32.mrf.mxu1 }
  0xc9   :  { %v642_v40 = vmax.f32 %v394_v36, 0.0  ;;  %v674_v41 = vmax.f32 %v522_v37, 0.0  ;;  %v386_v42 = vadd.f32 %v1127_v33, %v385_v38  ;;  %v514_v43 = vadd.f32 %v1127_v33, %v513_v39 }
  0xca   :  { %v877_v44 = vpop.f32.mrf.mxu0  ;;  %v909_v45 = vpop.f32.mrf.mxu1 }
  0xcb   :  { %707 = vst.msk [vmem:[%s1452_s3 + $0x10] sm:$0xff] %vm704_vm1, %v642_v40  ;;  %739 = vst.msk [vmem:[%s1452_s3 + $0x110] sm:$0xff] %vm704_vm1, %v674_v41  ;;  %v640_v46 = vmax.f32 %v386_v42, 0.0  ;;  %v672_v47 = vmax.f32 %v514_v43, 0.0  ;;  %v397_v48 = vadd.f32 %v877_v44, %v1127_v33  ;;  %v525_v49 = vadd.f32 %v909_v45, %v1127_v33 }
  0xcc   :  { %v388_v50 = vpop.f32.mrf.mxu0  ;;  %v516_v51 = vpop.f32.mrf.mxu1 }
  0xcd   :  { %705 = vst.msk [vmem:[%s1452_s3] sm:$0xff] %vm704_vm1, %v640_v46  ;;  %737 = vst.msk [vmem:[%s1452_s3 + $0x100] sm:$0xff] %vm704_vm1, %v672_v47  ;;  %v643_v52 = vmax.f32 %v397_v48, 0.0  ;;  %v675_v53 = vmax.f32 %v525_v49, 0.0  ;;  %v389_v54 = vadd.f32 %v1127_v33, %v388_v50  ;;  %v517_v55 = vadd.f32 %v1127_v33, %v516_v51 }
  0xce   :  { %v880_v56 = vpop.f32.mrf.mxu0  ;;  %v912_v57 = vpop.f32.mrf.mxu1 }
  0xcf   :  { %708 = vst.msk [vmem:[%s1452_s3 + $0x18] sm:$0xff] %vm704_vm1, %v643_v52  ;;  %740 = vst.msk [vmem:[%s1452_s3 + $0x118] sm:$0xff] %vm704_vm1, %v675_v53  ;;  %v641_v58 = vmax.f32 %v389_v54, 0.0  ;;  %v673_v59 = vmax.f32 %v517_v55, 0.0  ;;  %v410_v60 = vadd.f32 %v880_v56, %v1127_v33  ;;  %v538_v61 = vadd.f32 %v912_v57, %v1127_v33 }
  0xd0   :  { %v401_v62 = vpop.f32.mrf.mxu0  ;;  %v529_v63 = vpop.f32.mrf.mxu1 }
  0xd1   :  { %706 = vst.msk [vmem:[%s1452_s3 + $0x8] sm:$0xff] %vm704_vm1, %v641_v58  ;;  %738 = vst.msk [vmem:[%s1452_s3 + $0x108] sm:$0xff] %vm704_vm1, %v673_v59  ;;  %v646_v0 = vmax.f32 %v410_v60, 0.0  ;;  %v678_v1 = vmax.f32 %v538_v61, 0.0  ;;  %v402_v2 = vadd.f32 %v1127_v33, %v401_v62  ;;  %v530_v3 = vadd.f32 %v1127_v33, %v529_v63 }
  0xd2   :  { %v881_v4 = vpop.f32.mrf.mxu0  ;;  %v913_v5 = vpop.f32.mrf.mxu1 }
  0xd3   :  { %711 = vst.msk [vmem:[%s1452_s3 + $0x30] sm:$0xff] %vm704_vm1, %v646_v0  ;;  %743 = vst.msk [vmem:[%s1452_s3 + $0x130] sm:$0xff] %vm704_vm1, %v678_v1  ;;  %v644_v6 = vmax.f32 %v402_v2, 0.0  ;;  %v676_v7 = vmax.f32 %v530_v3, 0.0  ;;  %v413_v8 = vadd.f32 %v881_v4, %v1127_v33  ;;  %v541_v9 = vadd.f32 %v913_v5, %v1127_v33 }
  0xd4   :  { %v404_v10 = vpop.f32.mrf.mxu0  ;;  %v532_v11 = vpop.f32.mrf.mxu1 }
  0xd5   :  { %709 = vst.msk [vmem:[%s1452_s3 + $0x20] sm:$0xff] %vm704_vm1, %v644_v6  ;;  %741 = vst.msk [vmem:[%s1452_s3 + $0x120] sm:$0xff] %vm704_vm1, %v676_v7  ;;  %v647_v12 = vmax.f32 %v413_v8, 0.0  ;;  %v679_v13 = vmax.f32 %v541_v9, 0.0  ;;  %v405_v14 = vadd.f32 %v1127_v33, %v404_v10  ;;  %v533_v15 = vadd.f32 %v1127_v33, %v532_v11 }
  0xd6   :  { %v884_v16 = vpop.f32.mrf.mxu0  ;;  %v916_v17 = vpop.f32.mrf.mxu1 }
  0xd7   :  { %712 = vst.msk [vmem:[%s1452_s3 + $0x38] sm:$0xff] %vm704_vm1, %v647_v12  ;;  %744 = vst.msk [vmem:[%s1452_s3 + $0x138] sm:$0xff] %vm704_vm1, %v679_v13  ;;  %v645_v18 = vmax.f32 %v405_v14, 0.0  ;;  %v677_v19 = vmax.f32 %v533_v15, 0.0  ;;  %v426_v20 = vadd.f32 %v884_v16, %v1127_v33  ;;  %v554_v21 = vadd.f32 %v916_v17, %v1127_v33 }
  0xd8   :  { %v417_v22 = vpop.f32.mrf.mxu0  ;;  %v545_v23 = vpop.f32.mrf.mxu1 }
  0xd9   :  { %710 = vst.msk [vmem:[%s1452_s3 + $0x28] sm:$0xff] %vm704_vm1, %v645_v18  ;;  %742 = vst.msk [vmem:[%s1452_s3 + $0x128] sm:$0xff] %vm704_vm1, %v677_v19  ;;  %v650_v24 = vmax.f32 %v426_v20, 0.0  ;;  %v682_v25 = vmax.f32 %v554_v21, 0.0  ;;  %v418_v26 = vadd.f32 %v1127_v33, %v417_v22  ;;  %v546_v27 = vadd.f32 %v1127_v33, %v545_v23 }
  0xda   :  { %v885_v28 = vpop.f32.mrf.mxu0  ;;  %v917_v29 = vpop.f32.mrf.mxu1 }
  0xdb   :  { %715 = vst.msk [vmem:[%s1452_s3 + $0x50] sm:$0xff] %vm704_vm1, %v650_v24  ;;  %747 = vst.msk [vmem:[%s1452_s3 + $0x150] sm:$0xff] %vm704_vm1, %v682_v25  ;;  %v648_v30 = vmax.f32 %v418_v26, 0.0  ;;  %v680_v31 = vmax.f32 %v546_v27, 0.0  ;;  %v429_v32 = vadd.f32 %v885_v28, %v1127_v33  ;;  %v557_v34 = vadd.f32 %v917_v29, %v1127_v33 }
  0xdc   :  { %v420_v35 = vpop.f32.mrf.mxu0  ;;  %v548_v36 = vpop.f32.mrf.mxu1 }
  0xdd   :  { %713 = vst.msk [vmem:[%s1452_s3 + $0x40] sm:$0xff] %vm704_vm1, %v648_v30  ;;  %745 = vst.msk [vmem:[%s1452_s3 + $0x140] sm:$0xff] %vm704_vm1, %v680_v31  ;;  %v651_v37 = vmax.f32 %v429_v32, 0.0  ;;  %v683_v38 = vmax.f32 %v557_v34, 0.0  ;;  %v421_v39 = vadd.f32 %v1127_v33, %v420_v35  ;;  %v549_v40 = vadd.f32 %v1127_v33, %v548_v36 }
  0xde   :  { %v888_v41 = vpop.f32.mrf.mxu0  ;;  %v920_v42 = vpop.f32.mrf.mxu1 }
  0xdf   :  { %716 = vst.msk [vmem:[%s1452_s3 + $0x58] sm:$0xff] %vm704_vm1, %v651_v37  ;;  %748 = vst.msk [vmem:[%s1452_s3 + $0x158] sm:$0xff] %vm704_vm1, %v683_v38  ;;  %v649_v43 = vmax.f32 %v421_v39, 0.0  ;;  %v681_v44 = vmax.f32 %v549_v40, 0.0  ;;  %v442_v45 = vadd.f32 %v888_v41, %v1127_v33  ;;  %v570_v46 = vadd.f32 %v920_v42, %v1127_v33 }
  0xe0   :  { %v433_v47 = vpop.f32.mrf.mxu0  ;;  %v561_v48 = vpop.f32.mrf.mxu1 }
  0xe1   :  { %714 = vst.msk [vmem:[%s1452_s3 + $0x48] sm:$0xff] %vm704_vm1, %v649_v43  ;;  %746 = vst.msk [vmem:[%s1452_s3 + $0x148] sm:$0xff] %vm704_vm1, %v681_v44  ;;  %v654_v49 = vmax.f32 %v442_v45, 0.0  ;;  %v686_v50 = vmax.f32 %v570_v46, 0.0  ;;  %v434_v51 = vadd.f32 %v1127_v33, %v433_v47  ;;  %v562_v52 = vadd.f32 %v1127_v33, %v561_v48 }
  0xe2   :  { %v889_v53 = vpop.f32.mrf.mxu0  ;;  %v921_v54 = vpop.f32.mrf.mxu1 }
  0xe3   :  { %719 = vst.msk [vmem:[%s1452_s3 + $0x70] sm:$0xff] %vm704_vm1, %v654_v49  ;;  %751 = vst.msk [vmem:[%s1452_s3 + $0x170] sm:$0xff] %vm704_vm1, %v686_v50  ;;  %v652_v55 = vmax.f32 %v434_v51, 0.0  ;;  %v684_v56 = vmax.f32 %v562_v52, 0.0  ;;  %v445_v57 = vadd.f32 %v889_v53, %v1127_v33  ;;  %v573_v58 = vadd.f32 %v921_v54, %v1127_v33 }
  0xe4   :  { %v436_v59 = vpop.f32.mrf.mxu0  ;;  %v564_v60 = vpop.f32.mrf.mxu1 }
  0xe5   :  { %717 = vst.msk [vmem:[%s1452_s3 + $0x60] sm:$0xff] %vm704_vm1, %v652_v55  ;;  %749 = vst.msk [vmem:[%s1452_s3 + $0x160] sm:$0xff] %vm704_vm1, %v684_v56  ;;  %v655_v61 = vmax.f32 %v445_v57, 0.0  ;;  %v687_v62 = vmax.f32 %v573_v58, 0.0  ;;  %v437_v63 = vadd.f32 %v1127_v33, %v436_v59  ;;  %v565_v0 = vadd.f32 %v1127_v33, %v564_v60 }
  0xe6   :  { %v892_v1 = vpop.f32.mrf.mxu0  ;;  %v924_v2 = vpop.f32.mrf.mxu1 }
  0xe7   :  { %720 = vst.msk [vmem:[%s1452_s3 + $0x78] sm:$0xff] %vm704_vm1, %v655_v61  ;;  %752 = vst.msk [vmem:[%s1452_s3 + $0x178] sm:$0xff] %vm704_vm1, %v687_v62  ;;  %v653_v3 = vmax.f32 %v437_v63, 0.0  ;;  %v685_v4 = vmax.f32 %v565_v0, 0.0  ;;  %v458_v5 = vadd.f32 %v892_v1, %v1127_v33  ;;  %v586_v6 = vadd.f32 %v924_v2, %v1127_v33 }
  0xe8   :  { %v449_v7 = vpop.f32.mrf.mxu0  ;;  %v577_v8 = vpop.f32.mrf.mxu1 }
  0xe9   :  { %718 = vst.msk [vmem:[%s1452_s3 + $0x68] sm:$0xff] %vm704_vm1, %v653_v3  ;;  %750 = vst.msk [vmem:[%s1452_s3 + $0x168] sm:$0xff] %vm704_vm1, %v685_v4  ;;  %v658_v9 = vmax.f32 %v458_v5, 0.0  ;;  %v690_v10 = vmax.f32 %v586_v6, 0.0  ;;  %v450_v11 = vadd.f32 %v1127_v33, %v449_v7  ;;  %v578_v12 = vadd.f32 %v1127_v33, %v577_v8 }
  0xea   :  { %v893_v13 = vpop.f32.mrf.mxu0  ;;  %v925_v14 = vpop.f32.mrf.mxu1 }
  0xeb   :  { %723 = vst.msk [vmem:[%s1452_s3 + $0x90] sm:$0xff] %vm704_vm1, %v658_v9  ;;  %755 = vst.msk [vmem:[%s1452_s3 + $0x190] sm:$0xff] %vm704_vm1, %v690_v10  ;;  %v656_v15 = vmax.f32 %v450_v11, 0.0  ;;  %v688_v16 = vmax.f32 %v578_v12, 0.0  ;;  %v461_v17 = vadd.f32 %v893_v13, %v1127_v33  ;;  %v589_v18 = vadd.f32 %v925_v14, %v1127_v33 }
  0xec   :  { %v452_v19 = vpop.f32.mrf.mxu0  ;;  %v580_v20 = vpop.f32.mrf.mxu1 }
  0xed   :  { %721 = vst.msk [vmem:[%s1452_s3 + $0x80] sm:$0xff] %vm704_vm1, %v656_v15  ;;  %753 = vst.msk [vmem:[%s1452_s3 + $0x180] sm:$0xff] %vm704_vm1, %v688_v16  ;;  %v659_v21 = vmax.f32 %v461_v17, 0.0  ;;  %v691_v22 = vmax.f32 %v589_v18, 0.0  ;;  %v453_v23 = vadd.f32 %v1127_v33, %v452_v19  ;;  %v581_v24 = vadd.f32 %v1127_v33, %v580_v20 }
  0xee   :  { %v896_v25 = vpop.f32.mrf.mxu0  ;;  %v928_v26 = vpop.f32.mrf.mxu1 }
  0xef   :  { %724 = vst.msk [vmem:[%s1452_s3 + $0x98] sm:$0xff] %vm704_vm1, %v659_v21  ;;  %756 = vst.msk [vmem:[%s1452_s3 + $0x198] sm:$0xff] %vm704_vm1, %v691_v22  ;;  %v657_v27 = vmax.f32 %v453_v23, 0.0  ;;  %v689_v28 = vmax.f32 %v581_v24, 0.0  ;;  %v474_v29 = vadd.f32 %v896_v25, %v1127_v33  ;;  %v602_v30 = vadd.f32 %v928_v26, %v1127_v33 }
  0xf0   :  { %v465_v31 = vpop.f32.mrf.mxu0  ;;  %v593_v32 = vpop.f32.mrf.mxu1 }
  0xf1   :  { %722 = vst.msk [vmem:[%s1452_s3 + $0x88] sm:$0xff] %vm704_vm1, %v657_v27  ;;  %754 = vst.msk [vmem:[%s1452_s3 + $0x188] sm:$0xff] %vm704_vm1, %v689_v28  ;;  %v662_v34 = vmax.f32 %v474_v29, 0.0  ;;  %v694_v35 = vmax.f32 %v602_v30, 0.0  ;;  %v466_v36 = vadd.f32 %v1127_v33, %v465_v31  ;;  %v594_v37 = vadd.f32 %v1127_v33, %v593_v32 }
  0xf2   :  { %v897_v38 = vpop.f32.mrf.mxu0  ;;  %v929_v39 = vpop.f32.mrf.mxu1 }
  0xf3   :  { %727 = vst.msk [vmem:[%s1452_s3 + $0xb0] sm:$0xff] %vm704_vm1, %v662_v34  ;;  %759 = vst.msk [vmem:[%s1452_s3 + $0x1b0] sm:$0xff] %vm704_vm1, %v694_v35  ;;  %v660_v40 = vmax.f32 %v466_v36, 0.0  ;;  %v692_v41 = vmax.f32 %v594_v37, 0.0  ;;  %v477_v42 = vadd.f32 %v897_v38, %v1127_v33  ;;  %v605_v43 = vadd.f32 %v929_v39, %v1127_v33 }
  0xf4   :  { %v468_v44 = vpop.f32.mrf.mxu0  ;;  %v596_v45 = vpop.f32.mrf.mxu1 }
  0xf5   :  { %725 = vst.msk [vmem:[%s1452_s3 + $0xa0] sm:$0xff] %vm704_vm1, %v660_v40  ;;  %757 = vst.msk [vmem:[%s1452_s3 + $0x1a0] sm:$0xff] %vm704_vm1, %v692_v41  ;;  %v663_v46 = vmax.f32 %v477_v42, 0.0  ;;  %v695_v47 = vmax.f32 %v605_v43, 0.0  ;;  %v469_v48 = vadd.f32 %v1127_v33, %v468_v44  ;;  %v597_v49 = vadd.f32 %v1127_v33, %v596_v45 }
  0xf6   :  { %v900_v50 = vpop.f32.mrf.mxu0  ;;  %v932_v51 = vpop.f32.mrf.mxu1 }
  0xf7   :  { %728 = vst.msk [vmem:[%s1452_s3 + $0xb8] sm:$0xff] %vm704_vm1, %v663_v46  ;;  %760 = vst.msk [vmem:[%s1452_s3 + $0x1b8] sm:$0xff] %vm704_vm1, %v695_v47  ;;  %v661_v52 = vmax.f32 %v469_v48, 0.0  ;;  %v693_v53 = vmax.f32 %v597_v49, 0.0  ;;  %v490_v54 = vadd.f32 %v900_v50, %v1127_v33  ;;  %v618_v55 = vadd.f32 %v932_v51, %v1127_v33 }
  0xf8   :  { %v481_v56 = vpop.f32.mrf.mxu0  ;;  %v609_v57 = vpop.f32.mrf.mxu1 }
  0xf9   :  { %726 = vst.msk [vmem:[%s1452_s3 + $0xa8] sm:$0xff] %vm704_vm1, %v661_v52  ;;  %758 = vst.msk [vmem:[%s1452_s3 + $0x1a8] sm:$0xff] %vm704_vm1, %v693_v53  ;;  %v666_v58 = vmax.f32 %v490_v54, 0.0  ;;  %v698_v59 = vmax.f32 %v618_v55, 0.0  ;;  %v482_v60 = vadd.f32 %v1127_v33, %v481_v56  ;;  %v610_v61 = vadd.f32 %v1127_v33, %v609_v57 }
  0xfa   :  { %v901_v62 = vpop.f32.mrf.mxu0  ;;  %v933_v63 = vpop.f32.mrf.mxu1 }
  0xfb   :  { %731 = vst.msk [vmem:[%s1452_s3 + $0xd0] sm:$0xff] %vm704_vm1, %v666_v58  ;;  %763 = vst.msk [vmem:[%s1452_s3 + $0x1d0] sm:$0xff] %vm704_vm1, %v698_v59  ;;  %v664_v0 = vmax.f32 %v482_v60, 0.0  ;;  %v696_v1 = vmax.f32 %v610_v61, 0.0  ;;  %v493_v2 = vadd.f32 %v901_v62, %v1127_v33  ;;  %v621_v3 = vadd.f32 %v933_v63, %v1127_v33 }
  0xfc   :  { %v484_v4 = vpop.f32.mrf.mxu0  ;;  %v612_v5 = vpop.f32.mrf.mxu1 }
  0xfd   :  { %729 = vst.msk [vmem:[%s1452_s3 + $0xc0] sm:$0xff] %vm704_vm1, %v664_v0  ;;  %761 = vst.msk [vmem:[%s1452_s3 + $0x1c0] sm:$0xff] %vm704_vm1, %v696_v1  ;;  %v667_v6 = vmax.f32 %v493_v2, 0.0  ;;  %v699_v7 = vmax.f32 %v621_v3, 0.0  ;;  %v485_v8 = vadd.f32 %v1127_v33, %v484_v4  ;;  %v613_v9 = vadd.f32 %v1127_v33, %v612_v5 }
  0xfe   :  { %v904_v10 = vpop.f32.mrf.mxu0  ;;  %v936_v11 = vpop.f32.mrf.mxu1 }
  0xff   :  { %732 = vst.msk [vmem:[%s1452_s3 + $0xd8] sm:$0xff] %vm704_vm1, %v667_v6  ;;  %764 = vst.msk [vmem:[%s1452_s3 + $0x1d8] sm:$0xff] %vm704_vm1, %v699_v7  ;;  %v665_v12 = vmax.f32 %v485_v8, 0.0  ;;  %v697_v13 = vmax.f32 %v613_v9, 0.0  ;;  %v506_v14 = vadd.f32 %v904_v10, %v1127_v33  ;;  %v634_v15 = vadd.f32 %v936_v11, %v1127_v33 }
 0x100   :  { %v497_v16 = vpop.f32.mrf.mxu0  ;;  %v625_v17 = vpop.f32.mrf.mxu1 }
 0x101   :  { %730 = vst.msk [vmem:[%s1452_s3 + $0xc8] sm:$0xff] %vm704_vm1, %v665_v12  ;;  %762 = vst.msk [vmem:[%s1452_s3 + $0x1c8] sm:$0xff] %vm704_vm1, %v697_v13  ;;  %v670_v18 = vmax.f32 %v506_v14, 0.0  ;;  %v702_v19 = vmax.f32 %v634_v15, 0.0  ;;  %v498_v20 = vadd.f32 %v1127_v33, %v497_v16  ;;  %v626_v21 = vadd.f32 %v1127_v33, %v625_v17 }
 0x102   :  { %v905_v22 = vpop.f32.mrf.mxu0  ;;  %v937_v23 = vpop.f32.mrf.mxu1 }
 0x103   :  { %735 = vst.msk [vmem:[%s1452_s3 + $0xf0] sm:$0xff] %vm704_vm1, %v670_v18  ;;  %767 = vst.msk [vmem:[%s1452_s3 + $0x1f0] sm:$0xff] %vm704_vm1, %v702_v19  ;;  %v668_v24 = vmax.f32 %v498_v20, 0.0  ;;  %v700_v25 = vmax.f32 %v626_v21, 0.0  ;;  %v509_v26 = vadd.f32 %v905_v22, %v1127_v33  ;;  %v637_v27 = vadd.f32 %v937_v23, %v1127_v33 }
 0x104   :  { %v500_v28 = vpop.f32.mrf.mxu0  ;;  %v628_v29 = vpop.f32.mrf.mxu1 }
 0x105   :  { %733 = vst.msk [vmem:[%s1452_s3 + $0xe0] sm:$0xff] %vm704_vm1, %v668_v24  ;;  %765 = vst.msk [vmem:[%s1452_s3 + $0x1e0] sm:$0xff] %vm704_vm1, %v700_v25  ;;  %v671_v30 = vmax.f32 %v509_v26, 0.0  ;;  %v703_v31 = vmax.f32 %v637_v27, 0.0  ;;  %v501_v32 = vadd.f32 %v1127_v33, %v500_v28  ;;  %v629_v34 = vadd.f32 %v1127_v33, %v628_v29 }
 0x107   :  { %736 = vst.msk [vmem:[%s1452_s3 + $0xf8] sm:$0xff] %vm704_vm1, %v671_v30  ;;  %768 = vst.msk [vmem:[%s1452_s3 + $0x1f8] sm:$0xff] %vm704_vm1, %v703_v31  ;;  %v669_v35 = vmax.f32 %v501_v32, 0.0  ;;  %v701_v36 = vmax.f32 %v629_v34, 0.0 }
 0x109   :  { %734 = vst.msk [vmem:[%s1452_s3 + $0xe8] sm:$0xff] %vm704_vm1, %v669_v35  ;;  %766 = vst.msk [vmem:[%s1452_s3 + $0x1e8] sm:$0xff] %vm704_vm1, %v701_v36 }

// kernel: enet_forward.173
= control target key start
LH: loop header
LB: loop body
LE: loop exit
PB: predicated region body
PF: predicated region fallthrough
CT: control target
= control target key end

     0   :  { %vm257_vm0 = vcmask 130048   ;;  %s1840_s1 = inlined_call_operand.vmem [shape: bf16[16,16], index: 1, kind: input, shape index: {}]   ;;  %s1841_s0 = inlined_call_operand.vmem [shape: bf16[512,16], index: 0, kind: input, shape index: {}]   ;;  %s1842_s2 = inlined_call_operand.vmem [shape: f32[1,16], index: 2, kind: input, shape index: {}]   ;;  %s1843_s3 = inlined_call_operand.vmem [shape: f32[512,16], index: 3, kind: input, shape index: {}]   ;;  %s1844_s4 = inlined_call_operand.vmem [shape: f32[512,16], index: 4, kind: output, shape index: {}]  }
   0x1   :  { %v1134_v0 = vld [vmem:[%s1840_s1] sm:$0xff]   ;;  %v1137_v3 = vld [vmem:[%s1841_s0 + $0x8] sm:$0xff]   ;;  %v1139_v5 = vld [vmem:[%s1841_s0 + $0x10] sm:$0xff]  }
   0x2   :  { %v1135_v1 = vld [vmem:[%s1841_s0] sm:$0xff]   ;;  %1066 = vmatprep.subr.bf16.mxu0 %v1134_v0  ;;  %1132 = vmatprep.subr.bf16.mxu1 %v1134_v0  ;;  %v1138_v4 = vld [vmem:[%s1841_s0 + $0x88] sm:$0xff]   ;;  %v1140_v6 = vld [vmem:[%s1841_s0 + $0x90] sm:$0xff]  }
   0x3   :  { %v1136_v2 = vld [vmem:[%s1841_s0 + $0x80] sm:$0xff]   ;;  %1067 = vmatpush3.bf16.msra.mxu0 %v1134_v0  ;;  %1133 = vmatpush3.bf16.msra.mxu1 %v1134_v0  ;;  %v1141_v7 = vld [vmem:[%s1841_s0 + $0x18] sm:$0xff]   ;;  %v1145_v11 = vld [vmem:[%s1841_s0 + $0x28] sm:$0xff]  }
   0x4   :  { %1068 = vmatprep.mubr.msk.bf16.mxu0 %vm257_vm0, %v1135_v1  ;;  %1100 = vmatprep.mubr.msk.bf16.mxu1 %vm257_vm0, %v1136_v2  ;;  %v1142_v8 = vld [vmem:[%s1841_s0 + $0x98] sm:$0xff]   ;;  %v1143_v9 = vld [vmem:[%s1841_s0 + $0x20] sm:$0xff]   ;;  %v1146_v12 = vld [vmem:[%s1841_s0 + $0xa8] sm:$0xff]  }
   0x5   :  { %v1144_v10 = vld [vmem:[%s1841_s0 + $0xa0] sm:$0xff]   ;;  %v1147_v13 = vld [vmem:[%s1841_s0 + $0x30] sm:$0xff]   ;;  %v1149_v15 = vld [vmem:[%s1841_s0 + $0x38] sm:$0xff]  }
   0x6   :  { %1069 = vmatmul.mubr.msk.bf16.vlgmr.msra.gmra.mxu0 %vm257_vm0, %v1137_v3  ;;  %1101 = vmatmul.mubr.msk.bf16.vlgmr.msra.gmra.mxu1 %vm257_vm0, %v1138_v4  ;;  %v1148_v14 = vld [vmem:[%s1841_s0 + $0xb0] sm:$0xff]   ;;  %v1150_v16 = vld [vmem:[%s1841_s0 + $0xb8] sm:$0xff]   ;;  %v1151_v17 = vld [vmem:[%s1841_s0 + $0x40] sm:$0xff]  }
   0x7   :  { %1072 = vmatprep.mubr.msk.bf16.mxu0 %vm257_vm0, %v1139_v5  ;;  %1104 = vmatprep.mubr.msk.bf16.mxu1 %vm257_vm0, %v1140_v6  ;;  %v1152_v18 = vld [vmem:[%s1841_s0 + $0xc0] sm:$0xff]   ;;  %v1153_v19 = vld [vmem:[%s1841_s0 + $0x48] sm:$0xff]   ;;  %v1155_v21 = vld [vmem:[%s1841_s0 + $0x50] sm:$0xff]  }
   0x8   :  { %v1154_v20 = vld [vmem:[%s1841_s0 + $0xc8] sm:$0xff]   ;;  %v1156_v22 = vld [vmem:[%s1841_s0 + $0xd0] sm:$0xff]   ;;  %v1157_v23 = vld [vmem:[%s1841_s0 + $0x58] sm:$0xff]  }
   0x9   :  { %v1158_v24 = vld [vmem:[%s1841_s0 + $0xd8] sm:$0xff]   ;;  %v1159_v25 = vld [vmem:[%s1841_s0 + $0x60] sm:$0xff]   ;;  %v1161_v27 = vld [vmem:[%s1841_s0 + $0x68] sm:$0xff]  }
   0xa   :  { %v1160_v26 = vld [vmem:[%s1841_s0 + $0xe0] sm:$0xff]   ;;  %v1162_v28 = vld [vmem:[%s1841_s0 + $0xe8] sm:$0xff]   ;;  %v1163_v29 = vld [vmem:[%s1841_s0 + $0x70] sm:$0xff]  }
   0xb   :  { %v1164_v30 = vld [vmem:[%s1841_s0 + $0xf0] sm:$0xff]   ;;  %v1165_v31 = vld [vmem:[%s1841_s0 + $0x78] sm:$0xff]   ;;  %v1326_v33 = vld [vmem:[%s1842_s2] ss:$0 sm:$0xff] }
   0xc   :  { %v1166_v32 = vld [vmem:[%s1841_s0 + $0xf8] sm:$0xff]   ;;  %v709_v38 = vld [vmem:[%s1843_s3 + $0x10] sm:$0xff]  ;;  %v707_v46 = vld [vmem:[%s1843_s3] sm:$0xff] }
   0xd   :  { %v741_v39 = vld [vmem:[%s1843_s3 + $0x110] sm:$0xff]  ;;  %v739_v47 = vld [vmem:[%s1843_s3 + $0x100] sm:$0xff]  ;;  %v710_v62 = vld [vmem:[%s1843_s3 + $0x18] sm:$0xff] }
   0xe   :  { %1073 = vmatmul.mubr.msk.bf16.gmra.mxu0 %vm257_vm0, %v1141_v7  ;;  %1105 = vmatmul.mubr.msk.bf16.gmra.mxu1 %vm257_vm0, %v1142_v8  ;;  %v742_v63 = vld [vmem:[%s1843_s3 + $0x118] sm:$0xff]  ;;  %v708_v8 = vld [vmem:[%s1843_s3 + $0x8] sm:$0xff] }
   0xf   :  { %1076 = vmatprep.mubr.msk.bf16.mxu0 %vm257_vm0, %v1143_v9  ;;  %1108 = vmatprep.mubr.msk.bf16.mxu1 %vm257_vm0, %v1144_v10  ;;  %v740_v9 = vld [vmem:[%s1843_s3 + $0x108] sm:$0xff] }
  0x16   :  { %1077 = vmatmul.mubr.msk.bf16.gmra.mxu0 %vm257_vm0, %v1145_v11  ;;  %1109 = vmatmul.mubr.msk.bf16.gmra.mxu1 %vm257_vm0, %v1146_v12 }
  0x17   :  { %1080 = vmatprep.mubr.msk.bf16.mxu0 %vm257_vm0, %v1147_v13  ;;  %1112 = vmatprep.mubr.msk.bf16.mxu1 %vm257_vm0, %v1148_v14 }
  0x1e   :  { %1081 = vmatmul.mubr.msk.bf16.gmra.mxu0 %vm257_vm0, %v1149_v15  ;;  %1113 = vmatmul.mubr.msk.bf16.gmra.mxu1 %vm257_vm0, %v1150_v16  ;;  %v713_v16 = vld [vmem:[%s1843_s3 + $0x30] sm:$0xff] }
  0x1f   :  { %1084 = vmatprep.mubr.msk.bf16.mxu0 %vm257_vm0, %v1151_v17  ;;  %1116 = vmatprep.mubr.msk.bf16.mxu1 %vm257_vm0, %v1152_v18  ;;  %v745_v17 = vld [vmem:[%s1843_s3 + $0x130] sm:$0xff] }
  0x26   :  { %1085 = vmatmul.mubr.msk.bf16.gmra.mxu0 %vm257_vm0, %v1153_v19  ;;  %1117 = vmatmul.mubr.msk.bf16.gmra.mxu1 %vm257_vm0, %v1154_v20 }
  0x27   :  { %1088 = vmatprep.mubr.msk.bf16.mxu0 %vm257_vm0, %v1155_v21  ;;  %1120 = vmatprep.mubr.msk.bf16.mxu1 %vm257_vm0, %v1156_v22 }
  0x2e   :  { %1089 = vmatmul.mubr.msk.bf16.gmra.mxu0 %vm257_vm0, %v1157_v23  ;;  %1121 = vmatmul.mubr.msk.bf16.gmra.mxu1 %vm257_vm0, %v1158_v24 }
  0x2f   :  { %1092 = vmatprep.mubr.msk.bf16.mxu0 %vm257_vm0, %v1159_v25  ;;  %1124 = vmatprep.mubr.msk.bf16.mxu1 %vm257_vm0, %v1160_v26 }
  0x36   :  { %1093 = vmatmul.mubr.msk.bf16.gmra.mxu0 %vm257_vm0, %v1161_v27  ;;  %1125 = vmatmul.mubr.msk.bf16.gmra.mxu1 %vm257_vm0, %v1162_v28  ;;  %v711_v28 = vld [vmem:[%s1843_s3 + $0x20] sm:$0xff] }
  0x37   :  { %1096 = vmatprep.mubr.msk.bf16.mxu0 %vm257_vm0, %v1163_v29  ;;  %1128 = vmatprep.mubr.msk.bf16.mxu1 %vm257_vm0, %v1164_v30  ;;  %v743_v29 = vld [vmem:[%s1843_s3 + $0x120] sm:$0xff] }
  0x3e   :  { %1097 = vmatmul.mubr.msk.bf16.gmra.mxu0 %vm257_vm0, %v1165_v31  ;;  %1129 = vmatmul.mubr.msk.bf16.gmra.mxu1 %vm257_vm0, %v1166_v32 }
  0xc6   :  { %v1070_v34 = vpop.f32.mrf.mxu0  ;;  %v1102_v35 = vpop.f32.mrf.mxu1 }
  0xc7   :  { %v397_v36 = vadd.f32 %v1070_v34, %v1326_v33  ;;  %v525_v37 = vadd.f32 %v1102_v35, %v1326_v33 }
  0xc8   :  { %v388_v40 = vpop.f32.mrf.mxu0  ;;  %v516_v41 = vpop.f32.mrf.mxu1 }
  0xc9   :  { %v645_v42 = vmax.f32 %v397_v36, 0.0  ;;  %v677_v43 = vmax.f32 %v525_v37, 0.0  ;;  %v389_v44 = vadd.f32 %v1326_v33, %v388_v40  ;;  %v517_v45 = vadd.f32 %v1326_v33, %v516_v41 }
  0xca   :  { %v1071_v48 = vpop.f32.mrf.mxu0  ;;  %v1103_v49 = vpop.f32.mrf.mxu1 }
  0xcb   :  { %v773_v50 = vadd.f32 %v709_v38, %v645_v42  ;;  %v805_v51 = vadd.f32 %v741_v39, %v677_v43  ;;  %v643_v52 = vmax.f32 %v389_v44, 0.0  ;;  %v675_v53 = vmax.f32 %v517_v45, 0.0 }
  0xcc   :  { %v400_v54 = vadd.f32 %v1071_v48, %v1326_v33  ;;  %v528_v55 = vadd.f32 %v1103_v49, %v1326_v33  ;;  %v391_v56 = vpop.f32.mrf.mxu0  ;;  %v519_v57 = vpop.f32.mrf.mxu1  ;;  %v746_v48 = vld [vmem:[%s1843_s3 + $0x138] sm:$0xff] }
  0xcd   :  { %v837_v58 = vmax.f32 %v773_v50, 0.0  ;;  %v869_v59 = vmax.f32 %v805_v51, 0.0  ;;  %v771_v60 = vadd.f32 %v707_v46, %v643_v52  ;;  %v803_v61 = vadd.f32 %v739_v47, %v675_v53  ;;  %v714_v47 = vld [vmem:[%s1843_s3 + $0x38] sm:$0xff] }
  0xce   :  { %v646_v0 = vmax.f32 %v400_v54, 0.0  ;;  %v678_v1 = vmax.f32 %v528_v55, 0.0  ;;  %v392_v2 = vadd.f32 %v1326_v33, %v391_v56  ;;  %v520_v3 = vadd.f32 %v1326_v33, %v519_v57  ;;  %v1074_v4 = vpop.f32.mrf.mxu0  ;;  %v1106_v5 = vpop.f32.mrf.mxu1  ;;  %v712_v57 = vld [vmem:[%s1843_s3 + $0x28] sm:$0xff] }
  0xcf   :  { %901 = vst.msk [vmem:[%s1844_s4 + $0x10] sm:$0xff] %vm257_vm0, %v837_v58  ;;  %933 = vst.msk [vmem:[%s1844_s4 + $0x110] sm:$0xff] %vm257_vm0, %v869_v59  ;;  %v835_v6 = vmax.f32 %v771_v60, 0.0  ;;  %v867_v7 = vmax.f32 %v803_v61, 0.0  ;;  %v413_v10 = vadd.f32 %v1074_v4, %v1326_v33  ;;  %v541_v11 = vadd.f32 %v1106_v5, %v1326_v33  ;;  %v744_v58 = vld [vmem:[%s1843_s3 + $0x128] sm:$0xff] }
  0xd0   :  { %v774_v12 = vadd.f32 %v710_v62, %v646_v0  ;;  %v806_v13 = vadd.f32 %v742_v63, %v678_v1  ;;  %v644_v14 = vmax.f32 %v392_v2, 0.0  ;;  %v676_v15 = vmax.f32 %v520_v3, 0.0  ;;  %v404_v18 = vpop.f32.mrf.mxu0  ;;  %v532_v19 = vpop.f32.mrf.mxu1  ;;  %v717_v1 = vld [vmem:[%s1843_s3 + $0x50] sm:$0xff] }
  0xd1   :  { %899 = vst.msk [vmem:[%s1844_s4] sm:$0xff] %vm257_vm0, %v835_v6  ;;  %931 = vst.msk [vmem:[%s1844_s4 + $0x100] sm:$0xff] %vm257_vm0, %v867_v7  ;;  %v649_v20 = vmax.f32 %v413_v10, 0.0  ;;  %v681_v21 = vmax.f32 %v541_v11, 0.0  ;;  %v405_v22 = vadd.f32 %v1326_v33, %v404_v18  ;;  %v533_v23 = vadd.f32 %v1326_v33, %v532_v19  ;;  %v749_v2 = vld [vmem:[%s1843_s3 + $0x150] sm:$0xff] }
  0xd2   :  { %v838_v24 = vmax.f32 %v774_v12, 0.0  ;;  %v870_v25 = vmax.f32 %v806_v13, 0.0  ;;  %v772_v26 = vadd.f32 %v708_v8, %v644_v14  ;;  %v804_v27 = vadd.f32 %v740_v9, %v676_v15  ;;  %v1075_v30 = vpop.f32.mrf.mxu0  ;;  %v1107_v31 = vpop.f32.mrf.mxu1  ;;  %v715_v13 = vld [vmem:[%s1843_s3 + $0x40] sm:$0xff] }
  0xd3   :  { %v777_v32 = vadd.f32 %v713_v16, %v649_v20  ;;  %v809_v34 = vadd.f32 %v745_v17, %v681_v21  ;;  %v647_v35 = vmax.f32 %v405_v22, 0.0  ;;  %v679_v36 = vmax.f32 %v533_v23, 0.0  ;;  %v747_v14 = vld [vmem:[%s1843_s3 + $0x140] sm:$0xff] }
  0xd4   :  { %902 = vst.msk [vmem:[%s1844_s4 + $0x18] sm:$0xff] %vm257_vm0, %v838_v24  ;;  %934 = vst.msk [vmem:[%s1844_s4 + $0x118] sm:$0xff] %vm257_vm0, %v870_v25  ;;  %v836_v37 = vmax.f32 %v772_v26, 0.0  ;;  %v868_v38 = vmax.f32 %v804_v27, 0.0  ;;  %v416_v39 = vadd.f32 %v1075_v30, %v1326_v33  ;;  %v544_v40 = vadd.f32 %v1107_v31, %v1326_v33  ;;  %v407_v41 = vpop.f32.mrf.mxu0  ;;  %v535_v42 = vpop.f32.mrf.mxu1  ;;  %v718_v31 = vld [vmem:[%s1843_s3 + $0x58] sm:$0xff] }
  0xd5   :  { %v841_v43 = vmax.f32 %v777_v32, 0.0  ;;  %v873_v44 = vmax.f32 %v809_v34, 0.0  ;;  %v775_v45 = vadd.f32 %v711_v28, %v647_v35  ;;  %v807_v46 = vadd.f32 %v743_v29, %v679_v36  ;;  %v750_v32 = vld [vmem:[%s1843_s3 + $0x158] sm:$0xff] }
  0xd6   :  { %900 = vst.msk [vmem:[%s1844_s4 + $0x8] sm:$0xff] %vm257_vm0, %v836_v37  ;;  %932 = vst.msk [vmem:[%s1844_s4 + $0x108] sm:$0xff] %vm257_vm0, %v868_v38  ;;  %v650_v49 = vmax.f32 %v416_v39, 0.0  ;;  %v682_v50 = vmax.f32 %v544_v40, 0.0  ;;  %v408_v51 = vadd.f32 %v1326_v33, %v407_v41  ;;  %v536_v52 = vadd.f32 %v1326_v33, %v535_v42  ;;  %v1078_v53 = vpop.f32.mrf.mxu0  ;;  %v1110_v54 = vpop.f32.mrf.mxu1  ;;  %v716_v42 = vld [vmem:[%s1843_s3 + $0x48] sm:$0xff] }
  0xd7   :  { %905 = vst.msk [vmem:[%s1844_s4 + $0x30] sm:$0xff] %vm257_vm0, %v841_v43  ;;  %937 = vst.msk [vmem:[%s1844_s4 + $0x130] sm:$0xff] %vm257_vm0, %v873_v44  ;;  %v839_v55 = vmax.f32 %v775_v45, 0.0  ;;  %v871_v56 = vmax.f32 %v807_v46, 0.0  ;;  %v429_v59 = vadd.f32 %v1078_v53, %v1326_v33  ;;  %v557_v60 = vadd.f32 %v1110_v54, %v1326_v33  ;;  %v748_v43 = vld [vmem:[%s1843_s3 + $0x148] sm:$0xff] }
  0xd8   :  { %v778_v61 = vadd.f32 %v714_v47, %v650_v49  ;;  %v810_v62 = vadd.f32 %v746_v48, %v682_v50  ;;  %v648_v63 = vmax.f32 %v408_v51, 0.0  ;;  %v680_v0 = vmax.f32 %v536_v52, 0.0  ;;  %v420_v3 = vpop.f32.mrf.mxu0  ;;  %v548_v4 = vpop.f32.mrf.mxu1  ;;  %v721_v50 = vld [vmem:[%s1843_s3 + $0x70] sm:$0xff] }
  0xd9   :  { %903 = vst.msk [vmem:[%s1844_s4 + $0x20] sm:$0xff] %vm257_vm0, %v839_v55  ;;  %935 = vst.msk [vmem:[%s1844_s4 + $0x120] sm:$0xff] %vm257_vm0, %v871_v56  ;;  %v653_v5 = vmax.f32 %v429_v59, 0.0  ;;  %v685_v6 = vmax.f32 %v557_v60, 0.0  ;;  %v421_v7 = vadd.f32 %v1326_v33, %v420_v3  ;;  %v549_v8 = vadd.f32 %v1326_v33, %v548_v4  ;;  %v753_v51 = vld [vmem:[%s1843_s3 + $0x170] sm:$0xff] }
  0xda   :  { %v842_v9 = vmax.f32 %v778_v61, 0.0  ;;  %v874_v10 = vmax.f32 %v810_v62, 0.0  ;;  %v776_v11 = vadd.f32 %v712_v57, %v648_v63  ;;  %v808_v12 = vadd.f32 %v744_v58, %v680_v0  ;;  %v1079_v15 = vpop.f32.mrf.mxu0  ;;  %v1111_v16 = vpop.f32.mrf.mxu1  ;;  %v719_v62 = vld [vmem:[%s1843_s3 + $0x60] sm:$0xff] }
  0xdb   :  { %v781_v17 = vadd.f32 %v717_v1, %v653_v5  ;;  %v813_v18 = vadd.f32 %v749_v2, %v685_v6  ;;  %v651_v19 = vmax.f32 %v421_v7, 0.0  ;;  %v683_v20 = vmax.f32 %v549_v8, 0.0  ;;  %v751_v63 = vld [vmem:[%s1843_s3 + $0x160] sm:$0xff] }
  0xdc   :  { %906 = vst.msk [vmem:[%s1844_s4 + $0x38] sm:$0xff] %vm257_vm0, %v842_v9  ;;  %938 = vst.msk [vmem:[%s1844_s4 + $0x138] sm:$0xff] %vm257_vm0, %v874_v10  ;;  %v840_v21 = vmax.f32 %v776_v11, 0.0  ;;  %v872_v22 = vmax.f32 %v808_v12, 0.0  ;;  %v432_v23 = vadd.f32 %v1079_v15, %v1326_v33  ;;  %v560_v24 = vadd.f32 %v1111_v16, %v1326_v33  ;;  %v423_v25 = vpop.f32.mrf.mxu0  ;;  %v551_v26 = vpop.f32.mrf.mxu1  ;;  %v722_v16 = vld [vmem:[%s1843_s3 + $0x78] sm:$0xff] }
  0xdd   :  { %v845_v27 = vmax.f32 %v781_v17, 0.0  ;;  %v877_v28 = vmax.f32 %v813_v18, 0.0  ;;  %v779_v29 = vadd.f32 %v715_v13, %v651_v19  ;;  %v811_v30 = vadd.f32 %v747_v14, %v683_v20  ;;  %v754_v17 = vld [vmem:[%s1843_s3 + $0x178] sm:$0xff] }
  0xde   :  { %904 = vst.msk [vmem:[%s1844_s4 + $0x28] sm:$0xff] %vm257_vm0, %v840_v21  ;;  %936 = vst.msk [vmem:[%s1844_s4 + $0x128] sm:$0xff] %vm257_vm0, %v872_v22  ;;  %v654_v34 = vmax.f32 %v432_v23, 0.0  ;;  %v686_v35 = vmax.f32 %v560_v24, 0.0  ;;  %v424_v36 = vadd.f32 %v1326_v33, %v423_v25  ;;  %v552_v37 = vadd.f32 %v1326_v33, %v551_v26  ;;  %v1082_v38 = vpop.f32.mrf.mxu0  ;;  %v1114_v39 = vpop.f32.mrf.mxu1  ;;  %v720_v26 = vld [vmem:[%s1843_s3 + $0x68] sm:$0xff] }
  0xdf   :  { %909 = vst.msk [vmem:[%s1844_s4 + $0x50] sm:$0xff] %vm257_vm0, %v845_v27  ;;  %941 = vst.msk [vmem:[%s1844_s4 + $0x150] sm:$0xff] %vm257_vm0, %v877_v28  ;;  %v843_v40 = vmax.f32 %v779_v29, 0.0  ;;  %v875_v41 = vmax.f32 %v811_v30, 0.0  ;;  %v445_v44 = vadd.f32 %v1082_v38, %v1326_v33  ;;  %v573_v45 = vadd.f32 %v1114_v39, %v1326_v33  ;;  %v752_v27 = vld [vmem:[%s1843_s3 + $0x168] sm:$0xff] }
  0xe0   :  { %v782_v46 = vadd.f32 %v718_v31, %v654_v34  ;;  %v814_v47 = vadd.f32 %v750_v32, %v686_v35  ;;  %v652_v48 = vmax.f32 %v424_v36, 0.0  ;;  %v684_v49 = vmax.f32 %v552_v37, 0.0  ;;  %v436_v52 = vpop.f32.mrf.mxu0  ;;  %v564_v53 = vpop.f32.mrf.mxu1  ;;  %v725_v35 = vld [vmem:[%s1843_s3 + $0x90] sm:$0xff] }
  0xe1   :  { %907 = vst.msk [vmem:[%s1844_s4 + $0x40] sm:$0xff] %vm257_vm0, %v843_v40  ;;  %939 = vst.msk [vmem:[%s1844_s4 + $0x140] sm:$0xff] %vm257_vm0, %v875_v41  ;;  %v657_v54 = vmax.f32 %v445_v44, 0.0  ;;  %v689_v55 = vmax.f32 %v573_v45, 0.0  ;;  %v437_v56 = vadd.f32 %v1326_v33, %v436_v52  ;;  %v565_v57 = vadd.f32 %v1326_v33, %v564_v53  ;;  %v757_v36 = vld [vmem:[%s1843_s3 + $0x190] sm:$0xff] }
  0xe2   :  { %v846_v58 = vmax.f32 %v782_v46, 0.0  ;;  %v878_v59 = vmax.f32 %v814_v47, 0.0  ;;  %v780_v60 = vadd.f32 %v716_v42, %v652_v48  ;;  %v812_v61 = vadd.f32 %v748_v43, %v684_v49  ;;  %v1083_v0 = vpop.f32.mrf.mxu0  ;;  %v1115_v1 = vpop.f32.mrf.mxu1  ;;  %v723_v47 = vld [vmem:[%s1843_s3 + $0x80] sm:$0xff] }
  0xe3   :  { %v785_v2 = vadd.f32 %v721_v50, %v657_v54  ;;  %v817_v3 = vadd.f32 %v753_v51, %v689_v55  ;;  %v655_v4 = vmax.f32 %v437_v56, 0.0  ;;  %v687_v5 = vmax.f32 %v565_v57, 0.0  ;;  %v755_v48 = vld [vmem:[%s1843_s3 + $0x180] sm:$0xff] }
  0xe4   :  { %910 = vst.msk [vmem:[%s1844_s4 + $0x58] sm:$0xff] %vm257_vm0, %v846_v58  ;;  %942 = vst.msk [vmem:[%s1844_s4 + $0x158] sm:$0xff] %vm257_vm0, %v878_v59  ;;  %v844_v6 = vmax.f32 %v780_v60, 0.0  ;;  %v876_v7 = vmax.f32 %v812_v61, 0.0  ;;  %v448_v8 = vadd.f32 %v1083_v0, %v1326_v33  ;;  %v576_v9 = vadd.f32 %v1115_v1, %v1326_v33  ;;  %v439_v10 = vpop.f32.mrf.mxu0  ;;  %v567_v11 = vpop.f32.mrf.mxu1  ;;  %v726_v1 = vld [vmem:[%s1843_s3 + $0x98] sm:$0xff] }
  0xe5   :  { %v849_v12 = vmax.f32 %v785_v2, 0.0  ;;  %v881_v13 = vmax.f32 %v817_v3, 0.0  ;;  %v783_v14 = vadd.f32 %v719_v62, %v655_v4  ;;  %v815_v15 = vadd.f32 %v751_v63, %v687_v5  ;;  %v758_v2 = vld [vmem:[%s1843_s3 + $0x198] sm:$0xff] }
  0xe6   :  { %908 = vst.msk [vmem:[%s1844_s4 + $0x48] sm:$0xff] %vm257_vm0, %v844_v6  ;;  %940 = vst.msk [vmem:[%s1844_s4 + $0x148] sm:$0xff] %vm257_vm0, %v876_v7  ;;  %v658_v18 = vmax.f32 %v448_v8, 0.0  ;;  %v690_v19 = vmax.f32 %v576_v9, 0.0  ;;  %v440_v20 = vadd.f32 %v1326_v33, %v439_v10  ;;  %v568_v21 = vadd.f32 %v1326_v33, %v567_v11  ;;  %v1086_v22 = vpop.f32.mrf.mxu0  ;;  %v1118_v23 = vpop.f32.mrf.mxu1  ;;  %v724_v11 = vld [vmem:[%s1843_s3 + $0x88] sm:$0xff] }
  0xe7   :  { %913 = vst.msk [vmem:[%s1844_s4 + $0x70] sm:$0xff] %vm257_vm0, %v849_v12  ;;  %945 = vst.msk [vmem:[%s1844_s4 + $0x170] sm:$0xff] %vm257_vm0, %v881_v13  ;;  %v847_v24 = vmax.f32 %v783_v14, 0.0  ;;  %v879_v25 = vmax.f32 %v815_v15, 0.0  ;;  %v461_v28 = vadd.f32 %v1086_v22, %v1326_v33  ;;  %v589_v29 = vadd.f32 %v1118_v23, %v1326_v33  ;;  %v756_v12 = vld [vmem:[%s1843_s3 + $0x188] sm:$0xff] }
  0xe8   :  { %v786_v30 = vadd.f32 %v722_v16, %v658_v18  ;;  %v818_v31 = vadd.f32 %v754_v17, %v690_v19  ;;  %v656_v32 = vmax.f32 %v440_v20, 0.0  ;;  %v688_v34 = vmax.f32 %v568_v21, 0.0  ;;  %v452_v37 = vpop.f32.mrf.mxu0  ;;  %v580_v38 = vpop.f32.mrf.mxu1  ;;  %v729_v19 = vld [vmem:[%s1843_s3 + $0xb0] sm:$0xff] }
  0xe9   :  { %911 = vst.msk [vmem:[%s1844_s4 + $0x60] sm:$0xff] %vm257_vm0, %v847_v24  ;;  %943 = vst.msk [vmem:[%s1844_s4 + $0x160] sm:$0xff] %vm257_vm0, %v879_v25  ;;  %v661_v39 = vmax.f32 %v461_v28, 0.0  ;;  %v693_v40 = vmax.f32 %v589_v29, 0.0  ;;  %v453_v41 = vadd.f32 %v1326_v33, %v452_v37  ;;  %v581_v42 = vadd.f32 %v1326_v33, %v580_v38  ;;  %v761_v20 = vld [vmem:[%s1843_s3 + $0x1b0] sm:$0xff] }
  0xea   :  { %v850_v43 = vmax.f32 %v786_v30, 0.0  ;;  %v882_v44 = vmax.f32 %v818_v31, 0.0  ;;  %v784_v45 = vadd.f32 %v720_v26, %v656_v32  ;;  %v816_v46 = vadd.f32 %v752_v27, %v688_v34  ;;  %v1087_v49 = vpop.f32.mrf.mxu0  ;;  %v1119_v50 = vpop.f32.mrf.mxu1  ;;  %v727_v31 = vld [vmem:[%s1843_s3 + $0xa0] sm:$0xff] }
  0xeb   :  { %v789_v51 = vadd.f32 %v725_v35, %v661_v39  ;;  %v821_v52 = vadd.f32 %v757_v36, %v693_v40  ;;  %v659_v53 = vmax.f32 %v453_v41, 0.0  ;;  %v691_v54 = vmax.f32 %v581_v42, 0.0  ;;  %v759_v32 = vld [vmem:[%s1843_s3 + $0x1a0] sm:$0xff] }
  0xec   :  { %914 = vst.msk [vmem:[%s1844_s4 + $0x78] sm:$0xff] %vm257_vm0, %v850_v43  ;;  %946 = vst.msk [vmem:[%s1844_s4 + $0x178] sm:$0xff] %vm257_vm0, %v882_v44  ;;  %v848_v55 = vmax.f32 %v784_v45, 0.0  ;;  %v880_v56 = vmax.f32 %v816_v46, 0.0  ;;  %v464_v57 = vadd.f32 %v1087_v49, %v1326_v33  ;;  %v592_v58 = vadd.f32 %v1119_v50, %v1326_v33  ;;  %v455_v59 = vpop.f32.mrf.mxu0  ;;  %v583_v60 = vpop.f32.mrf.mxu1  ;;  %v730_v50 = vld [vmem:[%s1843_s3 + $0xb8] sm:$0xff] }
  0xed   :  { %v853_v61 = vmax.f32 %v789_v51, 0.0  ;;  %v885_v62 = vmax.f32 %v821_v52, 0.0  ;;  %v787_v63 = vadd.f32 %v723_v47, %v659_v53  ;;  %v819_v0 = vadd.f32 %v755_v48, %v691_v54  ;;  %v762_v51 = vld [vmem:[%s1843_s3 + $0x1b8] sm:$0xff] }
  0xee   :  { %912 = vst.msk [vmem:[%s1844_s4 + $0x68] sm:$0xff] %vm257_vm0, %v848_v55  ;;  %944 = vst.msk [vmem:[%s1844_s4 + $0x168] sm:$0xff] %vm257_vm0, %v880_v56  ;;  %v662_v3 = vmax.f32 %v464_v57, 0.0  ;;  %v694_v4 = vmax.f32 %v592_v58, 0.0  ;;  %v456_v5 = vadd.f32 %v1326_v33, %v455_v59  ;;  %v584_v6 = vadd.f32 %v1326_v33, %v583_v60  ;;  %v1090_v7 = vpop.f32.mrf.mxu0  ;;  %v1122_v8 = vpop.f32.mrf.mxu1  ;;  %v728_v60 = vld [vmem:[%s1843_s3 + $0xa8] sm:$0xff] }
  0xef   :  { %917 = vst.msk [vmem:[%s1844_s4 + $0x90] sm:$0xff] %vm257_vm0, %v853_v61  ;;  %949 = vst.msk [vmem:[%s1844_s4 + $0x190] sm:$0xff] %vm257_vm0, %v885_v62  ;;  %v851_v9 = vmax.f32 %v787_v63, 0.0  ;;  %v883_v10 = vmax.f32 %v819_v0, 0.0  ;;  %v477_v13 = vadd.f32 %v1090_v7, %v1326_v33  ;;  %v605_v14 = vadd.f32 %v1122_v8, %v1326_v33  ;;  %v760_v61 = vld [vmem:[%s1843_s3 + $0x1a8] sm:$0xff] }
  0xf0   :  { %v790_v15 = vadd.f32 %v726_v1, %v662_v3  ;;  %v822_v16 = vadd.f32 %v758_v2, %v694_v4  ;;  %v660_v17 = vmax.f32 %v456_v5, 0.0  ;;  %v692_v18 = vmax.f32 %v584_v6, 0.0  ;;  %v468_v21 = vpop.f32.mrf.mxu0  ;;  %v596_v22 = vpop.f32.mrf.mxu1  ;;  %v733_v4 = vld [vmem:[%s1843_s3 + $0xd0] sm:$0xff] }
  0xf1   :  { %915 = vst.msk [vmem:[%s1844_s4 + $0x80] sm:$0xff] %vm257_vm0, %v851_v9  ;;  %947 = vst.msk [vmem:[%s1844_s4 + $0x180] sm:$0xff] %vm257_vm0, %v883_v10  ;;  %v665_v23 = vmax.f32 %v477_v13, 0.0  ;;  %v697_v24 = vmax.f32 %v605_v14, 0.0  ;;  %v469_v25 = vadd.f32 %v1326_v33, %v468_v21  ;;  %v597_v26 = vadd.f32 %v1326_v33, %v596_v22  ;;  %v765_v5 = vld [vmem:[%s1843_s3 + $0x1d0] sm:$0xff] }
  0xf2   :  { %v854_v27 = vmax.f32 %v790_v15, 0.0  ;;  %v886_v28 = vmax.f32 %v822_v16, 0.0  ;;  %v788_v29 = vadd.f32 %v724_v11, %v660_v17  ;;  %v820_v30 = vadd.f32 %v756_v12, %v692_v18  ;;  %v1091_v34 = vpop.f32.mrf.mxu0  ;;  %v1123_v35 = vpop.f32.mrf.mxu1  ;;  %v731_v16 = vld [vmem:[%s1843_s3 + $0xc0] sm:$0xff] }
  0xf3   :  { %v793_v36 = vadd.f32 %v729_v19, %v665_v23  ;;  %v825_v37 = vadd.f32 %v761_v20, %v697_v24  ;;  %v663_v38 = vmax.f32 %v469_v25, 0.0  ;;  %v695_v39 = vmax.f32 %v597_v26, 0.0  ;;  %v763_v17 = vld [vmem:[%s1843_s3 + $0x1c0] sm:$0xff] }
  0xf4   :  { %918 = vst.msk [vmem:[%s1844_s4 + $0x98] sm:$0xff] %vm257_vm0, %v854_v27  ;;  %950 = vst.msk [vmem:[%s1844_s4 + $0x198] sm:$0xff] %vm257_vm0, %v886_v28  ;;  %v852_v40 = vmax.f32 %v788_v29, 0.0  ;;  %v884_v41 = vmax.f32 %v820_v30, 0.0  ;;  %v480_v42 = vadd.f32 %v1091_v34, %v1326_v33  ;;  %v608_v43 = vadd.f32 %v1123_v35, %v1326_v33  ;;  %v471_v44 = vpop.f32.mrf.mxu0  ;;  %v599_v45 = vpop.f32.mrf.mxu1  ;;  %v734_v35 = vld [vmem:[%s1843_s3 + $0xd8] sm:$0xff] }
  0xf5   :  { %v857_v46 = vmax.f32 %v793_v36, 0.0  ;;  %v889_v47 = vmax.f32 %v825_v37, 0.0  ;;  %v791_v48 = vadd.f32 %v727_v31, %v663_v38  ;;  %v823_v49 = vadd.f32 %v759_v32, %v695_v39  ;;  %v766_v36 = vld [vmem:[%s1843_s3 + $0x1d8] sm:$0xff] }
  0xf6   :  { %916 = vst.msk [vmem:[%s1844_s4 + $0x88] sm:$0xff] %vm257_vm0, %v852_v40  ;;  %948 = vst.msk [vmem:[%s1844_s4 + $0x188] sm:$0xff] %vm257_vm0, %v884_v41  ;;  %v666_v52 = vmax.f32 %v480_v42, 0.0  ;;  %v698_v53 = vmax.f32 %v608_v43, 0.0  ;;  %v472_v54 = vadd.f32 %v1326_v33, %v471_v44  ;;  %v600_v55 = vadd.f32 %v1326_v33, %v599_v45  ;;  %v1094_v56 = vpop.f32.mrf.mxu0  ;;  %v1126_v57 = vpop.f32.mrf.mxu1  ;;  %v732_v45 = vld [vmem:[%s1843_s3 + $0xc8] sm:$0xff] }
  0xf7   :  { %921 = vst.msk [vmem:[%s1844_s4 + $0xb0] sm:$0xff] %vm257_vm0, %v857_v46  ;;  %953 = vst.msk [vmem:[%s1844_s4 + $0x1b0] sm:$0xff] %vm257_vm0, %v889_v47  ;;  %v855_v58 = vmax.f32 %v791_v48, 0.0  ;;  %v887_v59 = vmax.f32 %v823_v49, 0.0  ;;  %v493_v62 = vadd.f32 %v1094_v56, %v1326_v33  ;;  %v621_v63 = vadd.f32 %v1126_v57, %v1326_v33  ;;  %v764_v46 = vld [vmem:[%s1843_s3 + $0x1c8] sm:$0xff] }
  0xf8   :  { %v794_v0 = vadd.f32 %v730_v50, %v666_v52  ;;  %v826_v1 = vadd.f32 %v762_v51, %v698_v53  ;;  %v664_v2 = vmax.f32 %v472_v54, 0.0  ;;  %v696_v3 = vmax.f32 %v600_v55, 0.0  ;;  %v484_v6 = vpop.f32.mrf.mxu0  ;;  %v612_v7 = vpop.f32.mrf.mxu1  ;;  %v737_v53 = vld [vmem:[%s1843_s3 + $0xf0] sm:$0xff] }
  0xf9   :  { %919 = vst.msk [vmem:[%s1844_s4 + $0xa0] sm:$0xff] %vm257_vm0, %v855_v58  ;;  %951 = vst.msk [vmem:[%s1844_s4 + $0x1a0] sm:$0xff] %vm257_vm0, %v887_v59  ;;  %v669_v8 = vmax.f32 %v493_v62, 0.0  ;;  %v701_v9 = vmax.f32 %v621_v63, 0.0  ;;  %v485_v10 = vadd.f32 %v1326_v33, %v484_v6  ;;  %v613_v11 = vadd.f32 %v1326_v33, %v612_v7  ;;  %v769_v54 = vld [vmem:[%s1843_s3 + $0x1f0] sm:$0xff] }
  0xfa   :  { %v858_v12 = vmax.f32 %v794_v0, 0.0  ;;  %v890_v13 = vmax.f32 %v826_v1, 0.0  ;;  %v792_v14 = vadd.f32 %v728_v60, %v664_v2  ;;  %v824_v15 = vadd.f32 %v760_v61, %v696_v3  ;;  %v1095_v18 = vpop.f32.mrf.mxu0  ;;  %v1127_v19 = vpop.f32.mrf.mxu1  ;;  %v735_v1 = vld [vmem:[%s1843_s3 + $0xe0] sm:$0xff] }
  0xfb   :  { %v797_v20 = vadd.f32 %v733_v4, %v669_v8  ;;  %v829_v21 = vadd.f32 %v765_v5, %v701_v9  ;;  %v667_v22 = vmax.f32 %v485_v10, 0.0  ;;  %v699_v23 = vmax.f32 %v613_v11, 0.0  ;;  %v767_v2 = vld [vmem:[%s1843_s3 + $0x1e0] sm:$0xff] }
  0xfc   :  { %922 = vst.msk [vmem:[%s1844_s4 + $0xb8] sm:$0xff] %vm257_vm0, %v858_v12  ;;  %954 = vst.msk [vmem:[%s1844_s4 + $0x1b8] sm:$0xff] %vm257_vm0, %v890_v13  ;;  %v856_v24 = vmax.f32 %v792_v14, 0.0  ;;  %v888_v25 = vmax.f32 %v824_v15, 0.0  ;;  %v496_v26 = vadd.f32 %v1095_v18, %v1326_v33  ;;  %v624_v27 = vadd.f32 %v1127_v19, %v1326_v33  ;;  %v487_v28 = vpop.f32.mrf.mxu0  ;;  %v615_v29 = vpop.f32.mrf.mxu1  ;;  %v738_v19 = vld [vmem:[%s1843_s3 + $0xf8] sm:$0xff] }
  0xfd   :  { %v861_v30 = vmax.f32 %v797_v20, 0.0  ;;  %v893_v31 = vmax.f32 %v829_v21, 0.0  ;;  %v795_v32 = vadd.f32 %v731_v16, %v667_v22  ;;  %v827_v34 = vadd.f32 %v763_v17, %v699_v23  ;;  %v770_v20 = vld [vmem:[%s1843_s3 + $0x1f8] sm:$0xff] }
  0xfe   :  { %920 = vst.msk [vmem:[%s1844_s4 + $0xa8] sm:$0xff] %vm257_vm0, %v856_v24  ;;  %952 = vst.msk [vmem:[%s1844_s4 + $0x1a8] sm:$0xff] %vm257_vm0, %v888_v25  ;;  %v670_v37 = vmax.f32 %v496_v26, 0.0  ;;  %v702_v38 = vmax.f32 %v624_v27, 0.0  ;;  %v488_v39 = vadd.f32 %v1326_v33, %v487_v28  ;;  %v616_v40 = vadd.f32 %v1326_v33, %v615_v29  ;;  %v1098_v41 = vpop.f32.mrf.mxu0  ;;  %v1130_v42 = vpop.f32.mrf.mxu1  ;;  %v736_v27 = vld [vmem:[%s1843_s3 + $0xe8] sm:$0xff] }
  0xff   :  { %925 = vst.msk [vmem:[%s1844_s4 + $0xd0] sm:$0xff] %vm257_vm0, %v861_v30  ;;  %957 = vst.msk [vmem:[%s1844_s4 + $0x1d0] sm:$0xff] %vm257_vm0, %v893_v31  ;;  %v859_v43 = vmax.f32 %v795_v32, 0.0  ;;  %v891_v44 = vmax.f32 %v827_v34, 0.0  ;;  %v509_v47 = vadd.f32 %v1098_v41, %v1326_v33  ;;  %v637_v48 = vadd.f32 %v1130_v42, %v1326_v33 }
 0x100   :  { %v798_v49 = vadd.f32 %v734_v35, %v670_v37  ;;  %v830_v50 = vadd.f32 %v766_v36, %v702_v38  ;;  %v668_v51 = vmax.f32 %v488_v39, 0.0  ;;  %v700_v52 = vmax.f32 %v616_v40, 0.0  ;;  %v500_v55 = vpop.f32.mrf.mxu0  ;;  %v628_v56 = vpop.f32.mrf.mxu1 }
 0x101   :  { %923 = vst.msk [vmem:[%s1844_s4 + $0xc0] sm:$0xff] %vm257_vm0, %v859_v43  ;;  %955 = vst.msk [vmem:[%s1844_s4 + $0x1c0] sm:$0xff] %vm257_vm0, %v891_v44  ;;  %v673_v57 = vmax.f32 %v509_v47, 0.0  ;;  %v705_v58 = vmax.f32 %v637_v48, 0.0  ;;  %v501_v59 = vadd.f32 %v1326_v33, %v500_v55  ;;  %v629_v60 = vadd.f32 %v1326_v33, %v628_v56 }
 0x102   :  { %v862_v61 = vmax.f32 %v798_v49, 0.0  ;;  %v894_v62 = vmax.f32 %v830_v50, 0.0  ;;  %v796_v63 = vadd.f32 %v732_v45, %v668_v51  ;;  %v828_v0 = vadd.f32 %v764_v46, %v700_v52  ;;  %v1099_v3 = vpop.f32.mrf.mxu0  ;;  %v1131_v4 = vpop.f32.mrf.mxu1 }
 0x103   :  { %v801_v5 = vadd.f32 %v737_v53, %v673_v57  ;;  %v833_v6 = vadd.f32 %v769_v54, %v705_v58  ;;  %v671_v7 = vmax.f32 %v501_v59, 0.0  ;;  %v703_v8 = vmax.f32 %v629_v60, 0.0 }
 0x104   :  { %926 = vst.msk [vmem:[%s1844_s4 + $0xd8] sm:$0xff] %vm257_vm0, %v862_v61  ;;  %958 = vst.msk [vmem:[%s1844_s4 + $0x1d8] sm:$0xff] %vm257_vm0, %v894_v62  ;;  %v860_v9 = vmax.f32 %v796_v63, 0.0  ;;  %v892_v10 = vmax.f32 %v828_v0, 0.0  ;;  %v512_v11 = vadd.f32 %v1099_v3, %v1326_v33  ;;  %v640_v12 = vadd.f32 %v1131_v4, %v1326_v33  ;;  %v503_v13 = vpop.f32.mrf.mxu0  ;;  %v631_v14 = vpop.f32.mrf.mxu1 }
 0x105   :  { %v865_v15 = vmax.f32 %v801_v5, 0.0  ;;  %v897_v16 = vmax.f32 %v833_v6, 0.0  ;;  %v799_v17 = vadd.f32 %v735_v1, %v671_v7  ;;  %v831_v18 = vadd.f32 %v767_v2, %v703_v8 }
 0x106   :  { %924 = vst.msk [vmem:[%s1844_s4 + $0xc8] sm:$0xff] %vm257_vm0, %v860_v9  ;;  %956 = vst.msk [vmem:[%s1844_s4 + $0x1c8] sm:$0xff] %vm257_vm0, %v892_v10  ;;  %v674_v21 = vmax.f32 %v512_v11, 0.0  ;;  %v706_v22 = vmax.f32 %v640_v12, 0.0  ;;  %v504_v23 = vadd.f32 %v1326_v33, %v503_v13  ;;  %v632_v24 = vadd.f32 %v1326_v33, %v631_v14  ;;  %v768_v33 = vld [vmem:[%s1843_s3 + $0x1e8] sm:$0xff] }
 0x107   :  { %929 = vst.msk [vmem:[%s1844_s4 + $0xf0] sm:$0xff] %vm257_vm0, %v865_v15  ;;  %961 = vst.msk [vmem:[%s1844_s4 + $0x1f0] sm:$0xff] %vm257_vm0, %v897_v16  ;;  %v863_v25 = vmax.f32 %v799_v17, 0.0  ;;  %v895_v26 = vmax.f32 %v831_v18, 0.0 }
 0x108   :  { %v802_v28 = vadd.f32 %v738_v19, %v674_v21  ;;  %v834_v29 = vadd.f32 %v770_v20, %v706_v22  ;;  %v672_v30 = vmax.f32 %v504_v23, 0.0  ;;  %v704_v31 = vmax.f32 %v632_v24, 0.0 }
 0x109   :  { %927 = vst.msk [vmem:[%s1844_s4 + $0xe0] sm:$0xff] %vm257_vm0, %v863_v25  ;;  %959 = vst.msk [vmem:[%s1844_s4 + $0x1e0] sm:$0xff] %vm257_vm0, %v895_v26 }
 0x10a   :  { %v866_v32 = vmax.f32 %v802_v28, 0.0  ;;  %v898_v34 = vmax.f32 %v834_v29, 0.0  ;;  %v800_v35 = vadd.f32 %v736_v27, %v672_v30  ;;  %v832_v36 = vadd.f32 %v768_v33, %v704_v31 }
 0x10c   :  { %930 = vst.msk [vmem:[%s1844_s4 + $0xf8] sm:$0xff] %vm257_vm0, %v866_v32  ;;  %962 = vst.msk [vmem:[%s1844_s4 + $0x1f8] sm:$0xff] %vm257_vm0, %v898_v34  ;;  %v864_v37 = vmax.f32 %v800_v35, 0.0  ;;  %v896_v38 = vmax.f32 %v832_v36, 0.0 }
 0x10e   :  { %928 = vst.msk [vmem:[%s1844_s4 + $0xe8] sm:$0xff] %vm257_vm0, %v864_v37  ;;  %960 = vst.msk [vmem:[%s1844_s4 + $0x1e8] sm:$0xff] %vm257_vm0, %v896_v38 }

// kernel: enet_forward.175
= control target key start
LH: loop header
LB: loop body
LE: loop exit
PB: predicated region body
PF: predicated region fallthrough
CT: control target
= control target key end

     0   :  { %vm363_vm0 = vcmask 1041408   ;;  %vm266_vm1 = vcmask 293888   ;;  %vm720_vm2 = vcmask 31744   ;;  %s1487_s1 = inlined_call_operand.vmem [shape: bf16[36,4], index: 1, kind: input, shape index: {}]   ;;  %s1488_s0 = inlined_call_operand.vmem [shape: bf16[512,36], index: 0, kind: input, shape index: {}]   ;;  %s1489_s2 = inlined_call_operand.vmem [shape: f32[1,4], index: 2, kind: input, shape index: {}]   ;;  %s1490_s3 = inlined_call_operand.vmem [shape: f32[512,4], index: 3, kind: output, shape index: {}]  }
   0x1   :  { %v970_v0 = vld [vmem:[%s1487_s1 + $0x10] ss:$0 sps:$4 sm:$0x33]   ;;  %v971_v1 = vld [vmem:[%s1487_s1 + $0x8] sm:$0xff]   ;;  %v972_v3 = vld [vmem:[%s1487_s1] sm:$0xff]  }
   0x2   :  { %968 = vmatprep.subr.msk.bf16.mxu0 %vm363_vm0, %v970_v0  ;;  %969 = vmatprep.subr.msk.bf16.mxu1 %vm363_vm0, %v970_v0  ;;  %v365_v2 = vsel %vm363_vm0, %v970_v0, 0  ;;  %v973_v4 = vld [vmem:[%s1488_s0] sm:$0xff]   ;;  %v975_v6 = vld [vmem:[%s1488_s0 + $0x8] sm:$0xff]   ;;  %v977_v8 = vld [vmem:[%s1488_s0 + $0x10] sm:$0xff]  }
   0x3   :  { %893 = vmatpush3.bf16.msra.mxu0 %v365_v2  ;;  %965 = vmatpush3.bf16.msra.mxu1 %v365_v2  ;;  %v974_v5 = vld [vmem:[%s1488_s0 + $0x80] sm:$0xff]   ;;  %v976_v7 = vld [vmem:[%s1488_s0 + $0x88] sm:$0xff]   ;;  %v978_v9 = vld [vmem:[%s1488_s0 + $0x90] sm:$0xff]  }
   0x4   :  { %894 = vmatprep.subr.bf16.mxu0 %v971_v1  ;;  %963 = vmatprep.subr.bf16.mxu1 %v971_v1  ;;  %v979_v10 = vld [vmem:[%s1488_s0 + $0x18] sm:$0xff]   ;;  %v981_v12 = vld [vmem:[%s1488_s0 + $0x20] sm:$0xff]   ;;  %v983_v14 = vld [vmem:[%s1488_s0 + $0x28] sm:$0xff]  }
   0x5   :  { %898 = vmatprep.mubr.msk.bf16.mxu0 %vm266_vm1, %v973_v4  ;;  %930 = vmatprep.mubr.msk.bf16.mxu1 %vm266_vm1, %v974_v5  ;;  %v980_v11 = vld [vmem:[%s1488_s0 + $0x98] sm:$0xff]   ;;  %v982_v13 = vld [vmem:[%s1488_s0 + $0xa0] sm:$0xff]   ;;  %v984_v15 = vld [vmem:[%s1488_s0 + $0xa8] sm:$0xff]  }
   0x6   :  { %v985_v16 = vld [vmem:[%s1488_s0 + $0x30] sm:$0xff]   ;;  %v987_v18 = vld [vmem:[%s1488_s0 + $0x38] sm:$0xff]   ;;  %v989_v20 = vld [vmem:[%s1488_s0 + $0x40] sm:$0xff]  }
   0x7   :  { %895 = vmatpush3.bf16.msra.mxu0 %v971_v1  ;;  %966 = vmatpush3.bf16.msra.mxu1 %v971_v1  ;;  %v986_v17 = vld [vmem:[%s1488_s0 + $0xb0] sm:$0xff]   ;;  %v988_v19 = vld [vmem:[%s1488_s0 + $0xb8] sm:$0xff]   ;;  %v990_v21 = vld [vmem:[%s1488_s0 + $0xc0] sm:$0xff]  }
   0x8   :  { %896 = vmatprep.subr.bf16.mxu0 %v972_v3  ;;  %964 = vmatprep.subr.bf16.mxu1 %v972_v3  ;;  %v991_v22 = vld [vmem:[%s1488_s0 + $0x48] sm:$0xff]   ;;  %v993_v24 = vld [vmem:[%s1488_s0 + $0x50] sm:$0xff]   ;;  %v995_v26 = vld [vmem:[%s1488_s0 + $0x58] sm:$0xff]  }
   0x9   :  { %v992_v23 = vld [vmem:[%s1488_s0 + $0xc8] sm:$0xff]   ;;  %v994_v25 = vld [vmem:[%s1488_s0 + $0xd0] sm:$0xff]   ;;  %v996_v27 = vld [vmem:[%s1488_s0 + $0xd8] sm:$0xff]  }
   0xa   :  { %v997_v28 = vld [vmem:[%s1488_s0 + $0x60] sm:$0xff]   ;;  %v999_v30 = vld [vmem:[%s1488_s0 + $0x68] sm:$0xff]   ;;  %v1001_v32 = vld [vmem:[%s1488_s0 + $0x70] sm:$0xff]  }
   0xb   :  { %897 = vmatpush3.bf16.msra.mxu0 %v972_v3  ;;  %967 = vmatpush3.bf16.msra.mxu1 %v972_v3  ;;  %v998_v29 = vld [vmem:[%s1488_s0 + $0xe0] sm:$0xff]   ;;  %v1000_v31 = vld [vmem:[%s1488_s0 + $0xe8] sm:$0xff]   ;;  %v1002_v33 = vld [vmem:[%s1488_s0 + $0xf0] sm:$0xff]  }
   0xc   :  { %v1003_v34 = vld [vmem:[%s1488_s0 + $0x78] sm:$0xff]   ;;  %v1165_v36 = vld [vmem:[%s1489_s2] ss:$0 sm:$0xff] }
   0xd   :  { %v1004_v35 = vld [vmem:[%s1488_s0 + $0xf8] sm:$0xff]  }
   0xe   :  { %899 = vmatmul.mubr.msk.bf16.vlgmr.msra.gmra.mxu0 %vm266_vm1, %v975_v6  ;;  %931 = vmatmul.mubr.msk.bf16.vlgmr.msra.gmra.mxu1 %vm266_vm1, %v976_v7 }
   0xf   :  { %902 = vmatprep.mubr.msk.bf16.mxu0 %vm266_vm1, %v977_v8  ;;  %934 = vmatprep.mubr.msk.bf16.mxu1 %vm266_vm1, %v978_v9 }
  0x16   :  { %903 = vmatmul.mubr.msk.bf16.gmra.mxu0 %vm266_vm1, %v979_v10  ;;  %935 = vmatmul.mubr.msk.bf16.gmra.mxu1 %vm266_vm1, %v980_v11 }
  0x17   :  { %906 = vmatprep.mubr.msk.bf16.mxu0 %vm266_vm1, %v981_v12  ;;  %938 = vmatprep.mubr.msk.bf16.mxu1 %vm266_vm1, %v982_v13 }
  0x1e   :  { %907 = vmatmul.mubr.msk.bf16.gmra.mxu0 %vm266_vm1, %v983_v14  ;;  %939 = vmatmul.mubr.msk.bf16.gmra.mxu1 %vm266_vm1, %v984_v15 }
  0x1f   :  { %910 = vmatprep.mubr.msk.bf16.mxu0 %vm266_vm1, %v985_v16  ;;  %942 = vmatprep.mubr.msk.bf16.mxu1 %vm266_vm1, %v986_v17 }
  0x26   :  { %911 = vmatmul.mubr.msk.bf16.gmra.mxu0 %vm266_vm1, %v987_v18  ;;  %943 = vmatmul.mubr.msk.bf16.gmra.mxu1 %vm266_vm1, %v988_v19 }
  0x27   :  { %914 = vmatprep.mubr.msk.bf16.mxu0 %vm266_vm1, %v989_v20  ;;  %946 = vmatprep.mubr.msk.bf16.mxu1 %vm266_vm1, %v990_v21 }
  0x2e   :  { %915 = vmatmul.mubr.msk.bf16.gmra.mxu0 %vm266_vm1, %v991_v22  ;;  %947 = vmatmul.mubr.msk.bf16.gmra.mxu1 %vm266_vm1, %v992_v23 }
  0x2f   :  { %918 = vmatprep.mubr.msk.bf16.mxu0 %vm266_vm1, %v993_v24  ;;  %950 = vmatprep.mubr.msk.bf16.mxu1 %vm266_vm1, %v994_v25 }
  0x36   :  { %919 = vmatmul.mubr.msk.bf16.gmra.mxu0 %vm266_vm1, %v995_v26  ;;  %951 = vmatmul.mubr.msk.bf16.gmra.mxu1 %vm266_vm1, %v996_v27 }
  0x37   :  { %922 = vmatprep.mubr.msk.bf16.mxu0 %vm266_vm1, %v997_v28  ;;  %954 = vmatprep.mubr.msk.bf16.mxu1 %vm266_vm1, %v998_v29 }
  0x3e   :  { %923 = vmatmul.mubr.msk.bf16.gmra.mxu0 %vm266_vm1, %v999_v30  ;;  %955 = vmatmul.mubr.msk.bf16.gmra.mxu1 %vm266_vm1, %v1000_v31 }
  0x3f   :  { %926 = vmatprep.mubr.msk.bf16.mxu0 %vm266_vm1, %v1001_v32  ;;  %958 = vmatprep.mubr.msk.bf16.mxu1 %vm266_vm1, %v1002_v33 }
  0x46   :  { %927 = vmatmul.mubr.msk.bf16.gmra.mxu0 %vm266_vm1, %v1003_v34  ;;  %959 = vmatmul.mubr.msk.bf16.gmra.mxu1 %vm266_vm1, %v1004_v35 }
  0xce   :  { %v900_v37 = vpop.f32.mrf.mxu0  ;;  %v932_v38 = vpop.f32.mrf.mxu1 }
  0xcf   :  { %v410_v39 = vadd.f32 %v900_v37, %v1165_v36  ;;  %v538_v40 = vadd.f32 %v932_v38, %v1165_v36 }
  0xd0   :  { %v401_v41 = vpop.f32.mrf.mxu0  ;;  %v529_v42 = vpop.f32.mrf.mxu1 }
  0xd1   :  { %v658_v43 = vmax.f32 %v410_v39, 0.0  ;;  %v690_v44 = vmax.f32 %v538_v40, 0.0  ;;  %v402_v45 = vadd.f32 %v1165_v36, %v401_v41  ;;  %v530_v46 = vadd.f32 %v1165_v36, %v529_v42 }
  0xd2   :  { %v901_v47 = vpop.f32.mrf.mxu0  ;;  %v933_v48 = vpop.f32.mrf.mxu1 }
  0xd3   :  { %723 = vst.msk [vmem:[%s1490_s3 + $0x10] sm:$0xff] %vm720_vm2, %v658_v43  ;;  %755 = vst.msk [vmem:[%s1490_s3 + $0x110] sm:$0xff] %vm720_vm2, %v690_v44  ;;  %v656_v49 = vmax.f32 %v402_v45, 0.0  ;;  %v688_v50 = vmax.f32 %v530_v46, 0.0  ;;  %v413_v51 = vadd.f32 %v901_v47, %v1165_v36  ;;  %v541_v52 = vadd.f32 %v933_v48, %v1165_v36 }
  0xd4   :  { %v404_v53 = vpop.f32.mrf.mxu0  ;;  %v532_v54 = vpop.f32.mrf.mxu1 }
  0xd5   :  { %721 = vst.msk [vmem:[%s1490_s3] sm:$0xff] %vm720_vm2, %v656_v49  ;;  %753 = vst.msk [vmem:[%s1490_s3 + $0x100] sm:$0xff] %vm720_vm2, %v688_v50  ;;  %v659_v55 = vmax.f32 %v413_v51, 0.0  ;;  %v691_v56 = vmax.f32 %v541_v52, 0.0  ;;  %v405_v57 = vadd.f32 %v1165_v36, %v404_v53  ;;  %v533_v58 = vadd.f32 %v1165_v36, %v532_v54 }
  0xd6   :  { %v904_v59 = vpop.f32.mrf.mxu0  ;;  %v936_v60 = vpop.f32.mrf.mxu1 }
  0xd7   :  { %724 = vst.msk [vmem:[%s1490_s3 + $0x18] sm:$0xff] %vm720_vm2, %v659_v55  ;;  %756 = vst.msk [vmem:[%s1490_s3 + $0x118] sm:$0xff] %vm720_vm2, %v691_v56  ;;  %v657_v61 = vmax.f32 %v405_v57, 0.0  ;;  %v689_v62 = vmax.f32 %v533_v58, 0.0  ;;  %v426_v63 = vadd.f32 %v904_v59, %v1165_v36  ;;  %v554_v0 = vadd.f32 %v936_v60, %v1165_v36 }
  0xd8   :  { %v417_v1 = vpop.f32.mrf.mxu0  ;;  %v545_v2 = vpop.f32.mrf.mxu1 }
  0xd9   :  { %722 = vst.msk [vmem:[%s1490_s3 + $0x8] sm:$0xff] %vm720_vm2, %v657_v61  ;;  %754 = vst.msk [vmem:[%s1490_s3 + $0x108] sm:$0xff] %vm720_vm2, %v689_v62  ;;  %v662_v3 = vmax.f32 %v426_v63, 0.0  ;;  %v694_v4 = vmax.f32 %v554_v0, 0.0  ;;  %v418_v5 = vadd.f32 %v1165_v36, %v417_v1  ;;  %v546_v6 = vadd.f32 %v1165_v36, %v545_v2 }
  0xda   :  { %v905_v7 = vpop.f32.mrf.mxu0  ;;  %v937_v8 = vpop.f32.mrf.mxu1 }
  0xdb   :  { %727 = vst.msk [vmem:[%s1490_s3 + $0x30] sm:$0xff] %vm720_vm2, %v662_v3  ;;  %759 = vst.msk [vmem:[%s1490_s3 + $0x130] sm:$0xff] %vm720_vm2, %v694_v4  ;;  %v660_v9 = vmax.f32 %v418_v5, 0.0  ;;  %v692_v10 = vmax.f32 %v546_v6, 0.0  ;;  %v429_v11 = vadd.f32 %v905_v7, %v1165_v36  ;;  %v557_v12 = vadd.f32 %v937_v8, %v1165_v36 }
  0xdc   :  { %v420_v13 = vpop.f32.mrf.mxu0  ;;  %v548_v14 = vpop.f32.mrf.mxu1 }
  0xdd   :  { %725 = vst.msk [vmem:[%s1490_s3 + $0x20] sm:$0xff] %vm720_vm2, %v660_v9  ;;  %757 = vst.msk [vmem:[%s1490_s3 + $0x120] sm:$0xff] %vm720_vm2, %v692_v10  ;;  %v663_v15 = vmax.f32 %v429_v11, 0.0  ;;  %v695_v16 = vmax.f32 %v557_v12, 0.0  ;;  %v421_v17 = vadd.f32 %v1165_v36, %v420_v13  ;;  %v549_v18 = vadd.f32 %v1165_v36, %v548_v14 }
  0xde   :  { %v908_v19 = vpop.f32.mrf.mxu0  ;;  %v940_v20 = vpop.f32.mrf.mxu1 }
  0xdf   :  { %728 = vst.msk [vmem:[%s1490_s3 + $0x38] sm:$0xff] %vm720_vm2, %v663_v15  ;;  %760 = vst.msk [vmem:[%s1490_s3 + $0x138] sm:$0xff] %vm720_vm2, %v695_v16  ;;  %v661_v21 = vmax.f32 %v421_v17, 0.0  ;;  %v693_v22 = vmax.f32 %v549_v18, 0.0  ;;  %v442_v23 = vadd.f32 %v908_v19, %v1165_v36  ;;  %v570_v24 = vadd.f32 %v940_v20, %v1165_v36 }
  0xe0   :  { %v433_v25 = vpop.f32.mrf.mxu0  ;;  %v561_v26 = vpop.f32.mrf.mxu1 }
  0xe1   :  { %726 = vst.msk [vmem:[%s1490_s3 + $0x28] sm:$0xff] %vm720_vm2, %v661_v21  ;;  %758 = vst.msk [vmem:[%s1490_s3 + $0x128] sm:$0xff] %vm720_vm2, %v693_v22  ;;  %v666_v27 = vmax.f32 %v442_v23, 0.0  ;;  %v698_v28 = vmax.f32 %v570_v24, 0.0  ;;  %v434_v29 = vadd.f32 %v1165_v36, %v433_v25  ;;  %v562_v30 = vadd.f32 %v1165_v36, %v561_v26 }
  0xe2   :  { %v909_v31 = vpop.f32.mrf.mxu0  ;;  %v941_v32 = vpop.f32.mrf.mxu1 }
  0xe3   :  { %731 = vst.msk [vmem:[%s1490_s3 + $0x50] sm:$0xff] %vm720_vm2, %v666_v27  ;;  %763 = vst.msk [vmem:[%s1490_s3 + $0x150] sm:$0xff] %vm720_vm2, %v698_v28  ;;  %v664_v33 = vmax.f32 %v434_v29, 0.0  ;;  %v696_v34 = vmax.f32 %v562_v30, 0.0  ;;  %v445_v35 = vadd.f32 %v909_v31, %v1165_v36  ;;  %v573_v37 = vadd.f32 %v941_v32, %v1165_v36 }
  0xe4   :  { %v436_v38 = vpop.f32.mrf.mxu0  ;;  %v564_v39 = vpop.f32.mrf.mxu1 }
  0xe5   :  { %729 = vst.msk [vmem:[%s1490_s3 + $0x40] sm:$0xff] %vm720_vm2, %v664_v33  ;;  %761 = vst.msk [vmem:[%s1490_s3 + $0x140] sm:$0xff] %vm720_vm2, %v696_v34  ;;  %v667_v40 = vmax.f32 %v445_v35, 0.0  ;;  %v699_v41 = vmax.f32 %v573_v37, 0.0  ;;  %v437_v42 = vadd.f32 %v1165_v36, %v436_v38  ;;  %v565_v43 = vadd.f32 %v1165_v36, %v564_v39 }
  0xe6   :  { %v912_v44 = vpop.f32.mrf.mxu0  ;;  %v944_v45 = vpop.f32.mrf.mxu1 }
  0xe7   :  { %732 = vst.msk [vmem:[%s1490_s3 + $0x58] sm:$0xff] %vm720_vm2, %v667_v40  ;;  %764 = vst.msk [vmem:[%s1490_s3 + $0x158] sm:$0xff] %vm720_vm2, %v699_v41  ;;  %v665_v46 = vmax.f32 %v437_v42, 0.0  ;;  %v697_v47 = vmax.f32 %v565_v43, 0.0  ;;  %v458_v48 = vadd.f32 %v912_v44, %v1165_v36  ;;  %v586_v49 = vadd.f32 %v944_v45, %v1165_v36 }
  0xe8   :  { %v449_v50 = vpop.f32.mrf.mxu0  ;;  %v577_v51 = vpop.f32.mrf.mxu1 }
  0xe9   :  { %730 = vst.msk [vmem:[%s1490_s3 + $0x48] sm:$0xff] %vm720_vm2, %v665_v46  ;;  %762 = vst.msk [vmem:[%s1490_s3 + $0x148] sm:$0xff] %vm720_vm2, %v697_v47  ;;  %v670_v52 = vmax.f32 %v458_v48, 0.0  ;;  %v702_v53 = vmax.f32 %v586_v49, 0.0  ;;  %v450_v54 = vadd.f32 %v1165_v36, %v449_v50  ;;  %v578_v55 = vadd.f32 %v1165_v36, %v577_v51 }
  0xea   :  { %v913_v56 = vpop.f32.mrf.mxu0  ;;  %v945_v57 = vpop.f32.mrf.mxu1 }
  0xeb   :  { %735 = vst.msk [vmem:[%s1490_s3 + $0x70] sm:$0xff] %vm720_vm2, %v670_v52  ;;  %767 = vst.msk [vmem:[%s1490_s3 + $0x170] sm:$0xff] %vm720_vm2, %v702_v53  ;;  %v668_v58 = vmax.f32 %v450_v54, 0.0  ;;  %v700_v59 = vmax.f32 %v578_v55, 0.0  ;;  %v461_v60 = vadd.f32 %v913_v56, %v1165_v36  ;;  %v589_v61 = vadd.f32 %v945_v57, %v1165_v36 }
  0xec   :  { %v452_v62 = vpop.f32.mrf.mxu0  ;;  %v580_v63 = vpop.f32.mrf.mxu1 }
  0xed   :  { %733 = vst.msk [vmem:[%s1490_s3 + $0x60] sm:$0xff] %vm720_vm2, %v668_v58  ;;  %765 = vst.msk [vmem:[%s1490_s3 + $0x160] sm:$0xff] %vm720_vm2, %v700_v59  ;;  %v671_v0 = vmax.f32 %v461_v60, 0.0  ;;  %v703_v1 = vmax.f32 %v589_v61, 0.0  ;;  %v453_v2 = vadd.f32 %v1165_v36, %v452_v62  ;;  %v581_v3 = vadd.f32 %v1165_v36, %v580_v63 }
  0xee   :  { %v916_v4 = vpop.f32.mrf.mxu0  ;;  %v948_v5 = vpop.f32.mrf.mxu1 }
  0xef   :  { %736 = vst.msk [vmem:[%s1490_s3 + $0x78] sm:$0xff] %vm720_vm2, %v671_v0  ;;  %768 = vst.msk [vmem:[%s1490_s3 + $0x178] sm:$0xff] %vm720_vm2, %v703_v1  ;;  %v669_v6 = vmax.f32 %v453_v2, 0.0  ;;  %v701_v7 = vmax.f32 %v581_v3, 0.0  ;;  %v474_v8 = vadd.f32 %v916_v4, %v1165_v36  ;;  %v602_v9 = vadd.f32 %v948_v5, %v1165_v36 }
  0xf0   :  { %v465_v10 = vpop.f32.mrf.mxu0  ;;  %v593_v11 = vpop.f32.mrf.mxu1 }
  0xf1   :  { %734 = vst.msk [vmem:[%s1490_s3 + $0x68] sm:$0xff] %vm720_vm2, %v669_v6  ;;  %766 = vst.msk [vmem:[%s1490_s3 + $0x168] sm:$0xff] %vm720_vm2, %v701_v7  ;;  %v674_v12 = vmax.f32 %v474_v8, 0.0  ;;  %v706_v13 = vmax.f32 %v602_v9, 0.0  ;;  %v466_v14 = vadd.f32 %v1165_v36, %v465_v10  ;;  %v594_v15 = vadd.f32 %v1165_v36, %v593_v11 }
  0xf2   :  { %v917_v16 = vpop.f32.mrf.mxu0  ;;  %v949_v17 = vpop.f32.mrf.mxu1 }
  0xf3   :  { %739 = vst.msk [vmem:[%s1490_s3 + $0x90] sm:$0xff] %vm720_vm2, %v674_v12  ;;  %771 = vst.msk [vmem:[%s1490_s3 + $0x190] sm:$0xff] %vm720_vm2, %v706_v13  ;;  %v672_v18 = vmax.f32 %v466_v14, 0.0  ;;  %v704_v19 = vmax.f32 %v594_v15, 0.0  ;;  %v477_v20 = vadd.f32 %v917_v16, %v1165_v36  ;;  %v605_v21 = vadd.f32 %v949_v17, %v1165_v36 }
  0xf4   :  { %v468_v22 = vpop.f32.mrf.mxu0  ;;  %v596_v23 = vpop.f32.mrf.mxu1 }
  0xf5   :  { %737 = vst.msk [vmem:[%s1490_s3 + $0x80] sm:$0xff] %vm720_vm2, %v672_v18  ;;  %769 = vst.msk [vmem:[%s1490_s3 + $0x180] sm:$0xff] %vm720_vm2, %v704_v19  ;;  %v675_v24 = vmax.f32 %v477_v20, 0.0  ;;  %v707_v25 = vmax.f32 %v605_v21, 0.0  ;;  %v469_v26 = vadd.f32 %v1165_v36, %v468_v22  ;;  %v597_v27 = vadd.f32 %v1165_v36, %v596_v23 }
  0xf6   :  { %v920_v28 = vpop.f32.mrf.mxu0  ;;  %v952_v29 = vpop.f32.mrf.mxu1 }
  0xf7   :  { %740 = vst.msk [vmem:[%s1490_s3 + $0x98] sm:$0xff] %vm720_vm2, %v675_v24  ;;  %772 = vst.msk [vmem:[%s1490_s3 + $0x198] sm:$0xff] %vm720_vm2, %v707_v25  ;;  %v673_v30 = vmax.f32 %v469_v26, 0.0  ;;  %v705_v31 = vmax.f32 %v597_v27, 0.0  ;;  %v490_v32 = vadd.f32 %v920_v28, %v1165_v36  ;;  %v618_v33 = vadd.f32 %v952_v29, %v1165_v36 }
  0xf8   :  { %v481_v34 = vpop.f32.mrf.mxu0  ;;  %v609_v35 = vpop.f32.mrf.mxu1 }
  0xf9   :  { %738 = vst.msk [vmem:[%s1490_s3 + $0x88] sm:$0xff] %vm720_vm2, %v673_v30  ;;  %770 = vst.msk [vmem:[%s1490_s3 + $0x188] sm:$0xff] %vm720_vm2, %v705_v31  ;;  %v678_v37 = vmax.f32 %v490_v32, 0.0  ;;  %v710_v38 = vmax.f32 %v618_v33, 0.0  ;;  %v482_v39 = vadd.f32 %v1165_v36, %v481_v34  ;;  %v610_v40 = vadd.f32 %v1165_v36, %v609_v35 }
  0xfa   :  { %v921_v41 = vpop.f32.mrf.mxu0  ;;  %v953_v42 = vpop.f32.mrf.mxu1 }
  0xfb   :  { %743 = vst.msk [vmem:[%s1490_s3 + $0xb0] sm:$0xff] %vm720_vm2, %v678_v37  ;;  %775 = vst.msk [vmem:[%s1490_s3 + $0x1b0] sm:$0xff] %vm720_vm2, %v710_v38  ;;  %v676_v43 = vmax.f32 %v482_v39, 0.0  ;;  %v708_v44 = vmax.f32 %v610_v40, 0.0  ;;  %v493_v45 = vadd.f32 %v921_v41, %v1165_v36  ;;  %v621_v46 = vadd.f32 %v953_v42, %v1165_v36 }
  0xfc   :  { %v484_v47 = vpop.f32.mrf.mxu0  ;;  %v612_v48 = vpop.f32.mrf.mxu1 }
  0xfd   :  { %741 = vst.msk [vmem:[%s1490_s3 + $0xa0] sm:$0xff] %vm720_vm2, %v676_v43  ;;  %773 = vst.msk [vmem:[%s1490_s3 + $0x1a0] sm:$0xff] %vm720_vm2, %v708_v44  ;;  %v679_v49 = vmax.f32 %v493_v45, 0.0  ;;  %v711_v50 = vmax.f32 %v621_v46, 0.0  ;;  %v485_v51 = vadd.f32 %v1165_v36, %v484_v47  ;;  %v613_v52 = vadd.f32 %v1165_v36, %v612_v48 }
  0xfe   :  { %v924_v53 = vpop.f32.mrf.mxu0  ;;  %v956_v54 = vpop.f32.mrf.mxu1 }
  0xff   :  { %744 = vst.msk [vmem:[%s1490_s3 + $0xb8] sm:$0xff] %vm720_vm2, %v679_v49  ;;  %776 = vst.msk [vmem:[%s1490_s3 + $0x1b8] sm:$0xff] %vm720_vm2, %v711_v50  ;;  %v677_v55 = vmax.f32 %v485_v51, 0.0  ;;  %v709_v56 = vmax.f32 %v613_v52, 0.0  ;;  %v506_v57 = vadd.f32 %v924_v53, %v1165_v36  ;;  %v634_v58 = vadd.f32 %v956_v54, %v1165_v36 }
 0x100   :  { %v497_v59 = vpop.f32.mrf.mxu0  ;;  %v625_v60 = vpop.f32.mrf.mxu1 }
 0x101   :  { %742 = vst.msk [vmem:[%s1490_s3 + $0xa8] sm:$0xff] %vm720_vm2, %v677_v55  ;;  %774 = vst.msk [vmem:[%s1490_s3 + $0x1a8] sm:$0xff] %vm720_vm2, %v709_v56  ;;  %v682_v61 = vmax.f32 %v506_v57, 0.0  ;;  %v714_v62 = vmax.f32 %v634_v58, 0.0  ;;  %v498_v63 = vadd.f32 %v1165_v36, %v497_v59  ;;  %v626_v0 = vadd.f32 %v1165_v36, %v625_v60 }
 0x102   :  { %v925_v1 = vpop.f32.mrf.mxu0  ;;  %v957_v2 = vpop.f32.mrf.mxu1 }
 0x103   :  { %747 = vst.msk [vmem:[%s1490_s3 + $0xd0] sm:$0xff] %vm720_vm2, %v682_v61  ;;  %779 = vst.msk [vmem:[%s1490_s3 + $0x1d0] sm:$0xff] %vm720_vm2, %v714_v62  ;;  %v680_v3 = vmax.f32 %v498_v63, 0.0  ;;  %v712_v4 = vmax.f32 %v626_v0, 0.0  ;;  %v509_v5 = vadd.f32 %v925_v1, %v1165_v36  ;;  %v637_v6 = vadd.f32 %v957_v2, %v1165_v36 }
 0x104   :  { %v500_v7 = vpop.f32.mrf.mxu0  ;;  %v628_v8 = vpop.f32.mrf.mxu1 }
 0x105   :  { %745 = vst.msk [vmem:[%s1490_s3 + $0xc0] sm:$0xff] %vm720_vm2, %v680_v3  ;;  %777 = vst.msk [vmem:[%s1490_s3 + $0x1c0] sm:$0xff] %vm720_vm2, %v712_v4  ;;  %v683_v9 = vmax.f32 %v509_v5, 0.0  ;;  %v715_v10 = vmax.f32 %v637_v6, 0.0  ;;  %v501_v11 = vadd.f32 %v1165_v36, %v500_v7  ;;  %v629_v12 = vadd.f32 %v1165_v36, %v628_v8 }
 0x106   :  { %v928_v13 = vpop.f32.mrf.mxu0  ;;  %v960_v14 = vpop.f32.mrf.mxu1 }
 0x107   :  { %748 = vst.msk [vmem:[%s1490_s3 + $0xd8] sm:$0xff] %vm720_vm2, %v683_v9  ;;  %780 = vst.msk [vmem:[%s1490_s3 + $0x1d8] sm:$0xff] %vm720_vm2, %v715_v10  ;;  %v681_v15 = vmax.f32 %v501_v11, 0.0  ;;  %v713_v16 = vmax.f32 %v629_v12, 0.0  ;;  %v522_v17 = vadd.f32 %v928_v13, %v1165_v36  ;;  %v650_v18 = vadd.f32 %v960_v14, %v1165_v36 }
 0x108   :  { %v513_v19 = vpop.f32.mrf.mxu0  ;;  %v641_v20 = vpop.f32.mrf.mxu1 }
 0x109   :  { %746 = vst.msk [vmem:[%s1490_s3 + $0xc8] sm:$0xff] %vm720_vm2, %v681_v15  ;;  %778 = vst.msk [vmem:[%s1490_s3 + $0x1c8] sm:$0xff] %vm720_vm2, %v713_v16  ;;  %v686_v21 = vmax.f32 %v522_v17, 0.0  ;;  %v718_v22 = vmax.f32 %v650_v18, 0.0  ;;  %v514_v23 = vadd.f32 %v1165_v36, %v513_v19  ;;  %v642_v24 = vadd.f32 %v1165_v36, %v641_v20 }
 0x10a   :  { %v929_v25 = vpop.f32.mrf.mxu0  ;;  %v961_v26 = vpop.f32.mrf.mxu1 }
 0x10b   :  { %751 = vst.msk [vmem:[%s1490_s3 + $0xf0] sm:$0xff] %vm720_vm2, %v686_v21  ;;  %783 = vst.msk [vmem:[%s1490_s3 + $0x1f0] sm:$0xff] %vm720_vm2, %v718_v22  ;;  %v684_v27 = vmax.f32 %v514_v23, 0.0  ;;  %v716_v28 = vmax.f32 %v642_v24, 0.0  ;;  %v525_v29 = vadd.f32 %v929_v25, %v1165_v36  ;;  %v653_v30 = vadd.f32 %v961_v26, %v1165_v36 }
 0x10c   :  { %v516_v31 = vpop.f32.mrf.mxu0  ;;  %v644_v32 = vpop.f32.mrf.mxu1 }
 0x10d   :  { %749 = vst.msk [vmem:[%s1490_s3 + $0xe0] sm:$0xff] %vm720_vm2, %v684_v27  ;;  %781 = vst.msk [vmem:[%s1490_s3 + $0x1e0] sm:$0xff] %vm720_vm2, %v716_v28  ;;  %v687_v33 = vmax.f32 %v525_v29, 0.0  ;;  %v719_v34 = vmax.f32 %v653_v30, 0.0  ;;  %v517_v35 = vadd.f32 %v1165_v36, %v516_v31  ;;  %v645_v37 = vadd.f32 %v1165_v36, %v644_v32 }
 0x10f   :  { %752 = vst.msk [vmem:[%s1490_s3 + $0xf8] sm:$0xff] %vm720_vm2, %v687_v33  ;;  %784 = vst.msk [vmem:[%s1490_s3 + $0x1f8] sm:$0xff] %vm720_vm2, %v719_v34  ;;  %v685_v38 = vmax.f32 %v517_v35, 0.0  ;;  %v717_v39 = vmax.f32 %v645_v37, 0.0 }
 0x111   :  { %750 = vst.msk [vmem:[%s1490_s3 + $0xe8] sm:$0xff] %vm720_vm2, %v685_v38  ;;  %782 = vst.msk [vmem:[%s1490_s3 + $0x1e8] sm:$0xff] %vm720_vm2, %v717_v39 }

// kernel: enet_forward.176
= control target key start
LH: loop header
LB: loop body
LE: loop exit
PB: predicated region body
PF: predicated region fallthrough
CT: control target
= control target key end

     0   :  { %vm347_vm0 = vcmask 1041408   ;;  %vm250_vm1 = vcmask 31744   ;;  %vm896_vm2 = vcmask 130048   ;;  %s1838_s1 = inlined_call_operand.vmem [shape: bf16[4,16], index: 1, kind: input, shape index: {}]   ;;  %s1839_s0 = inlined_call_operand.vmem [shape: bf16[512,4], index: 0, kind: input, shape index: {}]   ;;  %s1840_s2 = inlined_call_operand.vmem [shape: f32[1,16], index: 2, kind: input, shape index: {}]   ;;  %s1841_s3 = inlined_call_operand.vmem [shape: f32[512,16], index: 3, kind: input, shape index: {}]   ;;  %s1842_s4 = inlined_call_operand.vmem [shape: f32[512,16], index: 4, kind: output, shape index: {}]  }
   0x1   :  { %v82_v0 = vld [vmem:[%s1838_s1] sm:$0x3]  ;;  %v1135_v4 = vld [vmem:[%s1839_s0 + $0x8] sm:$0xff]   ;;  %v1137_v6 = vld [vmem:[%s1839_s0 + $0x10] sm:$0xff]  }
   0x2   :  { %1131 = vmatprep.subr.msk.bf16.mxu0 %vm347_vm0, %v82_v0  ;;  %1132 = vmatprep.subr.msk.bf16.mxu1 %vm347_vm0, %v82_v0  ;;  %v349_v1 = vsel %vm347_vm0, %v82_v0, 0  ;;  %v1133_v2 = vld [vmem:[%s1839_s0] sm:$0xff]   ;;  %v1136_v5 = vld [vmem:[%s1839_s0 + $0x88] sm:$0xff]   ;;  %v1138_v7 = vld [vmem:[%s1839_s0 + $0x90] sm:$0xff]  }
   0x3   :  { %1064 = vmatpush3.bf16.msra.mxu0 %v349_v1  ;;  %1130 = vmatpush3.bf16.msra.mxu1 %v349_v1  ;;  %v1134_v3 = vld [vmem:[%s1839_s0 + $0x80] sm:$0xff]   ;;  %v1139_v8 = vld [vmem:[%s1839_s0 + $0x18] sm:$0xff]   ;;  %v1143_v12 = vld [vmem:[%s1839_s0 + $0x28] sm:$0xff]  }
   0x4   :  { %1065 = vmatprep.mubr.msk.bf16.mxu0 %vm250_vm1, %v1133_v2  ;;  %1097 = vmatprep.mubr.msk.bf16.mxu1 %vm250_vm1, %v1134_v3  ;;  %v1140_v9 = vld [vmem:[%s1839_s0 + $0x98] sm:$0xff]   ;;  %v1141_v10 = vld [vmem:[%s1839_s0 + $0x20] sm:$0xff]   ;;  %v1144_v13 = vld [vmem:[%s1839_s0 + $0xa8] sm:$0xff]  }
   0x5   :  { %v1142_v11 = vld [vmem:[%s1839_s0 + $0xa0] sm:$0xff]   ;;  %v1145_v14 = vld [vmem:[%s1839_s0 + $0x30] sm:$0xff]   ;;  %v1147_v16 = vld [vmem:[%s1839_s0 + $0x38] sm:$0xff]  }
   0x6   :  { %1066 = vmatmul.mubr.msk.bf16.vlgmr.msra.gmra.mxu0 %vm250_vm1, %v1135_v4  ;;  %1098 = vmatmul.mubr.msk.bf16.vlgmr.msra.gmra.mxu1 %vm250_vm1, %v1136_v5  ;;  %v1146_v15 = vld [vmem:[%s1839_s0 + $0xb0] sm:$0xff]   ;;  %v1148_v17 = vld [vmem:[%s1839_s0 + $0xb8] sm:$0xff]   ;;  %v1149_v18 = vld [vmem:[%s1839_s0 + $0x40] sm:$0xff]  }
   0x7   :  { %1069 = vmatprep.mubr.msk.bf16.mxu0 %vm250_vm1, %v1137_v6  ;;  %1101 = vmatprep.mubr.msk.bf16.mxu1 %vm250_vm1, %v1138_v7  ;;  %v1150_v19 = vld [vmem:[%s1839_s0 + $0xc0] sm:$0xff]   ;;  %v1151_v20 = vld [vmem:[%s1839_s0 + $0x48] sm:$0xff]   ;;  %v1153_v22 = vld [vmem:[%s1839_s0 + $0x50] sm:$0xff]  }
   0x8   :  { %v1152_v21 = vld [vmem:[%s1839_s0 + $0xc8] sm:$0xff]   ;;  %v1154_v23 = vld [vmem:[%s1839_s0 + $0xd0] sm:$0xff]   ;;  %v1155_v24 = vld [vmem:[%s1839_s0 + $0x58] sm:$0xff]  }
   0x9   :  { %v1156_v25 = vld [vmem:[%s1839_s0 + $0xd8] sm:$0xff]   ;;  %v1157_v26 = vld [vmem:[%s1839_s0 + $0x60] sm:$0xff]   ;;  %v1159_v28 = vld [vmem:[%s1839_s0 + $0x68] sm:$0xff]  }
   0xa   :  { %v1158_v27 = vld [vmem:[%s1839_s0 + $0xe0] sm:$0xff]   ;;  %v1160_v29 = vld [vmem:[%s1839_s0 + $0xe8] sm:$0xff]   ;;  %v1161_v30 = vld [vmem:[%s1839_s0 + $0x70] sm:$0xff]  }
   0xb   :  { %v1162_v31 = vld [vmem:[%s1839_s0 + $0xf0] sm:$0xff]   ;;  %v1163_v32 = vld [vmem:[%s1839_s0 + $0x78] sm:$0xff]   ;;  %v1324_v34 = vld [vmem:[%s1840_s2] ss:$0 sm:$0xff] }
   0xc   :  { %v1164_v33 = vld [vmem:[%s1839_s0 + $0xf8] sm:$0xff]   ;;  %v706_v38 = vld [vmem:[%s1841_s3 + $0x10] sm:$0xff]  ;;  %v704_v46 = vld [vmem:[%s1841_s3] sm:$0xff] }
   0xd   :  { %v738_v42 = vld [vmem:[%s1841_s3 + $0x110] sm:$0xff]  ;;  %v736_v51 = vld [vmem:[%s1841_s3 + $0x100] sm:$0xff]  ;;  %v707_v56 = vld [vmem:[%s1841_s3 + $0x18] sm:$0xff] }
   0xe   :  { %1070 = vmatmul.mubr.msk.bf16.gmra.mxu0 %vm250_vm1, %v1139_v8  ;;  %1102 = vmatmul.mubr.msk.bf16.gmra.mxu1 %vm250_vm1, %v1140_v9  ;;  %v739_v62 = vld [vmem:[%s1841_s3 + $0x118] sm:$0xff]  ;;  %v705_v4 = vld [vmem:[%s1841_s3 + $0x8] sm:$0xff] }
   0xf   :  { %1073 = vmatprep.mubr.msk.bf16.mxu0 %vm250_vm1, %v1141_v10  ;;  %1105 = vmatprep.mubr.msk.bf16.mxu1 %vm250_vm1, %v1142_v11  ;;  %v737_v10 = vld [vmem:[%s1841_s3 + $0x108] sm:$0xff] }
  0x16   :  { %1074 = vmatmul.mubr.msk.bf16.gmra.mxu0 %vm250_vm1, %v1143_v12  ;;  %1106 = vmatmul.mubr.msk.bf16.gmra.mxu1 %vm250_vm1, %v1144_v13 }
  0x17   :  { %1077 = vmatprep.mubr.msk.bf16.mxu0 %vm250_vm1, %v1145_v14  ;;  %1109 = vmatprep.mubr.msk.bf16.mxu1 %vm250_vm1, %v1146_v15 }
  0x1e   :  { %1078 = vmatmul.mubr.msk.bf16.gmra.mxu0 %vm250_vm1, %v1147_v16  ;;  %1110 = vmatmul.mubr.msk.bf16.gmra.mxu1 %vm250_vm1, %v1148_v17  ;;  %v710_v16 = vld [vmem:[%s1841_s3 + $0x30] sm:$0xff] }
  0x1f   :  { %1081 = vmatprep.mubr.msk.bf16.mxu0 %vm250_vm1, %v1149_v18  ;;  %1113 = vmatprep.mubr.msk.bf16.mxu1 %vm250_vm1, %v1150_v19 }
  0x26   :  { %1082 = vmatmul.mubr.msk.bf16.gmra.mxu0 %vm250_vm1, %v1151_v20  ;;  %1114 = vmatmul.mubr.msk.bf16.gmra.mxu1 %vm250_vm1, %v1152_v21 }
  0x27   :  { %1085 = vmatprep.mubr.msk.bf16.mxu0 %vm250_vm1, %v1153_v22  ;;  %1117 = vmatprep.mubr.msk.bf16.mxu1 %vm250_vm1, %v1154_v23  ;;  %v742_v22 = vld [vmem:[%s1841_s3 + $0x130] sm:$0xff] }
  0x2e   :  { %1086 = vmatmul.mubr.msk.bf16.gmra.mxu0 %vm250_vm1, %v1155_v24  ;;  %1118 = vmatmul.mubr.msk.bf16.gmra.mxu1 %vm250_vm1, %v1156_v25 }
  0x2f   :  { %1089 = vmatprep.mubr.msk.bf16.mxu0 %vm250_vm1, %v1157_v26  ;;  %1121 = vmatprep.mubr.msk.bf16.mxu1 %vm250_vm1, %v1158_v27 }
  0x36   :  { %1090 = vmatmul.mubr.msk.bf16.gmra.mxu0 %vm250_vm1, %v1159_v28  ;;  %1122 = vmatmul.mubr.msk.bf16.gmra.mxu1 %vm250_vm1, %v1160_v29  ;;  %v708_v28 = vld [vmem:[%s1841_s3 + $0x20] sm:$0xff] }
  0x37   :  { %1093 = vmatprep.mubr.msk.bf16.mxu0 %vm250_vm1, %v1161_v30  ;;  %1125 = vmatprep.mubr.msk.bf16.mxu1 %vm250_vm1, %v1162_v31 }
  0x3e   :  { %1094 = vmatmul.mubr.msk.bf16.gmra.mxu0 %vm250_vm1, %v1163_v32  ;;  %1126 = vmatmul.mubr.msk.bf16.gmra.mxu1 %vm250_vm1, %v1164_v33 }
  0xc6   :  { %v1067_v35 = vpop.f32.mrf.mxu0  ;;  %v1099_v37 = vpop.f32.mrf.mxu1 }
  0xc7   :  { %v394_v36 = vadd.f32 %v1067_v35, %v1324_v34  ;;  %v522_v39 = vadd.f32 %v1099_v37, %v1324_v34  ;;  %v740_v35 = vld [vmem:[%s1841_s3 + $0x120] sm:$0xff] }
  0xc8   :  { %v385_v40 = vpop.f32.mrf.mxu0  ;;  %v513_v44 = vpop.f32.mrf.mxu1 }
  0xc9   :  { %v642_v41 = vmax.f32 %v394_v36, 0.0  ;;  %v386_v43 = vadd.f32 %v1324_v34, %v385_v40  ;;  %v674_v45 = vmax.f32 %v522_v39, 0.0  ;;  %v514_v47 = vadd.f32 %v1324_v34, %v513_v44 }
  0xca   :  { %v1068_v48 = vpop.f32.mrf.mxu0  ;;  %v1100_v53 = vpop.f32.mrf.mxu1 }
  0xcb   :  { %v770_v49 = vadd.f32 %v706_v38, %v642_v41  ;;  %v640_v50 = vmax.f32 %v386_v43, 0.0  ;;  %v397_v52 = vadd.f32 %v1068_v48, %v1324_v34  ;;  %v802_v54 = vadd.f32 %v738_v42, %v674_v45  ;;  %v711_v41 = vld [vmem:[%s1841_s3 + $0x38] sm:$0xff] }
  0xcc   :  { %v672_v55 = vmax.f32 %v514_v47, 0.0  ;;  %v525_v57 = vadd.f32 %v1100_v53, %v1324_v34  ;;  %v388_v58 = vpop.f32.mrf.mxu0  ;;  %v516_v0 = vpop.f32.mrf.mxu1  ;;  %v743_v47 = vld [vmem:[%s1841_s3 + $0x138] sm:$0xff]  ;;  %v709_v53 = vld [vmem:[%s1841_s3 + $0x28] sm:$0xff] }
  0xcd   :  { %v834_v59 = vmax.f32 %v770_v49, 0.0  ;;  %v768_v60 = vadd.f32 %v704_v46, %v640_v50  ;;  %v643_v61 = vmax.f32 %v397_v52, 0.0  ;;  %v389_v63 = vadd.f32 %v1324_v34, %v388_v58 }
  0xce   :  { %v866_v1 = vmax.f32 %v802_v54, 0.0  ;;  %v800_v2 = vadd.f32 %v736_v51, %v672_v55  ;;  %v675_v3 = vmax.f32 %v525_v57, 0.0  ;;  %v517_v5 = vadd.f32 %v1324_v34, %v516_v0  ;;  %v1071_v6 = vpop.f32.mrf.mxu0  ;;  %v1103_v12 = vpop.f32.mrf.mxu1 }
  0xcf   :  { %899 = vst.msk [vmem:[%s1842_s4 + $0x10] sm:$0xff] %vm896_vm2, %v834_v59  ;;  %v832_v7 = vmax.f32 %v768_v60, 0.0  ;;  %v771_v8 = vadd.f32 %v707_v56, %v643_v61  ;;  %v641_v9 = vmax.f32 %v389_v63, 0.0  ;;  %v410_v11 = vadd.f32 %v1071_v6, %v1324_v34  ;;  %v741_v59 = vld [vmem:[%s1841_s3 + $0x128] sm:$0xff] }
  0xd0   :  { %931 = vst.msk [vmem:[%s1842_s4 + $0x110] sm:$0xff] %vm896_vm2, %v866_v1  ;;  %v864_v13 = vmax.f32 %v800_v2, 0.0  ;;  %v803_v14 = vadd.f32 %v739_v62, %v675_v3  ;;  %v673_v15 = vmax.f32 %v517_v5, 0.0  ;;  %v538_v17 = vadd.f32 %v1103_v12, %v1324_v34  ;;  %v401_v18 = vpop.f32.mrf.mxu0  ;;  %v529_v24 = vpop.f32.mrf.mxu1  ;;  %v714_v1 = vld [vmem:[%s1841_s3 + $0x50] sm:$0xff] }
  0xd1   :  { %897 = vst.msk [vmem:[%s1842_s4] sm:$0xff] %vm896_vm2, %v832_v7  ;;  %v835_v19 = vmax.f32 %v771_v8, 0.0  ;;  %v769_v20 = vadd.f32 %v705_v4, %v641_v9  ;;  %v646_v21 = vmax.f32 %v410_v11, 0.0  ;;  %v402_v23 = vadd.f32 %v1324_v34, %v401_v18  ;;  %v746_v7 = vld [vmem:[%s1841_s3 + $0x150] sm:$0xff] }
  0xd2   :  { %929 = vst.msk [vmem:[%s1842_s4 + $0x100] sm:$0xff] %vm896_vm2, %v864_v13  ;;  %v867_v25 = vmax.f32 %v803_v14, 0.0  ;;  %v801_v26 = vadd.f32 %v737_v10, %v673_v15  ;;  %v678_v27 = vmax.f32 %v538_v17, 0.0  ;;  %v530_v29 = vadd.f32 %v1324_v34, %v529_v24  ;;  %v1072_v30 = vpop.f32.mrf.mxu0  ;;  %v1104_v37 = vpop.f32.mrf.mxu1  ;;  %v712_v13 = vld [vmem:[%s1841_s3 + $0x40] sm:$0xff] }
  0xd3   :  { %900 = vst.msk [vmem:[%s1842_s4 + $0x18] sm:$0xff] %vm896_vm2, %v835_v19  ;;  %v833_v31 = vmax.f32 %v769_v20, 0.0  ;;  %v774_v32 = vadd.f32 %v710_v16, %v646_v21  ;;  %v644_v33 = vmax.f32 %v402_v23, 0.0  ;;  %v413_v36 = vadd.f32 %v1072_v30, %v1324_v34  ;;  %v744_v19 = vld [vmem:[%s1841_s3 + $0x140] sm:$0xff] }
  0xd4   :  { %932 = vst.msk [vmem:[%s1842_s4 + $0x118] sm:$0xff] %vm896_vm2, %v867_v25  ;;  %v865_v38 = vmax.f32 %v801_v26, 0.0  ;;  %v806_v39 = vadd.f32 %v742_v22, %v678_v27  ;;  %v676_v40 = vmax.f32 %v530_v29, 0.0  ;;  %v541_v42 = vadd.f32 %v1104_v37, %v1324_v34  ;;  %v404_v43 = vpop.f32.mrf.mxu0  ;;  %v532_v49 = vpop.f32.mrf.mxu1  ;;  %v715_v25 = vld [vmem:[%s1841_s3 + $0x58] sm:$0xff] }
  0xd5   :  { %898 = vst.msk [vmem:[%s1842_s4 + $0x8] sm:$0xff] %vm896_vm2, %v833_v31  ;;  %v838_v44 = vmax.f32 %v774_v32, 0.0  ;;  %v772_v45 = vadd.f32 %v708_v28, %v644_v33  ;;  %v647_v46 = vmax.f32 %v413_v36, 0.0  ;;  %v405_v48 = vadd.f32 %v1324_v34, %v404_v43  ;;  %v747_v31 = vld [vmem:[%s1841_s3 + $0x158] sm:$0xff] }
  0xd6   :  { %930 = vst.msk [vmem:[%s1842_s4 + $0x108] sm:$0xff] %vm896_vm2, %v865_v38  ;;  %v870_v50 = vmax.f32 %v806_v39, 0.0  ;;  %v804_v51 = vadd.f32 %v740_v35, %v676_v40  ;;  %v679_v52 = vmax.f32 %v541_v42, 0.0  ;;  %v533_v54 = vadd.f32 %v1324_v34, %v532_v49  ;;  %v1075_v55 = vpop.f32.mrf.mxu0  ;;  %v1107_v61 = vpop.f32.mrf.mxu1  ;;  %v713_v38 = vld [vmem:[%s1841_s3 + $0x48] sm:$0xff] }
  0xd7   :  { %903 = vst.msk [vmem:[%s1842_s4 + $0x30] sm:$0xff] %vm896_vm2, %v838_v44  ;;  %v836_v56 = vmax.f32 %v772_v45, 0.0  ;;  %v775_v57 = vadd.f32 %v711_v41, %v647_v46  ;;  %v645_v58 = vmax.f32 %v405_v48, 0.0  ;;  %v426_v60 = vadd.f32 %v1075_v55, %v1324_v34  ;;  %v745_v44 = vld [vmem:[%s1841_s3 + $0x148] sm:$0xff] }
  0xd8   :  { %935 = vst.msk [vmem:[%s1842_s4 + $0x130] sm:$0xff] %vm896_vm2, %v870_v50  ;;  %v868_v62 = vmax.f32 %v804_v51, 0.0  ;;  %v807_v63 = vadd.f32 %v743_v47, %v679_v52  ;;  %v677_v0 = vmax.f32 %v533_v54, 0.0  ;;  %v554_v2 = vadd.f32 %v1107_v61, %v1324_v34  ;;  %v417_v3 = vpop.f32.mrf.mxu0  ;;  %v545_v9 = vpop.f32.mrf.mxu1  ;;  %v718_v50 = vld [vmem:[%s1841_s3 + $0x70] sm:$0xff] }
  0xd9   :  { %901 = vst.msk [vmem:[%s1842_s4 + $0x20] sm:$0xff] %vm896_vm2, %v836_v56  ;;  %v839_v4 = vmax.f32 %v775_v57, 0.0  ;;  %v773_v5 = vadd.f32 %v709_v53, %v645_v58  ;;  %v650_v6 = vmax.f32 %v426_v60, 0.0  ;;  %v418_v8 = vadd.f32 %v1324_v34, %v417_v3  ;;  %v750_v56 = vld [vmem:[%s1841_s3 + $0x170] sm:$0xff] }
  0xda   :  { %933 = vst.msk [vmem:[%s1842_s4 + $0x120] sm:$0xff] %vm896_vm2, %v868_v62  ;;  %v871_v10 = vmax.f32 %v807_v63, 0.0  ;;  %v805_v11 = vadd.f32 %v741_v59, %v677_v0  ;;  %v682_v12 = vmax.f32 %v554_v2, 0.0  ;;  %v546_v14 = vadd.f32 %v1324_v34, %v545_v9  ;;  %v1076_v15 = vpop.f32.mrf.mxu0  ;;  %v1108_v21 = vpop.f32.mrf.mxu1  ;;  %v716_v62 = vld [vmem:[%s1841_s3 + $0x60] sm:$0xff] }
  0xdb   :  { %904 = vst.msk [vmem:[%s1842_s4 + $0x38] sm:$0xff] %vm896_vm2, %v839_v4  ;;  %v837_v16 = vmax.f32 %v773_v5, 0.0  ;;  %v778_v17 = vadd.f32 %v714_v1, %v650_v6  ;;  %v648_v18 = vmax.f32 %v418_v8, 0.0  ;;  %v429_v20 = vadd.f32 %v1076_v15, %v1324_v34  ;;  %v748_v4 = vld [vmem:[%s1841_s3 + $0x160] sm:$0xff] }
  0xdc   :  { %936 = vst.msk [vmem:[%s1842_s4 + $0x138] sm:$0xff] %vm896_vm2, %v871_v10  ;;  %v869_v22 = vmax.f32 %v805_v11, 0.0  ;;  %v810_v23 = vadd.f32 %v746_v7, %v682_v12  ;;  %v680_v24 = vmax.f32 %v546_v14, 0.0  ;;  %v557_v26 = vadd.f32 %v1108_v21, %v1324_v34  ;;  %v420_v27 = vpop.f32.mrf.mxu0  ;;  %v548_v33 = vpop.f32.mrf.mxu1  ;;  %v719_v10 = vld [vmem:[%s1841_s3 + $0x78] sm:$0xff] }
  0xdd   :  { %902 = vst.msk [vmem:[%s1842_s4 + $0x28] sm:$0xff] %vm896_vm2, %v837_v16  ;;  %v842_v28 = vmax.f32 %v778_v17, 0.0  ;;  %v776_v29 = vadd.f32 %v712_v13, %v648_v18  ;;  %v651_v30 = vmax.f32 %v429_v20, 0.0  ;;  %v421_v32 = vadd.f32 %v1324_v34, %v420_v27  ;;  %v751_v16 = vld [vmem:[%s1841_s3 + $0x178] sm:$0xff] }
  0xde   :  { %934 = vst.msk [vmem:[%s1842_s4 + $0x128] sm:$0xff] %vm896_vm2, %v869_v22  ;;  %v874_v35 = vmax.f32 %v810_v23, 0.0  ;;  %v808_v36 = vadd.f32 %v744_v19, %v680_v24  ;;  %v683_v37 = vmax.f32 %v557_v26, 0.0  ;;  %v549_v39 = vadd.f32 %v1324_v34, %v548_v33  ;;  %v1079_v40 = vpop.f32.mrf.mxu0  ;;  %v1111_v46 = vpop.f32.mrf.mxu1  ;;  %v717_v22 = vld [vmem:[%s1841_s3 + $0x68] sm:$0xff] }
  0xdf   :  { %907 = vst.msk [vmem:[%s1842_s4 + $0x50] sm:$0xff] %vm896_vm2, %v842_v28  ;;  %v840_v41 = vmax.f32 %v776_v29, 0.0  ;;  %v779_v42 = vadd.f32 %v715_v25, %v651_v30  ;;  %v649_v43 = vmax.f32 %v421_v32, 0.0  ;;  %v442_v45 = vadd.f32 %v1079_v40, %v1324_v34  ;;  %v749_v28 = vld [vmem:[%s1841_s3 + $0x168] sm:$0xff] }
  0xe0   :  { %939 = vst.msk [vmem:[%s1842_s4 + $0x150] sm:$0xff] %vm896_vm2, %v874_v35  ;;  %v872_v47 = vmax.f32 %v808_v36, 0.0  ;;  %v811_v48 = vadd.f32 %v747_v31, %v683_v37  ;;  %v681_v49 = vmax.f32 %v549_v39, 0.0  ;;  %v570_v51 = vadd.f32 %v1111_v46, %v1324_v34  ;;  %v433_v52 = vpop.f32.mrf.mxu0  ;;  %v561_v58 = vpop.f32.mrf.mxu1  ;;  %v722_v35 = vld [vmem:[%s1841_s3 + $0x90] sm:$0xff] }
  0xe1   :  { %905 = vst.msk [vmem:[%s1842_s4 + $0x40] sm:$0xff] %vm896_vm2, %v840_v41  ;;  %v843_v53 = vmax.f32 %v779_v42, 0.0  ;;  %v777_v54 = vadd.f32 %v713_v38, %v649_v43  ;;  %v654_v55 = vmax.f32 %v442_v45, 0.0  ;;  %v434_v57 = vadd.f32 %v1324_v34, %v433_v52  ;;  %v754_v41 = vld [vmem:[%s1841_s3 + $0x190] sm:$0xff] }
  0xe2   :  { %937 = vst.msk [vmem:[%s1842_s4 + $0x140] sm:$0xff] %vm896_vm2, %v872_v47  ;;  %v875_v59 = vmax.f32 %v811_v48, 0.0  ;;  %v809_v60 = vadd.f32 %v745_v44, %v681_v49  ;;  %v686_v61 = vmax.f32 %v570_v51, 0.0  ;;  %v562_v63 = vadd.f32 %v1324_v34, %v561_v58  ;;  %v1080_v0 = vpop.f32.mrf.mxu0  ;;  %v1112_v6 = vpop.f32.mrf.mxu1  ;;  %v720_v47 = vld [vmem:[%s1841_s3 + $0x80] sm:$0xff] }
  0xe3   :  { %908 = vst.msk [vmem:[%s1842_s4 + $0x58] sm:$0xff] %vm896_vm2, %v843_v53  ;;  %v841_v1 = vmax.f32 %v777_v54, 0.0  ;;  %v782_v2 = vadd.f32 %v718_v50, %v654_v55  ;;  %v652_v3 = vmax.f32 %v434_v57, 0.0  ;;  %v445_v5 = vadd.f32 %v1080_v0, %v1324_v34  ;;  %v752_v53 = vld [vmem:[%s1841_s3 + $0x180] sm:$0xff] }
  0xe4   :  { %940 = vst.msk [vmem:[%s1842_s4 + $0x158] sm:$0xff] %vm896_vm2, %v875_v59  ;;  %v873_v7 = vmax.f32 %v809_v60, 0.0  ;;  %v814_v8 = vadd.f32 %v750_v56, %v686_v61  ;;  %v684_v9 = vmax.f32 %v562_v63, 0.0  ;;  %v573_v11 = vadd.f32 %v1112_v6, %v1324_v34  ;;  %v436_v12 = vpop.f32.mrf.mxu0  ;;  %v564_v18 = vpop.f32.mrf.mxu1  ;;  %v723_v59 = vld [vmem:[%s1841_s3 + $0x98] sm:$0xff] }
  0xe5   :  { %906 = vst.msk [vmem:[%s1842_s4 + $0x48] sm:$0xff] %vm896_vm2, %v841_v1  ;;  %v846_v13 = vmax.f32 %v782_v2, 0.0  ;;  %v780_v14 = vadd.f32 %v716_v62, %v652_v3  ;;  %v655_v15 = vmax.f32 %v445_v5, 0.0  ;;  %v437_v17 = vadd.f32 %v1324_v34, %v436_v12  ;;  %v755_v1 = vld [vmem:[%s1841_s3 + $0x198] sm:$0xff] }
  0xe6   :  { %938 = vst.msk [vmem:[%s1842_s4 + $0x148] sm:$0xff] %vm896_vm2, %v873_v7  ;;  %v878_v19 = vmax.f32 %v814_v8, 0.0  ;;  %v812_v20 = vadd.f32 %v748_v4, %v684_v9  ;;  %v687_v21 = vmax.f32 %v573_v11, 0.0  ;;  %v565_v23 = vadd.f32 %v1324_v34, %v564_v18  ;;  %v1083_v24 = vpop.f32.mrf.mxu0  ;;  %v1115_v30 = vpop.f32.mrf.mxu1  ;;  %v721_v7 = vld [vmem:[%s1841_s3 + $0x88] sm:$0xff] }
  0xe7   :  { %911 = vst.msk [vmem:[%s1842_s4 + $0x70] sm:$0xff] %vm896_vm2, %v846_v13  ;;  %v844_v25 = vmax.f32 %v780_v14, 0.0  ;;  %v783_v26 = vadd.f32 %v719_v10, %v655_v15  ;;  %v653_v27 = vmax.f32 %v437_v17, 0.0  ;;  %v458_v29 = vadd.f32 %v1083_v24, %v1324_v34  ;;  %v753_v13 = vld [vmem:[%s1841_s3 + $0x188] sm:$0xff] }
  0xe8   :  { %943 = vst.msk [vmem:[%s1842_s4 + $0x170] sm:$0xff] %vm896_vm2, %v878_v19  ;;  %v876_v31 = vmax.f32 %v812_v20, 0.0  ;;  %v815_v32 = vadd.f32 %v751_v16, %v687_v21  ;;  %v685_v33 = vmax.f32 %v565_v23, 0.0  ;;  %v586_v36 = vadd.f32 %v1115_v30, %v1324_v34  ;;  %v449_v37 = vpop.f32.mrf.mxu0  ;;  %v577_v43 = vpop.f32.mrf.mxu1  ;;  %v726_v19 = vld [vmem:[%s1841_s3 + $0xb0] sm:$0xff] }
  0xe9   :  { %909 = vst.msk [vmem:[%s1842_s4 + $0x60] sm:$0xff] %vm896_vm2, %v844_v25  ;;  %v847_v38 = vmax.f32 %v783_v26, 0.0  ;;  %v781_v39 = vadd.f32 %v717_v22, %v653_v27  ;;  %v658_v40 = vmax.f32 %v458_v29, 0.0  ;;  %v450_v42 = vadd.f32 %v1324_v34, %v449_v37  ;;  %v758_v25 = vld [vmem:[%s1841_s3 + $0x1b0] sm:$0xff] }
  0xea   :  { %941 = vst.msk [vmem:[%s1842_s4 + $0x160] sm:$0xff] %vm896_vm2, %v876_v31  ;;  %v879_v44 = vmax.f32 %v815_v32, 0.0  ;;  %v813_v45 = vadd.f32 %v749_v28, %v685_v33  ;;  %v690_v46 = vmax.f32 %v586_v36, 0.0  ;;  %v578_v48 = vadd.f32 %v1324_v34, %v577_v43  ;;  %v1084_v49 = vpop.f32.mrf.mxu0  ;;  %v1116_v55 = vpop.f32.mrf.mxu1  ;;  %v724_v31 = vld [vmem:[%s1841_s3 + $0xa0] sm:$0xff] }
  0xeb   :  { %912 = vst.msk [vmem:[%s1842_s4 + $0x78] sm:$0xff] %vm896_vm2, %v847_v38  ;;  %v845_v50 = vmax.f32 %v781_v39, 0.0  ;;  %v786_v51 = vadd.f32 %v722_v35, %v658_v40  ;;  %v656_v52 = vmax.f32 %v450_v42, 0.0  ;;  %v461_v54 = vadd.f32 %v1084_v49, %v1324_v34  ;;  %v756_v38 = vld [vmem:[%s1841_s3 + $0x1a0] sm:$0xff] }
  0xec   :  { %944 = vst.msk [vmem:[%s1842_s4 + $0x178] sm:$0xff] %vm896_vm2, %v879_v44  ;;  %v877_v56 = vmax.f32 %v813_v45, 0.0  ;;  %v818_v57 = vadd.f32 %v754_v41, %v690_v46  ;;  %v688_v58 = vmax.f32 %v578_v48, 0.0  ;;  %v589_v60 = vadd.f32 %v1116_v55, %v1324_v34  ;;  %v452_v61 = vpop.f32.mrf.mxu0  ;;  %v580_v3 = vpop.f32.mrf.mxu1  ;;  %v727_v44 = vld [vmem:[%s1841_s3 + $0xb8] sm:$0xff] }
  0xed   :  { %910 = vst.msk [vmem:[%s1842_s4 + $0x68] sm:$0xff] %vm896_vm2, %v845_v50  ;;  %v850_v62 = vmax.f32 %v786_v51, 0.0  ;;  %v784_v63 = vadd.f32 %v720_v47, %v656_v52  ;;  %v659_v0 = vmax.f32 %v461_v54, 0.0  ;;  %v453_v2 = vadd.f32 %v1324_v34, %v452_v61  ;;  %v759_v50 = vld [vmem:[%s1841_s3 + $0x1b8] sm:$0xff] }
  0xee   :  { %942 = vst.msk [vmem:[%s1842_s4 + $0x168] sm:$0xff] %vm896_vm2, %v877_v56  ;;  %v882_v4 = vmax.f32 %v818_v57, 0.0  ;;  %v816_v5 = vadd.f32 %v752_v53, %v688_v58  ;;  %v691_v6 = vmax.f32 %v589_v60, 0.0  ;;  %v581_v8 = vadd.f32 %v1324_v34, %v580_v3  ;;  %v1087_v9 = vpop.f32.mrf.mxu0  ;;  %v1119_v15 = vpop.f32.mrf.mxu1  ;;  %v725_v56 = vld [vmem:[%s1841_s3 + $0xa8] sm:$0xff] }
  0xef   :  { %915 = vst.msk [vmem:[%s1842_s4 + $0x90] sm:$0xff] %vm896_vm2, %v850_v62  ;;  %v848_v10 = vmax.f32 %v784_v63, 0.0  ;;  %v787_v11 = vadd.f32 %v723_v59, %v659_v0  ;;  %v657_v12 = vmax.f32 %v453_v2, 0.0  ;;  %v474_v14 = vadd.f32 %v1087_v9, %v1324_v34  ;;  %v757_v62 = vld [vmem:[%s1841_s3 + $0x1a8] sm:$0xff] }
  0xf0   :  { %947 = vst.msk [vmem:[%s1842_s4 + $0x190] sm:$0xff] %vm896_vm2, %v882_v4  ;;  %v880_v16 = vmax.f32 %v816_v5, 0.0  ;;  %v819_v17 = vadd.f32 %v755_v1, %v691_v6  ;;  %v689_v18 = vmax.f32 %v581_v8, 0.0  ;;  %v602_v20 = vadd.f32 %v1119_v15, %v1324_v34  ;;  %v465_v21 = vpop.f32.mrf.mxu0  ;;  %v593_v27 = vpop.f32.mrf.mxu1  ;;  %v730_v4 = vld [vmem:[%s1841_s3 + $0xd0] sm:$0xff] }
  0xf1   :  { %913 = vst.msk [vmem:[%s1842_s4 + $0x80] sm:$0xff] %vm896_vm2, %v848_v10  ;;  %v851_v22 = vmax.f32 %v787_v11, 0.0  ;;  %v785_v23 = vadd.f32 %v721_v7, %v657_v12  ;;  %v662_v24 = vmax.f32 %v474_v14, 0.0  ;;  %v466_v26 = vadd.f32 %v1324_v34, %v465_v21  ;;  %v762_v10 = vld [vmem:[%s1841_s3 + $0x1d0] sm:$0xff] }
  0xf2   :  { %945 = vst.msk [vmem:[%s1842_s4 + $0x180] sm:$0xff] %vm896_vm2, %v880_v16  ;;  %v883_v28 = vmax.f32 %v819_v17, 0.0  ;;  %v817_v29 = vadd.f32 %v753_v13, %v689_v18  ;;  %v694_v30 = vmax.f32 %v602_v20, 0.0  ;;  %v594_v32 = vadd.f32 %v1324_v34, %v593_v27  ;;  %v1088_v33 = vpop.f32.mrf.mxu0  ;;  %v1120_v40 = vpop.f32.mrf.mxu1  ;;  %v728_v16 = vld [vmem:[%s1841_s3 + $0xc0] sm:$0xff] }
  0xf3   :  { %916 = vst.msk [vmem:[%s1842_s4 + $0x98] sm:$0xff] %vm896_vm2, %v851_v22  ;;  %v849_v35 = vmax.f32 %v785_v23, 0.0  ;;  %v790_v36 = vadd.f32 %v726_v19, %v662_v24  ;;  %v660_v37 = vmax.f32 %v466_v26, 0.0  ;;  %v477_v39 = vadd.f32 %v1088_v33, %v1324_v34  ;;  %v760_v22 = vld [vmem:[%s1841_s3 + $0x1c0] sm:$0xff] }
  0xf4   :  { %948 = vst.msk [vmem:[%s1842_s4 + $0x198] sm:$0xff] %vm896_vm2, %v883_v28  ;;  %v881_v41 = vmax.f32 %v817_v29, 0.0  ;;  %v822_v42 = vadd.f32 %v758_v25, %v694_v30  ;;  %v692_v43 = vmax.f32 %v594_v32, 0.0  ;;  %v605_v45 = vadd.f32 %v1120_v40, %v1324_v34  ;;  %v468_v46 = vpop.f32.mrf.mxu0  ;;  %v596_v52 = vpop.f32.mrf.mxu1  ;;  %v731_v28 = vld [vmem:[%s1841_s3 + $0xd8] sm:$0xff] }
  0xf5   :  { %914 = vst.msk [vmem:[%s1842_s4 + $0x88] sm:$0xff] %vm896_vm2, %v849_v35  ;;  %v854_v47 = vmax.f32 %v790_v36, 0.0  ;;  %v788_v48 = vadd.f32 %v724_v31, %v660_v37  ;;  %v663_v49 = vmax.f32 %v477_v39, 0.0  ;;  %v469_v51 = vadd.f32 %v1324_v34, %v468_v46  ;;  %v763_v35 = vld [vmem:[%s1841_s3 + $0x1d8] sm:$0xff] }
  0xf6   :  { %946 = vst.msk [vmem:[%s1842_s4 + $0x188] sm:$0xff] %vm896_vm2, %v881_v41  ;;  %v886_v53 = vmax.f32 %v822_v42, 0.0  ;;  %v820_v54 = vadd.f32 %v756_v38, %v692_v43  ;;  %v695_v55 = vmax.f32 %v605_v45, 0.0  ;;  %v597_v57 = vadd.f32 %v1324_v34, %v596_v52  ;;  %v1091_v58 = vpop.f32.mrf.mxu0  ;;  %v1123_v0 = vpop.f32.mrf.mxu1  ;;  %v729_v41 = vld [vmem:[%s1841_s3 + $0xc8] sm:$0xff] }
  0xf7   :  { %919 = vst.msk [vmem:[%s1842_s4 + $0xb0] sm:$0xff] %vm896_vm2, %v854_v47  ;;  %v852_v59 = vmax.f32 %v788_v48, 0.0  ;;  %v791_v60 = vadd.f32 %v727_v44, %v663_v49  ;;  %v661_v61 = vmax.f32 %v469_v51, 0.0  ;;  %v490_v63 = vadd.f32 %v1091_v58, %v1324_v34  ;;  %v761_v47 = vld [vmem:[%s1841_s3 + $0x1c8] sm:$0xff] }
  0xf8   :  { %951 = vst.msk [vmem:[%s1842_s4 + $0x1b0] sm:$0xff] %vm896_vm2, %v886_v53  ;;  %v884_v1 = vmax.f32 %v820_v54, 0.0  ;;  %v823_v2 = vadd.f32 %v759_v50, %v695_v55  ;;  %v693_v3 = vmax.f32 %v597_v57, 0.0  ;;  %v618_v5 = vadd.f32 %v1123_v0, %v1324_v34  ;;  %v481_v6 = vpop.f32.mrf.mxu0  ;;  %v609_v12 = vpop.f32.mrf.mxu1  ;;  %v734_v53 = vld [vmem:[%s1841_s3 + $0xf0] sm:$0xff] }
  0xf9   :  { %917 = vst.msk [vmem:[%s1842_s4 + $0xa0] sm:$0xff] %vm896_vm2, %v852_v59  ;;  %v855_v7 = vmax.f32 %v791_v60, 0.0  ;;  %v789_v8 = vadd.f32 %v725_v56, %v661_v61  ;;  %v666_v9 = vmax.f32 %v490_v63, 0.0  ;;  %v482_v11 = vadd.f32 %v1324_v34, %v481_v6  ;;  %v766_v59 = vld [vmem:[%s1841_s3 + $0x1f0] sm:$0xff] }
  0xfa   :  { %949 = vst.msk [vmem:[%s1842_s4 + $0x1a0] sm:$0xff] %vm896_vm2, %v884_v1  ;;  %v887_v13 = vmax.f32 %v823_v2, 0.0  ;;  %v821_v14 = vadd.f32 %v757_v62, %v693_v3  ;;  %v698_v15 = vmax.f32 %v618_v5, 0.0  ;;  %v610_v17 = vadd.f32 %v1324_v34, %v609_v12  ;;  %v1092_v18 = vpop.f32.mrf.mxu0  ;;  %v1124_v24 = vpop.f32.mrf.mxu1  ;;  %v732_v1 = vld [vmem:[%s1841_s3 + $0xe0] sm:$0xff] }
  0xfb   :  { %920 = vst.msk [vmem:[%s1842_s4 + $0xb8] sm:$0xff] %vm896_vm2, %v855_v7  ;;  %v853_v19 = vmax.f32 %v789_v8, 0.0  ;;  %v794_v20 = vadd.f32 %v730_v4, %v666_v9  ;;  %v664_v21 = vmax.f32 %v482_v11, 0.0  ;;  %v493_v23 = vadd.f32 %v1092_v18, %v1324_v34  ;;  %v764_v7 = vld [vmem:[%s1841_s3 + $0x1e0] sm:$0xff] }
  0xfc   :  { %952 = vst.msk [vmem:[%s1842_s4 + $0x1b8] sm:$0xff] %vm896_vm2, %v887_v13  ;;  %v885_v25 = vmax.f32 %v821_v14, 0.0  ;;  %v826_v26 = vadd.f32 %v762_v10, %v698_v15  ;;  %v696_v27 = vmax.f32 %v610_v17, 0.0  ;;  %v621_v29 = vadd.f32 %v1124_v24, %v1324_v34  ;;  %v484_v30 = vpop.f32.mrf.mxu0  ;;  %v612_v37 = vpop.f32.mrf.mxu1  ;;  %v735_v13 = vld [vmem:[%s1841_s3 + $0xf8] sm:$0xff] }
  0xfd   :  { %918 = vst.msk [vmem:[%s1842_s4 + $0xa8] sm:$0xff] %vm896_vm2, %v853_v19  ;;  %v858_v31 = vmax.f32 %v794_v20, 0.0  ;;  %v792_v32 = vadd.f32 %v728_v16, %v664_v21  ;;  %v667_v33 = vmax.f32 %v493_v23, 0.0  ;;  %v485_v36 = vadd.f32 %v1324_v34, %v484_v30  ;;  %v767_v19 = vld [vmem:[%s1841_s3 + $0x1f8] sm:$0xff]  ;;  %v765_v30 = vld [vmem:[%s1841_s3 + $0x1e8] sm:$0xff] }
  0xfe   :  { %950 = vst.msk [vmem:[%s1842_s4 + $0x1a8] sm:$0xff] %vm896_vm2, %v885_v25  ;;  %v890_v38 = vmax.f32 %v826_v26, 0.0  ;;  %v824_v39 = vadd.f32 %v760_v22, %v696_v27  ;;  %v699_v40 = vmax.f32 %v621_v29, 0.0  ;;  %v613_v42 = vadd.f32 %v1324_v34, %v612_v37  ;;  %v1095_v43 = vpop.f32.mrf.mxu0  ;;  %v1127_v49 = vpop.f32.mrf.mxu1  ;;  %v733_v25 = vld [vmem:[%s1841_s3 + $0xe8] sm:$0xff] }
  0xff   :  { %923 = vst.msk [vmem:[%s1842_s4 + $0xd0] sm:$0xff] %vm896_vm2, %v858_v31  ;;  %v856_v44 = vmax.f32 %v792_v32, 0.0  ;;  %v795_v45 = vadd.f32 %v731_v28, %v667_v33  ;;  %v665_v46 = vmax.f32 %v485_v36, 0.0  ;;  %v506_v48 = vadd.f32 %v1095_v43, %v1324_v34 }
 0x100   :  { %955 = vst.msk [vmem:[%s1842_s4 + $0x1d0] sm:$0xff] %vm896_vm2, %v890_v38  ;;  %v888_v50 = vmax.f32 %v824_v39, 0.0  ;;  %v827_v51 = vadd.f32 %v763_v35, %v699_v40  ;;  %v697_v52 = vmax.f32 %v613_v42, 0.0  ;;  %v634_v54 = vadd.f32 %v1127_v49, %v1324_v34  ;;  %v497_v55 = vpop.f32.mrf.mxu0  ;;  %v625_v61 = vpop.f32.mrf.mxu1 }
 0x101   :  { %921 = vst.msk [vmem:[%s1842_s4 + $0xc0] sm:$0xff] %vm896_vm2, %v856_v44  ;;  %v859_v56 = vmax.f32 %v795_v45, 0.0  ;;  %v793_v57 = vadd.f32 %v729_v41, %v665_v46  ;;  %v670_v58 = vmax.f32 %v506_v48, 0.0  ;;  %v498_v60 = vadd.f32 %v1324_v34, %v497_v55 }
 0x102   :  { %953 = vst.msk [vmem:[%s1842_s4 + $0x1c0] sm:$0xff] %vm896_vm2, %v888_v50  ;;  %v891_v62 = vmax.f32 %v827_v51, 0.0  ;;  %v825_v63 = vadd.f32 %v761_v47, %v697_v52  ;;  %v702_v0 = vmax.f32 %v634_v54, 0.0  ;;  %v626_v2 = vadd.f32 %v1324_v34, %v625_v61  ;;  %v1096_v3 = vpop.f32.mrf.mxu0  ;;  %v1128_v9 = vpop.f32.mrf.mxu1 }
 0x103   :  { %924 = vst.msk [vmem:[%s1842_s4 + $0xd8] sm:$0xff] %vm896_vm2, %v859_v56  ;;  %v857_v4 = vmax.f32 %v793_v57, 0.0  ;;  %v798_v5 = vadd.f32 %v734_v53, %v670_v58  ;;  %v668_v6 = vmax.f32 %v498_v60, 0.0  ;;  %v509_v8 = vadd.f32 %v1096_v3, %v1324_v34 }
 0x104   :  { %956 = vst.msk [vmem:[%s1842_s4 + $0x1d8] sm:$0xff] %vm896_vm2, %v891_v62  ;;  %v889_v10 = vmax.f32 %v825_v63, 0.0  ;;  %v830_v11 = vadd.f32 %v766_v59, %v702_v0  ;;  %v700_v12 = vmax.f32 %v626_v2, 0.0  ;;  %v637_v14 = vadd.f32 %v1128_v9, %v1324_v34  ;;  %v500_v15 = vpop.f32.mrf.mxu0  ;;  %v628_v21 = vpop.f32.mrf.mxu1 }
 0x105   :  { %922 = vst.msk [vmem:[%s1842_s4 + $0xc8] sm:$0xff] %vm896_vm2, %v857_v4  ;;  %v862_v16 = vmax.f32 %v798_v5, 0.0  ;;  %v796_v17 = vadd.f32 %v732_v1, %v668_v6  ;;  %v671_v18 = vmax.f32 %v509_v8, 0.0  ;;  %v501_v20 = vadd.f32 %v1324_v34, %v500_v15 }
 0x106   :  { %954 = vst.msk [vmem:[%s1842_s4 + $0x1c8] sm:$0xff] %vm896_vm2, %v889_v10  ;;  %v894_v22 = vmax.f32 %v830_v11, 0.0  ;;  %v828_v23 = vadd.f32 %v764_v7, %v700_v12  ;;  %v703_v24 = vmax.f32 %v637_v14, 0.0  ;;  %v629_v26 = vadd.f32 %v1324_v34, %v628_v21 }
 0x107   :  { %927 = vst.msk [vmem:[%s1842_s4 + $0xf0] sm:$0xff] %vm896_vm2, %v862_v16  ;;  %v860_v27 = vmax.f32 %v796_v17, 0.0  ;;  %v799_v28 = vadd.f32 %v735_v13, %v671_v18  ;;  %v669_v29 = vmax.f32 %v501_v20, 0.0 }
 0x108   :  { %959 = vst.msk [vmem:[%s1842_s4 + $0x1f0] sm:$0xff] %vm896_vm2, %v894_v22  ;;  %v892_v31 = vmax.f32 %v828_v23, 0.0  ;;  %v831_v32 = vadd.f32 %v767_v19, %v703_v24  ;;  %v701_v34 = vmax.f32 %v629_v26, 0.0 }
 0x109   :  { %925 = vst.msk [vmem:[%s1842_s4 + $0xe0] sm:$0xff] %vm896_vm2, %v860_v27  ;;  %v863_v33 = vmax.f32 %v799_v28, 0.0  ;;  %v797_v35 = vadd.f32 %v733_v25, %v669_v29 }
 0x10a   :  { %957 = vst.msk [vmem:[%s1842_s4 + $0x1e0] sm:$0xff] %vm896_vm2, %v892_v31  ;;  %v895_v36 = vmax.f32 %v831_v32, 0.0  ;;  %v829_v37 = vadd.f32 %v765_v30, %v701_v34 }
 0x10b   :  { %928 = vst.msk [vmem:[%s1842_s4 + $0xf8] sm:$0xff] %vm896_vm2, %v863_v33  ;;  %v861_v38 = vmax.f32 %v797_v35, 0.0 }
 0x10c   :  { %960 = vst.msk [vmem:[%s1842_s4 + $0x1f8] sm:$0xff] %vm896_vm2, %v895_v36  ;;  %v893_v39 = vmax.f32 %v829_v37, 0.0 }
 0x10d   :  { %926 = vst.msk [vmem:[%s1842_s4 + $0xe8] sm:$0xff] %vm896_vm2, %v861_v38 }
 0x10e   :  { %958 = vst.msk [vmem:[%s1842_s4 + $0x1e8] sm:$0xff] %vm896_vm2, %v893_v39 }

// kernel: enet_forward.177
= control target key start
LH: loop header
LB: loop body
LE: loop exit
PB: predicated region body
PF: predicated region fallthrough
CT: control target
= control target key end

     0   :  { %vm278_vm0 = vcmask 523264   ;;  %vm664_vm1 = vcmask 130048   ;;  %s1439_s1 = inlined_call_operand.vmem [shape: bf16[64,16], index: 1, kind: input, shape index: {}]   ;;  %s1440_s0 = inlined_call_operand.vmem [shape: bf16[512,64], index: 0, kind: input, shape index: {}]   ;;  %s1441_s2 = inlined_call_operand.vmem [shape: f32[1,16], index: 2, kind: input, shape index: {}]   ;;  %s1442_s3 = inlined_call_operand.vmem [shape: f32[512,16], index: 3, kind: output, shape index: {}]  }
   0x1   :  { %v918_v0 = vld [vmem:[%s1439_s1 + $0x18] sm:$0xff]   ;;  %v919_v1 = vld [vmem:[%s1439_s1 + $0x10] sm:$0xff]   ;;  %v920_v2 = vld [vmem:[%s1439_s1 + $0x8] sm:$0xff]  }
   0x2   :  { %838 = vmatprep.subr.bf16.mxu0 %v918_v0  ;;  %910 = vmatprep.subr.bf16.mxu1 %v918_v0  ;;  %v922_v3 = vld [vmem:[%s1440_s0] sm:$0xff]   ;;  %v924_v6 = vld [vmem:[%s1440_s0 + $0x8] sm:$0xff]   ;;  %v926_v8 = vld [vmem:[%s1440_s0 + $0x10] sm:$0xff]  }
   0x3   :  { %839 = vmatpush3.bf16.msra.mxu0 %v918_v0  ;;  %914 = vmatpush3.bf16.msra.mxu1 %v918_v0  ;;  %v923_v4 = vld [vmem:[%s1440_s0 + $0x80] sm:$0xff]   ;;  %v925_v7 = vld [vmem:[%s1440_s0 + $0x88] sm:$0xff]   ;;  %v927_v9 = vld [vmem:[%s1440_s0 + $0x90] sm:$0xff]  }
   0x4   :  { %840 = vmatprep.subr.bf16.mxu0 %v919_v1  ;;  %911 = vmatprep.subr.bf16.mxu1 %v919_v1  ;;  %v921_v5 = vld [vmem:[%s1439_s1] sm:$0xff]   ;;  %v928_v10 = vld [vmem:[%s1440_s0 + $0x18] sm:$0xff]   ;;  %v932_v14 = vld [vmem:[%s1440_s0 + $0x28] sm:$0xff]  }
   0x5   :  { %846 = vmatprep.mubr.msk.bf16.mxu0 %vm278_vm0, %v922_v3  ;;  %878 = vmatprep.mubr.msk.bf16.mxu1 %vm278_vm0, %v923_v4  ;;  %v929_v11 = vld [vmem:[%s1440_s0 + $0x98] sm:$0xff]   ;;  %v930_v12 = vld [vmem:[%s1440_s0 + $0x20] sm:$0xff]   ;;  %v933_v15 = vld [vmem:[%s1440_s0 + $0xa8] sm:$0xff]  }
   0x6   :  { %v931_v13 = vld [vmem:[%s1440_s0 + $0xa0] sm:$0xff]   ;;  %v934_v16 = vld [vmem:[%s1440_s0 + $0x30] sm:$0xff]   ;;  %v936_v18 = vld [vmem:[%s1440_s0 + $0x38] sm:$0xff]  }
   0x7   :  { %841 = vmatpush3.bf16.msra.mxu0 %v919_v1  ;;  %915 = vmatpush3.bf16.msra.mxu1 %v919_v1  ;;  %v935_v17 = vld [vmem:[%s1440_s0 + $0xb0] sm:$0xff]   ;;  %v937_v19 = vld [vmem:[%s1440_s0 + $0xb8] sm:$0xff]   ;;  %v938_v20 = vld [vmem:[%s1440_s0 + $0x40] sm:$0xff]  }
   0x8   :  { %842 = vmatprep.subr.bf16.mxu0 %v920_v2  ;;  %912 = vmatprep.subr.bf16.mxu1 %v920_v2  ;;  %v939_v21 = vld [vmem:[%s1440_s0 + $0xc0] sm:$0xff]   ;;  %v940_v22 = vld [vmem:[%s1440_s0 + $0x48] sm:$0xff]   ;;  %v942_v24 = vld [vmem:[%s1440_s0 + $0x50] sm:$0xff]  }
   0x9   :  { %v941_v23 = vld [vmem:[%s1440_s0 + $0xc8] sm:$0xff]   ;;  %v943_v25 = vld [vmem:[%s1440_s0 + $0xd0] sm:$0xff]   ;;  %v944_v26 = vld [vmem:[%s1440_s0 + $0x58] sm:$0xff]  }
   0xa   :  { %v945_v27 = vld [vmem:[%s1440_s0 + $0xd8] sm:$0xff]   ;;  %v946_v28 = vld [vmem:[%s1440_s0 + $0x60] sm:$0xff]   ;;  %v948_v30 = vld [vmem:[%s1440_s0 + $0x68] sm:$0xff]  }
   0xb   :  { %843 = vmatpush3.bf16.msra.mxu0 %v920_v2  ;;  %916 = vmatpush3.bf16.msra.mxu1 %v920_v2  ;;  %v947_v29 = vld [vmem:[%s1440_s0 + $0xe0] sm:$0xff]   ;;  %v949_v31 = vld [vmem:[%s1440_s0 + $0xe8] sm:$0xff]   ;;  %v950_v32 = vld [vmem:[%s1440_s0 + $0x70] sm:$0xff]  }
   0xc   :  { %844 = vmatprep.subr.bf16.mxu0 %v921_v5  ;;  %913 = vmatprep.subr.bf16.mxu1 %v921_v5  ;;  %v951_v33 = vld [vmem:[%s1440_s0 + $0xf0] sm:$0xff]   ;;  %v952_v34 = vld [vmem:[%s1440_s0 + $0x78] sm:$0xff]   ;;  %v1117_v36 = vld [vmem:[%s1441_s2] ss:$0 sm:$0xff] }
   0xd   :  { %v953_v35 = vld [vmem:[%s1440_s0 + $0xf8] sm:$0xff]  }
   0xf   :  { %845 = vmatpush3.bf16.msra.mxu0 %v921_v5  ;;  %917 = vmatpush3.bf16.msra.mxu1 %v921_v5 }
  0x12   :  { %847 = vmatmul.mubr.msk.bf16.vlgmr.msra.gmra.mxu0 %vm278_vm0, %v924_v6  ;;  %879 = vmatmul.mubr.msk.bf16.vlgmr.msra.gmra.mxu1 %vm278_vm0, %v925_v7 }
  0x13   :  { %850 = vmatprep.mubr.msk.bf16.mxu0 %vm278_vm0, %v926_v8  ;;  %882 = vmatprep.mubr.msk.bf16.mxu1 %vm278_vm0, %v927_v9 }
  0x1a   :  { %851 = vmatmul.mubr.msk.bf16.gmra.mxu0 %vm278_vm0, %v928_v10  ;;  %883 = vmatmul.mubr.msk.bf16.gmra.mxu1 %vm278_vm0, %v929_v11 }
  0x1b   :  { %854 = vmatprep.mubr.msk.bf16.mxu0 %vm278_vm0, %v930_v12  ;;  %886 = vmatprep.mubr.msk.bf16.mxu1 %vm278_vm0, %v931_v13 }
  0x22   :  { %855 = vmatmul.mubr.msk.bf16.gmra.mxu0 %vm278_vm0, %v932_v14  ;;  %887 = vmatmul.mubr.msk.bf16.gmra.mxu1 %vm278_vm0, %v933_v15 }
  0x23   :  { %858 = vmatprep.mubr.msk.bf16.mxu0 %vm278_vm0, %v934_v16  ;;  %890 = vmatprep.mubr.msk.bf16.mxu1 %vm278_vm0, %v935_v17 }
  0x2a   :  { %859 = vmatmul.mubr.msk.bf16.gmra.mxu0 %vm278_vm0, %v936_v18  ;;  %891 = vmatmul.mubr.msk.bf16.gmra.mxu1 %vm278_vm0, %v937_v19 }
  0x2b   :  { %862 = vmatprep.mubr.msk.bf16.mxu0 %vm278_vm0, %v938_v20  ;;  %894 = vmatprep.mubr.msk.bf16.mxu1 %vm278_vm0, %v939_v21 }
  0x32   :  { %863 = vmatmul.mubr.msk.bf16.gmra.mxu0 %vm278_vm0, %v940_v22  ;;  %895 = vmatmul.mubr.msk.bf16.gmra.mxu1 %vm278_vm0, %v941_v23 }
  0x33   :  { %866 = vmatprep.mubr.msk.bf16.mxu0 %vm278_vm0, %v942_v24  ;;  %898 = vmatprep.mubr.msk.bf16.mxu1 %vm278_vm0, %v943_v25 }
  0x3a   :  { %867 = vmatmul.mubr.msk.bf16.gmra.mxu0 %vm278_vm0, %v944_v26  ;;  %899 = vmatmul.mubr.msk.bf16.gmra.mxu1 %vm278_vm0, %v945_v27 }
  0x3b   :  { %870 = vmatprep.mubr.msk.bf16.mxu0 %vm278_vm0, %v946_v28  ;;  %902 = vmatprep.mubr.msk.bf16.mxu1 %vm278_vm0, %v947_v29 }
  0x42   :  { %871 = vmatmul.mubr.msk.bf16.gmra.mxu0 %vm278_vm0, %v948_v30  ;;  %903 = vmatmul.mubr.msk.bf16.gmra.mxu1 %vm278_vm0, %v949_v31 }
  0x43   :  { %874 = vmatprep.mubr.msk.bf16.mxu0 %vm278_vm0, %v950_v32  ;;  %906 = vmatprep.mubr.msk.bf16.mxu1 %vm278_vm0, %v951_v33 }
  0x4a   :  { %875 = vmatmul.mubr.msk.bf16.gmra.mxu0 %vm278_vm0, %v952_v34  ;;  %907 = vmatmul.mubr.msk.bf16.gmra.mxu1 %vm278_vm0, %v953_v35 }
  0xd2   :  { %v848_v37 = vpop.f32.mrf.mxu0  ;;  %v880_v38 = vpop.f32.mrf.mxu1 }
  0xd3   :  { %v418_v39 = vadd.f32 %v848_v37, %v1117_v36  ;;  %v546_v40 = vadd.f32 %v880_v38, %v1117_v36 }
  0xd4   :  { %v409_v41 = vpop.f32.mrf.mxu0  ;;  %v537_v42 = vpop.f32.mrf.mxu1 }
  0xd5   :  { %667 = vst.msk [vmem:[%s1442_s3 + $0x10] sm:$0xff] %vm664_vm1, %v418_v39  ;;  %699 = vst.msk [vmem:[%s1442_s3 + $0x110] sm:$0xff] %vm664_vm1, %v546_v40  ;;  %v410_v43 = vadd.f32 %v1117_v36, %v409_v41  ;;  %v538_v44 = vadd.f32 %v1117_v36, %v537_v42 }
  0xd6   :  { %v849_v45 = vpop.f32.mrf.mxu0  ;;  %v881_v46 = vpop.f32.mrf.mxu1 }
  0xd7   :  { %665 = vst.msk [vmem:[%s1442_s3] sm:$0xff] %vm664_vm1, %v410_v43  ;;  %697 = vst.msk [vmem:[%s1442_s3 + $0x100] sm:$0xff] %vm664_vm1, %v538_v44  ;;  %v421_v47 = vadd.f32 %v849_v45, %v1117_v36  ;;  %v549_v48 = vadd.f32 %v881_v46, %v1117_v36 }
  0xd8   :  { %v412_v49 = vpop.f32.mrf.mxu0  ;;  %v540_v50 = vpop.f32.mrf.mxu1 }
  0xd9   :  { %668 = vst.msk [vmem:[%s1442_s3 + $0x18] sm:$0xff] %vm664_vm1, %v421_v47  ;;  %700 = vst.msk [vmem:[%s1442_s3 + $0x118] sm:$0xff] %vm664_vm1, %v549_v48  ;;  %v413_v51 = vadd.f32 %v1117_v36, %v412_v49  ;;  %v541_v52 = vadd.f32 %v1117_v36, %v540_v50 }
  0xda   :  { %v852_v53 = vpop.f32.mrf.mxu0  ;;  %v884_v54 = vpop.f32.mrf.mxu1 }
  0xdb   :  { %666 = vst.msk [vmem:[%s1442_s3 + $0x8] sm:$0xff] %vm664_vm1, %v413_v51  ;;  %698 = vst.msk [vmem:[%s1442_s3 + $0x108] sm:$0xff] %vm664_vm1, %v541_v52  ;;  %v434_v55 = vadd.f32 %v852_v53, %v1117_v36  ;;  %v562_v56 = vadd.f32 %v884_v54, %v1117_v36 }
  0xdc   :  { %v425_v57 = vpop.f32.mrf.mxu0  ;;  %v553_v58 = vpop.f32.mrf.mxu1 }
  0xdd   :  { %671 = vst.msk [vmem:[%s1442_s3 + $0x30] sm:$0xff] %vm664_vm1, %v434_v55  ;;  %703 = vst.msk [vmem:[%s1442_s3 + $0x130] sm:$0xff] %vm664_vm1, %v562_v56  ;;  %v426_v59 = vadd.f32 %v1117_v36, %v425_v57  ;;  %v554_v60 = vadd.f32 %v1117_v36, %v553_v58 }
  0xde   :  { %v853_v61 = vpop.f32.mrf.mxu0  ;;  %v885_v62 = vpop.f32.mrf.mxu1 }
  0xdf   :  { %669 = vst.msk [vmem:[%s1442_s3 + $0x20] sm:$0xff] %vm664_vm1, %v426_v59  ;;  %701 = vst.msk [vmem:[%s1442_s3 + $0x120] sm:$0xff] %vm664_vm1, %v554_v60  ;;  %v437_v63 = vadd.f32 %v853_v61, %v1117_v36  ;;  %v565_v0 = vadd.f32 %v885_v62, %v1117_v36 }
  0xe0   :  { %v428_v1 = vpop.f32.mrf.mxu0  ;;  %v556_v2 = vpop.f32.mrf.mxu1 }
  0xe1   :  { %672 = vst.msk [vmem:[%s1442_s3 + $0x38] sm:$0xff] %vm664_vm1, %v437_v63  ;;  %704 = vst.msk [vmem:[%s1442_s3 + $0x138] sm:$0xff] %vm664_vm1, %v565_v0  ;;  %v429_v3 = vadd.f32 %v1117_v36, %v428_v1  ;;  %v557_v4 = vadd.f32 %v1117_v36, %v556_v2 }
  0xe2   :  { %v856_v5 = vpop.f32.mrf.mxu0  ;;  %v888_v6 = vpop.f32.mrf.mxu1 }
  0xe3   :  { %670 = vst.msk [vmem:[%s1442_s3 + $0x28] sm:$0xff] %vm664_vm1, %v429_v3  ;;  %702 = vst.msk [vmem:[%s1442_s3 + $0x128] sm:$0xff] %vm664_vm1, %v557_v4  ;;  %v450_v7 = vadd.f32 %v856_v5, %v1117_v36  ;;  %v578_v8 = vadd.f32 %v888_v6, %v1117_v36 }
  0xe4   :  { %v441_v9 = vpop.f32.mrf.mxu0  ;;  %v569_v10 = vpop.f32.mrf.mxu1 }
  0xe5   :  { %675 = vst.msk [vmem:[%s1442_s3 + $0x50] sm:$0xff] %vm664_vm1, %v450_v7  ;;  %707 = vst.msk [vmem:[%s1442_s3 + $0x150] sm:$0xff] %vm664_vm1, %v578_v8  ;;  %v442_v11 = vadd.f32 %v1117_v36, %v441_v9  ;;  %v570_v12 = vadd.f32 %v1117_v36, %v569_v10 }
  0xe6   :  { %v857_v13 = vpop.f32.mrf.mxu0  ;;  %v889_v14 = vpop.f32.mrf.mxu1 }
  0xe7   :  { %673 = vst.msk [vmem:[%s1442_s3 + $0x40] sm:$0xff] %vm664_vm1, %v442_v11  ;;  %705 = vst.msk [vmem:[%s1442_s3 + $0x140] sm:$0xff] %vm664_vm1, %v570_v12  ;;  %v453_v15 = vadd.f32 %v857_v13, %v1117_v36  ;;  %v581_v16 = vadd.f32 %v889_v14, %v1117_v36 }
  0xe8   :  { %v444_v17 = vpop.f32.mrf.mxu0  ;;  %v572_v18 = vpop.f32.mrf.mxu1 }
  0xe9   :  { %676 = vst.msk [vmem:[%s1442_s3 + $0x58] sm:$0xff] %vm664_vm1, %v453_v15  ;;  %708 = vst.msk [vmem:[%s1442_s3 + $0x158] sm:$0xff] %vm664_vm1, %v581_v16  ;;  %v445_v19 = vadd.f32 %v1117_v36, %v444_v17  ;;  %v573_v20 = vadd.f32 %v1117_v36, %v572_v18 }
  0xea   :  { %v860_v21 = vpop.f32.mrf.mxu0  ;;  %v892_v22 = vpop.f32.mrf.mxu1 }
  0xeb   :  { %674 = vst.msk [vmem:[%s1442_s3 + $0x48] sm:$0xff] %vm664_vm1, %v445_v19  ;;  %706 = vst.msk [vmem:[%s1442_s3 + $0x148] sm:$0xff] %vm664_vm1, %v573_v20  ;;  %v466_v23 = vadd.f32 %v860_v21, %v1117_v36  ;;  %v594_v24 = vadd.f32 %v892_v22, %v1117_v36 }
  0xec   :  { %v457_v25 = vpop.f32.mrf.mxu0  ;;  %v585_v26 = vpop.f32.mrf.mxu1 }
  0xed   :  { %679 = vst.msk [vmem:[%s1442_s3 + $0x70] sm:$0xff] %vm664_vm1, %v466_v23  ;;  %711 = vst.msk [vmem:[%s1442_s3 + $0x170] sm:$0xff] %vm664_vm1, %v594_v24  ;;  %v458_v27 = vadd.f32 %v1117_v36, %v457_v25  ;;  %v586_v28 = vadd.f32 %v1117_v36, %v585_v26 }
  0xee   :  { %v861_v29 = vpop.f32.mrf.mxu0  ;;  %v893_v30 = vpop.f32.mrf.mxu1 }
  0xef   :  { %677 = vst.msk [vmem:[%s1442_s3 + $0x60] sm:$0xff] %vm664_vm1, %v458_v27  ;;  %709 = vst.msk [vmem:[%s1442_s3 + $0x160] sm:$0xff] %vm664_vm1, %v586_v28  ;;  %v469_v31 = vadd.f32 %v861_v29, %v1117_v36  ;;  %v597_v32 = vadd.f32 %v893_v30, %v1117_v36 }
  0xf0   :  { %v460_v33 = vpop.f32.mrf.mxu0  ;;  %v588_v34 = vpop.f32.mrf.mxu1 }
  0xf1   :  { %680 = vst.msk [vmem:[%s1442_s3 + $0x78] sm:$0xff] %vm664_vm1, %v469_v31  ;;  %712 = vst.msk [vmem:[%s1442_s3 + $0x178] sm:$0xff] %vm664_vm1, %v597_v32  ;;  %v461_v35 = vadd.f32 %v1117_v36, %v460_v33  ;;  %v589_v37 = vadd.f32 %v1117_v36, %v588_v34 }
  0xf2   :  { %v864_v38 = vpop.f32.mrf.mxu0  ;;  %v896_v39 = vpop.f32.mrf.mxu1 }
  0xf3   :  { %678 = vst.msk [vmem:[%s1442_s3 + $0x68] sm:$0xff] %vm664_vm1, %v461_v35  ;;  %710 = vst.msk [vmem:[%s1442_s3 + $0x168] sm:$0xff] %vm664_vm1, %v589_v37  ;;  %v482_v40 = vadd.f32 %v864_v38, %v1117_v36  ;;  %v610_v41 = vadd.f32 %v896_v39, %v1117_v36 }
  0xf4   :  { %v473_v42 = vpop.f32.mrf.mxu0  ;;  %v601_v43 = vpop.f32.mrf.mxu1 }
  0xf5   :  { %683 = vst.msk [vmem:[%s1442_s3 + $0x90] sm:$0xff] %vm664_vm1, %v482_v40  ;;  %715 = vst.msk [vmem:[%s1442_s3 + $0x190] sm:$0xff] %vm664_vm1, %v610_v41  ;;  %v474_v44 = vadd.f32 %v1117_v36, %v473_v42  ;;  %v602_v45 = vadd.f32 %v1117_v36, %v601_v43 }
  0xf6   :  { %v865_v46 = vpop.f32.mrf.mxu0  ;;  %v897_v47 = vpop.f32.mrf.mxu1 }
  0xf7   :  { %681 = vst.msk [vmem:[%s1442_s3 + $0x80] sm:$0xff] %vm664_vm1, %v474_v44  ;;  %713 = vst.msk [vmem:[%s1442_s3 + $0x180] sm:$0xff] %vm664_vm1, %v602_v45  ;;  %v485_v48 = vadd.f32 %v865_v46, %v1117_v36  ;;  %v613_v49 = vadd.f32 %v897_v47, %v1117_v36 }
  0xf8   :  { %v476_v50 = vpop.f32.mrf.mxu0  ;;  %v604_v51 = vpop.f32.mrf.mxu1 }
  0xf9   :  { %684 = vst.msk [vmem:[%s1442_s3 + $0x98] sm:$0xff] %vm664_vm1, %v485_v48  ;;  %716 = vst.msk [vmem:[%s1442_s3 + $0x198] sm:$0xff] %vm664_vm1, %v613_v49  ;;  %v477_v52 = vadd.f32 %v1117_v36, %v476_v50  ;;  %v605_v53 = vadd.f32 %v1117_v36, %v604_v51 }
  0xfa   :  { %v868_v54 = vpop.f32.mrf.mxu0  ;;  %v900_v55 = vpop.f32.mrf.mxu1 }
  0xfb   :  { %682 = vst.msk [vmem:[%s1442_s3 + $0x88] sm:$0xff] %vm664_vm1, %v477_v52  ;;  %714 = vst.msk [vmem:[%s1442_s3 + $0x188] sm:$0xff] %vm664_vm1, %v605_v53  ;;  %v498_v56 = vadd.f32 %v868_v54, %v1117_v36  ;;  %v626_v57 = vadd.f32 %v900_v55, %v1117_v36 }
  0xfc   :  { %v489_v58 = vpop.f32.mrf.mxu0  ;;  %v617_v59 = vpop.f32.mrf.mxu1 }
  0xfd   :  { %687 = vst.msk [vmem:[%s1442_s3 + $0xb0] sm:$0xff] %vm664_vm1, %v498_v56  ;;  %719 = vst.msk [vmem:[%s1442_s3 + $0x1b0] sm:$0xff] %vm664_vm1, %v626_v57  ;;  %v490_v60 = vadd.f32 %v1117_v36, %v489_v58  ;;  %v618_v61 = vadd.f32 %v1117_v36, %v617_v59 }
  0xfe   :  { %v869_v62 = vpop.f32.mrf.mxu0  ;;  %v901_v63 = vpop.f32.mrf.mxu1 }
  0xff   :  { %685 = vst.msk [vmem:[%s1442_s3 + $0xa0] sm:$0xff] %vm664_vm1, %v490_v60  ;;  %717 = vst.msk [vmem:[%s1442_s3 + $0x1a0] sm:$0xff] %vm664_vm1, %v618_v61  ;;  %v501_v0 = vadd.f32 %v869_v62, %v1117_v36  ;;  %v629_v1 = vadd.f32 %v901_v63, %v1117_v36 }
 0x100   :  { %v492_v2 = vpop.f32.mrf.mxu0  ;;  %v620_v3 = vpop.f32.mrf.mxu1 }
 0x101   :  { %688 = vst.msk [vmem:[%s1442_s3 + $0xb8] sm:$0xff] %vm664_vm1, %v501_v0  ;;  %720 = vst.msk [vmem:[%s1442_s3 + $0x1b8] sm:$0xff] %vm664_vm1, %v629_v1  ;;  %v493_v4 = vadd.f32 %v1117_v36, %v492_v2  ;;  %v621_v5 = vadd.f32 %v1117_v36, %v620_v3 }
 0x102   :  { %v872_v6 = vpop.f32.mrf.mxu0  ;;  %v904_v7 = vpop.f32.mrf.mxu1 }
 0x103   :  { %686 = vst.msk [vmem:[%s1442_s3 + $0xa8] sm:$0xff] %vm664_vm1, %v493_v4  ;;  %718 = vst.msk [vmem:[%s1442_s3 + $0x1a8] sm:$0xff] %vm664_vm1, %v621_v5  ;;  %v514_v8 = vadd.f32 %v872_v6, %v1117_v36  ;;  %v642_v9 = vadd.f32 %v904_v7, %v1117_v36 }
 0x104   :  { %v505_v10 = vpop.f32.mrf.mxu0  ;;  %v633_v11 = vpop.f32.mrf.mxu1 }
 0x105   :  { %691 = vst.msk [vmem:[%s1442_s3 + $0xd0] sm:$0xff] %vm664_vm1, %v514_v8  ;;  %723 = vst.msk [vmem:[%s1442_s3 + $0x1d0] sm:$0xff] %vm664_vm1, %v642_v9  ;;  %v506_v12 = vadd.f32 %v1117_v36, %v505_v10  ;;  %v634_v13 = vadd.f32 %v1117_v36, %v633_v11 }
 0x106   :  { %v873_v14 = vpop.f32.mrf.mxu0  ;;  %v905_v15 = vpop.f32.mrf.mxu1 }
 0x107   :  { %689 = vst.msk [vmem:[%s1442_s3 + $0xc0] sm:$0xff] %vm664_vm1, %v506_v12  ;;  %721 = vst.msk [vmem:[%s1442_s3 + $0x1c0] sm:$0xff] %vm664_vm1, %v634_v13  ;;  %v517_v16 = vadd.f32 %v873_v14, %v1117_v36  ;;  %v645_v17 = vadd.f32 %v905_v15, %v1117_v36 }
 0x108   :  { %v508_v18 = vpop.f32.mrf.mxu0  ;;  %v636_v19 = vpop.f32.mrf.mxu1 }
 0x109   :  { %692 = vst.msk [vmem:[%s1442_s3 + $0xd8] sm:$0xff] %vm664_vm1, %v517_v16  ;;  %724 = vst.msk [vmem:[%s1442_s3 + $0x1d8] sm:$0xff] %vm664_vm1, %v645_v17  ;;  %v509_v20 = vadd.f32 %v1117_v36, %v508_v18  ;;  %v637_v21 = vadd.f32 %v1117_v36, %v636_v19 }
 0x10a   :  { %v876_v22 = vpop.f32.mrf.mxu0  ;;  %v908_v23 = vpop.f32.mrf.mxu1 }
 0x10b   :  { %690 = vst.msk [vmem:[%s1442_s3 + $0xc8] sm:$0xff] %vm664_vm1, %v509_v20  ;;  %722 = vst.msk [vmem:[%s1442_s3 + $0x1c8] sm:$0xff] %vm664_vm1, %v637_v21  ;;  %v530_v24 = vadd.f32 %v876_v22, %v1117_v36  ;;  %v658_v25 = vadd.f32 %v908_v23, %v1117_v36 }
 0x10c   :  { %v521_v26 = vpop.f32.mrf.mxu0  ;;  %v649_v27 = vpop.f32.mrf.mxu1 }
 0x10d   :  { %695 = vst.msk [vmem:[%s1442_s3 + $0xf0] sm:$0xff] %vm664_vm1, %v530_v24  ;;  %727 = vst.msk [vmem:[%s1442_s3 + $0x1f0] sm:$0xff] %vm664_vm1, %v658_v25  ;;  %v522_v28 = vadd.f32 %v1117_v36, %v521_v26  ;;  %v650_v29 = vadd.f32 %v1117_v36, %v649_v27 }
 0x10e   :  { %v877_v30 = vpop.f32.mrf.mxu0  ;;  %v909_v31 = vpop.f32.mrf.mxu1 }
 0x10f   :  { %693 = vst.msk [vmem:[%s1442_s3 + $0xe0] sm:$0xff] %vm664_vm1, %v522_v28  ;;  %725 = vst.msk [vmem:[%s1442_s3 + $0x1e0] sm:$0xff] %vm664_vm1, %v650_v29  ;;  %v533_v32 = vadd.f32 %v877_v30, %v1117_v36  ;;  %v661_v33 = vadd.f32 %v909_v31, %v1117_v36 }
 0x110   :  { %v524_v34 = vpop.f32.mrf.mxu0  ;;  %v652_v35 = vpop.f32.mrf.mxu1 }
 0x111   :  { %696 = vst.msk [vmem:[%s1442_s3 + $0xf8] sm:$0xff] %vm664_vm1, %v533_v32  ;;  %728 = vst.msk [vmem:[%s1442_s3 + $0x1f8] sm:$0xff] %vm664_vm1, %v661_v33  ;;  %v525_v37 = vadd.f32 %v1117_v36, %v524_v34  ;;  %v653_v38 = vadd.f32 %v1117_v36, %v652_v35 }
 0x113   :  { %694 = vst.msk [vmem:[%s1442_s3 + $0xe8] sm:$0xff] %vm664_vm1, %v525_v37  ;;  %726 = vst.msk [vmem:[%s1442_s3 + $0x1e8] sm:$0xff] %vm664_vm1, %v653_v38 }

</bundles_post_ra>
